<compile_context>
chip_gen: v7x
topology: tpu7x:2x2x1
jax: 0.10.0
libtpu: 0.0.40
codegen_flags: <defaults>
</compile_context>

<pallas_src>
import jax
import jax.numpy as jnp
from jax.experimental import pallas as pl
from jax.experimental.pallas import tpu as pltpu

# ----------------------------- fused conv stack --------------------------------
M1, M2, M3 = 400, 344, 256       # matmul rows computed per layer (multiples of 8)
H1_ROWS = 408                    # conv2 reads h1 rows up to 63 + 343 = 406
H2_ROWS = 344                    # conv3 reads h2 rows up to 84 + 255 = 339
K1_OFFS = (0, 128)                                        # conv1 K = 8*8*4 = 256
K2_OFFS = tuple(20 * i + j for i in range(4) for j in range(4))      # conv2 taps
K3_OFFS = tuple(40 * i + 2 * j for i in range(3) for j in range(3))  # conv3 taps
OUT_IDX = tuple(40 * oh + 2 * ow for oh in range(7) for ow in range(7))


def _m_chunks(m, cap=256):
    """Split m rows into <=cap chunks (all chunk sizes are multiples of 8 here)."""
    out, off = [], 0
    while off < m:
        size = min(cap, m - off)
        out.append((off, size))
        off += size
    return out


def _fused_conv_kernel(p1_ref, w1_ref, b1_ref, w2_ref, b2_ref, w3_ref, b3_ref,
                       out_ref, h1_ref, h2_ref):
    # Keep the read-overrun tail of the h1 scratch deterministic (it only ever
    # feeds rows that are discarded, but zero it for hygiene -- 1 tiny store).
    h1_ref[pl.ds(M1, H1_ROWS - M1), :] = jnp.zeros(
        (H1_ROWS - M1, 128), h1_ref.dtype)

    def run_layer(read_piece, w_ref, b_ref, write_out, m_rows, k_offsets):
        bias = b_ref[...]                                   # (1, N) f32
        n = bias.shape[-1]
        for mo, ml in _m_chunks(m_rows):
            acc = jnp.zeros((ml, n), jnp.float32)
            for ki, koff in enumerate(k_offsets):
                piece = read_piece(mo, ml, koff)            # (ml, 128) bf16
                wk = w_ref[pl.ds(ki * 128, 128), :]         # (128, N) bf16
                acc = acc + jnp.dot(piece, wk,
                                    preferred_element_type=jnp.float32)
            write_out(mo, ml, jnp.maximum(acc + bias, 0.0))

    # conv1: uint8 patches (400, 256) -> h1 (400, 128) bf16 in VMEM scratch.
    def read1(mo, ml, koff):
        x = p1_ref[pl.ds(mo, ml), pl.ds(koff, 128)]
        return x.astype(jnp.float32).astype(jnp.bfloat16)   # 0..255 exact in bf16

    def write1(mo, ml, val):
        h1_ref[pl.ds(mo, ml), :] = val.astype(h1_ref.dtype)

    run_layer(read1, w1_ref, b1_ref, write1, M1, K1_OFFS)

    # conv2: offset row-slices of h1 -> h2 (344, 128) bf16 in VMEM scratch.
    def read2(mo, ml, koff):
        return h1_ref[pl.ds(mo + koff, ml), :]

    def write2(mo, ml, val):
        h2_ref[pl.ds(mo, ml), :] = val.astype(h2_ref.dtype)

    run_layer(read2, w2_ref, b2_ref, write2, M2, K2_OFFS)

    # conv3: offset row-slices of h2 -> kernel output (256, 64) bf16.
    def read3(mo, ml, koff):
        return h2_ref[pl.ds(mo + koff, ml), :]

    def write3(mo, ml, val):
        out_ref[pl.ds(mo, ml), :] = val.astype(out_ref.dtype)

    run_layer(read3, w3_ref, b3_ref, write3, M3, K3_OFFS)


def fused_convs(p1, w1, b1, w2, b2, w3, b3):
    B = p1.shape[0]
    flops = 2 * B * (M1 * 256 * 128 + M2 * 2048 * 128 + M3 * 1152 * 64)
    bytes_accessed = (B * (M1 * 256 + M3 * 64 * 2)
                      + 2 * (w1.size + w2.size + w3.size)
                      + 4 * (b1.size + b2.size + b3.size))
    return pl.pallas_call(
        _fused_conv_kernel,
        out_shape=jax.ShapeDtypeStruct((B, M3, 64), jnp.bfloat16),
        grid=(B,),
        in_specs=[
            pl.BlockSpec((None, M1, 256), lambda b: (b, 0, 0)),   # uint8 patches
            pl.BlockSpec((256, 128), lambda b: (0, 0)),           # w1 (resident)
            pl.BlockSpec((1, 128), lambda b: (0, 0)),             # b1
            pl.BlockSpec((2048, 128), lambda b: (0, 0)),          # w2 (resident)
            pl.BlockSpec((1, 128), lambda b: (0, 0)),             # b2
            pl.BlockSpec((1152, 64), lambda b: (0, 0)),           # w3 (resident)
            pl.BlockSpec((1, 64), lambda b: (0, 0)),              # b3
        ],
        out_specs=pl.BlockSpec((None, M3, 64), lambda b: (b, 0, 0)),
        scratch_shapes=[
            pltpu.VMEM((H1_ROWS, 128), jnp.bfloat16),              # h1
            pltpu.VMEM((H2_ROWS, 128), jnp.bfloat16),              # h2
        ],
        compiler_params=pltpu.CompilerParams(
            dimension_semantics=("parallel",)),
        cost_estimate=pl.CostEstimate(flops=flops, transcendentals=0,
                                      bytes_accessed=bytes_accessed),
    )(p1, w1, b1, w2, b2, w3, b3)


# ------------------------------ final Linear -----------------------------------
def _linear_kernel(x_ref, w_ref, b_ref, o_ref):
    acc = jnp.dot(x_ref[...], w_ref[...], preferred_element_type=jnp.float32)
    o_ref[...] = (acc + b_ref[...]).astype(o_ref.dtype)


def linear(x, w, b, out_dtype=jnp.float32):
    M, K = x.shape
    Kw, N = w.shape
    assert K == Kw
    # Single N block: the (K, N) weight block index is constant across the grid,
    # so it is DMA'd once and stays VMEM-resident (no per-M-block re-DMA).
    bm = M if M <= 256 else 256
    flops = 2 * M * K * N
    bytes_accessed = M * K * 2 + K * N * 2 + M * N * 4 + N * 4
    return pl.pallas_call(
        _linear_kernel,
        out_shape=jax.ShapeDtypeStruct((M, N), out_dtype),
        grid=(pl.cdiv(M, bm),),
        in_specs=[
            pl.BlockSpec((bm, K), lambda i: (i, 0)),
            pl.BlockSpec((K, N), lambda i: (0, 0)),
            pl.BlockSpec((1, N), lambda i: (0, 0)),
        ],
        out_specs=pl.BlockSpec((bm, N), lambda i: (i, 0)),
        compiler_params=pltpu.CompilerParams(
            dimension_semantics=("parallel",)),
        cost_estimate=pl.CostEstimate(flops=flops, transcendentals=0,
                                      bytes_accessed=bytes_accessed),
    )(x, w, b)


# ------------------------- one-time weight preparation --------------------------
def prep_params(params):
    """Run ONCE, outside the jitted forward (hoisted per perf review)."""
    # conv1 (32, 4, 8, 8): fold /255, K in (kh, kw, ic) order, pad OC 32 -> 128.
    w1 = jnp.transpose(params["w1"], (2, 3, 1, 0)).reshape(8 * 8 * 4, 32)
    w1 = jnp.pad(w1 * (1.0 / 255.0), ((0, 0), (0, 96))).astype(jnp.bfloat16)
    b1 = jnp.pad(params["b1"], (0, 96)).astype(jnp.float32).reshape(1, -1)
    # conv2 (64, 32, 4, 4): pad IC 32 -> 128 (zero rows), pad OC 64 -> 128.
    w2 = jnp.transpose(params["w2"], (2, 3, 1, 0))             # (4,4,32,64)
    w2 = jnp.pad(w2, ((0, 0), (0, 0), (0, 96), (0, 64)))
    w2 = w2.reshape(4 * 4 * 128, 128).astype(jnp.bfloat16)
    b2 = jnp.pad(params["b2"], (0, 64)).astype(jnp.float32).reshape(1, -1)
    # conv3 (64, 64, 3, 3): pad IC 64 -> 128, keep the 64 real output channels.
    w3 = jnp.transpose(params["w3"], (2, 3, 1, 0))             # (3,3,64,64)
    w3 = jnp.pad(w3, ((0, 0), (0, 0), (0, 64), (0, 0)))
    w3 = w3.reshape(3 * 3 * 128, 64).astype(jnp.bfloat16)
    b3 = params["b3"].astype(jnp.float32).reshape(1, -1)
    # Linear (512, 3136): torch flatten order c*49 + h*7 + w -> (h, w, c), no pad.
    wl = params["wl"].reshape(512, 64, 7, 7).transpose(0, 2, 3, 1)
    wl = wl.reshape(512, 3136).T.astype(jnp.bfloat16)
    bl = params["bl"].astype(jnp.float32).reshape(1, -1)
    return dict(w1=w1, b1=b1, w2=w2, b2=b2, w3=w3, b3=b3, wl=wl, bl=bl)


# ----------------------------- model definition --------------------------------
def init_params(key):
    def uniform(k, shape, fan_in):
        bound = 1.0 / float(fan_in) ** 0.5
        return jax.random.uniform(k, shape, jnp.float32, -bound, bound)

    ks = jax.random.split(key, 8)
    return {
        "w1": uniform(ks[0], (32, 4, 8, 8), 4 * 8 * 8),
        "b1": uniform(ks[1], (32,), 4 * 8 * 8),
        "w2": uniform(ks[2], (64, 32, 4, 4), 32 * 4 * 4),
        "b2": uniform(ks[3], (64,), 32 * 4 * 4),
        "w3": uniform(ks[4], (64, 64, 3, 3), 64 * 3 * 3),
        "b3": uniform(ks[5], (64,), 64 * 3 * 3),
        "wl": uniform(ks[6], (512, 3136), 3136),
        "bl": uniform(ks[7], (512,), 3136),
    }


def cnn_encoder(prepped, x):
    """Forward pass; `prepped` = prep_params(params) computed once outside jit."""
    assert x.shape[1:] == (4, 84, 84), f"Bad observation shape: {x.shape}"
    assert x.dtype == jnp.uint8
    B = x.shape[0]
    xh = jnp.transpose(x, (0, 2, 3, 1))                        # (B,84,84,4) u8
    # conv1 im2col on the uint8 input (tiny XLA glue, ~100 KiB/image): rows in
    # (oh, ow) order, K in (kh, kw, c) order -- matches the prepped w1.
    cols = [xh[:, i:i + 77:4, j:j + 77:4, :]
            for i in range(8) for j in range(8)]
    p1 = jnp.concatenate(cols, axis=-1).reshape(B, 400, 256)
    # TODO(synk): process >1 image per grid step (batch tile) to amortize the
    # ~0.35us per-step overhead at very large batch, and optionally fold the
    # final Linear into the fused kernel too.
    h3 = fused_convs(p1, prepped["w1"], prepped["b1"], prepped["w2"],
                     prepped["b2"], prepped["w3"], prepped["b3"])  # (B,256,64)
    # Keep the 49 valid conv3 rows (row = 40*oh + 2*ow) and flatten (h, w, c).
    idx = jnp.asarray(OUT_IDX, dtype=jnp.int32)
    flat = jnp.take(h3, idx, axis=1).reshape(B, 49 * 64)          # (B, 3136)
    return linear(flat, prepped["wl"], prepped["bl"])             # (B, 512) f32


# ----------------------------- pure-JAX reference ------------------------------
def reference(params, x):
    hp = jax.lax.Precision.HIGHEST
    dn = ("NCHW", "OIHW", "NCHW")
    h = x.astype(jnp.float32) / 255.0
    h = jax.lax.conv_general_dilated(h, params["w1"], (4, 4), "VALID",
                                     dimension_numbers=dn, precision=hp)
    h = jnp.maximum(h + params["b1"][None, :, None, None], 0.0)
    h = jax.lax.conv_general_dilated(h, params["w2"], (2, 2), "VALID",
                                     dimension_numbers=dn, precision=hp)
    h = jnp.maximum(h + params["b2"][None, :, None, None], 0.0)
    h = jax.lax.conv_general_dilated(h, params["w3"], (1, 1), "VALID",
                                     dimension_numbers=dn, precision=hp)
    h = jnp.maximum(h + params["b3"][None, :, None, None], 0.0)
    flat = h.reshape(h.shape[0], -1)
    return jnp.dot(flat, params["wl"].T, precision=hp) + params["bl"]


if __name__ == "__main__":
    key = jax.random.PRNGKey(0)
    kx, kp = jax.random.split(key)
    B = 2  # batch; channels/spatial are fixed at (4, 84, 84) by the module
    x = jax.random.randint(kx, (B, 4, 84, 84), 0, 256,
                           dtype=jnp.int32).astype(jnp.uint8)
    params = init_params(kp)

    prepped = prep_params(params)          # one-time weight prep (hoisted)
    encode = jax.jit(cnn_encoder)
    y = jax.block_until_ready(encode(prepped, x))
    assert y.shape == (B, 512) and y.dtype == jnp.float32

    y_ref = reference(params, x)
    err = float(jnp.max(jnp.abs(y - y_ref)))
    assert jnp.allclose(y, y_ref, atol=2e-2, rtol=2e-2), f"max abs err {err}"
    print("KERNEL_OK")
</pallas_src>

<mosaic_0001>
module attributes {stable_mosaic.version = 11 : i64} {
  func.func @_fused_conv_kernel(%arg0: i32, %arg1: memref<1x400x256xi8, #tpu.memory_space<vmem>>, %arg2: memref<256x128xbf16, #tpu.memory_space<vmem>>, %arg3: memref<1x128xf32, #tpu.memory_space<vmem>>, %arg4: memref<2048x128xbf16, #tpu.memory_space<vmem>>, %arg5: memref<1x128xf32, #tpu.memory_space<vmem>>, %arg6: memref<1152x64xbf16, #tpu.memory_space<vmem>>, %arg7: memref<1x64xf32, #tpu.memory_space<vmem>>, %arg8: memref<1x256x64xbf16, #tpu.memory_space<vmem>>, %arg9: memref<408x128xbf16, #tpu.memory_space<vmem>>, %arg10: memref<344x128xbf16, #tpu.memory_space<vmem>>) attributes {dimension_semantics = [#tpu.dimension_semantics<parallel>], iteration_bounds = array<i64: 2>, scalar_prefetch = 0 : i64, scratch_operands = 2 : i64, tpu.core_type = #tpu.core_type<tc>, window_params = [{transform_indices = @transform_0, window_bounds = array<i64: 1, 400, 256>}, {pipeline_mode = #tpu.pipeline_mode<synchronous>, transform_indices = @transform_1, window_bounds = array<i64: 256, 128>}, {pipeline_mode = #tpu.pipeline_mode<synchronous>, transform_indices = @transform_2, window_bounds = array<i64: 1, 128>}, {pipeline_mode = #tpu.pipeline_mode<synchronous>, transform_indices = @transform_3, window_bounds = array<i64: 2048, 128>}, {pipeline_mode = #tpu.pipeline_mode<synchronous>, transform_indices = @transform_4, window_bounds = array<i64: 1, 128>}, {pipeline_mode = #tpu.pipeline_mode<synchronous>, transform_indices = @transform_5, window_bounds = array<i64: 1152, 64>}, {pipeline_mode = #tpu.pipeline_mode<synchronous>, transform_indices = @transform_6, window_bounds = array<i64: 1, 64>}, {transform_indices = @transform_7, window_bounds = array<i64: 1, 256, 64>}]} {
    %cst = arith.constant 0.000000e+00 : bf16
    %0 = vector.broadcast %cst : bf16 to vector<8x128xbf16>
    %c400 = arith.constant 400 : index
    %c0 = arith.constant 0 : index
    %1 = vector.load %arg9[%c400, %c0] : memref<408x128xbf16, #tpu.memory_space<vmem>>, vector<8x128xbf16>
    tpu.vector_store %arg9[%c400, %c0], %0 {strides = array<i32>} : memref<408x128xbf16, #tpu.memory_space<vmem>>, vector<8x128xbf16>,
    %c0_0 = arith.constant 0 : index
    %c0_1 = arith.constant 0 : index
    %2 = vector.load %arg3[%c0_0, %c0_1] : memref<1x128xf32, #tpu.memory_space<vmem>>, vector<1x128xf32>
    %cst_2 = arith.constant 0.000000e+00 : f32
    %3 = vector.broadcast %cst_2 : f32 to vector<256x128xf32>
    %c0_3 = arith.constant 0 : index
    %c0_4 = arith.constant 0 : index
    %c0_5 = arith.constant 0 : index
    %4 = vector.load %arg1[%c0_3, %c0_4, %c0_5] : memref<1x400x256xi8, #tpu.memory_space<vmem>>, vector<1x256x128xi8>
    %5 = vector.shape_cast %4 : vector<1x256x128xi8> to vector<256x128xi8>
    %6 = arith.uitofp %5 : vector<256x128xi8> to vector<256x128xf32>
    %7 = arith.truncf %6 : vector<256x128xf32> to vector<256x128xbf16>
    %c0_6 = arith.constant 0 : index
    %c0_7 = arith.constant 0 : index
    %8 = vector.load %arg2[%c0_6, %c0_7] : memref<256x128xbf16, #tpu.memory_space<vmem>>, vector<128x128xbf16>
    %cst_8 = arith.constant dense<0.000000e+00> : vector<256x128xf32>
    %9 = tpu.matmul %7, %8, %cst_8 {dimension_numbers = #tpu.dot_dimension_numbers<[1], [0], [0], [1], [0, 0, 1, 1], [], []>} : vector<256x128xbf16>, vector<128x128xbf16>, vector<256x128xf32> -> vector<256x128xf32>
    %10 = arith.addf %3, %9 : vector<256x128xf32>
    %c0_9 = arith.constant 0 : index
    %c0_10 = arith.constant 0 : index
    %c128 = arith.constant 128 : index
    %11 = vector.load %arg1[%c0_9, %c0_10, %c128] : memref<1x400x256xi8, #tpu.memory_space<vmem>>, vector<1x256x128xi8>
    %12 = vector.shape_cast %11 : vector<1x256x128xi8> to vector<256x128xi8>
    %13 = arith.uitofp %12 : vector<256x128xi8> to vector<256x128xf32>
    %14 = arith.truncf %13 : vector<256x128xf32> to vector<256x128xbf16>
    %c128_11 = arith.constant 128 : index
    %c0_12 = arith.constant 0 : index
    %15 = vector.load %arg2[%c128_11, %c0_12] : memref<256x128xbf16, #tpu.memory_space<vmem>>, vector<128x128xbf16>
    %cst_13 = arith.constant dense<0.000000e+00> : vector<256x128xf32>
    %16 = tpu.matmul %14, %15, %cst_13 {dimension_numbers = #tpu.dot_dimension_numbers<[1], [0], [0], [1], [0, 0, 1, 1], [], []>} : vector<256x128xbf16>, vector<128x128xbf16>, vector<256x128xf32> -> vector<256x128xf32>
    %17 = arith.addf %10, %16 : vector<256x128xf32>
    %18 = vector.broadcast %2 : vector<1x128xf32> to vector<256x128xf32>
    %19 = arith.addf %17, %18 : vector<256x128xf32>
    %cst_14 = arith.constant 0.000000e+00 : f32
    %20 = vector.broadcast %cst_14 : f32 to vector<256x128xf32>
    %21 = arith.maximumf %19, %20 : vector<256x128xf32>
    %22 = arith.truncf %21 : vector<256x128xf32> to vector<256x128xbf16>
    %c0_15 = arith.constant 0 : index
    %c0_16 = arith.constant 0 : index
    %23 = vector.load %arg9[%c0_15, %c0_16] : memref<408x128xbf16, #tpu.memory_space<vmem>>, vector<256x128xbf16>
    tpu.vector_store %arg9[%c0_15, %c0_16], %22 {strides = array<i32>} : memref<408x128xbf16, #tpu.memory_space<vmem>>, vector<256x128xbf16>,
    %cst_17 = arith.constant 0.000000e+00 : f32
    %24 = vector.broadcast %cst_17 : f32 to vector<144x128xf32>
    %c0_18 = arith.constant 0 : index
    %c256 = arith.constant 256 : index
    %c0_19 = arith.constant 0 : index
    %25 = vector.load %arg1[%c0_18, %c256, %c0_19] : memref<1x400x256xi8, #tpu.memory_space<vmem>>, vector<1x144x128xi8>
    %26 = vector.shape_cast %25 : vector<1x144x128xi8> to vector<144x128xi8>
    %27 = arith.uitofp %26 : vector<144x128xi8> to vector<144x128xf32>
    %28 = arith.truncf %27 : vector<144x128xf32> to vector<144x128xbf16>
    %c0_20 = arith.constant 0 : index
    %c0_21 = arith.constant 0 : index
    %29 = vector.load %arg2[%c0_20, %c0_21] : memref<256x128xbf16, #tpu.memory_space<vmem>>, vector<128x128xbf16>
    %cst_22 = arith.constant dense<0.000000e+00> : vector<144x128xf32>
    %30 = tpu.matmul %28, %29, %cst_22 {dimension_numbers = #tpu.dot_dimension_numbers<[1], [0], [0], [1], [0, 0, 1, 1], [], []>} : vector<144x128xbf16>, vector<128x128xbf16>, vector<144x128xf32> -> vector<144x128xf32>
    %31 = arith.addf %24, %30 : vector<144x128xf32>
    %c0_23 = arith.constant 0 : index
    %c256_24 = arith.constant 256 : index
    %c128_25 = arith.constant 128 : index
    %32 = vector.load %arg1[%c0_23, %c256_24, %c128_25] : memref<1x400x256xi8, #tpu.memory_space<vmem>>, vector<1x144x128xi8>
    %33 = vector.shape_cast %32 : vector<1x144x128xi8> to vector<144x128xi8>
    %34 = arith.uitofp %33 : vector<144x128xi8> to vector<144x128xf32>
    %35 = arith.truncf %34 : vector<144x128xf32> to vector<144x128xbf16>
    %c128_26 = arith.constant 128 : index
    %c0_27 = arith.constant 0 : index
    %36 = vector.load %arg2[%c128_26, %c0_27] : memref<256x128xbf16, #tpu.memory_space<vmem>>, vector<128x128xbf16>
    %cst_28 = arith.constant dense<0.000000e+00> : vector<144x128xf32>
    %37 = tpu.matmul %35, %36, %cst_28 {dimension_numbers = #tpu.dot_dimension_numbers<[1], [0], [0], [1], [0, 0, 1, 1], [], []>} : vector<144x128xbf16>, vector<128x128xbf16>, vector<144x128xf32> -> vector<144x128xf32>
    %38 = arith.addf %31, %37 : vector<144x128xf32>
    %39 = vector.broadcast %2 : vector<1x128xf32> to vector<144x128xf32>
    %40 = arith.addf %38, %39 : vector<144x128xf32>
    %cst_29 = arith.constant 0.000000e+00 : f32
    %41 = vector.broadcast %cst_29 : f32 to vector<144x128xf32>
    %42 = arith.maximumf %40, %41 : vector<144x128xf32>
    %43 = arith.truncf %42 : vector<144x128xf32> to vector<144x128xbf16>
    %c256_30 = arith.constant 256 : index
    %c0_31 = arith.constant 0 : index
    %44 = vector.load %arg9[%c256_30, %c0_31] : memref<408x128xbf16, #tpu.memory_space<vmem>>, vector<144x128xbf16>
    tpu.vector_store %arg9[%c256_30, %c0_31], %43 {strides = array<i32>} : memref<408x128xbf16, #tpu.memory_space<vmem>>, vector<144x128xbf16>,
    %c0_32 = arith.constant 0 : index
    %c0_33 = arith.constant 0 : index
    %45 = vector.load %arg5[%c0_32, %c0_33] : memref<1x128xf32, #tpu.memory_space<vmem>>, vector<1x128xf32>
    %cst_34 = arith.constant 0.000000e+00 : f32
    %46 = vector.broadcast %cst_34 : f32 to vector<256x128xf32>
    %c0_35 = arith.constant 0 : index
    %c0_36 = arith.constant 0 : index
    %47 = vector.load %arg9[%c0_35, %c0_36] : memref<408x128xbf16, #tpu.memory_space<vmem>>, vector<256x128xbf16>
    %c0_37 = arith.constant 0 : index
    %c0_38 = arith.constant 0 : index
    %48 = vector.load %arg4[%c0_37, %c0_38] : memref<2048x128xbf16, #tpu.memory_space<vmem>>, vector<128x128xbf16>
    %cst_39 = arith.constant dense<0.000000e+00> : vector<256x128xf32>
    %49 = tpu.matmul %47, %48, %cst_39 {dimension_numbers = #tpu.dot_dimension_numbers<[1], [0], [0], [1], [0, 0, 1, 1], [], []>} : vector<256x128xbf16>, vector<128x128xbf16>, vector<256x128xf32> -> vector<256x128xf32>
    %50 = arith.addf %46, %49 : vector<256x128xf32>
    %c1 = arith.constant 1 : index
    %c0_40 = arith.constant 0 : index
    %51 = vector.load %arg9[%c1, %c0_40] : memref<408x128xbf16, #tpu.memory_space<vmem>>, vector<256x128xbf16>
    %c128_41 = arith.constant 128 : index
    %c0_42 = arith.constant 0 : index
    %52 = vector.load %arg4[%c128_41, %c0_42] : memref<2048x128xbf16, #tpu.memory_space<vmem>>, vector<128x128xbf16>
    %cst_43 = arith.constant dense<0.000000e+00> : vector<256x128xf32>
    %53 = tpu.matmul %51, %52, %cst_43 {dimension_numbers = #tpu.dot_dimension_numbers<[1], [0], [0], [1], [0, 0, 1, 1], [], []>} : vector<256x128xbf16>, vector<128x128xbf16>, vector<256x128xf32> -> vector<256x128xf32>
    %54 = arith.addf %50, %53 : vector<256x128xf32>
    %c2 = arith.constant 2 : index
    %c0_44 = arith.constant 0 : index
    %55 = vector.load %arg9[%c2, %c0_44] : memref<408x128xbf16, #tpu.memory_space<vmem>>, vector<256x128xbf16>
    %c256_45 = arith.constant 256 : index
    %c0_46 = arith.constant 0 : index
    %56 = vector.load %arg4[%c256_45, %c0_46] : memref<2048x128xbf16, #tpu.memory_space<vmem>>, vector<128x128xbf16>
    %cst_47 = arith.constant dense<0.000000e+00> : vector<256x128xf32>
    %57 = tpu.matmul %55, %56, %cst_47 {dimension_numbers = #tpu.dot_dimension_numbers<[1], [0], [0], [1], [0, 0, 1, 1], [], []>} : vector<256x128xbf16>, vector<128x128xbf16>, vector<256x128xf32> -> vector<256x128xf32>
    %58 = arith.addf %54, %57 : vector<256x128xf32>
    %c3 = arith.constant 3 : index
    %c0_48 = arith.constant 0 : index
    %59 = vector.load %arg9[%c3, %c0_48] : memref<408x128xbf16, #tpu.memory_space<vmem>>, vector<256x128xbf16>
    %c384 = arith.constant 384 : index
    %c0_49 = arith.constant 0 : index
    %60 = vector.load %arg4[%c384, %c0_49] : memref<2048x128xbf16, #tpu.memory_space<vmem>>, vector<128x128xbf16>
    %cst_50 = arith.constant dense<0.000000e+00> : vector<256x128xf32>
    %61 = tpu.matmul %59, %60, %cst_50 {dimension_numbers = #tpu.dot_dimension_numbers<[1], [0], [0], [1], [0, 0, 1, 1], [], []>} : vector<256x128xbf16>, vector<128x128xbf16>, vector<256x128xf32> -> vector<256x128xf32>
    %62 = arith.addf %58, %61 : vector<256x128xf32>
    %c20 = arith.constant 20 : index
    %c0_51 = arith.constant 0 : index
    %63 = vector.load %arg9[%c20, %c0_51] : memref<408x128xbf16, #tpu.memory_space<vmem>>, vector<256x128xbf16>
    %c512 = arith.constant 512 : index
    %c0_52 = arith.constant 0 : index
    %64 = vector.load %arg4[%c512, %c0_52] : memref<2048x128xbf16, #tpu.memory_space<vmem>>, vector<128x128xbf16>
    %cst_53 = arith.constant dense<0.000000e+00> : vector<256x128xf32>
    %65 = tpu.matmul %63, %64, %cst_53 {dimension_numbers = #tpu.dot_dimension_numbers<[1], [0], [0], [1], [0, 0, 1, 1], [], []>} : vector<256x128xbf16>, vector<128x128xbf16>, vector<256x128xf32> -> vector<256x128xf32>
    %66 = arith.addf %62, %65 : vector<256x128xf32>
    %c21 = arith.constant 21 : index
    %c0_54 = arith.constant 0 : index
    %67 = vector.load %arg9[%c21, %c0_54] : memref<408x128xbf16, #tpu.memory_space<vmem>>, vector<256x128xbf16>
    %c640 = arith.constant 640 : index
    %c0_55 = arith.constant 0 : index
    %68 = vector.load %arg4[%c640, %c0_55] : memref<2048x128xbf16, #tpu.memory_space<vmem>>, vector<128x128xbf16>
    %cst_56 = arith.constant dense<0.000000e+00> : vector<256x128xf32>
    %69 = tpu.matmul %67, %68, %cst_56 {dimension_numbers = #tpu.dot_dimension_numbers<[1], [0], [0], [1], [0, 0, 1, 1], [], []>} : vector<256x128xbf16>, vector<128x128xbf16>, vector<256x128xf32> -> vector<256x128xf32>
    %70 = arith.addf %66, %69 : vector<256x128xf32>
    %c22 = arith.constant 22 : index
    %c0_57 = arith.constant 0 : index
    %71 = vector.load %arg9[%c22, %c0_57] : memref<408x128xbf16, #tpu.memory_space<vmem>>, vector<256x128xbf16>
    %c768 = arith.constant 768 : index
    %c0_58 = arith.constant 0 : index
    %72 = vector.load %arg4[%c768, %c0_58] : memref<2048x128xbf16, #tpu.memory_space<vmem>>, vector<128x128xbf16>
    %cst_59 = arith.constant dense<0.000000e+00> : vector<256x128xf32>
    %73 = tpu.matmul %71, %72, %cst_59 {dimension_numbers = #tpu.dot_dimension_numbers<[1], [0], [0], [1], [0, 0, 1, 1], [], []>} : vector<256x128xbf16>, vector<128x128xbf16>, vector<256x128xf32> -> vector<256x128xf32>
    %74 = arith.addf %70, %73 : vector<256x128xf32>
    %c23 = arith.constant 23 : index
    %c0_60 = arith.constant 0 : index
    %75 = vector.load %arg9[%c23, %c0_60] : memref<408x128xbf16, #tpu.memory_space<vmem>>, vector<256x128xbf16>
    %c896 = arith.constant 896 : index
    %c0_61 = arith.constant 0 : index
    %76 = vector.load %arg4[%c896, %c0_61] : memref<2048x128xbf16, #tpu.memory_space<vmem>>, vector<128x128xbf16>
    %cst_62 = arith.constant dense<0.000000e+00> : vector<256x128xf32>
    %77 = tpu.matmul %75, %76, %cst_62 {dimension_numbers = #tpu.dot_dimension_numbers<[1], [0], [0], [1], [0, 0, 1, 1], [], []>} : vector<256x128xbf16>, vector<128x128xbf16>, vector<256x128xf32> -> vector<256x128xf32>
    %78 = arith.addf %74, %77 : vector<256x128xf32>
    %c40 = arith.constant 40 : index
    %c0_63 = arith.constant 0 : index
    %79 = vector.load %arg9[%c40, %c0_63] : memref<408x128xbf16, #tpu.memory_space<vmem>>, vector<256x128xbf16>
    %c1024 = arith.constant 1024 : index
    %c0_64 = arith.constant 0 : index
    %80 = vector.load %arg4[%c1024, %c0_64] : memref<2048x128xbf16, #tpu.memory_space<vmem>>, vector<128x128xbf16>
    %cst_65 = arith.constant dense<0.000000e+00> : vector<256x128xf32>
    %81 = tpu.matmul %79, %80, %cst_65 {dimension_numbers = #tpu.dot_dimension_numbers<[1], [0], [0], [1], [0, 0, 1, 1], [], []>} : vector<256x128xbf16>, vector<128x128xbf16>, vector<256x128xf32> -> vector<256x128xf32>
    %82 = arith.addf %78, %81 : vector<256x128xf32>
    %c41 = arith.constant 41 : index
    %c0_66 = arith.constant 0 : index
    %83 = vector.load %arg9[%c41, %c0_66] : memref<408x128xbf16, #tpu.memory_space<vmem>>, vector<256x128xbf16>
    %c1152 = arith.constant 1152 : index
    %c0_67 = arith.constant 0 : index
    %84 = vector.load %arg4[%c1152, %c0_67] : memref<2048x128xbf16, #tpu.memory_space<vmem>>, vector<128x128xbf16>
    %cst_68 = arith.constant dense<0.000000e+00> : vector<256x128xf32>
    %85 = tpu.matmul %83, %84, %cst_68 {dimension_numbers = #tpu.dot_dimension_numbers<[1], [0], [0], [1], [0, 0, 1, 1], [], []>} : vector<256x128xbf16>, vector<128x128xbf16>, vector<256x128xf32> -> vector<256x128xf32>
    %86 = arith.addf %82, %85 : vector<256x128xf32>
    %c42 = arith.constant 42 : index
    %c0_69 = arith.constant 0 : index
    %87 = vector.load %arg9[%c42, %c0_69] : memref<408x128xbf16, #tpu.memory_space<vmem>>, vector<256x128xbf16>
    %c1280 = arith.constant 1280 : index
    %c0_70 = arith.constant 0 : index
    %88 = vector.load %arg4[%c1280, %c0_70] : memref<2048x128xbf16, #tpu.memory_space<vmem>>, vector<128x128xbf16>
    %cst_71 = arith.constant dense<0.000000e+00> : vector<256x128xf32>
    %89 = tpu.matmul %87, %88, %cst_71 {dimension_numbers = #tpu.dot_dimension_numbers<[1], [0], [0], [1], [0, 0, 1, 1], [], []>} : vector<256x128xbf16>, vector<128x128xbf16>, vector<256x128xf32> -> vector<256x128xf32>
    %90 = arith.addf %86, %89 : vector<256x128xf32>
    %c43 = arith.constant 43 : index
    %c0_72 = arith.constant 0 : index
    %91 = vector.load %arg9[%c43, %c0_72] : memref<408x128xbf16, #tpu.memory_space<vmem>>, vector<256x128xbf16>
    %c1408 = arith.constant 1408 : index
    %c0_73 = arith.constant 0 : index
    %92 = vector.load %arg4[%c1408, %c0_73] : memref<2048x128xbf16, #tpu.memory_space<vmem>>, vector<128x128xbf16>
    %cst_74 = arith.constant dense<0.000000e+00> : vector<256x128xf32>
    %93 = tpu.matmul %91, %92, %cst_74 {dimension_numbers = #tpu.dot_dimension_numbers<[1], [0], [0], [1], [0, 0, 1, 1], [], []>} : vector<256x128xbf16>, vector<128x128xbf16>, vector<256x128xf32> -> vector<256x128xf32>
    %94 = arith.addf %90, %93 : vector<256x128xf32>
    %c60 = arith.constant 60 : index
    %c0_75 = arith.constant 0 : index
    %95 = vector.load %arg9[%c60, %c0_75] : memref<408x128xbf16, #tpu.memory_space<vmem>>, vector<256x128xbf16>
    %c1536 = arith.constant 1536 : index
    %c0_76 = arith.constant 0 : index
    %96 = vector.load %arg4[%c1536, %c0_76] : memref<2048x128xbf16, #tpu.memory_space<vmem>>, vector<128x128xbf16>
    %cst_77 = arith.constant dense<0.000000e+00> : vector<256x128xf32>
    %97 = tpu.matmul %95, %96, %cst_77 {dimension_numbers = #tpu.dot_dimension_numbers<[1], [0], [0], [1], [0, 0, 1, 1], [], []>} : vector<256x128xbf16>, vector<128x128xbf16>, vector<256x128xf32> -> vector<256x128xf32>
    %98 = arith.addf %94, %97 : vector<256x128xf32>
    %c61 = arith.constant 61 : index
    %c0_78 = arith.constant 0 : index
    %99 = vector.load %arg9[%c61, %c0_78] : memref<408x128xbf16, #tpu.memory_space<vmem>>, vector<256x128xbf16>
    %c1664 = arith.constant 1664 : index
    %c0_79 = arith.constant 0 : index
    %100 = vector.load %arg4[%c1664, %c0_79] : memref<2048x128xbf16, #tpu.memory_space<vmem>>, vector<128x128xbf16>
    %cst_80 = arith.constant dense<0.000000e+00> : vector<256x128xf32>
    %101 = tpu.matmul %99, %100, %cst_80 {dimension_numbers = #tpu.dot_dimension_numbers<[1], [0], [0], [1], [0, 0, 1, 1], [], []>} : vector<256x128xbf16>, vector<128x128xbf16>, vector<256x128xf32> -> vector<256x128xf32>
    %102 = arith.addf %98, %101 : vector<256x128xf32>
    %c62 = arith.constant 62 : index
    %c0_81 = arith.constant 0 : index
    %103 = vector.load %arg9[%c62, %c0_81] : memref<408x128xbf16, #tpu.memory_space<vmem>>, vector<256x128xbf16>
    %c1792 = arith.constant 1792 : index
    %c0_82 = arith.constant 0 : index
    %104 = vector.load %arg4[%c1792, %c0_82] : memref<2048x128xbf16, #tpu.memory_space<vmem>>, vector<128x128xbf16>
    %cst_83 = arith.constant dense<0.000000e+00> : vector<256x128xf32>
    %105 = tpu.matmul %103, %104, %cst_83 {dimension_numbers = #tpu.dot_dimension_numbers<[1], [0], [0], [1], [0, 0, 1, 1], [], []>} : vector<256x128xbf16>, vector<128x128xbf16>, vector<256x128xf32> -> vector<256x128xf32>
    %106 = arith.addf %102, %105 : vector<256x128xf32>
    %c63 = arith.constant 63 : index
    %c0_84 = arith.constant 0 : index
    %107 = vector.load %arg9[%c63, %c0_84] : memref<408x128xbf16, #tpu.memory_space<vmem>>, vector<256x128xbf16>
    %c1920 = arith.constant 1920 : index
    %c0_85 = arith.constant 0 : index
    %108 = vector.load %arg4[%c1920, %c0_85] : memref<2048x128xbf16, #tpu.memory_space<vmem>>, vector<128x128xbf16>
    %cst_86 = arith.constant dense<0.000000e+00> : vector<256x128xf32>
    %109 = tpu.matmul %107, %108, %cst_86 {dimension_numbers = #tpu.dot_dimension_numbers<[1], [0], [0], [1], [0, 0, 1, 1], [], []>} : vector<256x128xbf16>, vector<128x128xbf16>, vector<256x128xf32> -> vector<256x128xf32>
    %110 = arith.addf %106, %109 : vector<256x128xf32>
    %111 = vector.broadcast %45 : vector<1x128xf32> to vector<256x128xf32>
    %112 = arith.addf %110, %111 : vector<256x128xf32>
    %cst_87 = arith.constant 0.000000e+00 : f32
    %113 = vector.broadcast %cst_87 : f32 to vector<256x128xf32>
    %114 = arith.maximumf %112, %113 : vector<256x128xf32>
    %115 = arith.truncf %114 : vector<256x128xf32> to vector<256x128xbf16>
    %c0_88 = arith.constant 0 : index
    %c0_89 = arith.constant 0 : index
    %116 = vector.load %arg10[%c0_88, %c0_89] : memref<344x128xbf16, #tpu.memory_space<vmem>>, vector<256x128xbf16>
    tpu.vector_store %arg10[%c0_88, %c0_89], %115 {strides = array<i32>} : memref<344x128xbf16, #tpu.memory_space<vmem>>, vector<256x128xbf16>,
    %cst_90 = arith.constant 0.000000e+00 : f32
    %117 = vector.broadcast %cst_90 : f32 to vector<88x128xf32>
    %c256_91 = arith.constant 256 : index
    %c0_92 = arith.constant 0 : index
    %118 = vector.load %arg9[%c256_91, %c0_92] : memref<408x128xbf16, #tpu.memory_space<vmem>>, vector<88x128xbf16>
    %c0_93 = arith.constant 0 : index
    %c0_94 = arith.constant 0 : index
    %119 = vector.load %arg4[%c0_93, %c0_94] : memref<2048x128xbf16, #tpu.memory_space<vmem>>, vector<128x128xbf16>
    %cst_95 = arith.constant dense<0.000000e+00> : vector<88x128xf32>
    %120 = tpu.matmul %118, %119, %cst_95 {dimension_numbers = #tpu.dot_dimension_numbers<[1], [0], [0], [1], [0, 0, 1, 1], [], []>} : vector<88x128xbf16>, vector<128x128xbf16>, vector<88x128xf32> -> vector<88x128xf32>
    %121 = arith.addf %117, %120 : vector<88x128xf32>
    %c257 = arith.constant 257 : index
    %c0_96 = arith.constant 0 : index
    %122 = vector.load %arg9[%c257, %c0_96] : memref<408x128xbf16, #tpu.memory_space<vmem>>, vector<88x128xbf16>
    %c128_97 = arith.constant 128 : index
    %c0_98 = arith.constant 0 : index
    %123 = vector.load %arg4[%c128_97, %c0_98] : memref<2048x128xbf16, #tpu.memory_space<vmem>>, vector<128x128xbf16>
    %cst_99 = arith.constant dense<0.000000e+00> : vector<88x128xf32>
    %124 = tpu.matmul %122, %123, %cst_99 {dimension_numbers = #tpu.dot_dimension_numbers<[1], [0], [0], [1], [0, 0, 1, 1], [], []>} : vector<88x128xbf16>, vector<128x128xbf16>, vector<88x128xf32> -> vector<88x128xf32>
    %125 = arith.addf %121, %124 : vector<88x128xf32>
    %c258 = arith.constant 258 : index
    %c0_100 = arith.constant 0 : index
    %126 = vector.load %arg9[%c258, %c0_100] : memref<408x128xbf16, #tpu.memory_space<vmem>>, vector<88x128xbf16>
    %c256_101 = arith.constant 256 : index
    %c0_102 = arith.constant 0 : index
    %127 = vector.load %arg4[%c256_101, %c0_102] : memref<2048x128xbf16, #tpu.memory_space<vmem>>, vector<128x128xbf16>
    %cst_103 = arith.constant dense<0.000000e+00> : vector<88x128xf32>
    %128 = tpu.matmul %126, %127, %cst_103 {dimension_numbers = #tpu.dot_dimension_numbers<[1], [0], [0], [1], [0, 0, 1, 1], [], []>} : vector<88x128xbf16>, vector<128x128xbf16>, vector<88x128xf32> -> vector<88x128xf32>
    %129 = arith.addf %125, %128 : vector<88x128xf32>
    %c259 = arith.constant 259 : index
    %c0_104 = arith.constant 0 : index
    %130 = vector.load %arg9[%c259, %c0_104] : memref<408x128xbf16, #tpu.memory_space<vmem>>, vector<88x128xbf16>
    %c384_105 = arith.constant 384 : index
    %c0_106 = arith.constant 0 : index
    %131 = vector.load %arg4[%c384_105, %c0_106] : memref<2048x128xbf16, #tpu.memory_space<vmem>>, vector<128x128xbf16>
    %cst_107 = arith.constant dense<0.000000e+00> : vector<88x128xf32>
    %132 = tpu.matmul %130, %131, %cst_107 {dimension_numbers = #tpu.dot_dimension_numbers<[1], [0], [0], [1], [0, 0, 1, 1], [], []>} : vector<88x128xbf16>, vector<128x128xbf16>, vector<88x128xf32> -> vector<88x128xf32>
    %133 = arith.addf %129, %132 : vector<88x128xf32>
    %c276 = arith.constant 276 : index
    %c0_108 = arith.constant 0 : index
    %134 = vector.load %arg9[%c276, %c0_108] : memref<408x128xbf16, #tpu.memory_space<vmem>>, vector<88x128xbf16>
    %c512_109 = arith.constant 512 : index
    %c0_110 = arith.constant 0 : index
    %135 = vector.load %arg4[%c512_109, %c0_110] : memref<2048x128xbf16, #tpu.memory_space<vmem>>, vector<128x128xbf16>
    %cst_111 = arith.constant dense<0.000000e+00> : vector<88x128xf32>
    %136 = tpu.matmul %134, %135, %cst_111 {dimension_numbers = #tpu.dot_dimension_numbers<[1], [0], [0], [1], [0, 0, 1, 1], [], []>} : vector<88x128xbf16>, vector<128x128xbf16>, vector<88x128xf32> -> vector<88x128xf32>
    %137 = arith.addf %133, %136 : vector<88x128xf32>
    %c277 = arith.constant 277 : index
    %c0_112 = arith.constant 0 : index
    %138 = vector.load %arg9[%c277, %c0_112] : memref<408x128xbf16, #tpu.memory_space<vmem>>, vector<88x128xbf16>
    %c640_113 = arith.constant 640 : index
    %c0_114 = arith.constant 0 : index
    %139 = vector.load %arg4[%c640_113, %c0_114] : memref<2048x128xbf16, #tpu.memory_space<vmem>>, vector<128x128xbf16>
    %cst_115 = arith.constant dense<0.000000e+00> : vector<88x128xf32>
    %140 = tpu.matmul %138, %139, %cst_115 {dimension_numbers = #tpu.dot_dimension_numbers<[1], [0], [0], [1], [0, 0, 1, 1], [], []>} : vector<88x128xbf16>, vector<128x128xbf16>, vector<88x128xf32> -> vector<88x128xf32>
    %141 = arith.addf %137, %140 : vector<88x128xf32>
    %c278 = arith.constant 278 : index
    %c0_116 = arith.constant 0 : index
    %142 = vector.load %arg9[%c278, %c0_116] : memref<408x128xbf16, #tpu.memory_space<vmem>>, vector<88x128xbf16>
    %c768_117 = arith.constant 768 : index
    %c0_118 = arith.constant 0 : index
    %143 = vector.load %arg4[%c768_117, %c0_118] : memref<2048x128xbf16, #tpu.memory_space<vmem>>, vector<128x128xbf16>
    %cst_119 = arith.constant dense<0.000000e+00> : vector<88x128xf32>
    %144 = tpu.matmul %142, %143, %cst_119 {dimension_numbers = #tpu.dot_dimension_numbers<[1], [0], [0], [1], [0, 0, 1, 1], [], []>} : vector<88x128xbf16>, vector<128x128xbf16>, vector<88x128xf32> -> vector<88x128xf32>
    %145 = arith.addf %141, %144 : vector<88x128xf32>
    %c279 = arith.constant 279 : index
    %c0_120 = arith.constant 0 : index
    %146 = vector.load %arg9[%c279, %c0_120] : memref<408x128xbf16, #tpu.memory_space<vmem>>, vector<88x128xbf16>
    %c896_121 = arith.constant 896 : index
    %c0_122 = arith.constant 0 : index
    %147 = vector.load %arg4[%c896_121, %c0_122] : memref<2048x128xbf16, #tpu.memory_space<vmem>>, vector<128x128xbf16>
    %cst_123 = arith.constant dense<0.000000e+00> : vector<88x128xf32>
    %148 = tpu.matmul %146, %147, %cst_123 {dimension_numbers = #tpu.dot_dimension_numbers<[1], [0], [0], [1], [0, 0, 1, 1], [], []>} : vector<88x128xbf16>, vector<128x128xbf16>, vector<88x128xf32> -> vector<88x128xf32>
    %149 = arith.addf %145, %148 : vector<88x128xf32>
    %c296 = arith.constant 296 : index
    %c0_124 = arith.constant 0 : index
    %150 = vector.load %arg9[%c296, %c0_124] : memref<408x128xbf16, #tpu.memory_space<vmem>>, vector<88x128xbf16>
    %c1024_125 = arith.constant 1024 : index
    %c0_126 = arith.constant 0 : index
    %151 = vector.load %arg4[%c1024_125, %c0_126] : memref<2048x128xbf16, #tpu.memory_space<vmem>>, vector<128x128xbf16>
    %cst_127 = arith.constant dense<0.000000e+00> : vector<88x128xf32>
    %152 = tpu.matmul %150, %151, %cst_127 {dimension_numbers = #tpu.dot_dimension_numbers<[1], [0], [0], [1], [0, 0, 1, 1], [], []>} : vector<88x128xbf16>, vector<128x128xbf16>, vector<88x128xf32> -> vector<88x128xf32>
    %153 = arith.addf %149, %152 : vector<88x128xf32>
    %c297 = arith.constant 297 : index
    %c0_128 = arith.constant 0 : index
    %154 = vector.load %arg9[%c297, %c0_128] : memref<408x128xbf16, #tpu.memory_space<vmem>>, vector<88x128xbf16>
    %c1152_129 = arith.constant 1152 : index
    %c0_130 = arith.constant 0 : index
    %155 = vector.load %arg4[%c1152_129, %c0_130] : memref<2048x128xbf16, #tpu.memory_space<vmem>>, vector<128x128xbf16>
    %cst_131 = arith.constant dense<0.000000e+00> : vector<88x128xf32>
    %156 = tpu.matmul %154, %155, %cst_131 {dimension_numbers = #tpu.dot_dimension_numbers<[1], [0], [0], [1], [0, 0, 1, 1], [], []>} : vector<88x128xbf16>, vector<128x128xbf16>, vector<88x128xf32> -> vector<88x128xf32>
    %157 = arith.addf %153, %156 : vector<88x128xf32>
    %c298 = arith.constant 298 : index
    %c0_132 = arith.constant 0 : index
    %158 = vector.load %arg9[%c298, %c0_132] : memref<408x128xbf16, #tpu.memory_space<vmem>>, vector<88x128xbf16>
    %c1280_133 = arith.constant 1280 : index
    %c0_134 = arith.constant 0 : index
    %159 = vector.load %arg4[%c1280_133, %c0_134] : memref<2048x128xbf16, #tpu.memory_space<vmem>>, vector<128x128xbf16>
    %cst_135 = arith.constant dense<0.000000e+00> : vector<88x128xf32>
    %160 = tpu.matmul %158, %159, %cst_135 {dimension_numbers = #tpu.dot_dimension_numbers<[1], [0], [0], [1], [0, 0, 1, 1], [], []>} : vector<88x128xbf16>, vector<128x128xbf16>, vector<88x128xf32> -> vector<88x128xf32>
    %161 = arith.addf %157, %160 : vector<88x128xf32>
    %c299 = arith.constant 299 : index
    %c0_136 = arith.constant 0 : index
    %162 = vector.load %arg9[%c299, %c0_136] : memref<408x128xbf16, #tpu.memory_space<vmem>>, vector<88x128xbf16>
    %c1408_137 = arith.constant 1408 : index
    %c0_138 = arith.constant 0 : index
    %163 = vector.load %arg4[%c1408_137, %c0_138] : memref<2048x128xbf16, #tpu.memory_space<vmem>>, vector<128x128xbf16>
    %cst_139 = arith.constant dense<0.000000e+00> : vector<88x128xf32>
    %164 = tpu.matmul %162, %163, %cst_139 {dimension_numbers = #tpu.dot_dimension_numbers<[1], [0], [0], [1], [0, 0, 1, 1], [], []>} : vector<88x128xbf16>, vector<128x128xbf16>, vector<88x128xf32> -> vector<88x128xf32>
    %165 = arith.addf %161, %164 : vector<88x128xf32>
    %c316 = arith.constant 316 : index
    %c0_140 = arith.constant 0 : index
    %166 = vector.load %arg9[%c316, %c0_140] : memref<408x128xbf16, #tpu.memory_space<vmem>>, vector<88x128xbf16>
    %c1536_141 = arith.constant 1536 : index
    %c0_142 = arith.constant 0 : index
    %167 = vector.load %arg4[%c1536_141, %c0_142] : memref<2048x128xbf16, #tpu.memory_space<vmem>>, vector<128x128xbf16>
    %cst_143 = arith.constant dense<0.000000e+00> : vector<88x128xf32>
    %168 = tpu.matmul %166, %167, %cst_143 {dimension_numbers = #tpu.dot_dimension_numbers<[1], [0], [0], [1], [0, 0, 1, 1], [], []>} : vector<88x128xbf16>, vector<128x128xbf16>, vector<88x128xf32> -> vector<88x128xf32>
    %169 = arith.addf %165, %168 : vector<88x128xf32>
    %c317 = arith.constant 317 : index
    %c0_144 = arith.constant 0 : index
    %170 = vector.load %arg9[%c317, %c0_144] : memref<408x128xbf16, #tpu.memory_space<vmem>>, vector<88x128xbf16>
    %c1664_145 = arith.constant 1664 : index
    %c0_146 = arith.constant 0 : index
    %171 = vector.load %arg4[%c1664_145, %c0_146] : memref<2048x128xbf16, #tpu.memory_space<vmem>>, vector<128x128xbf16>
    %cst_147 = arith.constant dense<0.000000e+00> : vector<88x128xf32>
    %172 = tpu.matmul %170, %171, %cst_147 {dimension_numbers = #tpu.dot_dimension_numbers<[1], [0], [0], [1], [0, 0, 1, 1], [], []>} : vector<88x128xbf16>, vector<128x128xbf16>, vector<88x128xf32> -> vector<88x128xf32>
    %173 = arith.addf %169, %172 : vector<88x128xf32>
    %c318 = arith.constant 318 : index
    %c0_148 = arith.constant 0 : index
    %174 = vector.load %arg9[%c318, %c0_148] : memref<408x128xbf16, #tpu.memory_space<vmem>>, vector<88x128xbf16>
    %c1792_149 = arith.constant 1792 : index
    %c0_150 = arith.constant 0 : index
    %175 = vector.load %arg4[%c1792_149, %c0_150] : memref<2048x128xbf16, #tpu.memory_space<vmem>>, vector<128x128xbf16>
    %cst_151 = arith.constant dense<0.000000e+00> : vector<88x128xf32>
    %176 = tpu.matmul %174, %175, %cst_151 {dimension_numbers = #tpu.dot_dimension_numbers<[1], [0], [0], [1], [0, 0, 1, 1], [], []>} : vector<88x128xbf16>, vector<128x128xbf16>, vector<88x128xf32> -> vector<88x128xf32>
    %177 = arith.addf %173, %176 : vector<88x128xf32>
    %c319 = arith.constant 319 : index
    %c0_152 = arith.constant 0 : index
    %178 = vector.load %arg9[%c319, %c0_152] : memref<408x128xbf16, #tpu.memory_space<vmem>>, vector<88x128xbf16>
    %c1920_153 = arith.constant 1920 : index
    %c0_154 = arith.constant 0 : index
    %179 = vector.load %arg4[%c1920_153, %c0_154] : memref<2048x128xbf16, #tpu.memory_space<vmem>>, vector<128x128xbf16>
    %cst_155 = arith.constant dense<0.000000e+00> : vector<88x128xf32>
    %180 = tpu.matmul %178, %179, %cst_155 {dimension_numbers = #tpu.dot_dimension_numbers<[1], [0], [0], [1], [0, 0, 1, 1], [], []>} : vector<88x128xbf16>, vector<128x128xbf16>, vector<88x128xf32> -> vector<88x128xf32>
    %181 = arith.addf %177, %180 : vector<88x128xf32>
    %182 = vector.broadcast %45 : vector<1x128xf32> to vector<88x128xf32>
    %183 = arith.addf %181, %182 : vector<88x128xf32>
    %cst_156 = arith.constant 0.000000e+00 : f32
    %184 = vector.broadcast %cst_156 : f32 to vector<88x128xf32>
    %185 = arith.maximumf %183, %184 : vector<88x128xf32>
    %186 = arith.truncf %185 : vector<88x128xf32> to vector<88x128xbf16>
    %c256_157 = arith.constant 256 : index
    %c0_158 = arith.constant 0 : index
    %187 = vector.load %arg10[%c256_157, %c0_158] : memref<344x128xbf16, #tpu.memory_space<vmem>>, vector<88x128xbf16>
    tpu.vector_store %arg10[%c256_157, %c0_158], %186 {strides = array<i32>} : memref<344x128xbf16, #tpu.memory_space<vmem>>, vector<88x128xbf16>,
    %c0_159 = arith.constant 0 : index
    %c0_160 = arith.constant 0 : index
    %188 = vector.load %arg7[%c0_159, %c0_160] : memref<1x64xf32, #tpu.memory_space<vmem>>, vector<1x64xf32>
    %cst_161 = arith.constant 0.000000e+00 : f32
    %189 = vector.broadcast %cst_161 : f32 to vector<256x64xf32>
    %c0_162 = arith.constant 0 : index
    %c0_163 = arith.constant 0 : index
    %190 = vector.load %arg10[%c0_162, %c0_163] : memref<344x128xbf16, #tpu.memory_space<vmem>>, vector<256x128xbf16>
    %c0_164 = arith.constant 0 : index
    %c0_165 = arith.constant 0 : index
    %191 = vector.load %arg6[%c0_164, %c0_165] : memref<1152x64xbf16, #tpu.memory_space<vmem>>, vector<128x64xbf16>
    %cst_166 = arith.constant dense<0.000000e+00> : vector<256x64xf32>
    %192 = tpu.matmul %190, %191, %cst_166 {dimension_numbers = #tpu.dot_dimension_numbers<[1], [0], [0], [1], [0, 0, 1, 1], [], []>} : vector<256x128xbf16>, vector<128x64xbf16>, vector<256x64xf32> -> vector<256x64xf32>
    %193 = arith.addf %189, %192 : vector<256x64xf32>
    %c2_167 = arith.constant 2 : index
    %c0_168 = arith.constant 0 : index
    %194 = vector.load %arg10[%c2_167, %c0_168] : memref<344x128xbf16, #tpu.memory_space<vmem>>, vector<256x128xbf16>
    %c128_169 = arith.constant 128 : index
    %c0_170 = arith.constant 0 : index
    %195 = vector.load %arg6[%c128_169, %c0_170] : memref<1152x64xbf16, #tpu.memory_space<vmem>>, vector<128x64xbf16>
    %cst_171 = arith.constant dense<0.000000e+00> : vector<256x64xf32>
    %196 = tpu.matmul %194, %195, %cst_171 {dimension_numbers = #tpu.dot_dimension_numbers<[1], [0], [0], [1], [0, 0, 1, 1], [], []>} : vector<256x128xbf16>, vector<128x64xbf16>, vector<256x64xf32> -> vector<256x64xf32>
    %197 = arith.addf %193, %196 : vector<256x64xf32>
    %c4 = arith.constant 4 : index
    %c0_172 = arith.constant 0 : index
    %198 = vector.load %arg10[%c4, %c0_172] : memref<344x128xbf16, #tpu.memory_space<vmem>>, vector<256x128xbf16>
    %c256_173 = arith.constant 256 : index
    %c0_174 = arith.constant 0 : index
    %199 = vector.load %arg6[%c256_173, %c0_174] : memref<1152x64xbf16, #tpu.memory_space<vmem>>, vector<128x64xbf16>
    %cst_175 = arith.constant dense<0.000000e+00> : vector<256x64xf32>
    %200 = tpu.matmul %198, %199, %cst_175 {dimension_numbers = #tpu.dot_dimension_numbers<[1], [0], [0], [1], [0, 0, 1, 1], [], []>} : vector<256x128xbf16>, vector<128x64xbf16>, vector<256x64xf32> -> vector<256x64xf32>
    %201 = arith.addf %197, %200 : vector<256x64xf32>
    %c40_176 = arith.constant 40 : index
    %c0_177 = arith.constant 0 : index
    %202 = vector.load %arg10[%c40_176, %c0_177] : memref<344x128xbf16, #tpu.memory_space<vmem>>, vector<256x128xbf16>
    %c384_178 = arith.constant 384 : index
    %c0_179 = arith.constant 0 : index
    %203 = vector.load %arg6[%c384_178, %c0_179] : memref<1152x64xbf16, #tpu.memory_space<vmem>>, vector<128x64xbf16>
    %cst_180 = arith.constant dense<0.000000e+00> : vector<256x64xf32>
    %204 = tpu.matmul %202, %203, %cst_180 {dimension_numbers = #tpu.dot_dimension_numbers<[1], [0], [0], [1], [0, 0, 1, 1], [], []>} : vector<256x128xbf16>, vector<128x64xbf16>, vector<256x64xf32> -> vector<256x64xf32>
    %205 = arith.addf %201, %204 : vector<256x64xf32>
    %c42_181 = arith.constant 42 : index
    %c0_182 = arith.constant 0 : index
    %206 = vector.load %arg10[%c42_181, %c0_182] : memref<344x128xbf16, #tpu.memory_space<vmem>>, vector<256x128xbf16>
    %c512_183 = arith.constant 512 : index
    %c0_184 = arith.constant 0 : index
    %207 = vector.load %arg6[%c512_183, %c0_184] : memref<1152x64xbf16, #tpu.memory_space<vmem>>, vector<128x64xbf16>
    %cst_185 = arith.constant dense<0.000000e+00> : vector<256x64xf32>
    %208 = tpu.matmul %206, %207, %cst_185 {dimension_numbers = #tpu.dot_dimension_numbers<[1], [0], [0], [1], [0, 0, 1, 1], [], []>} : vector<256x128xbf16>, vector<128x64xbf16>, vector<256x64xf32> -> vector<256x64xf32>
    %209 = arith.addf %205, %208 : vector<256x64xf32>
    %c44 = arith.constant 44 : index
    %c0_186 = arith.constant 0 : index
    %210 = vector.load %arg10[%c44, %c0_186] : memref<344x128xbf16, #tpu.memory_space<vmem>>, vector<256x128xbf16>
    %c640_187 = arith.constant 640 : index
    %c0_188 = arith.constant 0 : index
    %211 = vector.load %arg6[%c640_187, %c0_188] : memref<1152x64xbf16, #tpu.memory_space<vmem>>, vector<128x64xbf16>
    %cst_189 = arith.constant dense<0.000000e+00> : vector<256x64xf32>
    %212 = tpu.matmul %210, %211, %cst_189 {dimension_numbers = #tpu.dot_dimension_numbers<[1], [0], [0], [1], [0, 0, 1, 1], [], []>} : vector<256x128xbf16>, vector<128x64xbf16>, vector<256x64xf32> -> vector<256x64xf32>
    %213 = arith.addf %209, %212 : vector<256x64xf32>
    %c80 = arith.constant 80 : index
    %c0_190 = arith.constant 0 : index
    %214 = vector.load %arg10[%c80, %c0_190] : memref<344x128xbf16, #tpu.memory_space<vmem>>, vector<256x128xbf16>
    %c768_191 = arith.constant 768 : index
    %c0_192 = arith.constant 0 : index
    %215 = vector.load %arg6[%c768_191, %c0_192] : memref<1152x64xbf16, #tpu.memory_space<vmem>>, vector<128x64xbf16>
    %cst_193 = arith.constant dense<0.000000e+00> : vector<256x64xf32>
    %216 = tpu.matmul %214, %215, %cst_193 {dimension_numbers = #tpu.dot_dimension_numbers<[1], [0], [0], [1], [0, 0, 1, 1], [], []>} : vector<256x128xbf16>, vector<128x64xbf16>, vector<256x64xf32> -> vector<256x64xf32>
    %217 = arith.addf %213, %216 : vector<256x64xf32>
    %c82 = arith.constant 82 : index
    %c0_194 = arith.constant 0 : index
    %218 = vector.load %arg10[%c82, %c0_194] : memref<344x128xbf16, #tpu.memory_space<vmem>>, vector<256x128xbf16>
    %c896_195 = arith.constant 896 : index
    %c0_196 = arith.constant 0 : index
    %219 = vector.load %arg6[%c896_195, %c0_196] : memref<1152x64xbf16, #tpu.memory_space<vmem>>, vector<128x64xbf16>
    %cst_197 = arith.constant dense<0.000000e+00> : vector<256x64xf32>
    %220 = tpu.matmul %218, %219, %cst_197 {dimension_numbers = #tpu.dot_dimension_numbers<[1], [0], [0], [1], [0, 0, 1, 1], [], []>} : vector<256x128xbf16>, vector<128x64xbf16>, vector<256x64xf32> -> vector<256x64xf32>
    %221 = arith.addf %217, %220 : vector<256x64xf32>
    %c84 = arith.constant 84 : index
    %c0_198 = arith.constant 0 : index
    %222 = vector.load %arg10[%c84, %c0_198] : memref<344x128xbf16, #tpu.memory_space<vmem>>, vector<256x128xbf16>
    %c1024_199 = arith.constant 1024 : index
    %c0_200 = arith.constant 0 : index
    %223 = vector.load %arg6[%c1024_199, %c0_200] : memref<1152x64xbf16, #tpu.memory_space<vmem>>, vector<128x64xbf16>
    %cst_201 = arith.constant dense<0.000000e+00> : vector<256x64xf32>
    %224 = tpu.matmul %222, %223, %cst_201 {dimension_numbers = #tpu.dot_dimension_numbers<[1], [0], [0], [1], [0, 0, 1, 1], [], []>} : vector<256x128xbf16>, vector<128x64xbf16>, vector<256x64xf32> -> vector<256x64xf32>
    %225 = arith.addf %221, %224 : vector<256x64xf32>
    %226 = vector.broadcast %188 : vector<1x64xf32> to vector<256x64xf32>
    %227 = arith.addf %225, %226 : vector<256x64xf32>
    %cst_202 = arith.constant 0.000000e+00 : f32
    %228 = vector.broadcast %cst_202 : f32 to vector<256x64xf32>
    %229 = arith.maximumf %227, %228 : vector<256x64xf32>
    %230 = arith.truncf %229 : vector<256x64xf32> to vector<256x64xbf16>
    %c0_203 = arith.constant 0 : index
    %c0_204 = arith.constant 0 : index
    %c0_205 = arith.constant 0 : index
    %231 = vector.load %arg8[%c0_203, %c0_204, %c0_205] : memref<1x256x64xbf16, #tpu.memory_space<vmem>>, vector<1x256x64xbf16>
    %232 = vector.shape_cast %231 : vector<1x256x64xbf16> to vector<256x64xbf16>
    %233 = vector.shape_cast %230 : vector<256x64xbf16> to vector<1x256x64xbf16>
    tpu.vector_store %arg8[%c0_203, %c0_204, %c0_205], %233 {strides = array<i32>} : memref<1x256x64xbf16, #tpu.memory_space<vmem>>, vector<1x256x64xbf16>,
    return
  }
  func.func @transform_0(%arg0: i32) -> (i32, i32, i32) {
    %c0_i32 = arith.constant 0 : i32
    %c0_i32_0 = arith.constant 0 : i32
    %c0_i32_1 = arith.constant 0 : i32
    return %arg0, %c0_i32, %c0_i32_0 : i32, i32, i32
  }
  func.func @transform_1(%arg0: i32) -> (i32, i32) {
    %c0_i32 = arith.constant 0 : i32
    %c0_i32_0 = arith.constant 0 : i32
    %c0_i32_1 = arith.constant 0 : i32
    return %c0_i32, %c0_i32_0 : i32, i32
  }
  func.func @transform_2(%arg0: i32) -> (i32, i32) {
    %c0_i32 = arith.constant 0 : i32
    %c0_i32_0 = arith.constant 0 : i32
    %c0_i32_1 = arith.constant 0 : i32
    return %c0_i32, %c0_i32_0 : i32, i32
  }
  func.func @transform_3(%arg0: i32) -> (i32, i32) {
    %c0_i32 = arith.constant 0 : i32
    %c0_i32_0 = arith.constant 0 : i32
    %c0_i32_1 = arith.constant 0 : i32
    return %c0_i32, %c0_i32_0 : i32, i32
  }
  func.func @transform_4(%arg0: i32) -> (i32, i32) {
    %c0_i32 = arith.constant 0 : i32
    %c0_i32_0 = arith.constant 0 : i32
    %c0_i32_1 = arith.constant 0 : i32
    return %c0_i32, %c0_i32_0 : i32, i32
  }
  func.func @transform_5(%arg0: i32) -> (i32, i32) {
    %c0_i32 = arith.constant 0 : i32
    %c0_i32_0 = arith.constant 0 : i32
    %c0_i32_1 = arith.constant 0 : i32
    return %c0_i32, %c0_i32_0 : i32, i32
  }
  func.func @transform_6(%arg0: i32) -> (i32, i32) {
    %c0_i32 = arith.constant 0 : i32
    %c0_i32_0 = arith.constant 0 : i32
    %c0_i32_1 = arith.constant 0 : i32
    return %c0_i32, %c0_i32_0 : i32, i32
  }
  func.func @transform_7(%arg0: i32) -> (i32, i32, i32) {
    %c0_i32 = arith.constant 0 : i32
    %c0_i32_0 = arith.constant 0 : i32
    %c0_i32_1 = arith.constant 0 : i32
    return %arg0, %c0_i32, %c0_i32_0 : i32, i32, i32
  }
}

module attributes {stable_mosaic.version = 11 : i64} {
  func.func @_linear_kernel(%arg0: i32, %arg1: memref<2x3136xbf16, #tpu.memory_space<vmem>>, %arg2: memref<3136x512xbf16, #tpu.memory_space<vmem>>, %arg3: memref<1x512xf32, #tpu.memory_space<vmem>>, %arg4: memref<2x512xf32, #tpu.memory_space<vmem>>) attributes {dimension_semantics = [#tpu.dimension_semantics<parallel>], iteration_bounds = array<i64: 1>, scalar_prefetch = 0 : i64, scratch_operands = 0 : i64, tpu.core_type = #tpu.core_type<tc>, window_params = [{transform_indices = @transform_0, window_bounds = array<i64: 2, 3136>}, {pipeline_mode = #tpu.pipeline_mode<synchronous>, transform_indices = @transform_1, window_bounds = array<i64: 3136, 512>}, {pipeline_mode = #tpu.pipeline_mode<synchronous>, transform_indices = @transform_2, window_bounds = array<i64: 1, 512>}, {transform_indices = @transform_3, window_bounds = array<i64: 2, 512>}]} {
    %c0 = arith.constant 0 : index
    %c0_0 = arith.constant 0 : index
    %0 = vector.load %arg1[%c0, %c0_0] : memref<2x3136xbf16, #tpu.memory_space<vmem>>, vector<2x3136xbf16>
    %c0_1 = arith.constant 0 : index
    %c0_2 = arith.constant 0 : index
    %1 = vector.load %arg2[%c0_1, %c0_2] : memref<3136x512xbf16, #tpu.memory_space<vmem>>, vector<3136x512xbf16>
    %cst = arith.constant dense<0.000000e+00> : vector<2x512xf32>
    %2 = tpu.matmul %0, %1, %cst {dimension_numbers = #tpu.dot_dimension_numbers<[1], [0], [0], [1], [0, 0, 1, 1], [], []>} : vector<2x3136xbf16>, vector<3136x512xbf16>, vector<2x512xf32> -> vector<2x512xf32>
    %c0_3 = arith.constant 0 : index
    %c0_4 = arith.constant 0 : index
    %3 = vector.load %arg3[%c0_3, %c0_4] : memref<1x512xf32, #tpu.memory_space<vmem>>, vector<1x512xf32>
    %4 = vector.broadcast %3 : vector<1x512xf32> to vector<2x512xf32>
    %5 = arith.addf %2, %4 : vector<2x512xf32>
    %c0_5 = arith.constant 0 : index
    %c0_6 = arith.constant 0 : index
    %6 = vector.load %arg4[%c0_5, %c0_6] : memref<2x512xf32, #tpu.memory_space<vmem>>, vector<2x512xf32>
    tpu.vector_store %arg4[%c0_5, %c0_6], %5 {strides = array<i32>} : memref<2x512xf32, #tpu.memory_space<vmem>>, vector<2x512xf32>,
    return
  }
  func.func @transform_0(%arg0: i32) -> (i32, i32) {
    %c0_i32 = arith.constant 0 : i32
    %c0_i32_0 = arith.constant 0 : i32
    return %arg0, %c0_i32 : i32, i32
  }
  func.func @transform_1(%arg0: i32) -> (i32, i32) {
    %c0_i32 = arith.constant 0 : i32
    %c0_i32_0 = arith.constant 0 : i32
    %c0_i32_1 = arith.constant 0 : i32
    return %c0_i32, %c0_i32_0 : i32, i32
  }
  func.func @transform_2(%arg0: i32) -> (i32, i32) {
    %c0_i32 = arith.constant 0 : i32
    %c0_i32_0 = arith.constant 0 : i32
    %c0_i32_1 = arith.constant 0 : i32
    return %c0_i32, %c0_i32_0 : i32, i32
  }
  func.func @transform_3(%arg0: i32) -> (i32, i32) {
    %c0_i32 = arith.constant 0 : i32
    %c0_i32_0 = arith.constant 0 : i32
    return %arg0, %c0_i32 : i32, i32
  }
}

</mosaic_0001>

<bundles_post_ra>
// kernel: cnn_encoder.3
= control target key start
LH: loop header
LB: loop body
LE: loop exit
PB: predicated region body
PF: predicated region fallthrough
CT: control target
= control target key end

     0   :  { %v806_v36 = vlaneseq  ;;  %v8138_v37 = vmov 1966171168   ;;  %s10673_s0 = inlined_call_operand.vmem [shape: bf16[2,3136], index: 0, kind: input, shape index: {}]   ;;  %s10674_s1 = inlined_call_operand.vmem [shape: bf16[3136,512], index: 1, kind: input, shape index: {}]   ;;  %s10675_s2 = inlined_call_operand.vmem [shape: f32[1,512], index: 2, kind: input, shape index: {}]   ;;  %s10676_s3 = inlined_call_operand.hbm [shape: f32[2,512], index: 3, kind: output, shape index: {}]  }
   0x1   :  { %v6933_v0 = vld [vmem:[%s10674_s1 + $0x4] ss:$16 sps:$4 sm:$0xff]   ;;  %v6935_v1 = vld [vmem:[%s10674_s1 + $0xc] ss:$16 sps:$4 sm:$0xff]   ;;  %v6937_v2 = vld [vmem:[%s10674_s1] ss:$16 sps:$4 sm:$0xff]   ;;  %v832_v38 = vunpack.c.l.s4 %v8138_v37 }
   0x2   :  { %4939 = vmatprep.subr.bf16.mxu0 %v6933_v0  ;;  %v6938_v3 = vld [vmem:[%s10674_s1 + $0x8] ss:$16 sps:$4 sm:$0xff]   ;;  %5472 = vmatprep.subr.bf16.mxu1 %v6935_v1  ;;  %v6939_v4 = vld [vmem:[%s10674_s1 + $0x24] ss:$16 sps:$4 sm:$0xff]   ;;  %v6941_v5 = vld [vmem:[%s10674_s1 + $0x2c] ss:$16 sps:$4 sm:$0xff]  }
   0x3   :  { %4940 = vmatpush1.bf16.msra.mxu0 %v6937_v2  ;;  %5473 = vmatpush1.bf16.msra.mxu1 %v6938_v3  ;;  %v6943_v6 = vld [vmem:[%s10674_s1 + $0x20] ss:$16 sps:$4 sm:$0xff]   ;;  %v6944_v7 = vld [vmem:[%s10674_s1 + $0x28] ss:$16 sps:$4 sm:$0xff]   ;;  %v6945_v8 = vld [vmem:[%s10674_s1 + $0x44] ss:$16 sps:$4 sm:$0xff]   ;;  %v833_v43 = vunpack.c.0.s8 %v832_v38 }
   0x4   :  { %4941 = vmatprep.subr.bf16.mxu0 %v6939_v4  ;;  %5474 = vmatprep.subr.bf16.mxu1 %v6941_v5  ;;  %v6947_v9 = vld [vmem:[%s10674_s1 + $0x4c] ss:$16 sps:$4 sm:$0xff]   ;;  %v6949_v10 = vld [vmem:[%s10674_s1 + $0x40] ss:$16 sps:$4 sm:$0xff]   ;;  %v6950_v11 = vld [vmem:[%s10674_s1 + $0x48] ss:$16 sps:$4 sm:$0xff]  }
   0x5   :  { %v6951_v12 = vld [vmem:[%s10674_s1 + $0x64] ss:$16 sps:$4 sm:$0xff]   ;;  %v6953_v13 = vld [vmem:[%s10674_s1 + $0x6c] ss:$16 sps:$4 sm:$0xff]   ;;  %v6955_v14 = vld [vmem:[%s10674_s1 + $0x60] ss:$16 sps:$4 sm:$0xff]  }
   0x6   :  { %v6956_v15 = vld [vmem:[%s10674_s1 + $0x68] ss:$16 sps:$4 sm:$0xff]   ;;  %v6957_v16 = vld [vmem:[%s10674_s1 + $0x84] ss:$16 sps:$4 sm:$0xff]   ;;  %v6959_v17 = vld [vmem:[%s10674_s1 + $0x8c] ss:$16 sps:$4 sm:$0xff]  }
   0x7   :  { %4942 = vmatpush1.bf16.msra.mxu0 %v6943_v6  ;;  %5475 = vmatpush1.bf16.msra.mxu1 %v6944_v7  ;;  %v6961_v18 = vld [vmem:[%s10674_s1 + $0x80] ss:$16 sps:$4 sm:$0xff]   ;;  %v6962_v19 = vld [vmem:[%s10674_s1 + $0x88] ss:$16 sps:$4 sm:$0xff]   ;;  %v6963_v20 = vld [vmem:[%s10674_s1 + $0xa4] ss:$16 sps:$4 sm:$0xff]  }
   0x8   :  { %4943 = vmatprep.subr.bf16.mxu0 %v6945_v8  ;;  %5476 = vmatprep.subr.bf16.mxu1 %v6947_v9  ;;  %v6965_v21 = vld [vmem:[%s10674_s1 + $0xac] ss:$16 sps:$4 sm:$0xff]   ;;  %v6967_v22 = vld [vmem:[%s10674_s1 + $0xa0] ss:$16 sps:$4 sm:$0xff]   ;;  %v6968_v23 = vld [vmem:[%s10674_s1 + $0xa8] ss:$16 sps:$4 sm:$0xff]  }
   0x9   :  { %v6969_v24 = vld [vmem:[%s10674_s1 + $0xc4] ss:$16 sps:$4 sm:$0xff]   ;;  %v6971_v25 = vld [vmem:[%s10674_s1 + $0xcc] ss:$16 sps:$4 sm:$0xff]   ;;  %v6973_v26 = vld [vmem:[%s10674_s1 + $0xc0] ss:$16 sps:$4 sm:$0xff]  }
   0xa   :  { %v6974_v27 = vld [vmem:[%s10674_s1 + $0xc8] ss:$16 sps:$4 sm:$0xff]   ;;  %v6975_v28 = vld [vmem:[%s10674_s1 + $0xe4] ss:$16 sps:$4 sm:$0xff]   ;;  %v6977_v29 = vld [vmem:[%s10674_s1 + $0xec] ss:$16 sps:$4 sm:$0xff]  }
   0xb   :  { %4944 = vmatpush1.bf16.msra.mxu0 %v6949_v10  ;;  %5477 = vmatpush1.bf16.msra.mxu1 %v6950_v11  ;;  %v6979_v30 = vld [vmem:[%s10674_s1 + $0xe0] ss:$16 sps:$4 sm:$0xff]   ;;  %v6980_v31 = vld [vmem:[%s10674_s1 + $0xe8] ss:$16 sps:$4 sm:$0xff]   ;;  %v6981_v32 = vld [vmem:[%s10674_s1 + $0x104] ss:$16 sps:$4 sm:$0xff]  }
   0xc   :  { %4945 = vmatprep.subr.bf16.mxu0 %v6951_v12  ;;  %5478 = vmatprep.subr.bf16.mxu1 %v6953_v13  ;;  %v6983_v33 = vld [vmem:[%s10674_s1 + $0x10c] ss:$16 sps:$4 sm:$0xff]   ;;  %v6985_v34 = vld [vmem:[%s10674_s1 + $0x100] ss:$16 sps:$4 sm:$0xff]   ;;  %v6986_v35 = vld [vmem:[%s10674_s1 + $0x108] ss:$16 sps:$4 sm:$0xff]  }
   0xd   :  { %v6987_v39 = vld [vmem:[%s10674_s1 + $0x124] ss:$16 sps:$4 sm:$0xff]   ;;  %v6989_v40 = vld [vmem:[%s10674_s1 + $0x12c] ss:$16 sps:$4 sm:$0xff]   ;;  %v6991_v41 = vld [vmem:[%s10674_s1 + $0x120] ss:$16 sps:$4 sm:$0xff]  }
   0xe   :  { %v8279_v42 = vshrl.u32 %v806_v36, 7  ;;  %v6992_v44 = vld [vmem:[%s10674_s1 + $0x128] ss:$16 sps:$4 sm:$0xff]   ;;  %v6993_v45 = vld [vmem:[%s10674_s1 + $0x144] ss:$16 sps:$4 sm:$0xff]  }
   0xf   :  { %4946 = vmatpush1.bf16.msra.mxu0 %v6955_v14  ;;  %5479 = vmatpush1.bf16.msra.mxu1 %v6956_v15  ;;  %v6995_v46 = vld [vmem:[%s10674_s1 + $0x14c] ss:$16 sps:$4 sm:$0xff]   ;;  %v6997_v47 = vld [vmem:[%s10674_s1 + $0x140] ss:$16 sps:$4 sm:$0xff]   ;;  %v6998_v48 = vld [vmem:[%s10674_s1 + $0x148] ss:$16 sps:$4 sm:$0xff]  }
  0x10   :  { %4947 = vmatprep.subr.bf16.mxu0 %v6957_v16  ;;  %5480 = vmatprep.subr.bf16.mxu1 %v6959_v17  ;;  %v8297_v49 = vsub.s32 %v833_v43, %v8279_v42  ;;  %v6999_v50 = vld [vmem:[%s10674_s1 + $0x164] ss:$16 sps:$4 sm:$0xff]   ;;  %v7001_v51 = vld [vmem:[%s10674_s1 + $0x16c] ss:$16 sps:$4 sm:$0xff]   ;;  %v7003_v53 = vld [vmem:[%s10674_s1 + $0x160] ss:$16 sps:$4 sm:$0xff]  }
  0x11   :  { %v8308_v52 = vld [vmem:[%s10673_s0] sm:$0xff]  ;;  %v7004_v55 = vld [vmem:[%s10674_s1 + $0x168] ss:$16 sps:$4 sm:$0xff]   ;;  %v7007_v57 = vld [vmem:[%s10674_s1 + $0x18c] ss:$16 sps:$4 sm:$0xff]  }
  0x12   :  { %v837_v54 = vrot.slane %v8308_v52, %v8297_v49  ;;  %v7005_v56 = vld [vmem:[%s10674_s1 + $0x184] ss:$16 sps:$4 sm:$0xff]   ;;  %v7009_v59 = vld [vmem:[%s10674_s1 + $0x180] ss:$16 sps:$4 sm:$0xff]   ;;  %v7010_v61 = vld [vmem:[%s10674_s1 + $0x188] ss:$16 sps:$4 sm:$0xff]  }
  0x13   :  { %4948 = vmatpush1.bf16.msra.mxu0 %v6961_v18  ;;  %5481 = vmatpush1.bf16.msra.mxu1 %v6962_v19  ;;  %v7011_v62 = vld [vmem:[%s10674_s1 + $0x1a4] ss:$16 sps:$4 sm:$0xff]   ;;  %v7013_v63 = vld [vmem:[%s10674_s1 + $0x1ac] ss:$16 sps:$4 sm:$0xff]   ;;  %v7015_v0 = vld [vmem:[%s10674_s1 + $0x1a0] ss:$16 sps:$4 sm:$0xff]  }
  0x14   :  { %4949 = vmatprep.subr.bf16.mxu0 %v6963_v20  ;;  %5482 = vmatprep.subr.bf16.mxu1 %v6965_v21  ;;  %v845_v58 = vcombine.high %v837_v54, %v837_v54  ;;  %v7016_v1 = vld [vmem:[%s10674_s1 + $0x1a8] ss:$16 sps:$4 sm:$0xff]   ;;  %v7017_v2 = vld [vmem:[%s10674_s1 + $0x1c4] ss:$16 sps:$4 sm:$0xff]   ;;  %v7019_v3 = vld [vmem:[%s10674_s1 + $0x1cc] ss:$16 sps:$4 sm:$0xff]   ;;  %v8377_v13 = vrot.slane %v837_v54, %v8297_v49 }
  0x15   :  { %v7021_v4 = vld [vmem:[%s10674_s1 + $0x1c0] ss:$16 sps:$4 sm:$0xff]   ;;  %v7022_v5 = vld [vmem:[%s10674_s1 + $0x1c8] ss:$16 sps:$4 sm:$0xff]   ;;  %v7023_v6 = vld [vmem:[%s10674_s1 + $0x1e4] ss:$16 sps:$4 sm:$0xff]  }
  0x16   :  { %v867_v60 = vrot.slane %v845_v58, %v8297_v49  ;;  %v7025_v7 = vld [vmem:[%s10674_s1 + $0x1ec] ss:$16 sps:$4 sm:$0xff]   ;;  %v7027_v8 = vld [vmem:[%s10674_s1 + $0x1e0] ss:$16 sps:$4 sm:$0xff]   ;;  %v7028_v9 = vld [vmem:[%s10674_s1 + $0x1e8] ss:$16 sps:$4 sm:$0xff]  }
  0x17   :  { %4950 = vmatpush1.bf16.msra.mxu0 %v6967_v22  ;;  %5483 = vmatpush1.bf16.msra.mxu1 %v6968_v23  ;;  %v7031_v10 = vld [vmem:[%s10674_s1 + $0x204] ss:$16 sps:$4 sm:$0xff]   ;;  %v7034_v11 = vld [vmem:[%s10674_s1 + $0x20c] ss:$16 sps:$4 sm:$0xff]   ;;  %v7029_v12 = vld [vmem:[%s10674_s1 + $0x200] ss:$16 sps:$4 sm:$0xff]  }
  0x18   :  { %4951 = vmatprep.subr.bf16.mxu0 %v6969_v24  ;;  %5484 = vmatprep.subr.bf16.mxu1 %v6971_v25  ;;  %v7032_v14 = vld [vmem:[%s10674_s1 + $0x208] ss:$16 sps:$4 sm:$0xff]   ;;  %v7037_v15 = vld [vmem:[%s10674_s1 + $0x224] ss:$16 sps:$4 sm:$0xff]   ;;  %v7040_v16 = vld [vmem:[%s10674_s1 + $0x22c] ss:$16 sps:$4 sm:$0xff]   ;;  %v877_v17 = vcombine.high %v867_v60, %v867_v60 }
  0x19   :  { %4971 = vmatprep.mubr.bf16.mxu0 %v867_v60  ;;  %5504 = vmatprep.mubr.bf16.mxu1 %v867_v60  ;;  %v7035_v18 = vld [vmem:[%s10674_s1 + $0x220] ss:$16 sps:$4 sm:$0xff]   ;;  %v7038_v19 = vld [vmem:[%s10674_s1 + $0x228] ss:$16 sps:$4 sm:$0xff]   ;;  %v7043_v20 = vld [vmem:[%s10674_s1 + $0x244] ss:$16 sps:$4 sm:$0xff]  }
  0x1a   :  { %v7046_v21 = vld [vmem:[%s10674_s1 + $0x24c] ss:$16 sps:$4 sm:$0xff]   ;;  %v7041_v22 = vld [vmem:[%s10674_s1 + $0x240] ss:$16 sps:$4 sm:$0xff]   ;;  %v7044_v23 = vld [vmem:[%s10674_s1 + $0x248] ss:$16 sps:$4 sm:$0xff]  }
  0x1b   :  { %4952 = vmatpush1.bf16.msra.mxu0 %v6973_v26  ;;  %5485 = vmatpush1.bf16.msra.mxu1 %v6974_v27  ;;  %v7049_v24 = vld [vmem:[%s10674_s1 + $0x264] ss:$16 sps:$4 sm:$0xff]   ;;  %v7052_v25 = vld [vmem:[%s10674_s1 + $0x26c] ss:$16 sps:$4 sm:$0xff]   ;;  %v7047_v26 = vld [vmem:[%s10674_s1 + $0x260] ss:$16 sps:$4 sm:$0xff]  }
  0x1c   :  { %4953 = vmatprep.subr.bf16.mxu0 %v6975_v28  ;;  %5486 = vmatprep.subr.bf16.mxu1 %v6977_v29  ;;  %v7050_v27 = vld [vmem:[%s10674_s1 + $0x268] ss:$16 sps:$4 sm:$0xff]   ;;  %v7055_v28 = vld [vmem:[%s10674_s1 + $0x284] ss:$16 sps:$4 sm:$0xff]   ;;  %v7058_v29 = vld [vmem:[%s10674_s1 + $0x28c] ss:$16 sps:$4 sm:$0xff]  }
  0x1d   :  { %v7067_v36 = vld [vmem:[%s10674_s1 + $0x2c4] ss:$16 sps:$4 sm:$0xff]   ;;  %v7070_v37 = vld [vmem:[%s10674_s1 + $0x2cc] ss:$16 sps:$4 sm:$0xff]   ;;  %v7065_v38 = vld [vmem:[%s10674_s1 + $0x2c0] ss:$16 sps:$4 sm:$0xff]  }
  0x1e   :  { %v7071_v43 = vld [vmem:[%s10674_s1 + $0x2e0] ss:$16 sps:$4 sm:$0xff]   ;;  %v7086_v54 = vld [vmem:[%s10674_s1 + $0x328] ss:$16 sps:$4 sm:$0xff]   ;;  %v7100_v60 = vld [vmem:[%s10674_s1 + $0x36c] ss:$16 sps:$4 sm:$0xff]  }
  0x1f   :  { %4954 = vmatpush1.bf16.msra.mxu0 %v6979_v30  ;;  %5487 = vmatpush1.bf16.msra.mxu1 %v6980_v31  ;;  %v7053_v30 = vld [vmem:[%s10674_s1 + $0x280] ss:$16 sps:$4 sm:$0xff]   ;;  %v7056_v31 = vld [vmem:[%s10674_s1 + $0x288] ss:$16 sps:$4 sm:$0xff]  }
  0x20   :  { %4955 = vmatprep.subr.bf16.mxu0 %v6981_v32  ;;  %5488 = vmatprep.subr.bf16.mxu1 %v6983_v33  ;;  %v7061_v32 = vld [vmem:[%s10674_s1 + $0x2a4] ss:$16 sps:$4 sm:$0xff]   ;;  %v7064_v33 = vld [vmem:[%s10674_s1 + $0x2ac] ss:$16 sps:$4 sm:$0xff]   ;;  %v7092_v58 = vld [vmem:[%s10674_s1 + $0x348] ss:$16 sps:$4 sm:$0xff]  }
  0x23   :  { %4956 = vmatpush1.bf16.msra.mxu0 %v6985_v34  ;;  %5489 = vmatpush1.bf16.msra.mxu1 %v6986_v35  ;;  %v7059_v34 = vld [vmem:[%s10674_s1 + $0x2a0] ss:$16 sps:$4 sm:$0xff]   ;;  %v7062_v35 = vld [vmem:[%s10674_s1 + $0x2a8] ss:$16 sps:$4 sm:$0xff]  }
  0x24   :  { %4957 = vmatprep.subr.bf16.mxu0 %v6987_v39  ;;  %5490 = vmatprep.subr.bf16.mxu1 %v6989_v40  ;;  %v7068_v39 = vld [vmem:[%s10674_s1 + $0x2c8] ss:$16 sps:$4 sm:$0xff]   ;;  %v7073_v40 = vld [vmem:[%s10674_s1 + $0x2e4] ss:$16 sps:$4 sm:$0xff]  }
  0x27   :  { %4958 = vmatpush1.bf16.msra.mxu0 %v6991_v41  ;;  %5491 = vmatpush1.bf16.msra.mxu1 %v6992_v44  ;;  %v7076_v41 = vld [vmem:[%s10674_s1 + $0x2ec] ss:$16 sps:$4 sm:$0xff]   ;;  %v7074_v44 = vld [vmem:[%s10674_s1 + $0x2e8] ss:$16 sps:$4 sm:$0xff]  }
  0x28   :  { %4959 = vmatprep.subr.bf16.mxu0 %v6993_v45  ;;  %5492 = vmatprep.subr.bf16.mxu1 %v6995_v46  ;;  %v7079_v45 = vld [vmem:[%s10674_s1 + $0x304] ss:$16 sps:$4 sm:$0xff]   ;;  %v7082_v46 = vld [vmem:[%s10674_s1 + $0x30c] ss:$16 sps:$4 sm:$0xff]  }
  0x2b   :  { %4960 = vmatpush1.bf16.msra.mxu0 %v6997_v47  ;;  %5493 = vmatpush1.bf16.msra.mxu1 %v6998_v48  ;;  %v7077_v47 = vld [vmem:[%s10674_s1 + $0x300] ss:$16 sps:$4 sm:$0xff]   ;;  %v7080_v48 = vld [vmem:[%s10674_s1 + $0x308] ss:$16 sps:$4 sm:$0xff]  }
  0x2c   :  { %4961 = vmatprep.subr.bf16.mxu0 %v6999_v50  ;;  %5494 = vmatprep.subr.bf16.mxu1 %v7001_v51  ;;  %v7085_v50 = vld [vmem:[%s10674_s1 + $0x324] ss:$16 sps:$4 sm:$0xff]   ;;  %v7088_v51 = vld [vmem:[%s10674_s1 + $0x32c] ss:$16 sps:$4 sm:$0xff]  }
  0x2f   :  { %4962 = vmatpush1.bf16.msra.mxu0 %v7003_v53  ;;  %5495 = vmatpush1.bf16.msra.mxu1 %v7004_v55  ;;  %v7083_v53 = vld [vmem:[%s10674_s1 + $0x320] ss:$16 sps:$4 sm:$0xff]   ;;  %v7091_v55 = vld [vmem:[%s10674_s1 + $0x344] ss:$16 sps:$4 sm:$0xff]  }
  0x30   :  { %4963 = vmatprep.subr.bf16.mxu0 %v7005_v56  ;;  %5496 = vmatprep.subr.bf16.mxu1 %v7007_v57  ;;  %v7094_v56 = vld [vmem:[%s10674_s1 + $0x34c] ss:$16 sps:$4 sm:$0xff]   ;;  %v7089_v57 = vld [vmem:[%s10674_s1 + $0x340] ss:$16 sps:$4 sm:$0xff]  }
  0x33   :  { %4964 = vmatpush1.bf16.msra.mxu0 %v7009_v59  ;;  %5497 = vmatpush1.bf16.msra.mxu1 %v7010_v61  ;;  %v7097_v59 = vld [vmem:[%s10674_s1 + $0x364] ss:$16 sps:$4 sm:$0xff]   ;;  %v7095_v61 = vld [vmem:[%s10674_s1 + $0x360] ss:$16 sps:$4 sm:$0xff]  }
  0x34   :  { %4965 = vmatprep.subr.bf16.mxu0 %v7011_v62  ;;  %5498 = vmatprep.subr.bf16.mxu1 %v7013_v63  ;;  %v7098_v62 = vld [vmem:[%s10674_s1 + $0x368] ss:$16 sps:$4 sm:$0xff]   ;;  %v7103_v63 = vld [vmem:[%s10674_s1 + $0x384] ss:$16 sps:$4 sm:$0xff]  }
  0x37   :  { %4966 = vmatpush1.bf16.msra.mxu0 %v7015_v0  ;;  %5499 = vmatpush1.bf16.msra.mxu1 %v7016_v1  ;;  %v7106_v0 = vld [vmem:[%s10674_s1 + $0x38c] ss:$16 sps:$4 sm:$0xff]   ;;  %v7101_v1 = vld [vmem:[%s10674_s1 + $0x380] ss:$16 sps:$4 sm:$0xff]  }
  0x38   :  { %4967 = vmatprep.subr.bf16.mxu0 %v7017_v2  ;;  %5500 = vmatprep.subr.bf16.mxu1 %v7019_v3  ;;  %v7104_v2 = vld [vmem:[%s10674_s1 + $0x388] ss:$16 sps:$4 sm:$0xff]   ;;  %v7109_v3 = vld [vmem:[%s10674_s1 + $0x3a4] ss:$16 sps:$4 sm:$0xff]  }
  0x3b   :  { %4968 = vmatpush1.bf16.msra.mxu0 %v7021_v4  ;;  %5501 = vmatpush1.bf16.msra.mxu1 %v7022_v5  ;;  %v7112_v4 = vld [vmem:[%s10674_s1 + $0x3ac] ss:$16 sps:$4 sm:$0xff]   ;;  %v7107_v5 = vld [vmem:[%s10674_s1 + $0x3a0] ss:$16 sps:$4 sm:$0xff]  }
  0x3c   :  { %4969 = vmatprep.subr.bf16.mxu0 %v7023_v6  ;;  %5502 = vmatprep.subr.bf16.mxu1 %v7025_v7  ;;  %v7110_v6 = vld [vmem:[%s10674_s1 + $0x3a8] ss:$16 sps:$4 sm:$0xff]   ;;  %v7115_v7 = vld [vmem:[%s10674_s1 + $0x3c4] ss:$16 sps:$4 sm:$0xff]  }
  0x3f   :  { %4970 = vmatpush1.bf16.msra.mxu0 %v7027_v8  ;;  %5503 = vmatpush1.bf16.msra.mxu1 %v7028_v9  ;;  %v7118_v8 = vld [vmem:[%s10674_s1 + $0x3cc] ss:$16 sps:$4 sm:$0xff]   ;;  %v830_v9 = vcombine.high %v8308_v52, %v8308_v52 }
  0x40   :  { %4980 = vmatprep.subr.bf16.mxu0 %v7031_v10  ;;  %5513 = vmatprep.subr.bf16.mxu1 %v7034_v11  ;;  %v7113_v10 = vld [vmem:[%s10674_s1 + $0x3c0] ss:$16 sps:$4 sm:$0xff]   ;;  %v7116_v11 = vld [vmem:[%s10674_s1 + $0x3c8] ss:$16 sps:$4 sm:$0xff]   ;;  %v7124_v52 = vld [vmem:[%s10674_s1 + $0x3ec] ss:$16 sps:$4 sm:$0xff]  }
  0x42   :  { %4972 = vmatmul.mubr.bf16.vlgmr.msra.gmra.mrb[0].mxu0 %v8377_v13  ;;  %5505 = vmatmul.mubr.bf16.vlgmr.msra.gmra.mrb[0].mxu1 %v8377_v13 }
  0x43   :  { %4981 = vmatpush1.bf16.msra.mxu0 %v7029_v12  ;;  %5514 = vmatpush1.bf16.msra.mxu1 %v7032_v14  ;;  %v7121_v12 = vld [vmem:[%s10674_s1 + $0x3e4] ss:$16 sps:$4 sm:$0xff]   ;;  %v8561_v14 = vrot.slane %v830_v9, %v8297_v49  ;;  %v7200_v9 = vld [vmem:[%s10674_s1 + $0x588] ss:$16 sps:$4 sm:$0xff]  }
  0x44   :  { %4982 = vmatprep.subr.bf16.mxu0 %v7037_v15  ;;  %5515 = vmatprep.subr.bf16.mxu1 %v7040_v16  ;;  %v7119_v15 = vld [vmem:[%s10674_s1 + $0x3e0] ss:$16 sps:$4 sm:$0xff]   ;;  %v7122_v16 = vld [vmem:[%s10674_s1 + $0x3e8] ss:$16 sps:$4 sm:$0xff]  }
  0x45   :  { %5012 = vmatprep.mubr.bf16.mxu0 %v877_v17  ;;  %5545 = vmatprep.mubr.bf16.mxu1 %v877_v17  ;;  %v7127_v17 = vld [vmem:[%s10674_s1 + $0x404] ss:$16 sps:$4 sm:$0xff]  }
  0x47   :  { %4983 = vmatpush1.bf16.msra.mxu0 %v7035_v18  ;;  %5516 = vmatpush1.bf16.msra.mxu1 %v7038_v19  ;;  %v7130_v18 = vld [vmem:[%s10674_s1 + $0x40c] ss:$16 sps:$4 sm:$0xff]   ;;  %v846_v19 = vcombine.high %v8561_v14, %v8561_v14 }
  0x48   :  { %4984 = vmatprep.subr.bf16.mxu0 %v7043_v20  ;;  %5517 = vmatprep.subr.bf16.mxu1 %v7046_v21  ;;  %v7125_v20 = vld [vmem:[%s10674_s1 + $0x400] ss:$16 sps:$4 sm:$0xff]   ;;  %v875_v21 = vcombine.high %v8377_v13, %v8377_v13 }
  0x49   :  { %v7131_v13 = vld [vmem:[%s10674_s1 + $0x420] ss:$16 sps:$4 sm:$0xff]  }
  0x4b   :  { %4985 = vmatpush1.bf16.msra.mxu0 %v7041_v22  ;;  %5518 = vmatpush1.bf16.msra.mxu1 %v7044_v23  ;;  %v7128_v22 = vld [vmem:[%s10674_s1 + $0x408] ss:$16 sps:$4 sm:$0xff]   ;;  %v7133_v23 = vld [vmem:[%s10674_s1 + $0x424] ss:$16 sps:$4 sm:$0xff]  }
  0x4c   :  { %4986 = vmatprep.subr.bf16.mxu0 %v7049_v24  ;;  %5519 = vmatprep.subr.bf16.mxu1 %v7052_v25  ;;  %v7136_v24 = vld [vmem:[%s10674_s1 + $0x42c] ss:$16 sps:$4 sm:$0xff]   ;;  %v8592_v25 = vrot.slane %v846_v19, %v8297_v49  ;;  %v7217_v19 = vld [vmem:[%s10674_s1 + $0x5e4] ss:$16 sps:$4 sm:$0xff]  }
  0x4f   :  { %4987 = vmatpush1.bf16.msra.mxu0 %v7047_v26  ;;  %5520 = vmatpush1.bf16.msra.mxu1 %v7050_v27  ;;  %v7134_v26 = vld [vmem:[%s10674_s1 + $0x428] ss:$16 sps:$4 sm:$0xff]   ;;  %v7139_v27 = vld [vmem:[%s10674_s1 + $0x444] ss:$16 sps:$4 sm:$0xff]  }
  0x50   :  { %4988 = vmatprep.subr.bf16.mxu0 %v7055_v28  ;;  %5521 = vmatprep.subr.bf16.mxu1 %v7058_v29  ;;  %v7142_v28 = vld [vmem:[%s10674_s1 + $0x44c] ss:$16 sps:$4 sm:$0xff]   ;;  %v7137_v29 = vld [vmem:[%s10674_s1 + $0x440] ss:$16 sps:$4 sm:$0xff]  }
  0x53   :  { %4989 = vmatpush1.bf16.msra.mxu0 %v7053_v30  ;;  %5522 = vmatpush1.bf16.msra.mxu1 %v7056_v31  ;;  %v7140_v30 = vld [vmem:[%s10674_s1 + $0x448] ss:$16 sps:$4 sm:$0xff]   ;;  %v7145_v31 = vld [vmem:[%s10674_s1 + $0x464] ss:$16 sps:$4 sm:$0xff]  }
  0x54   :  { %4990 = vmatprep.subr.bf16.mxu0 %v7061_v32  ;;  %5523 = vmatprep.subr.bf16.mxu1 %v7064_v33  ;;  %v7148_v32 = vld [vmem:[%s10674_s1 + $0x46c] ss:$16 sps:$4 sm:$0xff]   ;;  %v7143_v33 = vld [vmem:[%s10674_s1 + $0x460] ss:$16 sps:$4 sm:$0xff]  }
  0x57   :  { %4991 = vmatpush1.bf16.msra.mxu0 %v7059_v34  ;;  %5524 = vmatpush1.bf16.msra.mxu1 %v7062_v35  ;;  %v7146_v34 = vld [vmem:[%s10674_s1 + $0x468] ss:$16 sps:$4 sm:$0xff]   ;;  %v7151_v35 = vld [vmem:[%s10674_s1 + $0x484] ss:$16 sps:$4 sm:$0xff]  }
  0x58   :  { %4992 = vmatprep.subr.bf16.mxu0 %v7067_v36  ;;  %5525 = vmatprep.subr.bf16.mxu1 %v7070_v37  ;;  %v7154_v36 = vld [vmem:[%s10674_s1 + $0x48c] ss:$16 sps:$4 sm:$0xff]   ;;  %v7149_v37 = vld [vmem:[%s10674_s1 + $0x480] ss:$16 sps:$4 sm:$0xff]  }
  0x5b   :  { %4993 = vmatpush1.bf16.msra.mxu0 %v7065_v38  ;;  %5526 = vmatpush1.bf16.msra.mxu1 %v7068_v39  ;;  %v7152_v38 = vld [vmem:[%s10674_s1 + $0x488] ss:$16 sps:$4 sm:$0xff]   ;;  %v7157_v39 = vld [vmem:[%s10674_s1 + $0x4a4] ss:$16 sps:$4 sm:$0xff]  }
  0x5c   :  { %4994 = vmatprep.subr.bf16.mxu0 %v7073_v40  ;;  %5527 = vmatprep.subr.bf16.mxu1 %v7076_v41  ;;  %v7160_v40 = vld [vmem:[%s10674_s1 + $0x4ac] ss:$16 sps:$4 sm:$0xff]   ;;  %v7155_v41 = vld [vmem:[%s10674_s1 + $0x4a0] ss:$16 sps:$4 sm:$0xff]  }
  0x5f   :  { %4995 = vmatpush1.bf16.msra.mxu0 %v7071_v43  ;;  %5528 = vmatpush1.bf16.msra.mxu1 %v7074_v44  ;;  %v7158_v43 = vld [vmem:[%s10674_s1 + $0x4a8] ss:$16 sps:$4 sm:$0xff]   ;;  %v7163_v44 = vld [vmem:[%s10674_s1 + $0x4c4] ss:$16 sps:$4 sm:$0xff]  }
  0x60   :  { %4996 = vmatprep.subr.bf16.mxu0 %v7079_v45  ;;  %5529 = vmatprep.subr.bf16.mxu1 %v7082_v46  ;;  %v7166_v45 = vld [vmem:[%s10674_s1 + $0x4cc] ss:$16 sps:$4 sm:$0xff]   ;;  %v7161_v46 = vld [vmem:[%s10674_s1 + $0x4c0] ss:$16 sps:$4 sm:$0xff]  }
  0x63   :  { %4997 = vmatpush1.bf16.msra.mxu0 %v7077_v47  ;;  %5530 = vmatpush1.bf16.msra.mxu1 %v7080_v48  ;;  %v7164_v47 = vld [vmem:[%s10674_s1 + $0x4c8] ss:$16 sps:$4 sm:$0xff]   ;;  %v7169_v48 = vld [vmem:[%s10674_s1 + $0x4e4] ss:$16 sps:$4 sm:$0xff]  }
  0x64   :  { %4998 = vmatprep.subr.bf16.mxu0 %v7085_v50  ;;  %5531 = vmatprep.subr.bf16.mxu1 %v7088_v51  ;;  %v7172_v50 = vld [vmem:[%s10674_s1 + $0x4ec] ss:$16 sps:$4 sm:$0xff]   ;;  %v7167_v51 = vld [vmem:[%s10674_s1 + $0x4e0] ss:$16 sps:$4 sm:$0xff]  }
  0x67   :  { %4999 = vmatpush1.bf16.msra.mxu0 %v7083_v53  ;;  %5532 = vmatpush1.bf16.msra.mxu1 %v7086_v54  ;;  %v7170_v53 = vld [vmem:[%s10674_s1 + $0x4e8] ss:$16 sps:$4 sm:$0xff]   ;;  %v7175_v54 = vld [vmem:[%s10674_s1 + $0x504] ss:$16 sps:$4 sm:$0xff]  }
  0x68   :  { %5000 = vmatprep.subr.bf16.mxu0 %v7091_v55  ;;  %5533 = vmatprep.subr.bf16.mxu1 %v7094_v56  ;;  %v7178_v55 = vld [vmem:[%s10674_s1 + $0x50c] ss:$16 sps:$4 sm:$0xff]   ;;  %v7173_v56 = vld [vmem:[%s10674_s1 + $0x500] ss:$16 sps:$4 sm:$0xff]  }
  0x6b   :  { %5001 = vmatpush1.bf16.msra.mxu0 %v7089_v57  ;;  %5534 = vmatpush1.bf16.msra.mxu1 %v7092_v58  ;;  %v7176_v57 = vld [vmem:[%s10674_s1 + $0x508] ss:$16 sps:$4 sm:$0xff]   ;;  %v7181_v58 = vld [vmem:[%s10674_s1 + $0x524] ss:$16 sps:$4 sm:$0xff]  }
  0x6c   :  { %5002 = vmatprep.subr.bf16.mxu0 %v7097_v59  ;;  %5535 = vmatprep.subr.bf16.mxu1 %v7100_v60  ;;  %v7184_v59 = vld [vmem:[%s10674_s1 + $0x52c] ss:$16 sps:$4 sm:$0xff]   ;;  %v7179_v60 = vld [vmem:[%s10674_s1 + $0x520] ss:$16 sps:$4 sm:$0xff]  }
  0x6f   :  { %5003 = vmatpush1.bf16.msra.mxu0 %v7095_v61  ;;  %5536 = vmatpush1.bf16.msra.mxu1 %v7098_v62  ;;  %v7182_v61 = vld [vmem:[%s10674_s1 + $0x528] ss:$16 sps:$4 sm:$0xff]   ;;  %v7187_v62 = vld [vmem:[%s10674_s1 + $0x544] ss:$16 sps:$4 sm:$0xff]  }
  0x70   :  { %5004 = vmatprep.subr.bf16.mxu0 %v7103_v63  ;;  %5537 = vmatprep.subr.bf16.mxu1 %v7106_v0  ;;  %v7190_v63 = vld [vmem:[%s10674_s1 + $0x54c] ss:$16 sps:$4 sm:$0xff]   ;;  %v7185_v0 = vld [vmem:[%s10674_s1 + $0x540] ss:$16 sps:$4 sm:$0xff]  }
  0x73   :  { %5005 = vmatpush1.bf16.msra.mxu0 %v7101_v1  ;;  %5538 = vmatpush1.bf16.msra.mxu1 %v7104_v2  ;;  %v7188_v1 = vld [vmem:[%s10674_s1 + $0x548] ss:$16 sps:$4 sm:$0xff]   ;;  %v7193_v2 = vld [vmem:[%s10674_s1 + $0x564] ss:$16 sps:$4 sm:$0xff]  }
  0x74   :  { %5006 = vmatprep.subr.bf16.mxu0 %v7109_v3  ;;  %5539 = vmatprep.subr.bf16.mxu1 %v7112_v4  ;;  %v7196_v3 = vld [vmem:[%s10674_s1 + $0x56c] ss:$16 sps:$4 sm:$0xff]   ;;  %v7191_v4 = vld [vmem:[%s10674_s1 + $0x560] ss:$16 sps:$4 sm:$0xff]  }
  0x77   :  { %5007 = vmatpush1.bf16.msra.mxu0 %v7107_v5  ;;  %5540 = vmatpush1.bf16.msra.mxu1 %v7110_v6  ;;  %v7194_v5 = vld [vmem:[%s10674_s1 + $0x568] ss:$16 sps:$4 sm:$0xff]   ;;  %v7199_v6 = vld [vmem:[%s10674_s1 + $0x584] ss:$16 sps:$4 sm:$0xff]  }
  0x78   :  { %5008 = vmatprep.subr.bf16.mxu0 %v7115_v7  ;;  %5541 = vmatprep.subr.bf16.mxu1 %v7118_v8  ;;  %v7202_v7 = vld [vmem:[%s10674_s1 + $0x58c] ss:$16 sps:$4 sm:$0xff]   ;;  %v7197_v8 = vld [vmem:[%s10674_s1 + $0x580] ss:$16 sps:$4 sm:$0xff]  }
  0x7b   :  { %5009 = vmatpush1.bf16.msra.mxu0 %v7113_v10  ;;  %5542 = vmatpush1.bf16.msra.mxu1 %v7116_v11  ;;  %v7205_v10 = vld [vmem:[%s10674_s1 + $0x5a4] ss:$16 sps:$4 sm:$0xff]   ;;  %v7208_v11 = vld [vmem:[%s10674_s1 + $0x5ac] ss:$16 sps:$4 sm:$0xff]  }
  0x7c   :  { %5010 = vmatprep.subr.bf16.mxu0 %v7121_v12  ;;  %5543 = vmatprep.subr.bf16.mxu1 %v7124_v52  ;;  %v7203_v12 = vld [vmem:[%s10674_s1 + $0x5a0] ss:$16 sps:$4 sm:$0xff]   ;;  %v7206_v52 = vld [vmem:[%s10674_s1 + $0x5a8] ss:$16 sps:$4 sm:$0xff]  }
  0x7f   :  { %5011 = vmatpush1.bf16.msra.mxu0 %v7119_v15  ;;  %5544 = vmatpush1.bf16.msra.mxu1 %v7122_v16  ;;  %v7211_v15 = vld [vmem:[%s10674_s1 + $0x5c4] ss:$16 sps:$4 sm:$0xff]   ;;  %v7214_v16 = vld [vmem:[%s10674_s1 + $0x5cc] ss:$16 sps:$4 sm:$0xff]  }
  0x80   :  { %5021 = vmatprep.subr.bf16.mxu0 %v7127_v17  ;;  %5554 = vmatprep.subr.bf16.mxu1 %v7130_v18  ;;  %v7209_v17 = vld [vmem:[%s10674_s1 + $0x5c0] ss:$16 sps:$4 sm:$0xff]   ;;  %v7212_v18 = vld [vmem:[%s10674_s1 + $0x5c8] ss:$16 sps:$4 sm:$0xff]  }
  0x82   :  { %5013 = vmatmul.mubr.bf16.vlgmr.msra.gmra.mrb[0].mxu0 %v875_v21  ;;  %5546 = vmatmul.mubr.bf16.vlgmr.msra.gmra.mrb[0].mxu1 %v875_v21  ;;  %v7215_v21 = vld [vmem:[%s10674_s1 + $0x5e0] ss:$16 sps:$4 sm:$0xff]  }
  0x83   :  { %5022 = vmatpush1.bf16.msra.mxu0 %v7125_v20  ;;  %5555 = vmatpush1.bf16.msra.mxu1 %v7128_v22  ;;  %v7220_v20 = vld [vmem:[%s10674_s1 + $0x5ec] ss:$16 sps:$4 sm:$0xff]   ;;  %v7218_v22 = vld [vmem:[%s10674_s1 + $0x5e8] ss:$16 sps:$4 sm:$0xff]  }
  0x84   :  { %5023 = vmatprep.subr.bf16.mxu0 %v7133_v23  ;;  %5556 = vmatprep.subr.bf16.mxu1 %v7136_v24  ;;  %v7224_v23 = vld [vmem:[%s10674_s1 + $0x604] ss:$16 sps:$4 sm:$0xff]   ;;  %v7227_v24 = vld [vmem:[%s10674_s1 + $0x60c] ss:$16 sps:$4 sm:$0xff]  }
  0x85   :  { %5053 = vmatprep.mubr.bf16.mxu0 %v8592_v25  ;;  %5586 = vmatprep.mubr.bf16.mxu1 %v8592_v25 }
  0x87   :  { %5024 = vmatpush1.bf16.msra.mxu0 %v7131_v13  ;;  %5557 = vmatpush1.bf16.msra.mxu1 %v7134_v26  ;;  %v7222_v13 = vld [vmem:[%s10674_s1 + $0x600] ss:$16 sps:$4 sm:$0xff]   ;;  %v8781_v26 = vrot.slane %v8561_v14, %v8297_v49  ;;  %v878_v14 = vcombine.high %v8592_v25, %v8592_v25  ;;  %v7236_v25 = vld [vmem:[%s10674_s1 + $0x644] ss:$16 sps:$4 sm:$0xff]  }
  0x88   :  { %5025 = vmatprep.subr.bf16.mxu0 %v7139_v27  ;;  %5558 = vmatprep.subr.bf16.mxu1 %v7142_v28  ;;  %v7225_v27 = vld [vmem:[%s10674_s1 + $0x608] ss:$16 sps:$4 sm:$0xff]   ;;  %v7230_v28 = vld [vmem:[%s10674_s1 + $0x624] ss:$16 sps:$4 sm:$0xff]  }
  0x8b   :  { %5026 = vmatpush1.bf16.msra.mxu0 %v7137_v29  ;;  %5559 = vmatpush1.bf16.msra.mxu1 %v7140_v30  ;;  %v7233_v29 = vld [vmem:[%s10674_s1 + $0x62c] ss:$16 sps:$4 sm:$0xff]   ;;  %v7228_v30 = vld [vmem:[%s10674_s1 + $0x620] ss:$16 sps:$4 sm:$0xff]  }
  0x8c   :  { %5027 = vmatprep.subr.bf16.mxu0 %v7145_v31  ;;  %5560 = vmatprep.subr.bf16.mxu1 %v7148_v32  ;;  %v7231_v31 = vld [vmem:[%s10674_s1 + $0x628] ss:$16 sps:$4 sm:$0xff]   ;;  %v7239_v32 = vld [vmem:[%s10674_s1 + $0x64c] ss:$16 sps:$4 sm:$0xff]  }
  0x8f   :  { %5028 = vmatpush1.bf16.msra.mxu0 %v7143_v33  ;;  %5561 = vmatpush1.bf16.msra.mxu1 %v7146_v34  ;;  %v7234_v33 = vld [vmem:[%s10674_s1 + $0x640] ss:$16 sps:$4 sm:$0xff]   ;;  %v7237_v34 = vld [vmem:[%s10674_s1 + $0x648] ss:$16 sps:$4 sm:$0xff]  }
  0x90   :  { %5029 = vmatprep.subr.bf16.mxu0 %v7151_v35  ;;  %5562 = vmatprep.subr.bf16.mxu1 %v7154_v36  ;;  %v7242_v35 = vld [vmem:[%s10674_s1 + $0x664] ss:$16 sps:$4 sm:$0xff]   ;;  %v7245_v36 = vld [vmem:[%s10674_s1 + $0x66c] ss:$16 sps:$4 sm:$0xff]  }
  0x93   :  { %5030 = vmatpush1.bf16.msra.mxu0 %v7149_v37  ;;  %5563 = vmatpush1.bf16.msra.mxu1 %v7152_v38  ;;  %v7240_v37 = vld [vmem:[%s10674_s1 + $0x660] ss:$16 sps:$4 sm:$0xff]   ;;  %v7243_v38 = vld [vmem:[%s10674_s1 + $0x668] ss:$16 sps:$4 sm:$0xff]  }
  0x94   :  { %5031 = vmatprep.subr.bf16.mxu0 %v7157_v39  ;;  %5564 = vmatprep.subr.bf16.mxu1 %v7160_v40  ;;  %v7248_v39 = vld [vmem:[%s10674_s1 + $0x684] ss:$16 sps:$4 sm:$0xff]   ;;  %v7251_v40 = vld [vmem:[%s10674_s1 + $0x68c] ss:$16 sps:$4 sm:$0xff]  }
  0x97   :  { %5032 = vmatpush1.bf16.msra.mxu0 %v7155_v41  ;;  %5565 = vmatpush1.bf16.msra.mxu1 %v7158_v43  ;;  %v7246_v41 = vld [vmem:[%s10674_s1 + $0x680] ss:$16 sps:$4 sm:$0xff]   ;;  %v7249_v43 = vld [vmem:[%s10674_s1 + $0x688] ss:$16 sps:$4 sm:$0xff]  }
  0x98   :  { %5033 = vmatprep.subr.bf16.mxu0 %v7163_v44  ;;  %5566 = vmatprep.subr.bf16.mxu1 %v7166_v45  ;;  %v7254_v44 = vld [vmem:[%s10674_s1 + $0x6a4] ss:$16 sps:$4 sm:$0xff]   ;;  %v7257_v45 = vld [vmem:[%s10674_s1 + $0x6ac] ss:$16 sps:$4 sm:$0xff]  }
  0x9b   :  { %5034 = vmatpush1.bf16.msra.mxu0 %v7161_v46  ;;  %5567 = vmatpush1.bf16.msra.mxu1 %v7164_v47  ;;  %v7252_v46 = vld [vmem:[%s10674_s1 + $0x6a0] ss:$16 sps:$4 sm:$0xff]   ;;  %v7255_v47 = vld [vmem:[%s10674_s1 + $0x6a8] ss:$16 sps:$4 sm:$0xff]  }
  0x9c   :  { %5035 = vmatprep.subr.bf16.mxu0 %v7169_v48  ;;  %5568 = vmatprep.subr.bf16.mxu1 %v7172_v50  ;;  %v7260_v48 = vld [vmem:[%s10674_s1 + $0x6c4] ss:$16 sps:$4 sm:$0xff]   ;;  %v7263_v50 = vld [vmem:[%s10674_s1 + $0x6cc] ss:$16 sps:$4 sm:$0xff]  }
  0x9f   :  { %5036 = vmatpush1.bf16.msra.mxu0 %v7167_v51  ;;  %5569 = vmatpush1.bf16.msra.mxu1 %v7170_v53  ;;  %v7258_v51 = vld [vmem:[%s10674_s1 + $0x6c0] ss:$16 sps:$4 sm:$0xff]   ;;  %v7261_v53 = vld [vmem:[%s10674_s1 + $0x6c8] ss:$16 sps:$4 sm:$0xff]  }
  0xa0   :  { %5037 = vmatprep.subr.bf16.mxu0 %v7175_v54  ;;  %5570 = vmatprep.subr.bf16.mxu1 %v7178_v55  ;;  %v7266_v54 = vld [vmem:[%s10674_s1 + $0x6e4] ss:$16 sps:$4 sm:$0xff]   ;;  %v7269_v55 = vld [vmem:[%s10674_s1 + $0x6ec] ss:$16 sps:$4 sm:$0xff]  }
  0xa3   :  { %5038 = vmatpush1.bf16.msra.mxu0 %v7173_v56  ;;  %5571 = vmatpush1.bf16.msra.mxu1 %v7176_v57  ;;  %v7264_v56 = vld [vmem:[%s10674_s1 + $0x6e0] ss:$16 sps:$4 sm:$0xff]   ;;  %v7267_v57 = vld [vmem:[%s10674_s1 + $0x6e8] ss:$16 sps:$4 sm:$0xff]  }
  0xa4   :  { %5039 = vmatprep.subr.bf16.mxu0 %v7181_v58  ;;  %5572 = vmatprep.subr.bf16.mxu1 %v7184_v59  ;;  %v7272_v58 = vld [vmem:[%s10674_s1 + $0x704] ss:$16 sps:$4 sm:$0xff]   ;;  %v7275_v59 = vld [vmem:[%s10674_s1 + $0x70c] ss:$16 sps:$4 sm:$0xff]  }
  0xa7   :  { %5040 = vmatpush1.bf16.msra.mxu0 %v7179_v60  ;;  %5573 = vmatpush1.bf16.msra.mxu1 %v7182_v61  ;;  %v7270_v60 = vld [vmem:[%s10674_s1 + $0x700] ss:$16 sps:$4 sm:$0xff]   ;;  %v7273_v61 = vld [vmem:[%s10674_s1 + $0x708] ss:$16 sps:$4 sm:$0xff]  }
  0xa8   :  { %5041 = vmatprep.subr.bf16.mxu0 %v7187_v62  ;;  %5574 = vmatprep.subr.bf16.mxu1 %v7190_v63  ;;  %v7278_v62 = vld [vmem:[%s10674_s1 + $0x724] ss:$16 sps:$4 sm:$0xff]   ;;  %v7281_v63 = vld [vmem:[%s10674_s1 + $0x72c] ss:$16 sps:$4 sm:$0xff]  }
  0xab   :  { %5042 = vmatpush1.bf16.msra.mxu0 %v7185_v0  ;;  %5575 = vmatpush1.bf16.msra.mxu1 %v7188_v1  ;;  %v7276_v0 = vld [vmem:[%s10674_s1 + $0x720] ss:$16 sps:$4 sm:$0xff]   ;;  %v7279_v1 = vld [vmem:[%s10674_s1 + $0x728] ss:$16 sps:$4 sm:$0xff]  }
  0xac   :  { %5043 = vmatprep.subr.bf16.mxu0 %v7193_v2  ;;  %5576 = vmatprep.subr.bf16.mxu1 %v7196_v3  ;;  %v7284_v2 = vld [vmem:[%s10674_s1 + $0x744] ss:$16 sps:$4 sm:$0xff]   ;;  %v7287_v3 = vld [vmem:[%s10674_s1 + $0x74c] ss:$16 sps:$4 sm:$0xff]  }
  0xaf   :  { %5044 = vmatpush1.bf16.msra.mxu0 %v7191_v4  ;;  %5577 = vmatpush1.bf16.msra.mxu1 %v7194_v5  ;;  %v7282_v4 = vld [vmem:[%s10674_s1 + $0x740] ss:$16 sps:$4 sm:$0xff]   ;;  %v7285_v5 = vld [vmem:[%s10674_s1 + $0x748] ss:$16 sps:$4 sm:$0xff]  }
  0xb0   :  { %5045 = vmatprep.subr.bf16.mxu0 %v7199_v6  ;;  %5578 = vmatprep.subr.bf16.mxu1 %v7202_v7  ;;  %v7290_v6 = vld [vmem:[%s10674_s1 + $0x764] ss:$16 sps:$4 sm:$0xff]   ;;  %v7293_v7 = vld [vmem:[%s10674_s1 + $0x76c] ss:$16 sps:$4 sm:$0xff]  }
  0xb3   :  { %5046 = vmatpush1.bf16.msra.mxu0 %v7197_v8  ;;  %5579 = vmatpush1.bf16.msra.mxu1 %v7200_v9  ;;  %v7288_v8 = vld [vmem:[%s10674_s1 + $0x760] ss:$16 sps:$4 sm:$0xff]   ;;  %v7291_v9 = vld [vmem:[%s10674_s1 + $0x768] ss:$16 sps:$4 sm:$0xff]  }
  0xb4   :  { %5047 = vmatprep.subr.bf16.mxu0 %v7205_v10  ;;  %5580 = vmatprep.subr.bf16.mxu1 %v7208_v11  ;;  %v7296_v10 = vld [vmem:[%s10674_s1 + $0x784] ss:$16 sps:$4 sm:$0xff]   ;;  %v7299_v11 = vld [vmem:[%s10674_s1 + $0x78c] ss:$16 sps:$4 sm:$0xff]  }
  0xb7   :  { %5048 = vmatpush1.bf16.msra.mxu0 %v7203_v12  ;;  %5581 = vmatpush1.bf16.msra.mxu1 %v7206_v52  ;;  %v7294_v12 = vld [vmem:[%s10674_s1 + $0x780] ss:$16 sps:$4 sm:$0xff]   ;;  %v7297_v52 = vld [vmem:[%s10674_s1 + $0x788] ss:$16 sps:$4 sm:$0xff]  }
  0xb8   :  { %5049 = vmatprep.subr.bf16.mxu0 %v7211_v15  ;;  %5582 = vmatprep.subr.bf16.mxu1 %v7214_v16  ;;  %v7302_v15 = vld [vmem:[%s10674_s1 + $0x7a4] ss:$16 sps:$4 sm:$0xff]   ;;  %v7305_v16 = vld [vmem:[%s10674_s1 + $0x7ac] ss:$16 sps:$4 sm:$0xff]  }
  0xbb   :  { %5050 = vmatpush1.bf16.msra.mxu0 %v7209_v17  ;;  %5583 = vmatpush1.bf16.msra.mxu1 %v7212_v18  ;;  %v7300_v17 = vld [vmem:[%s10674_s1 + $0x7a0] ss:$16 sps:$4 sm:$0xff]   ;;  %v7303_v18 = vld [vmem:[%s10674_s1 + $0x7a8] ss:$16 sps:$4 sm:$0xff]  }
  0xbc   :  { %5051 = vmatprep.subr.bf16.mxu0 %v7217_v19  ;;  %5584 = vmatprep.subr.bf16.mxu1 %v7220_v20  ;;  %v7308_v19 = vld [vmem:[%s10674_s1 + $0x7c4] ss:$16 sps:$4 sm:$0xff]   ;;  %v7311_v20 = vld [vmem:[%s10674_s1 + $0x7cc] ss:$16 sps:$4 sm:$0xff]  }
  0xbf   :  { %5052 = vmatpush1.bf16.msra.mxu0 %v7215_v21  ;;  %5585 = vmatpush1.bf16.msra.mxu1 %v7218_v22  ;;  %v8955_v21 = vld.sshfl [vmem:[%s10673_s0 + $0x8] sm:$0xff pattern:$0x75316420]  ;;  %v7306_v22 = vld [vmem:[%s10674_s1 + $0x7c0] ss:$16 sps:$4 sm:$0xff]  }
  0xc0   :  { %5062 = vmatprep.subr.bf16.mxu0 %v7224_v23  ;;  %5595 = vmatprep.subr.bf16.mxu1 %v7227_v24  ;;  %v7309_v23 = vld [vmem:[%s10674_s1 + $0x7c8] ss:$16 sps:$4 sm:$0xff]   ;;  %v7314_v24 = vld [vmem:[%s10674_s1 + $0x7e4] ss:$16 sps:$4 sm:$0xff]  }
  0xc2   :  { %5054 = vmatmul.mubr.bf16.vlgmr.msra.gmra.mrb[0].mxu0 %v8781_v26  ;;  %5587 = vmatmul.mubr.bf16.vlgmr.msra.gmra.mrb[0].mxu1 %v8781_v26 }
  0xc3   :  { %5063 = vmatpush1.bf16.msra.mxu0 %v7222_v13  ;;  %5596 = vmatpush1.bf16.msra.mxu1 %v7225_v27  ;;  %v7317_v13 = vld [vmem:[%s10674_s1 + $0x7ec] ss:$16 sps:$4 sm:$0xff]   ;;  %v7312_v27 = vld [vmem:[%s10674_s1 + $0x7e0] ss:$16 sps:$4 sm:$0xff]  }
  0xc4   :  { %5064 = vmatprep.subr.bf16.mxu0 %v7230_v28  ;;  %5597 = vmatprep.subr.bf16.mxu1 %v7233_v29  ;;  %v7315_v28 = vld [vmem:[%s10674_s1 + $0x7e8] ss:$16 sps:$4 sm:$0xff]   ;;  %v7320_v29 = vld [vmem:[%s10674_s1 + $0x804] ss:$16 sps:$4 sm:$0xff]  }
  0xc5   :  { %5094 = vmatprep.mubr.bf16.mxu0 %v878_v14  ;;  %5627 = vmatprep.mubr.bf16.mxu1 %v878_v14  ;;  %v7323_v14 = vld [vmem:[%s10674_s1 + $0x80c] ss:$16 sps:$4 sm:$0xff]  }
  0xc7   :  { %5065 = vmatpush1.bf16.msra.mxu0 %v7228_v30  ;;  %5598 = vmatpush1.bf16.msra.mxu1 %v7231_v31  ;;  %v894_v30 = vcombine.high %v8955_v21, %v8955_v21  ;;  %v876_v31 = vcombine.high %v8781_v26, %v8781_v26  ;;  %v7329_v26 = vld [vmem:[%s10674_s1 + $0x82c] ss:$16 sps:$4 sm:$0xff]  }
  0xc8   :  { %5066 = vmatprep.subr.bf16.mxu0 %v7236_v25  ;;  %5599 = vmatprep.subr.bf16.mxu1 %v7239_v32  ;;  %v7318_v25 = vld [vmem:[%s10674_s1 + $0x800] ss:$16 sps:$4 sm:$0xff]   ;;  %v7321_v32 = vld [vmem:[%s10674_s1 + $0x808] ss:$16 sps:$4 sm:$0xff]  }
  0xcb   :  { %5067 = vmatpush1.bf16.msra.mxu0 %v7234_v33  ;;  %5600 = vmatpush1.bf16.msra.mxu1 %v7237_v34  ;;  %v7326_v33 = vld [vmem:[%s10674_s1 + $0x824] ss:$16 sps:$4 sm:$0xff]   ;;  %v8998_v34 = vrot.slane %v894_v30, %v8297_v49 }
  0xcc   :  { %5068 = vmatprep.subr.bf16.mxu0 %v7242_v35  ;;  %5601 = vmatprep.subr.bf16.mxu1 %v7245_v36  ;;  %v7324_v35 = vld [vmem:[%s10674_s1 + $0x820] ss:$16 sps:$4 sm:$0xff]   ;;  %v7327_v36 = vld [vmem:[%s10674_s1 + $0x828] ss:$16 sps:$4 sm:$0xff]   ;;  %v7410_v30 = vld [vmem:[%s10674_s1 + $0x9e4] ss:$16 sps:$4 sm:$0xff]  }
  0xcf   :  { %5069 = vmatpush1.bf16.msra.mxu0 %v7240_v37  ;;  %5602 = vmatpush1.bf16.msra.mxu1 %v7243_v38  ;;  %v7332_v37 = vld [vmem:[%s10674_s1 + $0x844] ss:$16 sps:$4 sm:$0xff]   ;;  %v7335_v38 = vld [vmem:[%s10674_s1 + $0x84c] ss:$16 sps:$4 sm:$0xff]  }
  0xd0   :  { %5070 = vmatprep.subr.bf16.mxu0 %v7248_v39  ;;  %5603 = vmatprep.subr.bf16.mxu1 %v7251_v40  ;;  %v7330_v39 = vld [vmem:[%s10674_s1 + $0x840] ss:$16 sps:$4 sm:$0xff]   ;;  %v7333_v40 = vld [vmem:[%s10674_s1 + $0x848] ss:$16 sps:$4 sm:$0xff]  }
  0xd3   :  { %5071 = vmatpush1.bf16.msra.mxu0 %v7246_v41  ;;  %5604 = vmatpush1.bf16.msra.mxu1 %v7249_v43  ;;  %v7338_v41 = vld [vmem:[%s10674_s1 + $0x864] ss:$16 sps:$4 sm:$0xff]   ;;  %v7341_v43 = vld [vmem:[%s10674_s1 + $0x86c] ss:$16 sps:$4 sm:$0xff]  }
  0xd4   :  { %5072 = vmatprep.subr.bf16.mxu0 %v7254_v44  ;;  %5605 = vmatprep.subr.bf16.mxu1 %v7257_v45  ;;  %v7336_v44 = vld [vmem:[%s10674_s1 + $0x860] ss:$16 sps:$4 sm:$0xff]   ;;  %v7339_v45 = vld [vmem:[%s10674_s1 + $0x868] ss:$16 sps:$4 sm:$0xff]  }
  0xd7   :  { %5073 = vmatpush1.bf16.msra.mxu0 %v7252_v46  ;;  %5606 = vmatpush1.bf16.msra.mxu1 %v7255_v47  ;;  %v7344_v46 = vld [vmem:[%s10674_s1 + $0x884] ss:$16 sps:$4 sm:$0xff]   ;;  %v7347_v47 = vld [vmem:[%s10674_s1 + $0x88c] ss:$16 sps:$4 sm:$0xff]  }
  0xd8   :  { %5074 = vmatprep.subr.bf16.mxu0 %v7260_v48  ;;  %5607 = vmatprep.subr.bf16.mxu1 %v7263_v50  ;;  %v7342_v48 = vld [vmem:[%s10674_s1 + $0x880] ss:$16 sps:$4 sm:$0xff]   ;;  %v7345_v50 = vld [vmem:[%s10674_s1 + $0x888] ss:$16 sps:$4 sm:$0xff]  }
  0xdb   :  { %5075 = vmatpush1.bf16.msra.mxu0 %v7258_v51  ;;  %5608 = vmatpush1.bf16.msra.mxu1 %v7261_v53  ;;  %v7350_v51 = vld [vmem:[%s10674_s1 + $0x8a4] ss:$16 sps:$4 sm:$0xff]   ;;  %v7353_v53 = vld [vmem:[%s10674_s1 + $0x8ac] ss:$16 sps:$4 sm:$0xff]  }
  0xdc   :  { %5076 = vmatprep.subr.bf16.mxu0 %v7266_v54  ;;  %5609 = vmatprep.subr.bf16.mxu1 %v7269_v55  ;;  %v7348_v54 = vld [vmem:[%s10674_s1 + $0x8a0] ss:$16 sps:$4 sm:$0xff]   ;;  %v7351_v55 = vld [vmem:[%s10674_s1 + $0x8a8] ss:$16 sps:$4 sm:$0xff]  }
  0xdf   :  { %5077 = vmatpush1.bf16.msra.mxu0 %v7264_v56  ;;  %5610 = vmatpush1.bf16.msra.mxu1 %v7267_v57  ;;  %v7356_v56 = vld [vmem:[%s10674_s1 + $0x8c4] ss:$16 sps:$4 sm:$0xff]   ;;  %v7359_v57 = vld [vmem:[%s10674_s1 + $0x8cc] ss:$16 sps:$4 sm:$0xff]  }
  0xe0   :  { %5078 = vmatprep.subr.bf16.mxu0 %v7272_v58  ;;  %5611 = vmatprep.subr.bf16.mxu1 %v7275_v59  ;;  %v7354_v58 = vld [vmem:[%s10674_s1 + $0x8c0] ss:$16 sps:$4 sm:$0xff]   ;;  %v7357_v59 = vld [vmem:[%s10674_s1 + $0x8c8] ss:$16 sps:$4 sm:$0xff]  }
  0xe3   :  { %5079 = vmatpush1.bf16.msra.mxu0 %v7270_v60  ;;  %5612 = vmatpush1.bf16.msra.mxu1 %v7273_v61  ;;  %v7362_v60 = vld [vmem:[%s10674_s1 + $0x8e4] ss:$16 sps:$4 sm:$0xff]   ;;  %v7365_v61 = vld [vmem:[%s10674_s1 + $0x8ec] ss:$16 sps:$4 sm:$0xff]  }
  0xe4   :  { %5080 = vmatprep.subr.bf16.mxu0 %v7278_v62  ;;  %5613 = vmatprep.subr.bf16.mxu1 %v7281_v63  ;;  %v7360_v62 = vld [vmem:[%s10674_s1 + $0x8e0] ss:$16 sps:$4 sm:$0xff]   ;;  %v7363_v63 = vld [vmem:[%s10674_s1 + $0x8e8] ss:$16 sps:$4 sm:$0xff]  }
  0xe7   :  { %5081 = vmatpush1.bf16.msra.mxu0 %v7276_v0  ;;  %5614 = vmatpush1.bf16.msra.mxu1 %v7279_v1  ;;  %v7368_v0 = vld [vmem:[%s10674_s1 + $0x904] ss:$16 sps:$4 sm:$0xff]   ;;  %v7371_v1 = vld [vmem:[%s10674_s1 + $0x90c] ss:$16 sps:$4 sm:$0xff]  }
  0xe8   :  { %5082 = vmatprep.subr.bf16.mxu0 %v7284_v2  ;;  %5615 = vmatprep.subr.bf16.mxu1 %v7287_v3  ;;  %v7366_v2 = vld [vmem:[%s10674_s1 + $0x900] ss:$16 sps:$4 sm:$0xff]   ;;  %v7369_v3 = vld [vmem:[%s10674_s1 + $0x908] ss:$16 sps:$4 sm:$0xff]  }
  0xeb   :  { %5083 = vmatpush1.bf16.msra.mxu0 %v7282_v4  ;;  %5616 = vmatpush1.bf16.msra.mxu1 %v7285_v5  ;;  %v7374_v4 = vld [vmem:[%s10674_s1 + $0x924] ss:$16 sps:$4 sm:$0xff]   ;;  %v7377_v5 = vld [vmem:[%s10674_s1 + $0x92c] ss:$16 sps:$4 sm:$0xff]  }
  0xec   :  { %5084 = vmatprep.subr.bf16.mxu0 %v7290_v6  ;;  %5617 = vmatprep.subr.bf16.mxu1 %v7293_v7  ;;  %v7372_v6 = vld [vmem:[%s10674_s1 + $0x920] ss:$16 sps:$4 sm:$0xff]   ;;  %v7375_v7 = vld [vmem:[%s10674_s1 + $0x928] ss:$16 sps:$4 sm:$0xff]  }
  0xef   :  { %5085 = vmatpush1.bf16.msra.mxu0 %v7288_v8  ;;  %5618 = vmatpush1.bf16.msra.mxu1 %v7291_v9  ;;  %v7380_v8 = vld [vmem:[%s10674_s1 + $0x944] ss:$16 sps:$4 sm:$0xff]   ;;  %v7383_v9 = vld [vmem:[%s10674_s1 + $0x94c] ss:$16 sps:$4 sm:$0xff]  }
  0xf0   :  { %5086 = vmatprep.subr.bf16.mxu0 %v7296_v10  ;;  %5619 = vmatprep.subr.bf16.mxu1 %v7299_v11  ;;  %v7378_v10 = vld [vmem:[%s10674_s1 + $0x940] ss:$16 sps:$4 sm:$0xff]   ;;  %v7381_v11 = vld [vmem:[%s10674_s1 + $0x948] ss:$16 sps:$4 sm:$0xff]  }
  0xf3   :  { %5087 = vmatpush1.bf16.msra.mxu0 %v7294_v12  ;;  %5620 = vmatpush1.bf16.msra.mxu1 %v7297_v52  ;;  %v7386_v12 = vld [vmem:[%s10674_s1 + $0x964] ss:$16 sps:$4 sm:$0xff]   ;;  %v7389_v52 = vld [vmem:[%s10674_s1 + $0x96c] ss:$16 sps:$4 sm:$0xff]  }
  0xf4   :  { %5088 = vmatprep.subr.bf16.mxu0 %v7302_v15  ;;  %5621 = vmatprep.subr.bf16.mxu1 %v7305_v16  ;;  %v7384_v15 = vld [vmem:[%s10674_s1 + $0x960] ss:$16 sps:$4 sm:$0xff]   ;;  %v7387_v16 = vld [vmem:[%s10674_s1 + $0x968] ss:$16 sps:$4 sm:$0xff]  }
  0xf7   :  { %5089 = vmatpush1.bf16.msra.mxu0 %v7300_v17  ;;  %5622 = vmatpush1.bf16.msra.mxu1 %v7303_v18  ;;  %v7392_v17 = vld [vmem:[%s10674_s1 + $0x984] ss:$16 sps:$4 sm:$0xff]   ;;  %v7395_v18 = vld [vmem:[%s10674_s1 + $0x98c] ss:$16 sps:$4 sm:$0xff]  }
  0xf8   :  { %5090 = vmatprep.subr.bf16.mxu0 %v7308_v19  ;;  %5623 = vmatprep.subr.bf16.mxu1 %v7311_v20  ;;  %v7390_v19 = vld [vmem:[%s10674_s1 + $0x980] ss:$16 sps:$4 sm:$0xff]   ;;  %v7393_v20 = vld [vmem:[%s10674_s1 + $0x988] ss:$16 sps:$4 sm:$0xff]  }
  0xfb   :  { %5091 = vmatpush1.bf16.msra.mxu0 %v7306_v22  ;;  %5624 = vmatpush1.bf16.msra.mxu1 %v7309_v23  ;;  %v7398_v22 = vld [vmem:[%s10674_s1 + $0x9a4] ss:$16 sps:$4 sm:$0xff]   ;;  %v7401_v23 = vld [vmem:[%s10674_s1 + $0x9ac] ss:$16 sps:$4 sm:$0xff]  }
  0xfc   :  { %5092 = vmatprep.subr.bf16.mxu0 %v7314_v24  ;;  %5625 = vmatprep.subr.bf16.mxu1 %v7317_v13  ;;  %v7396_v24 = vld [vmem:[%s10674_s1 + $0x9a0] ss:$16 sps:$4 sm:$0xff]   ;;  %v7399_v13 = vld [vmem:[%s10674_s1 + $0x9a8] ss:$16 sps:$4 sm:$0xff]  }
  0xff   :  { %5093 = vmatpush1.bf16.msra.mxu0 %v7312_v27  ;;  %5626 = vmatpush1.bf16.msra.mxu1 %v7315_v28  ;;  %v7404_v27 = vld [vmem:[%s10674_s1 + $0x9c4] ss:$16 sps:$4 sm:$0xff]   ;;  %v7407_v28 = vld [vmem:[%s10674_s1 + $0x9cc] ss:$16 sps:$4 sm:$0xff]  }
 0x100   :  { %5103 = vmatprep.subr.bf16.mxu0 %v7320_v29  ;;  %5636 = vmatprep.subr.bf16.mxu1 %v7323_v14  ;;  %v7402_v29 = vld [vmem:[%s10674_s1 + $0x9c0] ss:$16 sps:$4 sm:$0xff]   ;;  %v7405_v14 = vld [vmem:[%s10674_s1 + $0x9c8] ss:$16 sps:$4 sm:$0xff]  }
 0x102   :  { %5095 = vmatmul.mubr.bf16.vlgmr.msra.gmra.mrb[0].mxu0 %v876_v31  ;;  %5628 = vmatmul.mubr.bf16.vlgmr.msra.gmra.mrb[0].mxu1 %v876_v31  ;;  %v7413_v31 = vld [vmem:[%s10674_s1 + $0x9ec] ss:$16 sps:$4 sm:$0xff]  }
 0x103   :  { %5104 = vmatpush1.bf16.msra.mxu0 %v7318_v25  ;;  %5637 = vmatpush1.bf16.msra.mxu1 %v7321_v32  ;;  %v7408_v25 = vld [vmem:[%s10674_s1 + $0x9e0] ss:$16 sps:$4 sm:$0xff]   ;;  %v7411_v32 = vld [vmem:[%s10674_s1 + $0x9e8] ss:$16 sps:$4 sm:$0xff]  }
 0x104   :  { %5105 = vmatprep.subr.bf16.mxu0 %v7326_v33  ;;  %5638 = vmatprep.subr.bf16.mxu1 %v7329_v26  ;;  %v7416_v33 = vld [vmem:[%s10674_s1 + $0xa04] ss:$16 sps:$4 sm:$0xff]   ;;  %v7419_v26 = vld [vmem:[%s10674_s1 + $0xa0c] ss:$16 sps:$4 sm:$0xff]  }
 0x105   :  { %5135 = vmatprep.mubr.bf16.mxu0 %v8998_v34  ;;  %5668 = vmatprep.mubr.bf16.mxu1 %v8998_v34 }
 0x107   :  { %5106 = vmatpush1.bf16.msra.mxu0 %v7324_v35  ;;  %5639 = vmatpush1.bf16.msra.mxu1 %v7327_v36  ;;  %v9184_v35 = vrot.slane %v8955_v21, %v8297_v49  ;;  %v7414_v36 = vld [vmem:[%s10674_s1 + $0xa00] ss:$16 sps:$4 sm:$0xff]   ;;  %v7425_v21 = vld [vmem:[%s10674_s1 + $0xa2c] ss:$16 sps:$4 sm:$0xff]  }
 0x108   :  { %5107 = vmatprep.subr.bf16.mxu0 %v7332_v37  ;;  %5640 = vmatprep.subr.bf16.mxu1 %v7335_v38  ;;  %v7417_v37 = vld [vmem:[%s10674_s1 + $0xa08] ss:$16 sps:$4 sm:$0xff]   ;;  %v7422_v38 = vld [vmem:[%s10674_s1 + $0xa24] ss:$16 sps:$4 sm:$0xff]  }
 0x10b   :  { %5108 = vmatpush1.bf16.msra.mxu0 %v7330_v39  ;;  %5641 = vmatpush1.bf16.msra.mxu1 %v7333_v40  ;;  %v926_v39 = vcombine.high %v8998_v34, %v8998_v34  ;;  %v7420_v40 = vld [vmem:[%s10674_s1 + $0xa20] ss:$16 sps:$4 sm:$0xff]   ;;  %v7428_v34 = vld [vmem:[%s10674_s1 + $0xa44] ss:$16 sps:$4 sm:$0xff]  }
 0x10c   :  { %5109 = vmatprep.subr.bf16.mxu0 %v7338_v41  ;;  %5642 = vmatprep.subr.bf16.mxu1 %v7341_v43  ;;  %v7423_v41 = vld [vmem:[%s10674_s1 + $0xa28] ss:$16 sps:$4 sm:$0xff]   ;;  %v7431_v43 = vld [vmem:[%s10674_s1 + $0xa4c] ss:$16 sps:$4 sm:$0xff]  }
 0x10f   :  { %5110 = vmatpush1.bf16.msra.mxu0 %v7336_v44  ;;  %5643 = vmatpush1.bf16.msra.mxu1 %v7339_v45  ;;  %v7426_v44 = vld [vmem:[%s10674_s1 + $0xa40] ss:$16 sps:$4 sm:$0xff]   ;;  %v7429_v45 = vld [vmem:[%s10674_s1 + $0xa48] ss:$16 sps:$4 sm:$0xff]  }
 0x110   :  { %5111 = vmatprep.subr.bf16.mxu0 %v7344_v46  ;;  %5644 = vmatprep.subr.bf16.mxu1 %v7347_v47  ;;  %v7434_v46 = vld [vmem:[%s10674_s1 + $0xa64] ss:$16 sps:$4 sm:$0xff]   ;;  %v7437_v47 = vld [vmem:[%s10674_s1 + $0xa6c] ss:$16 sps:$4 sm:$0xff]  }
 0x113   :  { %5112 = vmatpush1.bf16.msra.mxu0 %v7342_v48  ;;  %5645 = vmatpush1.bf16.msra.mxu1 %v7345_v50  ;;  %v7432_v48 = vld [vmem:[%s10674_s1 + $0xa60] ss:$16 sps:$4 sm:$0xff]   ;;  %v7435_v50 = vld [vmem:[%s10674_s1 + $0xa68] ss:$16 sps:$4 sm:$0xff]  }
 0x114   :  { %5113 = vmatprep.subr.bf16.mxu0 %v7350_v51  ;;  %5646 = vmatprep.subr.bf16.mxu1 %v7353_v53  ;;  %v7440_v51 = vld [vmem:[%s10674_s1 + $0xa84] ss:$16 sps:$4 sm:$0xff]   ;;  %v7443_v53 = vld [vmem:[%s10674_s1 + $0xa8c] ss:$16 sps:$4 sm:$0xff]  }
 0x117   :  { %5114 = vmatpush1.bf16.msra.mxu0 %v7348_v54  ;;  %5647 = vmatpush1.bf16.msra.mxu1 %v7351_v55  ;;  %v7438_v54 = vld [vmem:[%s10674_s1 + $0xa80] ss:$16 sps:$4 sm:$0xff]   ;;  %v7441_v55 = vld [vmem:[%s10674_s1 + $0xa88] ss:$16 sps:$4 sm:$0xff]  }
 0x118   :  { %5115 = vmatprep.subr.bf16.mxu0 %v7356_v56  ;;  %5648 = vmatprep.subr.bf16.mxu1 %v7359_v57  ;;  %v7446_v56 = vld [vmem:[%s10674_s1 + $0xaa4] ss:$16 sps:$4 sm:$0xff]   ;;  %v7449_v57 = vld [vmem:[%s10674_s1 + $0xaac] ss:$16 sps:$4 sm:$0xff]  }
 0x11b   :  { %5116 = vmatpush1.bf16.msra.mxu0 %v7354_v58  ;;  %5649 = vmatpush1.bf16.msra.mxu1 %v7357_v59  ;;  %v7444_v58 = vld [vmem:[%s10674_s1 + $0xaa0] ss:$16 sps:$4 sm:$0xff]   ;;  %v7447_v59 = vld [vmem:[%s10674_s1 + $0xaa8] ss:$16 sps:$4 sm:$0xff]  }
 0x11c   :  { %5117 = vmatprep.subr.bf16.mxu0 %v7362_v60  ;;  %5650 = vmatprep.subr.bf16.mxu1 %v7365_v61  ;;  %v7452_v60 = vld [vmem:[%s10674_s1 + $0xac4] ss:$16 sps:$4 sm:$0xff]   ;;  %v7455_v61 = vld [vmem:[%s10674_s1 + $0xacc] ss:$16 sps:$4 sm:$0xff]  }
 0x11f   :  { %5118 = vmatpush1.bf16.msra.mxu0 %v7360_v62  ;;  %5651 = vmatpush1.bf16.msra.mxu1 %v7363_v63  ;;  %v7450_v62 = vld [vmem:[%s10674_s1 + $0xac0] ss:$16 sps:$4 sm:$0xff]   ;;  %v7453_v63 = vld [vmem:[%s10674_s1 + $0xac8] ss:$16 sps:$4 sm:$0xff]  }
 0x120   :  { %5119 = vmatprep.subr.bf16.mxu0 %v7368_v0  ;;  %5652 = vmatprep.subr.bf16.mxu1 %v7371_v1  ;;  %v7458_v0 = vld [vmem:[%s10674_s1 + $0xae4] ss:$16 sps:$4 sm:$0xff]   ;;  %v7461_v1 = vld [vmem:[%s10674_s1 + $0xaec] ss:$16 sps:$4 sm:$0xff]  }
 0x123   :  { %5120 = vmatpush1.bf16.msra.mxu0 %v7366_v2  ;;  %5653 = vmatpush1.bf16.msra.mxu1 %v7369_v3  ;;  %v7456_v2 = vld [vmem:[%s10674_s1 + $0xae0] ss:$16 sps:$4 sm:$0xff]   ;;  %v7459_v3 = vld [vmem:[%s10674_s1 + $0xae8] ss:$16 sps:$4 sm:$0xff]  }
 0x124   :  { %5121 = vmatprep.subr.bf16.mxu0 %v7374_v4  ;;  %5654 = vmatprep.subr.bf16.mxu1 %v7377_v5  ;;  %v7464_v4 = vld [vmem:[%s10674_s1 + $0xb04] ss:$16 sps:$4 sm:$0xff]   ;;  %v7467_v5 = vld [vmem:[%s10674_s1 + $0xb0c] ss:$16 sps:$4 sm:$0xff]  }
 0x127   :  { %5122 = vmatpush1.bf16.msra.mxu0 %v7372_v6  ;;  %5655 = vmatpush1.bf16.msra.mxu1 %v7375_v7  ;;  %v7462_v6 = vld [vmem:[%s10674_s1 + $0xb00] ss:$16 sps:$4 sm:$0xff]   ;;  %v7465_v7 = vld [vmem:[%s10674_s1 + $0xb08] ss:$16 sps:$4 sm:$0xff]  }
 0x128   :  { %5123 = vmatprep.subr.bf16.mxu0 %v7380_v8  ;;  %5656 = vmatprep.subr.bf16.mxu1 %v7383_v9  ;;  %v7470_v8 = vld [vmem:[%s10674_s1 + $0xb24] ss:$16 sps:$4 sm:$0xff]   ;;  %v7473_v9 = vld [vmem:[%s10674_s1 + $0xb2c] ss:$16 sps:$4 sm:$0xff]  }
 0x12b   :  { %5124 = vmatpush1.bf16.msra.mxu0 %v7378_v10  ;;  %5657 = vmatpush1.bf16.msra.mxu1 %v7381_v11  ;;  %v7468_v10 = vld [vmem:[%s10674_s1 + $0xb20] ss:$16 sps:$4 sm:$0xff]   ;;  %v7471_v11 = vld [vmem:[%s10674_s1 + $0xb28] ss:$16 sps:$4 sm:$0xff]  }
 0x12c   :  { %5125 = vmatprep.subr.bf16.mxu0 %v7386_v12  ;;  %5658 = vmatprep.subr.bf16.mxu1 %v7389_v52  ;;  %v7476_v12 = vld [vmem:[%s10674_s1 + $0xb44] ss:$16 sps:$4 sm:$0xff]   ;;  %v7479_v52 = vld [vmem:[%s10674_s1 + $0xb4c] ss:$16 sps:$4 sm:$0xff]  }
 0x12f   :  { %5126 = vmatpush1.bf16.msra.mxu0 %v7384_v15  ;;  %5659 = vmatpush1.bf16.msra.mxu1 %v7387_v16  ;;  %v7474_v15 = vld [vmem:[%s10674_s1 + $0xb40] ss:$16 sps:$4 sm:$0xff]   ;;  %v7477_v16 = vld [vmem:[%s10674_s1 + $0xb48] ss:$16 sps:$4 sm:$0xff]  }
 0x130   :  { %5127 = vmatprep.subr.bf16.mxu0 %v7392_v17  ;;  %5660 = vmatprep.subr.bf16.mxu1 %v7395_v18  ;;  %v7482_v17 = vld [vmem:[%s10674_s1 + $0xb64] ss:$16 sps:$4 sm:$0xff]   ;;  %v7485_v18 = vld [vmem:[%s10674_s1 + $0xb6c] ss:$16 sps:$4 sm:$0xff]  }
 0x133   :  { %5128 = vmatpush1.bf16.msra.mxu0 %v7390_v19  ;;  %5661 = vmatpush1.bf16.msra.mxu1 %v7393_v20  ;;  %v7480_v19 = vld [vmem:[%s10674_s1 + $0xb60] ss:$16 sps:$4 sm:$0xff]   ;;  %v7483_v20 = vld [vmem:[%s10674_s1 + $0xb68] ss:$16 sps:$4 sm:$0xff]  }
 0x134   :  { %5129 = vmatprep.subr.bf16.mxu0 %v7398_v22  ;;  %5662 = vmatprep.subr.bf16.mxu1 %v7401_v23  ;;  %v7488_v22 = vld [vmem:[%s10674_s1 + $0xb84] ss:$16 sps:$4 sm:$0xff]   ;;  %v7491_v23 = vld [vmem:[%s10674_s1 + $0xb8c] ss:$16 sps:$4 sm:$0xff]  }
 0x137   :  { %5130 = vmatpush1.bf16.msra.mxu0 %v7396_v24  ;;  %5663 = vmatpush1.bf16.msra.mxu1 %v7399_v13  ;;  %v7486_v24 = vld [vmem:[%s10674_s1 + $0xb80] ss:$16 sps:$4 sm:$0xff]   ;;  %v7489_v13 = vld [vmem:[%s10674_s1 + $0xb88] ss:$16 sps:$4 sm:$0xff]  }
 0x138   :  { %5131 = vmatprep.subr.bf16.mxu0 %v7404_v27  ;;  %5664 = vmatprep.subr.bf16.mxu1 %v7407_v28  ;;  %v7494_v27 = vld [vmem:[%s10674_s1 + $0xba4] ss:$16 sps:$4 sm:$0xff]   ;;  %v7497_v28 = vld [vmem:[%s10674_s1 + $0xbac] ss:$16 sps:$4 sm:$0xff]  }
 0x13b   :  { %5132 = vmatpush1.bf16.msra.mxu0 %v7402_v29  ;;  %5665 = vmatpush1.bf16.msra.mxu1 %v7405_v14  ;;  %v7492_v29 = vld [vmem:[%s10674_s1 + $0xba0] ss:$16 sps:$4 sm:$0xff]   ;;  %v7495_v14 = vld [vmem:[%s10674_s1 + $0xba8] ss:$16 sps:$4 sm:$0xff]  }
 0x13c   :  { %5133 = vmatprep.subr.bf16.mxu0 %v7410_v30  ;;  %5666 = vmatprep.subr.bf16.mxu1 %v7413_v31  ;;  %v7500_v30 = vld [vmem:[%s10674_s1 + $0xbc4] ss:$16 sps:$4 sm:$0xff]   ;;  %v7503_v31 = vld [vmem:[%s10674_s1 + $0xbcc] ss:$16 sps:$4 sm:$0xff]  }
 0x13f   :  { %5134 = vmatpush1.bf16.msra.mxu0 %v7408_v25  ;;  %5667 = vmatpush1.bf16.msra.mxu1 %v7411_v32  ;;  %v8112_v25 = vld [vmem:[%s10673_s0 + $0x8] sm:$0xff] }
 0x140   :  { %5144 = vmatprep.subr.bf16.mxu0 %v7416_v33  ;;  %5677 = vmatprep.subr.bf16.mxu1 %v7419_v26  ;;  %v879_v32 = vcombine.high %v8112_v25, %v8112_v25  ;;  %v7498_v33 = vld [vmem:[%s10674_s1 + $0xbc0] ss:$16 sps:$4 sm:$0xff]   ;;  %v7501_v26 = vld [vmem:[%s10674_s1 + $0xbc8] ss:$16 sps:$4 sm:$0xff]  }
 0x141   :  { %v7582_v25 = vld [vmem:[%s10674_s1 + $0xd80] ss:$16 sps:$4 sm:$0xff]  }
 0x142   :  { %5136 = vmatmul.mubr.bf16.vlgmr.msra.gmra.mrb[0].mxu0 %v9184_v35  ;;  %5669 = vmatmul.mubr.bf16.vlgmr.msra.gmra.mrb[0].mxu1 %v9184_v35 }
 0x143   :  { %5145 = vmatpush1.bf16.msra.mxu0 %v7414_v36  ;;  %5678 = vmatpush1.bf16.msra.mxu1 %v7417_v37  ;;  %v7506_v36 = vld [vmem:[%s10674_s1 + $0xbe4] ss:$16 sps:$4 sm:$0xff]   ;;  %v7509_v37 = vld [vmem:[%s10674_s1 + $0xbec] ss:$16 sps:$4 sm:$0xff]  }
 0x144   :  { %5146 = vmatprep.subr.bf16.mxu0 %v7422_v38  ;;  %5679 = vmatprep.subr.bf16.mxu1 %v7425_v21  ;;  %v9374_v38 = vrot.slane %v879_v32, %v8297_v49  ;;  %v7504_v21 = vld [vmem:[%s10674_s1 + $0xbe0] ss:$16 sps:$4 sm:$0xff]   ;;  %v7585_v32 = vld [vmem:[%s10674_s1 + $0xd88] ss:$16 sps:$4 sm:$0xff]  }
 0x145   :  { %5176 = vmatprep.mubr.bf16.mxu0 %v926_v39  ;;  %5709 = vmatprep.mubr.bf16.mxu1 %v926_v39  ;;  %v7507_v39 = vld [vmem:[%s10674_s1 + $0xbe8] ss:$16 sps:$4 sm:$0xff]  }
 0x147   :  { %5147 = vmatpush1.bf16.msra.mxu0 %v7420_v40  ;;  %5680 = vmatpush1.bf16.msra.mxu1 %v7423_v41  ;;  %v7512_v40 = vld [vmem:[%s10674_s1 + $0xc04] ss:$16 sps:$4 sm:$0xff]   ;;  %v7515_v41 = vld [vmem:[%s10674_s1 + $0xc0c] ss:$16 sps:$4 sm:$0xff]  }
 0x148   :  { %5148 = vmatprep.subr.bf16.mxu0 %v7428_v34  ;;  %5681 = vmatprep.subr.bf16.mxu1 %v7431_v43  ;;  %v895_v34 = vcombine.high %v9374_v38, %v9374_v38  ;;  %v924_v43 = vcombine.high %v9184_v35, %v9184_v35  ;;  %v7521_v35 = vld [vmem:[%s10674_s1 + $0xc2c] ss:$16 sps:$4 sm:$0xff]  }
 0x14b   :  { %5149 = vmatpush1.bf16.msra.mxu0 %v7426_v44  ;;  %5682 = vmatpush1.bf16.msra.mxu1 %v7429_v45  ;;  %v7510_v44 = vld [vmem:[%s10674_s1 + $0xc00] ss:$16 sps:$4 sm:$0xff]   ;;  %v7513_v45 = vld [vmem:[%s10674_s1 + $0xc08] ss:$16 sps:$4 sm:$0xff]  }
 0x14c   :  { %5150 = vmatprep.subr.bf16.mxu0 %v7434_v46  ;;  %5683 = vmatprep.subr.bf16.mxu1 %v7437_v47  ;;  %v7518_v46 = vld [vmem:[%s10674_s1 + $0xc24] ss:$16 sps:$4 sm:$0xff]   ;;  %v9405_v47 = vrot.slane %v895_v34, %v8297_v49 }
 0x14d   :  { %v7602_v34 = vld [vmem:[%s10674_s1 + $0xde4] ss:$16 sps:$4 sm:$0xff]  }
 0x14f   :  { %5151 = vmatpush1.bf16.msra.mxu0 %v7432_v48  ;;  %5684 = vmatpush1.bf16.msra.mxu1 %v7435_v50  ;;  %v7516_v48 = vld [vmem:[%s10674_s1 + $0xc20] ss:$16 sps:$4 sm:$0xff]   ;;  %v7519_v50 = vld [vmem:[%s10674_s1 + $0xc28] ss:$16 sps:$4 sm:$0xff]  }
 0x150   :  { %5152 = vmatprep.subr.bf16.mxu0 %v7440_v51  ;;  %5685 = vmatprep.subr.bf16.mxu1 %v7443_v53  ;;  %v7524_v51 = vld [vmem:[%s10674_s1 + $0xc44] ss:$16 sps:$4 sm:$0xff]   ;;  %v7527_v53 = vld [vmem:[%s10674_s1 + $0xc4c] ss:$16 sps:$4 sm:$0xff]  }
 0x153   :  { %5153 = vmatpush1.bf16.msra.mxu0 %v7438_v54  ;;  %5686 = vmatpush1.bf16.msra.mxu1 %v7441_v55  ;;  %v7522_v54 = vld [vmem:[%s10674_s1 + $0xc40] ss:$16 sps:$4 sm:$0xff]   ;;  %v7525_v55 = vld [vmem:[%s10674_s1 + $0xc48] ss:$16 sps:$4 sm:$0xff]  }
 0x154   :  { %5154 = vmatprep.subr.bf16.mxu0 %v7446_v56  ;;  %5687 = vmatprep.subr.bf16.mxu1 %v7449_v57  ;;  %v7530_v56 = vld [vmem:[%s10674_s1 + $0xc64] ss:$16 sps:$4 sm:$0xff]   ;;  %v7533_v57 = vld [vmem:[%s10674_s1 + $0xc6c] ss:$16 sps:$4 sm:$0xff]  }
 0x157   :  { %5155 = vmatpush1.bf16.msra.mxu0 %v7444_v58  ;;  %5688 = vmatpush1.bf16.msra.mxu1 %v7447_v59  ;;  %v7528_v58 = vld [vmem:[%s10674_s1 + $0xc60] ss:$16 sps:$4 sm:$0xff]   ;;  %v7531_v59 = vld [vmem:[%s10674_s1 + $0xc68] ss:$16 sps:$4 sm:$0xff]  }
 0x158   :  { %5156 = vmatprep.subr.bf16.mxu0 %v7452_v60  ;;  %5689 = vmatprep.subr.bf16.mxu1 %v7455_v61  ;;  %v7536_v60 = vld [vmem:[%s10674_s1 + $0xc84] ss:$16 sps:$4 sm:$0xff]   ;;  %v7539_v61 = vld [vmem:[%s10674_s1 + $0xc8c] ss:$16 sps:$4 sm:$0xff]  }
 0x15b   :  { %5157 = vmatpush1.bf16.msra.mxu0 %v7450_v62  ;;  %5690 = vmatpush1.bf16.msra.mxu1 %v7453_v63  ;;  %v7534_v62 = vld [vmem:[%s10674_s1 + $0xc80] ss:$16 sps:$4 sm:$0xff]   ;;  %v7537_v63 = vld [vmem:[%s10674_s1 + $0xc88] ss:$16 sps:$4 sm:$0xff]  }
 0x15c   :  { %5158 = vmatprep.subr.bf16.mxu0 %v7458_v0  ;;  %5691 = vmatprep.subr.bf16.mxu1 %v7461_v1  ;;  %v7542_v0 = vld [vmem:[%s10674_s1 + $0xca4] ss:$16 sps:$4 sm:$0xff]   ;;  %v7545_v1 = vld [vmem:[%s10674_s1 + $0xcac] ss:$16 sps:$4 sm:$0xff]  }
 0x15f   :  { %5159 = vmatpush1.bf16.msra.mxu0 %v7456_v2  ;;  %5692 = vmatpush1.bf16.msra.mxu1 %v7459_v3  ;;  %v7540_v2 = vld [vmem:[%s10674_s1 + $0xca0] ss:$16 sps:$4 sm:$0xff]   ;;  %v7543_v3 = vld [vmem:[%s10674_s1 + $0xca8] ss:$16 sps:$4 sm:$0xff]  }
 0x160   :  { %5160 = vmatprep.subr.bf16.mxu0 %v7464_v4  ;;  %5693 = vmatprep.subr.bf16.mxu1 %v7467_v5  ;;  %v7548_v4 = vld [vmem:[%s10674_s1 + $0xcc4] ss:$16 sps:$4 sm:$0xff]   ;;  %v7551_v5 = vld [vmem:[%s10674_s1 + $0xccc] ss:$16 sps:$4 sm:$0xff]  }
 0x163   :  { %5161 = vmatpush1.bf16.msra.mxu0 %v7462_v6  ;;  %5694 = vmatpush1.bf16.msra.mxu1 %v7465_v7  ;;  %v7546_v6 = vld [vmem:[%s10674_s1 + $0xcc0] ss:$16 sps:$4 sm:$0xff]   ;;  %v7549_v7 = vld [vmem:[%s10674_s1 + $0xcc8] ss:$16 sps:$4 sm:$0xff]  }
 0x164   :  { %5162 = vmatprep.subr.bf16.mxu0 %v7470_v8  ;;  %5695 = vmatprep.subr.bf16.mxu1 %v7473_v9  ;;  %v7554_v8 = vld [vmem:[%s10674_s1 + $0xce4] ss:$16 sps:$4 sm:$0xff]   ;;  %v7557_v9 = vld [vmem:[%s10674_s1 + $0xcec] ss:$16 sps:$4 sm:$0xff]  }
 0x167   :  { %5163 = vmatpush1.bf16.msra.mxu0 %v7468_v10  ;;  %5696 = vmatpush1.bf16.msra.mxu1 %v7471_v11  ;;  %v7552_v10 = vld [vmem:[%s10674_s1 + $0xce0] ss:$16 sps:$4 sm:$0xff]   ;;  %v7555_v11 = vld [vmem:[%s10674_s1 + $0xce8] ss:$16 sps:$4 sm:$0xff]  }
 0x168   :  { %5164 = vmatprep.subr.bf16.mxu0 %v7476_v12  ;;  %5697 = vmatprep.subr.bf16.mxu1 %v7479_v52  ;;  %v7560_v12 = vld [vmem:[%s10674_s1 + $0xd04] ss:$16 sps:$4 sm:$0xff]   ;;  %v7563_v52 = vld [vmem:[%s10674_s1 + $0xd0c] ss:$16 sps:$4 sm:$0xff]  }
 0x16b   :  { %5165 = vmatpush1.bf16.msra.mxu0 %v7474_v15  ;;  %5698 = vmatpush1.bf16.msra.mxu1 %v7477_v16  ;;  %v7558_v15 = vld [vmem:[%s10674_s1 + $0xd00] ss:$16 sps:$4 sm:$0xff]   ;;  %v7561_v16 = vld [vmem:[%s10674_s1 + $0xd08] ss:$16 sps:$4 sm:$0xff]  }
 0x16c   :  { %5166 = vmatprep.subr.bf16.mxu0 %v7482_v17  ;;  %5699 = vmatprep.subr.bf16.mxu1 %v7485_v18  ;;  %v7566_v17 = vld [vmem:[%s10674_s1 + $0xd24] ss:$16 sps:$4 sm:$0xff]   ;;  %v7569_v18 = vld [vmem:[%s10674_s1 + $0xd2c] ss:$16 sps:$4 sm:$0xff]  }
 0x16f   :  { %5167 = vmatpush1.bf16.msra.mxu0 %v7480_v19  ;;  %5700 = vmatpush1.bf16.msra.mxu1 %v7483_v20  ;;  %v7564_v19 = vld [vmem:[%s10674_s1 + $0xd20] ss:$16 sps:$4 sm:$0xff]   ;;  %v7567_v20 = vld [vmem:[%s10674_s1 + $0xd28] ss:$16 sps:$4 sm:$0xff]  }
 0x170   :  { %5168 = vmatprep.subr.bf16.mxu0 %v7488_v22  ;;  %5701 = vmatprep.subr.bf16.mxu1 %v7491_v23  ;;  %v7572_v22 = vld [vmem:[%s10674_s1 + $0xd44] ss:$16 sps:$4 sm:$0xff]   ;;  %v7575_v23 = vld [vmem:[%s10674_s1 + $0xd4c] ss:$16 sps:$4 sm:$0xff]  }
 0x173   :  { %5169 = vmatpush1.bf16.msra.mxu0 %v7486_v24  ;;  %5702 = vmatpush1.bf16.msra.mxu1 %v7489_v13  ;;  %v7570_v24 = vld [vmem:[%s10674_s1 + $0xd40] ss:$16 sps:$4 sm:$0xff]   ;;  %v7573_v13 = vld [vmem:[%s10674_s1 + $0xd48] ss:$16 sps:$4 sm:$0xff]  }
 0x174   :  { %5170 = vmatprep.subr.bf16.mxu0 %v7494_v27  ;;  %5703 = vmatprep.subr.bf16.mxu1 %v7497_v28  ;;  %v7578_v27 = vld [vmem:[%s10674_s1 + $0xd64] ss:$16 sps:$4 sm:$0xff]   ;;  %v7581_v28 = vld [vmem:[%s10674_s1 + $0xd6c] ss:$16 sps:$4 sm:$0xff]  }
 0x177   :  { %5171 = vmatpush1.bf16.msra.mxu0 %v7492_v29  ;;  %5704 = vmatpush1.bf16.msra.mxu1 %v7495_v14  ;;  %v7576_v29 = vld [vmem:[%s10674_s1 + $0xd60] ss:$16 sps:$4 sm:$0xff]   ;;  %v7579_v14 = vld [vmem:[%s10674_s1 + $0xd68] ss:$16 sps:$4 sm:$0xff]  }
 0x178   :  { %5172 = vmatprep.subr.bf16.mxu0 %v7500_v30  ;;  %5705 = vmatprep.subr.bf16.mxu1 %v7503_v31  ;;  %v7584_v30 = vld [vmem:[%s10674_s1 + $0xd84] ss:$16 sps:$4 sm:$0xff]   ;;  %v7587_v31 = vld [vmem:[%s10674_s1 + $0xd8c] ss:$16 sps:$4 sm:$0xff]  }
 0x17b   :  { %5173 = vmatpush1.bf16.msra.mxu0 %v7498_v33  ;;  %5706 = vmatpush1.bf16.msra.mxu1 %v7501_v26  ;;  %v7590_v33 = vld [vmem:[%s10674_s1 + $0xda4] ss:$16 sps:$4 sm:$0xff]   ;;  %v7593_v26 = vld [vmem:[%s10674_s1 + $0xdac] ss:$16 sps:$4 sm:$0xff]  }
 0x17c   :  { %5174 = vmatprep.subr.bf16.mxu0 %v7506_v36  ;;  %5707 = vmatprep.subr.bf16.mxu1 %v7509_v37  ;;  %v7588_v36 = vld [vmem:[%s10674_s1 + $0xda0] ss:$16 sps:$4 sm:$0xff]   ;;  %v7591_v37 = vld [vmem:[%s10674_s1 + $0xda8] ss:$16 sps:$4 sm:$0xff]  }
 0x17f   :  { %5175 = vmatpush1.bf16.msra.mxu0 %v7504_v21  ;;  %5708 = vmatpush1.bf16.msra.mxu1 %v7507_v39  ;;  %v7596_v21 = vld [vmem:[%s10674_s1 + $0xdc4] ss:$16 sps:$4 sm:$0xff]   ;;  %v7599_v39 = vld [vmem:[%s10674_s1 + $0xdcc] ss:$16 sps:$4 sm:$0xff]  }
 0x180   :  { %5185 = vmatprep.subr.bf16.mxu0 %v7512_v40  ;;  %5718 = vmatprep.subr.bf16.mxu1 %v7515_v41  ;;  %v7594_v40 = vld [vmem:[%s10674_s1 + $0xdc0] ss:$16 sps:$4 sm:$0xff]   ;;  %v7597_v41 = vld [vmem:[%s10674_s1 + $0xdc8] ss:$16 sps:$4 sm:$0xff]  }
 0x182   :  { %5177 = vmatmul.mubr.bf16.vlgmr.msra.gmra.mrb[0].mxu0 %v924_v43  ;;  %5710 = vmatmul.mubr.bf16.vlgmr.msra.gmra.mrb[0].mxu1 %v924_v43  ;;  %v7605_v43 = vld [vmem:[%s10674_s1 + $0xdec] ss:$16 sps:$4 sm:$0xff]  }
 0x183   :  { %5186 = vmatpush1.bf16.msra.mxu0 %v7510_v44  ;;  %5719 = vmatpush1.bf16.msra.mxu1 %v7513_v45  ;;  %v7600_v44 = vld [vmem:[%s10674_s1 + $0xde0] ss:$16 sps:$4 sm:$0xff]   ;;  %v7603_v45 = vld [vmem:[%s10674_s1 + $0xde8] ss:$16 sps:$4 sm:$0xff]  }
 0x184   :  { %5187 = vmatprep.subr.bf16.mxu0 %v7518_v46  ;;  %5720 = vmatprep.subr.bf16.mxu1 %v7521_v35  ;;  %v7609_v46 = vld [vmem:[%s10674_s1 + $0xe04] ss:$16 sps:$4 sm:$0xff]   ;;  %v7612_v35 = vld [vmem:[%s10674_s1 + $0xe0c] ss:$16 sps:$4 sm:$0xff]  }
 0x185   :  { %5217 = vmatprep.mubr.bf16.mxu0 %v9405_v47  ;;  %5750 = vmatprep.mubr.bf16.mxu1 %v9405_v47 }
 0x187   :  { %5188 = vmatpush1.bf16.msra.mxu0 %v7516_v48  ;;  %5721 = vmatpush1.bf16.msra.mxu1 %v7519_v50  ;;  %v9591_v48 = vrot.slane %v9374_v38, %v8297_v49  ;;  %v7607_v50 = vld [vmem:[%s10674_s1 + $0xe00] ss:$16 sps:$4 sm:$0xff]   ;;  %v7618_v38 = vld [vmem:[%s10674_s1 + $0xe2c] ss:$16 sps:$4 sm:$0xff]  }
 0x188   :  { %5189 = vmatprep.subr.bf16.mxu0 %v7524_v51  ;;  %5722 = vmatprep.subr.bf16.mxu1 %v7527_v53  ;;  %v7610_v51 = vld [vmem:[%s10674_s1 + $0xe08] ss:$16 sps:$4 sm:$0xff]   ;;  %v7615_v53 = vld [vmem:[%s10674_s1 + $0xe24] ss:$16 sps:$4 sm:$0xff]  }
 0x18b   :  { %5190 = vmatpush1.bf16.msra.mxu0 %v7522_v54  ;;  %5723 = vmatpush1.bf16.msra.mxu1 %v7525_v55  ;;  %v927_v54 = vcombine.high %v9405_v47, %v9405_v47  ;;  %v7613_v55 = vld [vmem:[%s10674_s1 + $0xe20] ss:$16 sps:$4 sm:$0xff]   ;;  %v7621_v47 = vld [vmem:[%s10674_s1 + $0xe44] ss:$16 sps:$4 sm:$0xff]  }
 0x18c   :  { %5191 = vmatprep.subr.bf16.mxu0 %v7530_v56  ;;  %5724 = vmatprep.subr.bf16.mxu1 %v7533_v57  ;;  %v7616_v56 = vld [vmem:[%s10674_s1 + $0xe28] ss:$16 sps:$4 sm:$0xff]   ;;  %v7624_v57 = vld [vmem:[%s10674_s1 + $0xe4c] ss:$16 sps:$4 sm:$0xff]  }
 0x18f   :  { %5192 = vmatpush1.bf16.msra.mxu0 %v7528_v58  ;;  %5725 = vmatpush1.bf16.msra.mxu1 %v7531_v59  ;;  %v7619_v58 = vld [vmem:[%s10674_s1 + $0xe40] ss:$16 sps:$4 sm:$0xff]   ;;  %v7622_v59 = vld [vmem:[%s10674_s1 + $0xe48] ss:$16 sps:$4 sm:$0xff]  }
 0x190   :  { %5193 = vmatprep.subr.bf16.mxu0 %v7536_v60  ;;  %5726 = vmatprep.subr.bf16.mxu1 %v7539_v61  ;;  %v7627_v60 = vld [vmem:[%s10674_s1 + $0xe64] ss:$16 sps:$4 sm:$0xff]   ;;  %v7630_v61 = vld [vmem:[%s10674_s1 + $0xe6c] ss:$16 sps:$4 sm:$0xff]  }
 0x193   :  { %5194 = vmatpush1.bf16.msra.mxu0 %v7534_v62  ;;  %5727 = vmatpush1.bf16.msra.mxu1 %v7537_v63 }
 0x194   :  { %5195 = vmatprep.subr.bf16.mxu0 %v7542_v0  ;;  %5728 = vmatprep.subr.bf16.mxu1 %v7545_v1 }
 0x197   :  { %5196 = vmatpush1.bf16.msra.mxu0 %v7540_v2  ;;  %5729 = vmatpush1.bf16.msra.mxu1 %v7543_v3 }
 0x198   :  { %5197 = vmatprep.subr.bf16.mxu0 %v7548_v4  ;;  %5730 = vmatprep.subr.bf16.mxu1 %v7551_v5 }
 0x19b   :  { %5198 = vmatpush1.bf16.msra.mxu0 %v7546_v6  ;;  %5731 = vmatpush1.bf16.msra.mxu1 %v7549_v7 }
 0x19c   :  { %5199 = vmatprep.subr.bf16.mxu0 %v7554_v8  ;;  %5732 = vmatprep.subr.bf16.mxu1 %v7557_v9 }
 0x19f   :  { %5200 = vmatpush1.bf16.msra.mxu0 %v7552_v10  ;;  %5733 = vmatpush1.bf16.msra.mxu1 %v7555_v11 }
 0x1a0   :  { %5201 = vmatprep.subr.bf16.mxu0 %v7560_v12  ;;  %5734 = vmatprep.subr.bf16.mxu1 %v7563_v52 }
 0x1a3   :  { %5202 = vmatpush1.bf16.msra.mxu0 %v7558_v15  ;;  %5735 = vmatpush1.bf16.msra.mxu1 %v7561_v16 }
 0x1a4   :  { %5203 = vmatprep.subr.bf16.mxu0 %v7566_v17  ;;  %5736 = vmatprep.subr.bf16.mxu1 %v7569_v18 }
 0x1a7   :  { %5204 = vmatpush1.bf16.msra.mxu0 %v7564_v19  ;;  %5737 = vmatpush1.bf16.msra.mxu1 %v7567_v20 }
 0x1a8   :  { %5205 = vmatprep.subr.bf16.mxu0 %v7572_v22  ;;  %5738 = vmatprep.subr.bf16.mxu1 %v7575_v23 }
 0x1ab   :  { %5206 = vmatpush1.bf16.msra.mxu0 %v7570_v24  ;;  %5739 = vmatpush1.bf16.msra.mxu1 %v7573_v13 }
 0x1ac   :  { %5207 = vmatprep.subr.bf16.mxu0 %v7578_v27  ;;  %5740 = vmatprep.subr.bf16.mxu1 %v7581_v28 }
 0x1af   :  { %5208 = vmatpush1.bf16.msra.mxu0 %v7576_v29  ;;  %5741 = vmatpush1.bf16.msra.mxu1 %v7579_v14 }
 0x1b0   :  { %5209 = vmatprep.subr.bf16.mxu0 %v7584_v30  ;;  %5742 = vmatprep.subr.bf16.mxu1 %v7587_v31 }
 0x1b3   :  { %5210 = vmatpush1.bf16.msra.mxu0 %v7582_v25  ;;  %5743 = vmatpush1.bf16.msra.mxu1 %v7585_v32 }
 0x1b4   :  { %5211 = vmatprep.subr.bf16.mxu0 %v7590_v33  ;;  %5744 = vmatprep.subr.bf16.mxu1 %v7593_v26 }
 0x1b7   :  { %5212 = vmatpush1.bf16.msra.mxu0 %v7588_v36  ;;  %5745 = vmatpush1.bf16.msra.mxu1 %v7591_v37 }
 0x1b8   :  { %5213 = vmatprep.subr.bf16.mxu0 %v7596_v21  ;;  %5746 = vmatprep.subr.bf16.mxu1 %v7599_v39 }
 0x1bb   :  { %5214 = vmatpush1.bf16.msra.mxu0 %v7594_v40  ;;  %5747 = vmatpush1.bf16.msra.mxu1 %v7597_v41 }
 0x1bc   :  { %5215 = vmatprep.subr.bf16.mxu0 %v7602_v34  ;;  %5748 = vmatprep.subr.bf16.mxu1 %v7605_v43 }
 0x1bf   :  { %5216 = vmatpush1.bf16.msra.mxu0 %v7600_v44  ;;  %5749 = vmatpush1.bf16.msra.mxu1 %v7603_v45 }
 0x1c0   :  { %5226 = vmatprep.subr.bf16.mxu0 %v7609_v46  ;;  %5759 = vmatprep.subr.bf16.mxu1 %v7612_v35 }
 0x1c2   :  { %5218 = vmatmul.mubr.bf16.vlgmr.msra.gmra.mrb[0].mxu0 %v9591_v48  ;;  %5751 = vmatmul.mubr.bf16.vlgmr.msra.gmra.mrb[0].mxu1 %v9591_v48 }
 0x1c3   :  { %5227 = vmatpush1.bf16.msra.mxu0 %v7607_v50  ;;  %5760 = vmatpush1.bf16.msra.mxu1 %v7610_v51 }
 0x1c4   :  { %5228 = vmatprep.subr.bf16.mxu0 %v7615_v53  ;;  %5761 = vmatprep.subr.bf16.mxu1 %v7618_v38 }
 0x1c5   :  { %5258 = vmatprep.mubr.bf16.mxu0 %v927_v54  ;;  %5791 = vmatprep.mubr.bf16.mxu1 %v927_v54 }
 0x1c7   :  { %5229 = vmatpush1.bf16.msra.mxu0 %v7613_v55  ;;  %5762 = vmatpush1.bf16.msra.mxu1 %v7616_v56 }
 0x1c8   :  { %5230 = vmatprep.subr.bf16.mxu0 %v7621_v47  ;;  %5763 = vmatprep.subr.bf16.mxu1 %v7624_v57 }
 0x1c9   :  { %8 = vsyncpa [#allocation3], 0  ;;  %v7625_v62 = vld [vmem:[%s10674_s1 + $0xe60] ss:$16 sps:$4 sm:$0xff]   ;;  %v7628_v63 = vld [vmem:[%s10674_s1 + $0xe68] ss:$16 sps:$4 sm:$0xff]   ;;  %v925_v47 = vcombine.high %v9591_v48, %v9591_v48 }
 0x1ca   :  { %v7633_v0 = vld [vmem:[%s10674_s1 + $0xe84] ss:$16 sps:$4 sm:$0xff]   ;;  %v7636_v1 = vld [vmem:[%s10674_s1 + $0xe8c] ss:$16 sps:$4 sm:$0xff]   ;;  %v7631_v2 = vld [vmem:[%s10674_s1 + $0xe80] ss:$16 sps:$4 sm:$0xff]  }
 0x1cb   :  { %5231 = vmatpush1.bf16.msra.mxu0 %v7619_v58  ;;  %5764 = vmatpush1.bf16.msra.mxu1 %v7622_v59  ;;  %v7634_v3 = vld [vmem:[%s10674_s1 + $0xe88] ss:$16 sps:$4 sm:$0xff]   ;;  %v7639_v4 = vld [vmem:[%s10674_s1 + $0xea4] ss:$16 sps:$4 sm:$0xff]   ;;  %v7642_v5 = vld [vmem:[%s10674_s1 + $0xeac] ss:$16 sps:$4 sm:$0xff]  }
 0x1cc   :  { %5232 = vmatprep.subr.bf16.mxu0 %v7627_v60  ;;  %5765 = vmatprep.subr.bf16.mxu1 %v7630_v61  ;;  %v7637_v6 = vld [vmem:[%s10674_s1 + $0xea0] ss:$16 sps:$4 sm:$0xff]   ;;  %v7640_v7 = vld [vmem:[%s10674_s1 + $0xea8] ss:$16 sps:$4 sm:$0xff]   ;;  %v7645_v8 = vld [vmem:[%s10674_s1 + $0xec4] ss:$16 sps:$4 sm:$0xff]  }
 0x1cd   :  { %v7648_v9 = vld [vmem:[%s10674_s1 + $0xecc] ss:$16 sps:$4 sm:$0xff]   ;;  %v7643_v10 = vld [vmem:[%s10674_s1 + $0xec0] ss:$16 sps:$4 sm:$0xff]   ;;  %v7646_v11 = vld [vmem:[%s10674_s1 + $0xec8] ss:$16 sps:$4 sm:$0xff]  }
 0x1ce   :  { %v7651_v12 = vld [vmem:[%s10674_s1 + $0xee4] ss:$16 sps:$4 sm:$0xff]   ;;  %v7654_v52 = vld [vmem:[%s10674_s1 + $0xeec] ss:$16 sps:$4 sm:$0xff]   ;;  %v7649_v15 = vld [vmem:[%s10674_s1 + $0xee0] ss:$16 sps:$4 sm:$0xff]  }
 0x1cf   :  { %5233 = vmatpush1.bf16.msra.mxu0 %v7625_v62  ;;  %5766 = vmatpush1.bf16.msra.mxu1 %v7628_v63  ;;  %v7652_v16 = vld [vmem:[%s10674_s1 + $0xee8] ss:$16 sps:$4 sm:$0xff]   ;;  %v7657_v17 = vld [vmem:[%s10674_s1 + $0xf04] ss:$16 sps:$4 sm:$0xff]   ;;  %v7660_v18 = vld [vmem:[%s10674_s1 + $0xf0c] ss:$16 sps:$4 sm:$0xff]  }
 0x1d0   :  { %5234 = vmatprep.subr.bf16.mxu0 %v7633_v0  ;;  %5767 = vmatprep.subr.bf16.mxu1 %v7636_v1  ;;  %v7655_v19 = vld [vmem:[%s10674_s1 + $0xf00] ss:$16 sps:$4 sm:$0xff]   ;;  %v7658_v20 = vld [vmem:[%s10674_s1 + $0xf08] ss:$16 sps:$4 sm:$0xff]   ;;  %v7663_v22 = vld [vmem:[%s10674_s1 + $0xf24] ss:$16 sps:$4 sm:$0xff]  }
 0x1d1   :  { %v7666_v23 = vld [vmem:[%s10674_s1 + $0xf2c] ss:$16 sps:$4 sm:$0xff]   ;;  %v7661_v24 = vld [vmem:[%s10674_s1 + $0xf20] ss:$16 sps:$4 sm:$0xff]   ;;  %v7664_v13 = vld [vmem:[%s10674_s1 + $0xf28] ss:$16 sps:$4 sm:$0xff]  }
 0x1d2   :  { %v7669_v27 = vld [vmem:[%s10674_s1 + $0xf44] ss:$16 sps:$4 sm:$0xff]   ;;  %v7672_v28 = vld [vmem:[%s10674_s1 + $0xf4c] ss:$16 sps:$4 sm:$0xff]   ;;  %v7667_v29 = vld [vmem:[%s10674_s1 + $0xf40] ss:$16 sps:$4 sm:$0xff]  }
 0x1d3   :  { %5235 = vmatpush1.bf16.msra.mxu0 %v7631_v2  ;;  %5768 = vmatpush1.bf16.msra.mxu1 %v7634_v3  ;;  %v7670_v14 = vld [vmem:[%s10674_s1 + $0xf48] ss:$16 sps:$4 sm:$0xff]   ;;  %v7675_v30 = vld [vmem:[%s10674_s1 + $0xf64] ss:$16 sps:$4 sm:$0xff]   ;;  %v7678_v31 = vld [vmem:[%s10674_s1 + $0xf6c] ss:$16 sps:$4 sm:$0xff]  }
 0x1d4   :  { %5236 = vmatprep.subr.bf16.mxu0 %v7639_v4  ;;  %5769 = vmatprep.subr.bf16.mxu1 %v7642_v5  ;;  %v7673_v25 = vld [vmem:[%s10674_s1 + $0xf60] ss:$16 sps:$4 sm:$0xff]   ;;  %v7676_v32 = vld [vmem:[%s10674_s1 + $0xf68] ss:$16 sps:$4 sm:$0xff]   ;;  %v7681_v33 = vld [vmem:[%s10674_s1 + $0xf84] ss:$16 sps:$4 sm:$0xff]  }
 0x1d5   :  { %v7684_v26 = vld [vmem:[%s10674_s1 + $0xf8c] ss:$16 sps:$4 sm:$0xff]   ;;  %v7679_v36 = vld [vmem:[%s10674_s1 + $0xf80] ss:$16 sps:$4 sm:$0xff]   ;;  %v7682_v37 = vld [vmem:[%s10674_s1 + $0xf88] ss:$16 sps:$4 sm:$0xff]  }
 0x1d6   :  { %v7687_v21 = vld [vmem:[%s10674_s1 + $0xfa4] ss:$16 sps:$4 sm:$0xff]   ;;  %v7690_v39 = vld [vmem:[%s10674_s1 + $0xfac] ss:$16 sps:$4 sm:$0xff]   ;;  %v7685_v40 = vld [vmem:[%s10674_s1 + $0xfa0] ss:$16 sps:$4 sm:$0xff]  }
 0x1d7   :  { %5237 = vmatpush1.bf16.msra.mxu0 %v7637_v6  ;;  %5770 = vmatpush1.bf16.msra.mxu1 %v7640_v7  ;;  %v7688_v41 = vld [vmem:[%s10674_s1 + $0xfa8] ss:$16 sps:$4 sm:$0xff]   ;;  %v7693_v34 = vld [vmem:[%s10674_s1 + $0xfc4] ss:$16 sps:$4 sm:$0xff]   ;;  %v7696_v43 = vld [vmem:[%s10674_s1 + $0xfcc] ss:$16 sps:$4 sm:$0xff]  }
 0x1d8   :  { %5238 = vmatprep.subr.bf16.mxu0 %v7645_v8  ;;  %5771 = vmatprep.subr.bf16.mxu1 %v7648_v9  ;;  %v9768_v44 = vld [vmem:[%s10673_s0 + $0x10] sm:$0xff]  ;;  %v7694_v46 = vld [vmem:[%s10674_s1 + $0xfc8] ss:$16 sps:$4 sm:$0xff]   ;;  %v7702_v50 = vld [vmem:[%s10674_s1 + $0xfec] ss:$16 sps:$4 sm:$0xff]   ;;  %vm4935_vm0 = vcmask 523264  }
 0x1d9   :  { %v7691_v45 = vld [vmem:[%s10674_s1 + $0xfc0] ss:$16 sps:$4 sm:$0xff]   ;;  %v7699_v35 = vld [vmem:[%s10674_s1 + $0xfe4] ss:$16 sps:$4 sm:$0xff]   ;;  %v9784_v51 = vrot.slane %v9768_v44, %v8297_v49  ;;  %v7700_v38 = vld [vmem:[%s10674_s1 + $0xfe8] ss:$16 sps:$4 sm:$0xff]  }
 0x1da   :  { %v7697_v53 = vld [vmem:[%s10674_s1 + $0xfe0] ss:$16 sps:$4 sm:$0xff]   ;;  %v7705_v54 = vld [vmem:[%s10674_s1 + $0x1004] ss:$16 sps:$4 sm:$0xff]   ;;  %v7708_v55 = vld [vmem:[%s10674_s1 + $0x100c] ss:$16 sps:$4 sm:$0xff]  }
 0x1db   :  { %5239 = vmatpush1.bf16.msra.mxu0 %v7643_v10  ;;  %5772 = vmatpush1.bf16.msra.mxu1 %v7646_v11  ;;  %v943_v56 = vcombine.high %v9784_v51, %v9784_v51  ;;  %v7703_v57 = vld [vmem:[%s10674_s1 + $0x1000] ss:$16 sps:$4 sm:$0xff]   ;;  %v7706_v58 = vld [vmem:[%s10674_s1 + $0x1008] ss:$16 sps:$4 sm:$0xff]   ;;  %v7711_v59 = vld [vmem:[%s10674_s1 + $0x1024] ss:$16 sps:$4 sm:$0xff]  }
 0x1dc   :  { %5240 = vmatprep.subr.bf16.mxu0 %v7651_v12  ;;  %5773 = vmatprep.subr.bf16.mxu1 %v7654_v52  ;;  %v7714_v48 = vld [vmem:[%s10674_s1 + $0x102c] ss:$16 sps:$4 sm:$0xff]   ;;  %v7709_v61 = vld [vmem:[%s10674_s1 + $0x1020] ss:$16 sps:$4 sm:$0xff]   ;;  %v7712_v62 = vld [vmem:[%s10674_s1 + $0x1028] ss:$16 sps:$4 sm:$0xff]  }
 0x1dd   :  { %v9815_v60 = vrot.slane %v943_v56, %v8297_v49  ;;  %v7717_v63 = vld [vmem:[%s10674_s1 + $0x1044] ss:$16 sps:$4 sm:$0xff]   ;;  %v7720_v0 = vld [vmem:[%s10674_s1 + $0x104c] ss:$16 sps:$4 sm:$0xff]   ;;  %v7715_v1 = vld [vmem:[%s10674_s1 + $0x1040] ss:$16 sps:$4 sm:$0xff]  }
 0x1de   :  { %v7718_v2 = vld [vmem:[%s10674_s1 + $0x1048] ss:$16 sps:$4 sm:$0xff]   ;;  %v7723_v3 = vld [vmem:[%s10674_s1 + $0x1064] ss:$16 sps:$4 sm:$0xff]   ;;  %v7726_v4 = vld [vmem:[%s10674_s1 + $0x106c] ss:$16 sps:$4 sm:$0xff]  }
 0x1df   :  { %5241 = vmatpush1.bf16.msra.mxu0 %v7649_v15  ;;  %5774 = vmatpush1.bf16.msra.mxu1 %v7652_v16  ;;  %v7721_v5 = vld [vmem:[%s10674_s1 + $0x1060] ss:$16 sps:$4 sm:$0xff]   ;;  %v7724_v6 = vld [vmem:[%s10674_s1 + $0x1068] ss:$16 sps:$4 sm:$0xff]   ;;  %v7729_v7 = vld [vmem:[%s10674_s1 + $0x1084] ss:$16 sps:$4 sm:$0xff]  }
 0x1e0   :  { %5242 = vmatprep.subr.bf16.mxu0 %v7657_v17  ;;  %5775 = vmatprep.subr.bf16.mxu1 %v7660_v18  ;;  %v7732_v8 = vld [vmem:[%s10674_s1 + $0x108c] ss:$16 sps:$4 sm:$0xff]   ;;  %v7727_v9 = vld [vmem:[%s10674_s1 + $0x1080] ss:$16 sps:$4 sm:$0xff]   ;;  %v7730_v10 = vld [vmem:[%s10674_s1 + $0x1088] ss:$16 sps:$4 sm:$0xff]  }
 0x1e1   :  { %v7735_v11 = vld [vmem:[%s10674_s1 + $0x10a4] ss:$16 sps:$4 sm:$0xff]   ;;  %v7738_v12 = vld [vmem:[%s10674_s1 + $0x10ac] ss:$16 sps:$4 sm:$0xff]   ;;  %v7733_v52 = vld [vmem:[%s10674_s1 + $0x10a0] ss:$16 sps:$4 sm:$0xff]  }
 0x1e2   :  { %v7736_v15 = vld [vmem:[%s10674_s1 + $0x10a8] ss:$16 sps:$4 sm:$0xff]   ;;  %v7741_v16 = vld [vmem:[%s10674_s1 + $0x10c4] ss:$16 sps:$4 sm:$0xff]   ;;  %v7744_v17 = vld [vmem:[%s10674_s1 + $0x10cc] ss:$16 sps:$4 sm:$0xff]  }
 0x1e3   :  { %5243 = vmatpush1.bf16.msra.mxu0 %v7655_v19  ;;  %5776 = vmatpush1.bf16.msra.mxu1 %v7658_v20  ;;  %v7739_v18 = vld [vmem:[%s10674_s1 + $0x10c0] ss:$16 sps:$4 sm:$0xff]   ;;  %v7742_v19 = vld [vmem:[%s10674_s1 + $0x10c8] ss:$16 sps:$4 sm:$0xff]   ;;  %v7747_v20 = vld [vmem:[%s10674_s1 + $0x10e4] ss:$16 sps:$4 sm:$0xff]  }
 0x1e4   :  { %5244 = vmatprep.subr.bf16.mxu0 %v7663_v22  ;;  %5777 = vmatprep.subr.bf16.mxu1 %v7666_v23  ;;  %v7750_v22 = vld [vmem:[%s10674_s1 + $0x10ec] ss:$16 sps:$4 sm:$0xff]   ;;  %v7745_v23 = vld [vmem:[%s10674_s1 + $0x10e0] ss:$16 sps:$4 sm:$0xff]   ;;  %v7790_v56 = vld [vmem:[%s10674_s1 + $0x11c8] ss:$16 sps:$4 sm:$0xff]  }
 0x1e7   :  { %5245 = vmatpush1.bf16.msra.mxu0 %v7661_v24  ;;  %5778 = vmatpush1.bf16.msra.mxu1 %v7664_v13  ;;  %v7748_v24 = vld [vmem:[%s10674_s1 + $0x10e8] ss:$16 sps:$4 sm:$0xff]   ;;  %v7753_v13 = vld [vmem:[%s10674_s1 + $0x1104] ss:$16 sps:$4 sm:$0xff]  }
 0x1e8   :  { %5246 = vmatprep.subr.bf16.mxu0 %v7669_v27  ;;  %5779 = vmatprep.subr.bf16.mxu1 %v7672_v28  ;;  %v7756_v27 = vld [vmem:[%s10674_s1 + $0x110c] ss:$16 sps:$4 sm:$0xff]   ;;  %v7751_v28 = vld [vmem:[%s10674_s1 + $0x1100] ss:$16 sps:$4 sm:$0xff]  }
 0x1eb   :  { %5247 = vmatpush1.bf16.msra.mxu0 %v7667_v29  ;;  %5780 = vmatpush1.bf16.msra.mxu1 %v7670_v14  ;;  %v7754_v29 = vld [vmem:[%s10674_s1 + $0x1108] ss:$16 sps:$4 sm:$0xff]   ;;  %v7759_v14 = vld [vmem:[%s10674_s1 + $0x1124] ss:$16 sps:$4 sm:$0xff]  }
 0x1ec   :  { %5248 = vmatprep.subr.bf16.mxu0 %v7675_v30  ;;  %5781 = vmatprep.subr.bf16.mxu1 %v7678_v31  ;;  %v7762_v30 = vld [vmem:[%s10674_s1 + $0x112c] ss:$16 sps:$4 sm:$0xff]   ;;  %v7757_v31 = vld [vmem:[%s10674_s1 + $0x1120] ss:$16 sps:$4 sm:$0xff]  }
 0x1ef   :  { %5249 = vmatpush1.bf16.msra.mxu0 %v7673_v25  ;;  %5782 = vmatpush1.bf16.msra.mxu1 %v7676_v32  ;;  %v7760_v25 = vld [vmem:[%s10674_s1 + $0x1128] ss:$16 sps:$4 sm:$0xff]   ;;  %v7765_v32 = vld [vmem:[%s10674_s1 + $0x1144] ss:$16 sps:$4 sm:$0xff]  }
 0x1f0   :  { %5250 = vmatprep.subr.bf16.mxu0 %v7681_v33  ;;  %5783 = vmatprep.subr.bf16.mxu1 %v7684_v26  ;;  %v7768_v33 = vld [vmem:[%s10674_s1 + $0x114c] ss:$16 sps:$4 sm:$0xff]   ;;  %v7763_v26 = vld [vmem:[%s10674_s1 + $0x1140] ss:$16 sps:$4 sm:$0xff]  }
 0x1f3   :  { %5251 = vmatpush1.bf16.msra.mxu0 %v7679_v36  ;;  %5784 = vmatpush1.bf16.msra.mxu1 %v7682_v37  ;;  %v7766_v36 = vld [vmem:[%s10674_s1 + $0x1148] ss:$16 sps:$4 sm:$0xff]   ;;  %v7771_v37 = vld [vmem:[%s10674_s1 + $0x1164] ss:$16 sps:$4 sm:$0xff]  }
 0x1f4   :  { %5252 = vmatprep.subr.bf16.mxu0 %v7687_v21  ;;  %5785 = vmatprep.subr.bf16.mxu1 %v7690_v39  ;;  %v7774_v21 = vld [vmem:[%s10674_s1 + $0x116c] ss:$16 sps:$4 sm:$0xff]   ;;  %v7769_v39 = vld [vmem:[%s10674_s1 + $0x1160] ss:$16 sps:$4 sm:$0xff]  }
 0x1f7   :  { %5253 = vmatpush1.bf16.msra.mxu0 %v7685_v40  ;;  %5786 = vmatpush1.bf16.msra.mxu1 %v7688_v41  ;;  %v7772_v40 = vld [vmem:[%s10674_s1 + $0x1168] ss:$16 sps:$4 sm:$0xff]   ;;  %v7777_v41 = vld [vmem:[%s10674_s1 + $0x1184] ss:$16 sps:$4 sm:$0xff]  }
 0x1f8   :  { %5254 = vmatprep.subr.bf16.mxu0 %v7693_v34  ;;  %5787 = vmatprep.subr.bf16.mxu1 %v7696_v43  ;;  %v7780_v34 = vld [vmem:[%s10674_s1 + $0x118c] ss:$16 sps:$4 sm:$0xff]   ;;  %v7775_v43 = vld [vmem:[%s10674_s1 + $0x1180] ss:$16 sps:$4 sm:$0xff]  }
 0x1fb   :  { %5255 = vmatpush1.bf16.msra.mxu0 %v7691_v45  ;;  %5788 = vmatpush1.bf16.msra.mxu1 %v7694_v46  ;;  %v7778_v45 = vld [vmem:[%s10674_s1 + $0x1188] ss:$16 sps:$4 sm:$0xff]   ;;  %v7783_v46 = vld [vmem:[%s10674_s1 + $0x11a4] ss:$16 sps:$4 sm:$0xff]  }
 0x1fc   :  { %5256 = vmatprep.subr.bf16.mxu0 %v7699_v35  ;;  %5789 = vmatprep.subr.bf16.mxu1 %v7702_v50  ;;  %v7786_v35 = vld [vmem:[%s10674_s1 + $0x11ac] ss:$16 sps:$4 sm:$0xff]   ;;  %v7781_v50 = vld [vmem:[%s10674_s1 + $0x11a0] ss:$16 sps:$4 sm:$0xff]  }
 0x1ff   :  { %5257 = vmatpush1.bf16.msra.mxu0 %v7697_v53  ;;  %5790 = vmatpush1.bf16.msra.mxu1 %v7700_v38  ;;  %v7784_v53 = vld [vmem:[%s10674_s1 + $0x11a8] ss:$16 sps:$4 sm:$0xff]   ;;  %v7789_v38 = vld [vmem:[%s10674_s1 + $0x11c4] ss:$16 sps:$4 sm:$0xff]  }
 0x200   :  { %5267 = vmatprep.subr.bf16.mxu0 %v7705_v54  ;;  %5800 = vmatprep.subr.bf16.mxu1 %v7708_v55  ;;  %v7792_v54 = vld [vmem:[%s10674_s1 + $0x11cc] ss:$16 sps:$4 sm:$0xff]   ;;  %v7787_v55 = vld [vmem:[%s10674_s1 + $0x11c0] ss:$16 sps:$4 sm:$0xff]  }
 0x202   :  { %5259 = vmatmul.mubr.bf16.vlgmr.msra.gmra.mrb[0].mxu0 %v925_v47  ;;  %5792 = vmatmul.mubr.bf16.vlgmr.msra.gmra.mrb[0].mxu1 %v925_v47  ;;  %v7795_v47 = vld [vmem:[%s10674_s1 + $0x11e4] ss:$16 sps:$4 sm:$0xff]  }
 0x203   :  { %5268 = vmatpush1.bf16.msra.mxu0 %v7703_v57  ;;  %5801 = vmatpush1.bf16.msra.mxu1 %v7706_v58  ;;  %v7798_v57 = vld [vmem:[%s10674_s1 + $0x11ec] ss:$16 sps:$4 sm:$0xff]   ;;  %v7793_v58 = vld [vmem:[%s10674_s1 + $0x11e0] ss:$16 sps:$4 sm:$0xff]  }
 0x204   :  { %5269 = vmatprep.subr.bf16.mxu0 %v7711_v59  ;;  %5802 = vmatprep.subr.bf16.mxu1 %v7714_v48  ;;  %v7796_v59 = vld [vmem:[%s10674_s1 + $0x11e8] ss:$16 sps:$4 sm:$0xff]   ;;  %v7801_v48 = vld [vmem:[%s10674_s1 + $0x1204] ss:$16 sps:$4 sm:$0xff]  }
 0x205   :  { %5299 = vmatprep.mubr.bf16.mxu0 %v9815_v60  ;;  %5832 = vmatprep.mubr.bf16.mxu1 %v9815_v60 }
 0x207   :  { %5270 = vmatpush1.bf16.msra.mxu0 %v7709_v61  ;;  %5803 = vmatpush1.bf16.msra.mxu1 %v7712_v62  ;;  %v7804_v61 = vld [vmem:[%s10674_s1 + $0x120c] ss:$16 sps:$4 sm:$0xff]   ;;  %v10001_v62 = vrot.slane %v9784_v51, %v8297_v49 }
 0x208   :  { %5271 = vmatprep.subr.bf16.mxu0 %v7717_v63  ;;  %5804 = vmatprep.subr.bf16.mxu1 %v7720_v0  ;;  %v7799_v63 = vld [vmem:[%s10674_s1 + $0x1200] ss:$16 sps:$4 sm:$0xff]   ;;  %v7802_v0 = vld [vmem:[%s10674_s1 + $0x1208] ss:$16 sps:$4 sm:$0xff]   ;;  %v7810_v51 = vld [vmem:[%s10674_s1 + $0x122c] ss:$16 sps:$4 sm:$0xff]  }
 0x20b   :  { %5272 = vmatpush1.bf16.msra.mxu0 %v7715_v1  ;;  %5805 = vmatpush1.bf16.msra.mxu1 %v7718_v2  ;;  %v7807_v1 = vld [vmem:[%s10674_s1 + $0x1224] ss:$16 sps:$4 sm:$0xff]   ;;  %v975_v2 = vcombine.high %v9815_v60, %v9815_v60 }
 0x20c   :  { %5273 = vmatprep.subr.bf16.mxu0 %v7723_v3  ;;  %5806 = vmatprep.subr.bf16.mxu1 %v7726_v4  ;;  %v7805_v3 = vld [vmem:[%s10674_s1 + $0x1220] ss:$16 sps:$4 sm:$0xff]   ;;  %v7808_v4 = vld [vmem:[%s10674_s1 + $0x1228] ss:$16 sps:$4 sm:$0xff]   ;;  %v7813_v60 = vld [vmem:[%s10674_s1 + $0x1244] ss:$16 sps:$4 sm:$0xff]  }
 0x20f   :  { %5274 = vmatpush1.bf16.msra.mxu0 %v7721_v5  ;;  %5807 = vmatpush1.bf16.msra.mxu1 %v7724_v6  ;;  %v7816_v5 = vld [vmem:[%s10674_s1 + $0x124c] ss:$16 sps:$4 sm:$0xff]   ;;  %v7811_v6 = vld [vmem:[%s10674_s1 + $0x1240] ss:$16 sps:$4 sm:$0xff]  }
 0x210   :  { %5275 = vmatprep.subr.bf16.mxu0 %v7729_v7  ;;  %5808 = vmatprep.subr.bf16.mxu1 %v7732_v8  ;;  %v7814_v7 = vld [vmem:[%s10674_s1 + $0x1248] ss:$16 sps:$4 sm:$0xff]   ;;  %v7819_v8 = vld [vmem:[%s10674_s1 + $0x1264] ss:$16 sps:$4 sm:$0xff]  }
 0x213   :  { %5276 = vmatpush1.bf16.msra.mxu0 %v7727_v9  ;;  %5809 = vmatpush1.bf16.msra.mxu1 %v7730_v10  ;;  %v7822_v9 = vld [vmem:[%s10674_s1 + $0x126c] ss:$16 sps:$4 sm:$0xff]   ;;  %v7817_v10 = vld [vmem:[%s10674_s1 + $0x1260] ss:$16 sps:$4 sm:$0xff]  }
 0x214   :  { %5277 = vmatprep.subr.bf16.mxu0 %v7735_v11  ;;  %5810 = vmatprep.subr.bf16.mxu1 %v7738_v12  ;;  %v7820_v11 = vld [vmem:[%s10674_s1 + $0x1268] ss:$16 sps:$4 sm:$0xff]   ;;  %v7825_v12 = vld [vmem:[%s10674_s1 + $0x1284] ss:$16 sps:$4 sm:$0xff]  }
 0x217   :  { %5278 = vmatpush1.bf16.msra.mxu0 %v7733_v52  ;;  %5811 = vmatpush1.bf16.msra.mxu1 %v7736_v15  ;;  %v7828_v52 = vld [vmem:[%s10674_s1 + $0x128c] ss:$16 sps:$4 sm:$0xff]   ;;  %v7823_v15 = vld [vmem:[%s10674_s1 + $0x1280] ss:$16 sps:$4 sm:$0xff]  }
 0x218   :  { %5279 = vmatprep.subr.bf16.mxu0 %v7741_v16  ;;  %5812 = vmatprep.subr.bf16.mxu1 %v7744_v17  ;;  %v7826_v16 = vld [vmem:[%s10674_s1 + $0x1288] ss:$16 sps:$4 sm:$0xff]   ;;  %v7831_v17 = vld [vmem:[%s10674_s1 + $0x12a4] ss:$16 sps:$4 sm:$0xff]  }
 0x21b   :  { %5280 = vmatpush1.bf16.msra.mxu0 %v7739_v18  ;;  %5813 = vmatpush1.bf16.msra.mxu1 %v7742_v19  ;;  %v7834_v18 = vld [vmem:[%s10674_s1 + $0x12ac] ss:$16 sps:$4 sm:$0xff]   ;;  %v7829_v19 = vld [vmem:[%s10674_s1 + $0x12a0] ss:$16 sps:$4 sm:$0xff]  }
 0x21c   :  { %5281 = vmatprep.subr.bf16.mxu0 %v7747_v20  ;;  %5814 = vmatprep.subr.bf16.mxu1 %v7750_v22  ;;  %v7832_v20 = vld [vmem:[%s10674_s1 + $0x12a8] ss:$16 sps:$4 sm:$0xff]   ;;  %v7837_v22 = vld [vmem:[%s10674_s1 + $0x12c4] ss:$16 sps:$4 sm:$0xff]  }
 0x21f   :  { %5282 = vmatpush1.bf16.msra.mxu0 %v7745_v23  ;;  %5815 = vmatpush1.bf16.msra.mxu1 %v7748_v24  ;;  %v7840_v23 = vld [vmem:[%s10674_s1 + $0x12cc] ss:$16 sps:$4 sm:$0xff]   ;;  %v7835_v24 = vld [vmem:[%s10674_s1 + $0x12c0] ss:$16 sps:$4 sm:$0xff]  }
 0x220   :  { %5283 = vmatprep.subr.bf16.mxu0 %v7753_v13  ;;  %5816 = vmatprep.subr.bf16.mxu1 %v7756_v27  ;;  %v7838_v13 = vld [vmem:[%s10674_s1 + $0x12c8] ss:$16 sps:$4 sm:$0xff]   ;;  %v7843_v27 = vld [vmem:[%s10674_s1 + $0x12e4] ss:$16 sps:$4 sm:$0xff]  }
 0x223   :  { %5284 = vmatpush1.bf16.msra.mxu0 %v7751_v28  ;;  %5817 = vmatpush1.bf16.msra.mxu1 %v7754_v29  ;;  %v7846_v28 = vld [vmem:[%s10674_s1 + $0x12ec] ss:$16 sps:$4 sm:$0xff]   ;;  %v7841_v29 = vld [vmem:[%s10674_s1 + $0x12e0] ss:$16 sps:$4 sm:$0xff]  }
 0x224   :  { %5285 = vmatprep.subr.bf16.mxu0 %v7759_v14  ;;  %5818 = vmatprep.subr.bf16.mxu1 %v7762_v30  ;;  %v7844_v14 = vld [vmem:[%s10674_s1 + $0x12e8] ss:$16 sps:$4 sm:$0xff]   ;;  %v7849_v30 = vld [vmem:[%s10674_s1 + $0x1304] ss:$16 sps:$4 sm:$0xff]  }
 0x227   :  { %5286 = vmatpush1.bf16.msra.mxu0 %v7757_v31  ;;  %5819 = vmatpush1.bf16.msra.mxu1 %v7760_v25  ;;  %v7852_v31 = vld [vmem:[%s10674_s1 + $0x130c] ss:$16 sps:$4 sm:$0xff]   ;;  %v7847_v25 = vld [vmem:[%s10674_s1 + $0x1300] ss:$16 sps:$4 sm:$0xff]  }
 0x228   :  { %5287 = vmatprep.subr.bf16.mxu0 %v7765_v32  ;;  %5820 = vmatprep.subr.bf16.mxu1 %v7768_v33  ;;  %v7850_v32 = vld [vmem:[%s10674_s1 + $0x1308] ss:$16 sps:$4 sm:$0xff]   ;;  %v7855_v33 = vld [vmem:[%s10674_s1 + $0x1324] ss:$16 sps:$4 sm:$0xff]  }
 0x22b   :  { %5288 = vmatpush1.bf16.msra.mxu0 %v7763_v26  ;;  %5821 = vmatpush1.bf16.msra.mxu1 %v7766_v36  ;;  %v7858_v26 = vld [vmem:[%s10674_s1 + $0x132c] ss:$16 sps:$4 sm:$0xff]   ;;  %v7853_v36 = vld [vmem:[%s10674_s1 + $0x1320] ss:$16 sps:$4 sm:$0xff]  }
 0x22c   :  { %5289 = vmatprep.subr.bf16.mxu0 %v7771_v37  ;;  %5822 = vmatprep.subr.bf16.mxu1 %v7774_v21  ;;  %v7856_v37 = vld [vmem:[%s10674_s1 + $0x1328] ss:$16 sps:$4 sm:$0xff]   ;;  %v7861_v21 = vld [vmem:[%s10674_s1 + $0x1344] ss:$16 sps:$4 sm:$0xff]  }
 0x22f   :  { %5290 = vmatpush1.bf16.msra.mxu0 %v7769_v39  ;;  %5823 = vmatpush1.bf16.msra.mxu1 %v7772_v40  ;;  %v7864_v39 = vld [vmem:[%s10674_s1 + $0x134c] ss:$16 sps:$4 sm:$0xff]   ;;  %v7859_v40 = vld [vmem:[%s10674_s1 + $0x1340] ss:$16 sps:$4 sm:$0xff]  }
 0x230   :  { %5291 = vmatprep.subr.bf16.mxu0 %v7777_v41  ;;  %5824 = vmatprep.subr.bf16.mxu1 %v7780_v34  ;;  %v7862_v41 = vld [vmem:[%s10674_s1 + $0x1348] ss:$16 sps:$4 sm:$0xff]   ;;  %v7867_v34 = vld [vmem:[%s10674_s1 + $0x1364] ss:$16 sps:$4 sm:$0xff]  }
 0x233   :  { %5292 = vmatpush1.bf16.msra.mxu0 %v7775_v43  ;;  %5825 = vmatpush1.bf16.msra.mxu1 %v7778_v45  ;;  %v7870_v43 = vld [vmem:[%s10674_s1 + $0x136c] ss:$16 sps:$4 sm:$0xff]   ;;  %v7865_v45 = vld [vmem:[%s10674_s1 + $0x1360] ss:$16 sps:$4 sm:$0xff]  }
 0x234   :  { %5293 = vmatprep.subr.bf16.mxu0 %v7783_v46  ;;  %5826 = vmatprep.subr.bf16.mxu1 %v7786_v35  ;;  %v7868_v46 = vld [vmem:[%s10674_s1 + $0x1368] ss:$16 sps:$4 sm:$0xff]   ;;  %v7873_v35 = vld [vmem:[%s10674_s1 + $0x1384] ss:$16 sps:$4 sm:$0xff]  }
 0x237   :  { %5294 = vmatpush1.bf16.msra.mxu0 %v7781_v50  ;;  %5827 = vmatpush1.bf16.msra.mxu1 %v7784_v53  ;;  %v7876_v50 = vld [vmem:[%s10674_s1 + $0x138c] ss:$16 sps:$4 sm:$0xff]   ;;  %v7871_v53 = vld [vmem:[%s10674_s1 + $0x1380] ss:$16 sps:$4 sm:$0xff]  }
 0x238   :  { %5295 = vmatprep.subr.bf16.mxu0 %v7789_v38  ;;  %5828 = vmatprep.subr.bf16.mxu1 %v7792_v54  ;;  %v7874_v38 = vld [vmem:[%s10674_s1 + $0x1388] ss:$16 sps:$4 sm:$0xff]   ;;  %v7879_v54 = vld [vmem:[%s10674_s1 + $0x13a4] ss:$16 sps:$4 sm:$0xff]  }
 0x23b   :  { %5296 = vmatpush1.bf16.msra.mxu0 %v7787_v55  ;;  %5829 = vmatpush1.bf16.msra.mxu1 %v7790_v56  ;;  %v7882_v55 = vld [vmem:[%s10674_s1 + $0x13ac] ss:$16 sps:$4 sm:$0xff]   ;;  %v7877_v56 = vld [vmem:[%s10674_s1 + $0x13a0] ss:$16 sps:$4 sm:$0xff]  }
 0x23c   :  { %5297 = vmatprep.subr.bf16.mxu0 %v7795_v47  ;;  %5830 = vmatprep.subr.bf16.mxu1 %v7798_v57  ;;  %v7880_v47 = vld [vmem:[%s10674_s1 + $0x13a8] ss:$16 sps:$4 sm:$0xff]   ;;  %v7885_v57 = vld [vmem:[%s10674_s1 + $0x13c4] ss:$16 sps:$4 sm:$0xff]  }
 0x23f   :  { %5298 = vmatpush1.bf16.msra.mxu0 %v7793_v58  ;;  %5831 = vmatpush1.bf16.msra.mxu1 %v7796_v59  ;;  %v7888_v58 = vld [vmem:[%s10674_s1 + $0x13cc] ss:$16 sps:$4 sm:$0xff]   ;;  %v928_v59 = vcombine.high %v9768_v44, %v9768_v44 }
 0x240   :  { %5308 = vmatprep.subr.bf16.mxu0 %v7801_v48  ;;  %5841 = vmatprep.subr.bf16.mxu1 %v7804_v61  ;;  %v7883_v48 = vld [vmem:[%s10674_s1 + $0x13c0] ss:$16 sps:$4 sm:$0xff]   ;;  %v7886_v61 = vld [vmem:[%s10674_s1 + $0x13c8] ss:$16 sps:$4 sm:$0xff]   ;;  %v7894_v44 = vld [vmem:[%s10674_s1 + $0x13ec] ss:$16 sps:$4 sm:$0xff]  }
 0x242   :  { %5300 = vmatmul.mubr.bf16.vlgmr.msra.gmra.mrb[0].mxu0 %v10001_v62  ;;  %5833 = vmatmul.mubr.bf16.vlgmr.msra.gmra.mrb[0].mxu1 %v10001_v62 }
 0x243   :  { %5309 = vmatpush1.bf16.msra.mxu0 %v7799_v63  ;;  %5842 = vmatpush1.bf16.msra.mxu1 %v7802_v0  ;;  %v7891_v63 = vld [vmem:[%s10674_s1 + $0x13e4] ss:$16 sps:$4 sm:$0xff]   ;;  %v10190_v0 = vrot.slane %v928_v59, %v8297_v49  ;;  %v7970_v59 = vld [vmem:[%s10674_s1 + $0x1588] ss:$16 sps:$4 sm:$0xff]  }
 0x244   :  { %5310 = vmatprep.subr.bf16.mxu0 %v7807_v1  ;;  %5843 = vmatprep.subr.bf16.mxu1 %v7810_v51  ;;  %v7889_v1 = vld [vmem:[%s10674_s1 + $0x13e0] ss:$16 sps:$4 sm:$0xff]   ;;  %v7892_v51 = vld [vmem:[%s10674_s1 + $0x13e8] ss:$16 sps:$4 sm:$0xff]  }
 0x245   :  { %5340 = vmatprep.mubr.bf16.mxu0 %v975_v2  ;;  %5873 = vmatprep.mubr.bf16.mxu1 %v975_v2  ;;  %v7897_v2 = vld [vmem:[%s10674_s1 + $0x1404] ss:$16 sps:$4 sm:$0xff]  }
 0x247   :  { %5311 = vmatpush1.bf16.msra.mxu0 %v7805_v3  ;;  %5844 = vmatpush1.bf16.msra.mxu1 %v7808_v4  ;;  %v7900_v3 = vld [vmem:[%s10674_s1 + $0x140c] ss:$16 sps:$4 sm:$0xff]   ;;  %v944_v4 = vcombine.high %v10190_v0, %v10190_v0 }
 0x248   :  { %5312 = vmatprep.subr.bf16.mxu0 %v7813_v60  ;;  %5845 = vmatprep.subr.bf16.mxu1 %v7816_v5  ;;  %v973_v60 = vcombine.high %v10001_v62, %v10001_v62  ;;  %v7895_v5 = vld [vmem:[%s10674_s1 + $0x1400] ss:$16 sps:$4 sm:$0xff]   ;;  %v7906_v62 = vld [vmem:[%s10674_s1 + $0x142c] ss:$16 sps:$4 sm:$0xff]  }
 0x24b   :  { %5313 = vmatpush1.bf16.msra.mxu0 %v7811_v6  ;;  %5846 = vmatpush1.bf16.msra.mxu1 %v7814_v7  ;;  %v7898_v6 = vld [vmem:[%s10674_s1 + $0x1408] ss:$16 sps:$4 sm:$0xff]   ;;  %v7903_v7 = vld [vmem:[%s10674_s1 + $0x1424] ss:$16 sps:$4 sm:$0xff]  }
 0x24c   :  { %5314 = vmatprep.subr.bf16.mxu0 %v7819_v8  ;;  %5847 = vmatprep.subr.bf16.mxu1 %v7822_v9  ;;  %v10221_v8 = vrot.slane %v944_v4, %v8297_v49  ;;  %v7901_v9 = vld [vmem:[%s10674_s1 + $0x1420] ss:$16 sps:$4 sm:$0xff]   ;;  %v7987_v4 = vld [vmem:[%s10674_s1 + $0x15e4] ss:$16 sps:$4 sm:$0xff]  }
 0x24f   :  { %5315 = vmatpush1.bf16.msra.mxu0 %v7817_v10  ;;  %5848 = vmatpush1.bf16.msra.mxu1 %v7820_v11  ;;  %v7904_v10 = vld [vmem:[%s10674_s1 + $0x1428] ss:$16 sps:$4 sm:$0xff]   ;;  %v7909_v11 = vld [vmem:[%s10674_s1 + $0x1444] ss:$16 sps:$4 sm:$0xff]  }
 0x250   :  { %5316 = vmatprep.subr.bf16.mxu0 %v7825_v12  ;;  %5849 = vmatprep.subr.bf16.mxu1 %v7828_v52  ;;  %v7912_v12 = vld [vmem:[%s10674_s1 + $0x144c] ss:$16 sps:$4 sm:$0xff]   ;;  %v7907_v52 = vld [vmem:[%s10674_s1 + $0x1440] ss:$16 sps:$4 sm:$0xff]  }
 0x253   :  { %5317 = vmatpush1.bf16.msra.mxu0 %v7823_v15  ;;  %5850 = vmatpush1.bf16.msra.mxu1 %v7826_v16  ;;  %v7910_v15 = vld [vmem:[%s10674_s1 + $0x1448] ss:$16 sps:$4 sm:$0xff]   ;;  %v7915_v16 = vld [vmem:[%s10674_s1 + $0x1464] ss:$16 sps:$4 sm:$0xff]  }
 0x254   :  { %5318 = vmatprep.subr.bf16.mxu0 %v7831_v17  ;;  %5851 = vmatprep.subr.bf16.mxu1 %v7834_v18  ;;  %v7918_v17 = vld [vmem:[%s10674_s1 + $0x146c] ss:$16 sps:$4 sm:$0xff]   ;;  %v7913_v18 = vld [vmem:[%s10674_s1 + $0x1460] ss:$16 sps:$4 sm:$0xff]  }
 0x257   :  { %5319 = vmatpush1.bf16.msra.mxu0 %v7829_v19  ;;  %5852 = vmatpush1.bf16.msra.mxu1 %v7832_v20  ;;  %v7916_v19 = vld [vmem:[%s10674_s1 + $0x1468] ss:$16 sps:$4 sm:$0xff]   ;;  %v7921_v20 = vld [vmem:[%s10674_s1 + $0x1484] ss:$16 sps:$4 sm:$0xff]  }
 0x258   :  { %5320 = vmatprep.subr.bf16.mxu0 %v7837_v22  ;;  %5853 = vmatprep.subr.bf16.mxu1 %v7840_v23  ;;  %v7924_v22 = vld [vmem:[%s10674_s1 + $0x148c] ss:$16 sps:$4 sm:$0xff]   ;;  %v7919_v23 = vld [vmem:[%s10674_s1 + $0x1480] ss:$16 sps:$4 sm:$0xff]  }
 0x25b   :  { %5321 = vmatpush1.bf16.msra.mxu0 %v7835_v24  ;;  %5854 = vmatpush1.bf16.msra.mxu1 %v7838_v13  ;;  %v7922_v24 = vld [vmem:[%s10674_s1 + $0x1488] ss:$16 sps:$4 sm:$0xff]   ;;  %v7927_v13 = vld [vmem:[%s10674_s1 + $0x14a4] ss:$16 sps:$4 sm:$0xff]  }
 0x25c   :  { %5322 = vmatprep.subr.bf16.mxu0 %v7843_v27  ;;  %5855 = vmatprep.subr.bf16.mxu1 %v7846_v28  ;;  %v7930_v27 = vld [vmem:[%s10674_s1 + $0x14ac] ss:$16 sps:$4 sm:$0xff]   ;;  %v7925_v28 = vld [vmem:[%s10674_s1 + $0x14a0] ss:$16 sps:$4 sm:$0xff]  }
 0x25f   :  { %5323 = vmatpush1.bf16.msra.mxu0 %v7841_v29  ;;  %5856 = vmatpush1.bf16.msra.mxu1 %v7844_v14  ;;  %v7928_v29 = vld [vmem:[%s10674_s1 + $0x14a8] ss:$16 sps:$4 sm:$0xff]   ;;  %v7933_v14 = vld [vmem:[%s10674_s1 + $0x14c4] ss:$16 sps:$4 sm:$0xff]  }
 0x260   :  { %5324 = vmatprep.subr.bf16.mxu0 %v7849_v30  ;;  %5857 = vmatprep.subr.bf16.mxu1 %v7852_v31  ;;  %v7936_v30 = vld [vmem:[%s10674_s1 + $0x14cc] ss:$16 sps:$4 sm:$0xff]   ;;  %v7931_v31 = vld [vmem:[%s10674_s1 + $0x14c0] ss:$16 sps:$4 sm:$0xff]  }
 0x263   :  { %5325 = vmatpush1.bf16.msra.mxu0 %v7847_v25  ;;  %5858 = vmatpush1.bf16.msra.mxu1 %v7850_v32  ;;  %v7934_v25 = vld [vmem:[%s10674_s1 + $0x14c8] ss:$16 sps:$4 sm:$0xff]   ;;  %v7939_v32 = vld [vmem:[%s10674_s1 + $0x14e4] ss:$16 sps:$4 sm:$0xff]  }
 0x264   :  { %5326 = vmatprep.subr.bf16.mxu0 %v7855_v33  ;;  %5859 = vmatprep.subr.bf16.mxu1 %v7858_v26  ;;  %v7942_v33 = vld [vmem:[%s10674_s1 + $0x14ec] ss:$16 sps:$4 sm:$0xff]   ;;  %v7937_v26 = vld [vmem:[%s10674_s1 + $0x14e0] ss:$16 sps:$4 sm:$0xff]  }
 0x267   :  { %5327 = vmatpush1.bf16.msra.mxu0 %v7853_v36  ;;  %5860 = vmatpush1.bf16.msra.mxu1 %v7856_v37  ;;  %v7940_v36 = vld [vmem:[%s10674_s1 + $0x14e8] ss:$16 sps:$4 sm:$0xff]   ;;  %v7945_v37 = vld [vmem:[%s10674_s1 + $0x1504] ss:$16 sps:$4 sm:$0xff]  }
 0x268   :  { %5328 = vmatprep.subr.bf16.mxu0 %v7861_v21  ;;  %5861 = vmatprep.subr.bf16.mxu1 %v7864_v39  ;;  %v7948_v21 = vld [vmem:[%s10674_s1 + $0x150c] ss:$16 sps:$4 sm:$0xff]   ;;  %v7943_v39 = vld [vmem:[%s10674_s1 + $0x1500] ss:$16 sps:$4 sm:$0xff]  }
 0x26b   :  { %5329 = vmatpush1.bf16.msra.mxu0 %v7859_v40  ;;  %5862 = vmatpush1.bf16.msra.mxu1 %v7862_v41  ;;  %v7946_v40 = vld [vmem:[%s10674_s1 + $0x1508] ss:$16 sps:$4 sm:$0xff]   ;;  %v7951_v41 = vld [vmem:[%s10674_s1 + $0x1524] ss:$16 sps:$4 sm:$0xff]  }
 0x26c   :  { %5330 = vmatprep.subr.bf16.mxu0 %v7867_v34  ;;  %5863 = vmatprep.subr.bf16.mxu1 %v7870_v43  ;;  %v7954_v34 = vld [vmem:[%s10674_s1 + $0x152c] ss:$16 sps:$4 sm:$0xff]   ;;  %v7949_v43 = vld [vmem:[%s10674_s1 + $0x1520] ss:$16 sps:$4 sm:$0xff]  }
 0x26f   :  { %5331 = vmatpush1.bf16.msra.mxu0 %v7865_v45  ;;  %5864 = vmatpush1.bf16.msra.mxu1 %v7868_v46  ;;  %v7952_v45 = vld [vmem:[%s10674_s1 + $0x1528] ss:$16 sps:$4 sm:$0xff]   ;;  %v7957_v46 = vld [vmem:[%s10674_s1 + $0x1544] ss:$16 sps:$4 sm:$0xff]  }
 0x270   :  { %5332 = vmatprep.subr.bf16.mxu0 %v7873_v35  ;;  %5865 = vmatprep.subr.bf16.mxu1 %v7876_v50  ;;  %v7960_v35 = vld [vmem:[%s10674_s1 + $0x154c] ss:$16 sps:$4 sm:$0xff]   ;;  %v7955_v50 = vld [vmem:[%s10674_s1 + $0x1540] ss:$16 sps:$4 sm:$0xff]  }
 0x273   :  { %5333 = vmatpush1.bf16.msra.mxu0 %v7871_v53  ;;  %5866 = vmatpush1.bf16.msra.mxu1 %v7874_v38  ;;  %v7958_v53 = vld [vmem:[%s10674_s1 + $0x1548] ss:$16 sps:$4 sm:$0xff]   ;;  %v7963_v38 = vld [vmem:[%s10674_s1 + $0x1564] ss:$16 sps:$4 sm:$0xff]  }
 0x274   :  { %5334 = vmatprep.subr.bf16.mxu0 %v7879_v54  ;;  %5867 = vmatprep.subr.bf16.mxu1 %v7882_v55  ;;  %v7966_v54 = vld [vmem:[%s10674_s1 + $0x156c] ss:$16 sps:$4 sm:$0xff]   ;;  %v7961_v55 = vld [vmem:[%s10674_s1 + $0x1560] ss:$16 sps:$4 sm:$0xff]  }
 0x277   :  { %5335 = vmatpush1.bf16.msra.mxu0 %v7877_v56  ;;  %5868 = vmatpush1.bf16.msra.mxu1 %v7880_v47  ;;  %v7964_v56 = vld [vmem:[%s10674_s1 + $0x1568] ss:$16 sps:$4 sm:$0xff]   ;;  %v7969_v47 = vld [vmem:[%s10674_s1 + $0x1584] ss:$16 sps:$4 sm:$0xff]  }
 0x278   :  { %5336 = vmatprep.subr.bf16.mxu0 %v7885_v57  ;;  %5869 = vmatprep.subr.bf16.mxu1 %v7888_v58  ;;  %v7972_v57 = vld [vmem:[%s10674_s1 + $0x158c] ss:$16 sps:$4 sm:$0xff]   ;;  %v7967_v58 = vld [vmem:[%s10674_s1 + $0x1580] ss:$16 sps:$4 sm:$0xff]  }
 0x27b   :  { %5337 = vmatpush1.bf16.msra.mxu0 %v7883_v48  ;;  %5870 = vmatpush1.bf16.msra.mxu1 %v7886_v61  ;;  %v7975_v48 = vld [vmem:[%s10674_s1 + $0x15a4] ss:$16 sps:$4 sm:$0xff]   ;;  %v7978_v61 = vld [vmem:[%s10674_s1 + $0x15ac] ss:$16 sps:$4 sm:$0xff]  }
 0x27c   :  { %5338 = vmatprep.subr.bf16.mxu0 %v7891_v63  ;;  %5871 = vmatprep.subr.bf16.mxu1 %v7894_v44  ;;  %v7973_v63 = vld [vmem:[%s10674_s1 + $0x15a0] ss:$16 sps:$4 sm:$0xff]   ;;  %v7976_v44 = vld [vmem:[%s10674_s1 + $0x15a8] ss:$16 sps:$4 sm:$0xff]  }
 0x27f   :  { %5339 = vmatpush1.bf16.msra.mxu0 %v7889_v1  ;;  %5872 = vmatpush1.bf16.msra.mxu1 %v7892_v51  ;;  %v7981_v1 = vld [vmem:[%s10674_s1 + $0x15c4] ss:$16 sps:$4 sm:$0xff]   ;;  %v7984_v51 = vld [vmem:[%s10674_s1 + $0x15cc] ss:$16 sps:$4 sm:$0xff]  }
 0x280   :  { %5349 = vmatprep.subr.bf16.mxu0 %v7897_v2  ;;  %5882 = vmatprep.subr.bf16.mxu1 %v7900_v3  ;;  %v7979_v2 = vld [vmem:[%s10674_s1 + $0x15c0] ss:$16 sps:$4 sm:$0xff]   ;;  %v7982_v3 = vld [vmem:[%s10674_s1 + $0x15c8] ss:$16 sps:$4 sm:$0xff]  }
 0x282   :  { %5341 = vmatmul.mubr.bf16.vlgmr.msra.gmra.mrb[0].mxu0 %v973_v60  ;;  %5874 = vmatmul.mubr.bf16.vlgmr.msra.gmra.mrb[0].mxu1 %v973_v60  ;;  %v7990_v60 = vld [vmem:[%s10674_s1 + $0x15ec] ss:$16 sps:$4 sm:$0xff]  }
 0x283   :  { %5350 = vmatpush1.bf16.msra.mxu0 %v7895_v5  ;;  %5883 = vmatpush1.bf16.msra.mxu1 %v7898_v6  ;;  %v7985_v5 = vld [vmem:[%s10674_s1 + $0x15e0] ss:$16 sps:$4 sm:$0xff]   ;;  %v7988_v6 = vld [vmem:[%s10674_s1 + $0x15e8] ss:$16 sps:$4 sm:$0xff]  }
 0x284   :  { %5351 = vmatprep.subr.bf16.mxu0 %v7903_v7  ;;  %5884 = vmatprep.subr.bf16.mxu1 %v7906_v62  ;;  %v7994_v7 = vld [vmem:[%s10674_s1 + $0x1604] ss:$16 sps:$4 sm:$0xff]   ;;  %v7997_v62 = vld [vmem:[%s10674_s1 + $0x160c] ss:$16 sps:$4 sm:$0xff]  }
 0x285   :  { %5381 = vmatprep.mubr.bf16.mxu0 %v10221_v8  ;;  %5914 = vmatprep.mubr.bf16.mxu1 %v10221_v8 }
 0x287   :  { %5352 = vmatpush1.bf16.msra.mxu0 %v7901_v9  ;;  %5885 = vmatpush1.bf16.msra.mxu1 %v7904_v10  ;;  %v10407_v9 = vrot.slane %v10190_v0, %v8297_v49  ;;  %v7992_v10 = vld [vmem:[%s10674_s1 + $0x1600] ss:$16 sps:$4 sm:$0xff]   ;;  %v8003_v0 = vld [vmem:[%s10674_s1 + $0x162c] ss:$16 sps:$4 sm:$0xff]  }
 0x288   :  { %5353 = vmatprep.subr.bf16.mxu0 %v7909_v11  ;;  %5886 = vmatprep.subr.bf16.mxu1 %v7912_v12  ;;  %v7995_v11 = vld [vmem:[%s10674_s1 + $0x1608] ss:$16 sps:$4 sm:$0xff]   ;;  %v8000_v12 = vld [vmem:[%s10674_s1 + $0x1624] ss:$16 sps:$4 sm:$0xff]  }
 0x28b   :  { %5354 = vmatpush1.bf16.msra.mxu0 %v7907_v52  ;;  %5887 = vmatpush1.bf16.msra.mxu1 %v7910_v15  ;;  %v976_v52 = vcombine.high %v10221_v8, %v10221_v8  ;;  %v7998_v15 = vld [vmem:[%s10674_s1 + $0x1620] ss:$16 sps:$4 sm:$0xff]   ;;  %v8006_v8 = vld [vmem:[%s10674_s1 + $0x1644] ss:$16 sps:$4 sm:$0xff]  }
 0x28c   :  { %5355 = vmatprep.subr.bf16.mxu0 %v7915_v16  ;;  %5888 = vmatprep.subr.bf16.mxu1 %v7918_v17  ;;  %v8001_v16 = vld [vmem:[%s10674_s1 + $0x1628] ss:$16 sps:$4 sm:$0xff]   ;;  %v8009_v17 = vld [vmem:[%s10674_s1 + $0x164c] ss:$16 sps:$4 sm:$0xff]  }
 0x28f   :  { %5356 = vmatpush1.bf16.msra.mxu0 %v7913_v18  ;;  %5889 = vmatpush1.bf16.msra.mxu1 %v7916_v19  ;;  %v8004_v18 = vld [vmem:[%s10674_s1 + $0x1640] ss:$16 sps:$4 sm:$0xff]   ;;  %v8007_v19 = vld [vmem:[%s10674_s1 + $0x1648] ss:$16 sps:$4 sm:$0xff]  }
 0x290   :  { %5357 = vmatprep.subr.bf16.mxu0 %v7921_v20  ;;  %5890 = vmatprep.subr.bf16.mxu1 %v7924_v22  ;;  %v8012_v20 = vld [vmem:[%s10674_s1 + $0x1664] ss:$16 sps:$4 sm:$0xff]   ;;  %v8015_v22 = vld [vmem:[%s10674_s1 + $0x166c] ss:$16 sps:$4 sm:$0xff]  }
 0x293   :  { %5358 = vmatpush1.bf16.msra.mxu0 %v7919_v23  ;;  %5891 = vmatpush1.bf16.msra.mxu1 %v7922_v24  ;;  %v8010_v23 = vld [vmem:[%s10674_s1 + $0x1660] ss:$16 sps:$4 sm:$0xff]   ;;  %v8013_v24 = vld [vmem:[%s10674_s1 + $0x1668] ss:$16 sps:$4 sm:$0xff]  }
 0x294   :  { %5359 = vmatprep.subr.bf16.mxu0 %v7927_v13  ;;  %5892 = vmatprep.subr.bf16.mxu1 %v7930_v27  ;;  %v8018_v13 = vld [vmem:[%s10674_s1 + $0x1684] ss:$16 sps:$4 sm:$0xff]   ;;  %v8021_v27 = vld [vmem:[%s10674_s1 + $0x168c] ss:$16 sps:$4 sm:$0xff]  }
 0x297   :  { %5360 = vmatpush1.bf16.msra.mxu0 %v7925_v28  ;;  %5893 = vmatpush1.bf16.msra.mxu1 %v7928_v29  ;;  %v8016_v28 = vld [vmem:[%s10674_s1 + $0x1680] ss:$16 sps:$4 sm:$0xff]   ;;  %v8019_v29 = vld [vmem:[%s10674_s1 + $0x1688] ss:$16 sps:$4 sm:$0xff]  }
 0x298   :  { %5361 = vmatprep.subr.bf16.mxu0 %v7933_v14  ;;  %5894 = vmatprep.subr.bf16.mxu1 %v7936_v30  ;;  %v8024_v14 = vld [vmem:[%s10674_s1 + $0x16a4] ss:$16 sps:$4 sm:$0xff]   ;;  %v8027_v30 = vld [vmem:[%s10674_s1 + $0x16ac] ss:$16 sps:$4 sm:$0xff]  }
 0x29b   :  { %5362 = vmatpush1.bf16.msra.mxu0 %v7931_v31  ;;  %5895 = vmatpush1.bf16.msra.mxu1 %v7934_v25  ;;  %v8022_v31 = vld [vmem:[%s10674_s1 + $0x16a0] ss:$16 sps:$4 sm:$0xff]   ;;  %v8025_v25 = vld [vmem:[%s10674_s1 + $0x16a8] ss:$16 sps:$4 sm:$0xff]  }
 0x29c   :  { %5363 = vmatprep.subr.bf16.mxu0 %v7939_v32  ;;  %5896 = vmatprep.subr.bf16.mxu1 %v7942_v33  ;;  %v8030_v32 = vld [vmem:[%s10674_s1 + $0x16c4] ss:$16 sps:$4 sm:$0xff]   ;;  %v8033_v33 = vld [vmem:[%s10674_s1 + $0x16cc] ss:$16 sps:$4 sm:$0xff]  }
 0x29f   :  { %5364 = vmatpush1.bf16.msra.mxu0 %v7937_v26  ;;  %5897 = vmatpush1.bf16.msra.mxu1 %v7940_v36  ;;  %v8028_v26 = vld [vmem:[%s10674_s1 + $0x16c0] ss:$16 sps:$4 sm:$0xff]   ;;  %v8031_v36 = vld [vmem:[%s10674_s1 + $0x16c8] ss:$16 sps:$4 sm:$0xff]  }
 0x2a0   :  { %5365 = vmatprep.subr.bf16.mxu0 %v7945_v37  ;;  %5898 = vmatprep.subr.bf16.mxu1 %v7948_v21  ;;  %v8036_v37 = vld [vmem:[%s10674_s1 + $0x16e4] ss:$16 sps:$4 sm:$0xff]   ;;  %v8039_v21 = vld [vmem:[%s10674_s1 + $0x16ec] ss:$16 sps:$4 sm:$0xff]  }
 0x2a3   :  { %5366 = vmatpush1.bf16.msra.mxu0 %v7943_v39  ;;  %5899 = vmatpush1.bf16.msra.mxu1 %v7946_v40  ;;  %v8034_v39 = vld [vmem:[%s10674_s1 + $0x16e0] ss:$16 sps:$4 sm:$0xff]   ;;  %v8037_v40 = vld [vmem:[%s10674_s1 + $0x16e8] ss:$16 sps:$4 sm:$0xff]  }
 0x2a4   :  { %5367 = vmatprep.subr.bf16.mxu0 %v7951_v41  ;;  %5900 = vmatprep.subr.bf16.mxu1 %v7954_v34  ;;  %v8042_v41 = vld [vmem:[%s10674_s1 + $0x1704] ss:$16 sps:$4 sm:$0xff]   ;;  %v8045_v34 = vld [vmem:[%s10674_s1 + $0x170c] ss:$16 sps:$4 sm:$0xff]  }
 0x2a7   :  { %5368 = vmatpush1.bf16.msra.mxu0 %v7949_v43  ;;  %5901 = vmatpush1.bf16.msra.mxu1 %v7952_v45  ;;  %v8040_v43 = vld [vmem:[%s10674_s1 + $0x1700] ss:$16 sps:$4 sm:$0xff]   ;;  %v8043_v45 = vld [vmem:[%s10674_s1 + $0x1708] ss:$16 sps:$4 sm:$0xff]  }
 0x2a8   :  { %5369 = vmatprep.subr.bf16.mxu0 %v7957_v46  ;;  %5902 = vmatprep.subr.bf16.mxu1 %v7960_v35  ;;  %v8048_v46 = vld [vmem:[%s10674_s1 + $0x1724] ss:$16 sps:$4 sm:$0xff]   ;;  %v8051_v35 = vld [vmem:[%s10674_s1 + $0x172c] ss:$16 sps:$4 sm:$0xff]  }
 0x2ab   :  { %5370 = vmatpush1.bf16.msra.mxu0 %v7955_v50  ;;  %5903 = vmatpush1.bf16.msra.mxu1 %v7958_v53  ;;  %v8046_v50 = vld [vmem:[%s10674_s1 + $0x1720] ss:$16 sps:$4 sm:$0xff]   ;;  %v8049_v53 = vld [vmem:[%s10674_s1 + $0x1728] ss:$16 sps:$4 sm:$0xff]  }
 0x2ac   :  { %5371 = vmatprep.subr.bf16.mxu0 %v7963_v38  ;;  %5904 = vmatprep.subr.bf16.mxu1 %v7966_v54  ;;  %v8054_v38 = vld [vmem:[%s10674_s1 + $0x1744] ss:$16 sps:$4 sm:$0xff]   ;;  %v8057_v54 = vld [vmem:[%s10674_s1 + $0x174c] ss:$16 sps:$4 sm:$0xff]  }
 0x2af   :  { %5372 = vmatpush1.bf16.msra.mxu0 %v7961_v55  ;;  %5905 = vmatpush1.bf16.msra.mxu1 %v7964_v56  ;;  %v8052_v55 = vld [vmem:[%s10674_s1 + $0x1740] ss:$16 sps:$4 sm:$0xff]   ;;  %v8055_v56 = vld [vmem:[%s10674_s1 + $0x1748] ss:$16 sps:$4 sm:$0xff]  }
 0x2b0   :  { %5373 = vmatprep.subr.bf16.mxu0 %v7969_v47  ;;  %5906 = vmatprep.subr.bf16.mxu1 %v7972_v57  ;;  %v8060_v47 = vld [vmem:[%s10674_s1 + $0x1764] ss:$16 sps:$4 sm:$0xff]   ;;  %v8063_v57 = vld [vmem:[%s10674_s1 + $0x176c] ss:$16 sps:$4 sm:$0xff]  }
 0x2b3   :  { %5374 = vmatpush1.bf16.msra.mxu0 %v7967_v58  ;;  %5907 = vmatpush1.bf16.msra.mxu1 %v7970_v59  ;;  %v8058_v58 = vld [vmem:[%s10674_s1 + $0x1760] ss:$16 sps:$4 sm:$0xff]   ;;  %v8061_v59 = vld [vmem:[%s10674_s1 + $0x1768] ss:$16 sps:$4 sm:$0xff]  }
 0x2b4   :  { %5375 = vmatprep.subr.bf16.mxu0 %v7975_v48  ;;  %5908 = vmatprep.subr.bf16.mxu1 %v7978_v61  ;;  %v8066_v48 = vld [vmem:[%s10674_s1 + $0x1784] ss:$16 sps:$4 sm:$0xff]   ;;  %v8069_v61 = vld [vmem:[%s10674_s1 + $0x178c] ss:$16 sps:$4 sm:$0xff]  }
 0x2b7   :  { %5376 = vmatpush1.bf16.msra.mxu0 %v7973_v63  ;;  %5909 = vmatpush1.bf16.msra.mxu1 %v7976_v44  ;;  %v8064_v63 = vld [vmem:[%s10674_s1 + $0x1780] ss:$16 sps:$4 sm:$0xff]   ;;  %v8067_v44 = vld [vmem:[%s10674_s1 + $0x1788] ss:$16 sps:$4 sm:$0xff]  }
 0x2b8   :  { %5377 = vmatprep.subr.bf16.mxu0 %v7981_v1  ;;  %5910 = vmatprep.subr.bf16.mxu1 %v7984_v51  ;;  %v8072_v1 = vld [vmem:[%s10674_s1 + $0x17a4] ss:$16 sps:$4 sm:$0xff]   ;;  %v8075_v51 = vld [vmem:[%s10674_s1 + $0x17ac] ss:$16 sps:$4 sm:$0xff]  }
 0x2bb   :  { %5378 = vmatpush1.bf16.msra.mxu0 %v7979_v2  ;;  %5911 = vmatpush1.bf16.msra.mxu1 %v7982_v3  ;;  %v8070_v2 = vld [vmem:[%s10674_s1 + $0x17a0] ss:$16 sps:$4 sm:$0xff]   ;;  %v8073_v3 = vld [vmem:[%s10674_s1 + $0x17a8] ss:$16 sps:$4 sm:$0xff]  }
 0x2bc   :  { %5379 = vmatprep.subr.bf16.mxu0 %v7987_v4  ;;  %5912 = vmatprep.subr.bf16.mxu1 %v7990_v60  ;;  %v8078_v4 = vld [vmem:[%s10674_s1 + $0x17c4] ss:$16 sps:$4 sm:$0xff]   ;;  %v8081_v60 = vld [vmem:[%s10674_s1 + $0x17cc] ss:$16 sps:$4 sm:$0xff]  }
 0x2bf   :  { %5380 = vmatpush1.bf16.msra.mxu0 %v7985_v5  ;;  %5913 = vmatpush1.bf16.msra.mxu1 %v7988_v6  ;;  %v8076_v5 = vld [vmem:[%s10674_s1 + $0x17c0] ss:$16 sps:$4 sm:$0xff]   ;;  %v8079_v6 = vld [vmem:[%s10674_s1 + $0x17c8] ss:$16 sps:$4 sm:$0xff]  }
 0x2c0   :  { %5390 = vmatprep.subr.bf16.mxu0 %v7994_v7  ;;  %5923 = vmatprep.subr.bf16.mxu1 %v7997_v62  ;;  %v8084_v7 = vld [vmem:[%s10674_s1 + $0x17e4] ss:$16 sps:$4 sm:$0xff]   ;;  %v8087_v62 = vld [vmem:[%s10674_s1 + $0x17ec] ss:$16 sps:$4 sm:$0xff]  }
 0x2c2   :  { %5382 = vmatmul.mubr.bf16.vlgmr.msra.gmra.mrb[0].mxu0 %v10407_v9  ;;  %5915 = vmatmul.mubr.bf16.vlgmr.msra.gmra.mrb[0].mxu1 %v10407_v9 }
 0x2c3   :  { %5391 = vmatpush1.bf16.msra.mxu0 %v7992_v10  ;;  %5924 = vmatpush1.bf16.msra.mxu1 %v7995_v11  ;;  %v8082_v10 = vld [vmem:[%s10674_s1 + $0x17e0] ss:$16 sps:$4 sm:$0xff]   ;;  %v8085_v11 = vld [vmem:[%s10674_s1 + $0x17e8] ss:$16 sps:$4 sm:$0xff]  }
 0x2c4   :  { %5392 = vmatprep.subr.bf16.mxu0 %v8000_v12  ;;  %5925 = vmatprep.subr.bf16.mxu1 %v8003_v0  ;;  %v8090_v12 = vld [vmem:[%s10674_s1 + $0x1804] ss:$16 sps:$4 sm:$0xff]   ;;  %v8093_v0 = vld [vmem:[%s10674_s1 + $0x180c] ss:$16 sps:$4 sm:$0xff]  }
 0x2c5   :  { %5422 = vmatprep.mubr.bf16.mxu0 %v976_v52  ;;  %5955 = vmatprep.mubr.bf16.mxu1 %v976_v52  ;;  %v974_v52 = vcombine.high %v10407_v9, %v10407_v9  ;;  %v8099_v9 = vld [vmem:[%s10674_s1 + $0x182c] ss:$16 sps:$4 sm:$0xff]  }
 0x2c7   :  { %5393 = vmatpush1.bf16.msra.mxu0 %v7998_v15  ;;  %5926 = vmatpush1.bf16.msra.mxu1 %v8001_v16  ;;  %v8088_v15 = vld [vmem:[%s10674_s1 + $0x1800] ss:$16 sps:$4 sm:$0xff]   ;;  %v8091_v16 = vld [vmem:[%s10674_s1 + $0x1808] ss:$16 sps:$4 sm:$0xff]  }
 0x2c8   :  { %5394 = vmatprep.subr.bf16.mxu0 %v8006_v8  ;;  %5927 = vmatprep.subr.bf16.mxu1 %v8009_v17  ;;  %v8096_v8 = vld [vmem:[%s10674_s1 + $0x1824] ss:$16 sps:$4 sm:$0xff]   ;;  %v8094_v17 = vld [vmem:[%s10674_s1 + $0x1820] ss:$16 sps:$4 sm:$0xff]  }
 0x2cb   :  { %5395 = vmatpush1.bf16.msra.mxu0 %v8004_v18  ;;  %5928 = vmatpush1.bf16.msra.mxu1 %v8007_v19  ;;  %v8097_v18 = vld [vmem:[%s10674_s1 + $0x1828] ss:$16 sps:$4 sm:$0xff]   ;;  %v8102_v19 = vld [vmem:[%s10674_s1 + $0x1844] ss:$16 sps:$4 sm:$0xff]  }
 0x2cc   :  { %5396 = vmatprep.subr.bf16.mxu0 %v8012_v20  ;;  %5929 = vmatprep.subr.bf16.mxu1 %v8015_v22  ;;  %v8105_v20 = vld [vmem:[%s10674_s1 + $0x184c] ss:$16 sps:$4 sm:$0xff]   ;;  %v8139_v22 = vmov 0  }
 0x2cf   :  { %5397 = vmatpush1.bf16.msra.mxu0 %v8010_v23  ;;  %5930 = vmatpush1.bf16.msra.mxu1 %v8013_v24  ;;  %v8100_v23 = vld [vmem:[%s10674_s1 + $0x1840] ss:$16 sps:$4 sm:$0xff]   ;;  %v8103_v24 = vld [vmem:[%s10674_s1 + $0x1848] ss:$16 sps:$4 sm:$0xff]  }
 0x2d0   :  { %5398 = vmatprep.subr.bf16.mxu0 %v8018_v13  ;;  %5931 = vmatprep.subr.bf16.mxu1 %v8021_v27  ;;  %v8108_v13 = vld [vmem:[%s10674_s1 + $0x1864] ss:$16 sps:$4 sm:$0xff]   ;;  %v8111_v27 = vld [vmem:[%s10674_s1 + $0x186c] ss:$16 sps:$4 sm:$0xff]  }
 0x2d3   :  { %5399 = vmatpush1.bf16.msra.mxu0 %v8016_v28  ;;  %5932 = vmatpush1.bf16.msra.mxu1 %v8019_v29  ;;  %v8106_v28 = vld [vmem:[%s10674_s1 + $0x1860] ss:$16 sps:$4 sm:$0xff]   ;;  %v8109_v29 = vld [vmem:[%s10674_s1 + $0x1868] ss:$16 sps:$4 sm:$0xff]  }
 0x2d4   :  { %5400 = vmatprep.subr.bf16.mxu0 %v8024_v14  ;;  %5933 = vmatprep.subr.bf16.mxu1 %v8027_v30  ;;  %v6042_v14 = vld.sshfl [vmem:[%s10673_s0 + $0x18] sm:$0x1 pattern:$0x75316420]  ;;  %s8141_s0 = smov [#allocation2]  }
 0x2d5   :  { %v990_v30 = vrot.slane %v6042_v14, %v8297_v49  ;;  %s6034_s1 = sshll.u32 %s8141_s0, 4  ;;  %s6035_s1 = int_to_ptr.vmem [resolvable:$true] %s6034_s1 }
 0x2d6   :  { %p8119_p1 = scmp.lt.s32.totalorder %s6035_s1, %s6035_s1 }
 0x2d7   :  { %5401 = vmatpush1.bf16.msra.mxu0 %v8022_v31  ;;  %5934 = vmatpush1.bf16.msra.mxu1 %v8025_v25  ;;  %v808_v31 = vsub.s32 0, %v8279_v42  ;;  %v816_v25 = vsub.s32 2, %v8279_v42 }
 0x2d8   :  { %5402 = vmatprep.subr.bf16.mxu0 %v8030_v32  ;;  %5935 = vmatprep.subr.bf16.mxu1 %v8033_v33  ;;  %v804_v32 = vld [vmem:[%s10675_s2] sm:$0xf]  ;;  %v812_v33 = vsub.s32 1, %v8279_v42  ;;  %s8114_s2 = scalar_lea.vmem %s6035_s1, 128 }
 0x2d9   :  { %v809_v49 = vrot.slane %v804_v32, %v808_v31  ;;  %p8115_p0 = scmp.ne.s32.totalorder %s6035_s1, %s8114_s2  ;;  %p8120_p2 = scmp.lt.s32.totalorder %s8114_s2, %s8114_s2 }
 0x2db   :  { %5403 = vmatpush1.bf16.msra.mxu0 %v8028_v26  ;;  %5936 = vmatpush1.bf16.msra.mxu1 %v8031_v36  ;;  %v820_v26 = vsub.s32 3, %v8279_v42  ;;  %v8140_v36 = vmov 1983009808   ;;  %p8121_p3 = por %p8120_p2, %p8119_p1 }
 0x2dc   :  { %5404 = vmatprep.subr.bf16.mxu0 %v8036_v37  ;;  %5937 = vmatprep.subr.bf16.mxu1 %v8039_v21  ;;  %v6012_v37 = vunpack.c.l.s4 %v8140_v36  ;;  %v817_v21 = vrot.slane %v804_v32, %v816_v25 }
 0x2dd   :  { %p8122_p4 = pnand %p8121_p3, %p8115_p0 }
 0x2df   :  { %5405 = vmatpush1.bf16.msra.mxu0 %v8034_v39  ;;  %5938 = vmatpush1.bf16.msra.mxu1 %v8037_v40  ;;  %v813_v39 = vrot.slane %v804_v32, %v812_v33  ;;  %v821_v40 = vrot.slane %v804_v32, %v820_v26 }
 0x2e0   :  { %5406 = vmatprep.subr.bf16.mxu0 %v8042_v41  ;;  %5939 = vmatprep.subr.bf16.mxu1 %v8045_v34  ;;  %v6013_v41 = vunpack.c.0.s8 %v6012_v37 }
 0x2e3   :  { %5407 = vmatpush1.bf16.msra.mxu0 %v8040_v43  ;;  %5940 = vmatpush1.bf16.msra.mxu1 %v8043_v45 }
 0x2e4   :  { %5408 = vmatprep.subr.bf16.mxu0 %v8048_v46  ;;  %5941 = vmatprep.subr.bf16.mxu1 %v8051_v35 }
 0x2e7   :  { %5409 = vmatpush1.bf16.msra.mxu0 %v8046_v50  ;;  %5942 = vmatpush1.bf16.msra.mxu1 %v8049_v53 }
 0x2e8   :  { %5410 = vmatprep.subr.bf16.mxu0 %v8054_v38  ;;  %5943 = vmatprep.subr.bf16.mxu1 %v8057_v54 }
 0x2eb   :  { %5411 = vmatpush1.bf16.msra.mxu0 %v8052_v55  ;;  %5944 = vmatpush1.bf16.msra.mxu1 %v8055_v56  ;;  %v6016_v56 = vsub.s32 %v6013_v41, %v8279_v42 }
 0x2ec   :  { %5412 = vmatprep.subr.bf16.mxu0 %v8060_v47  ;;  %5945 = vmatprep.subr.bf16.mxu1 %v8063_v57 }
 0x2ef   :  { %5413 = vmatpush1.bf16.msra.mxu0 %v8058_v58  ;;  %5946 = vmatpush1.bf16.msra.mxu1 %v8061_v59 }
 0x2f0   :  { %5414 = vmatprep.subr.bf16.mxu0 %v8066_v48  ;;  %5947 = vmatprep.subr.bf16.mxu1 %v8069_v61 }
 0x2f3   :  { %5415 = vmatpush1.bf16.msra.mxu0 %v8064_v63  ;;  %5948 = vmatpush1.bf16.msra.mxu1 %v8067_v44 }
 0x2f4   :  { %5416 = vmatprep.subr.bf16.mxu0 %v8072_v1  ;;  %5949 = vmatprep.subr.bf16.mxu1 %v8075_v51 }
 0x2f7   :  { %5417 = vmatpush1.bf16.msra.mxu0 %v8070_v2  ;;  %5950 = vmatpush1.bf16.msra.mxu1 %v8073_v3 }
 0x2f8   :  { %5418 = vmatprep.subr.bf16.mxu0 %v8078_v4  ;;  %5951 = vmatprep.subr.bf16.mxu1 %v8081_v60 }
 0x2fb   :  { %5419 = vmatpush1.bf16.msra.mxu0 %v8076_v5  ;;  %5952 = vmatpush1.bf16.msra.mxu1 %v8079_v6 }
 0x2fc   :  { %5420 = vmatprep.subr.bf16.mxu0 %v8084_v7  ;;  %5953 = vmatprep.subr.bf16.mxu1 %v8087_v62 }
 0x2ff   :  { %5421 = vmatpush1.bf16.msra.mxu0 %v8082_v10  ;;  %5954 = vmatpush1.bf16.msra.mxu1 %v8085_v11 }
 0x300   :  { %5431 = vmatprep.subr.bf16.mxu0 %v8090_v12  ;;  %5964 = vmatprep.subr.bf16.mxu1 %v8093_v0 }
 0x302   :  { %5423 = vmatmul.mubr.bf16.vlgmr.msra.gmra.mrb[0].mxu0 %v974_v52  ;;  %5956 = vmatmul.mubr.bf16.vlgmr.msra.gmra.mrb[0].mxu1 %v974_v52 }
 0x303   :  { %5432 = vmatpush1.bf16.msra.mxu0 %v8088_v15  ;;  %5965 = vmatpush1.bf16.msra.mxu1 %v8091_v16 }
 0x304   :  { %5433 = vmatprep.subr.bf16.mxu0 %v8096_v8  ;;  %5966 = vmatprep.subr.bf16.mxu1 %v8099_v9 }
 0x305   :  { %5463 = vmatprep.mubr.bf16.mxu0 %v8139_v22  ;;  %5996 = vmatprep.mubr.bf16.mxu1 %v8139_v22 }
 0x307   :  { %5434 = vmatpush1.bf16.msra.mxu0 %v8094_v17  ;;  %5967 = vmatpush1.bf16.msra.mxu1 %v8097_v18 }
 0x308   :  { %5435 = vmatprep.subr.bf16.mxu0 %v8102_v19  ;;  %5968 = vmatprep.subr.bf16.mxu1 %v8105_v20 }
 0x30b   :  { %5436 = vmatpush1.bf16.msra.mxu0 %v8100_v23  ;;  %5969 = vmatpush1.bf16.msra.mxu1 %v8103_v24 }
 0x30c   :  { %5437 = vmatprep.subr.bf16.mxu0 %v8108_v13  ;;  %5970 = vmatprep.subr.bf16.mxu1 %v8111_v27 }
 0x30f   :  { %5438 = vmatpush1.bf16.msra.mxu0 %v8106_v28  ;;  %5971 = vmatpush1.bf16.msra.mxu1 %v8109_v29 }
 0x312   :  { %6827 = vmatmul.mubr.msk.bf16.vlgmr.msra.gmra.mrb[0].mxu0 %vm4935_vm0, %v990_v30  ;;  %6828 = vmatmul.mubr.msk.bf16.vlgmr.msra.gmra.mrb[0].mxu1 %vm4935_vm0, %v990_v30 }
 0x3e5   :  { %v5465_v34 = vpop.f32.mrb[0].mxu0  ;;  %v5998_v43 = vpop.f32.mrb[0].mxu1 }
 0x3e6   :  { %v6829_v45 = vadd.f32 %v5465_v34, %v809_v49  ;;  %v6831_v46 = vadd.f32 %v5998_v43, %v817_v21  ;;  %v5467_v35 = vpop.f32.mrb[1].mxu0  ;;  %v6000_v50 = vpop.f32.mrb[1].mxu1 }
 0x3e7   :  { %v6830_v53 = vadd.f32 %v5467_v35, %v813_v39  ;;  %v6832_v38 = vadd.f32 %v6000_v50, %v821_v40  ;;  %v5469_v54 = vpop.f32.mrb[2].mxu0  ;;  %v6002_v55 = vpop.f32.mrb[2].mxu1 }
 0x3e8   :  { %v5470_v47 = vpop.f32.mrb[3].mxu0  ;;  %v6003_v57 = vpop.f32.mrb[3].mxu1 }
 0x3e9   :  { %v6009_v58 = vcombine.low %v6829_v45, %v6830_v53  ;;  %v6010_v59 = vcombine.low %v6831_v46, %v6832_v38 }
 0x3eb   :  { %v6017_v48 = vrot.slane %v6009_v58, %v6016_v56  ;;  %v6024_v61 = vrot.slane %v6010_v59, %v6016_v56 }
 0x3ed   :  { %v6025_v63 = vcombine.low %v6017_v48, %v6024_v61 }
 0x3ef   :  { %6027 = vst [vmem:[#allocation2] sm:$0xff] %v6025_v63 }
 0x3f0   :  { %8125 = shalt.err (!%p8122_p4)
}
 0x3f1   :  { %s8126_s28 = scalar_lea.hbm %s10676_s3, 128 }
 0x3f2   :  { %p8127_p5 = scmp.ne.s32.totalorder %s10676_s3, %s8126_s28  ;;  %p8130_p6 = scmp.lt.u32.totalorder %s8126_s28, %s10676_s3 }
 0x3f4   :  { %p8132_p7 = pnand %p8130_p6, %p8127_p5 }
 0x3f6   :  { %8135 = shalt.err (!%p8132_p7)
}
 0x3f7   :  { %6037 = dma.vmem_to_hbm [thread:$0]  %s6035_s1, 128, %s10676_s3, [#allocation3]  }
 0x3f8   :  { %8136 = dma.done.wait [#allocation3], 128  }
 0x3f9   :  { %8137 = vsyncadd [#allocation3], 4294967168 }
 0x3fa   :  { %6041 = vsyncpa [#allocation3], 1 }

// kernel: cnn_encoder.2
= control target key start
LH: loop header
LB: loop body
LE: loop exit
PB: predicated region body
PF: predicated region fallthrough
CT: control target
= control target key end

     0   :  { %s20460_s24 = smov 0   ;;  %s24488_s0 = inlined_call_operand.vmem [shape: u8[2,400,256], index: 0, kind: input, shape index: {}]   ;;  %s24489_s1 = inlined_call_operand.vmem [shape: bf16[256,128], index: 1, kind: input, shape index: {}]   ;;  %s24490_s2 = inlined_call_operand.vmem [shape: f32[1,128], index: 2, kind: input, shape index: {}]   ;;  %s24491_s3 = inlined_call_operand.vmem [shape: bf16[2048,128], index: 3, kind: input, shape index: {}]   ;;  %s24492_s4 = inlined_call_operand.vmem [shape: f32[1,128], index: 4, kind: input, shape index: {}]   ;;  %s24493_s5 = inlined_call_operand.vmem [shape: bf16[1152,64], index: 5, kind: input, shape index: {}]   ;;  %s24494_s6 = inlined_call_operand.vmem [shape: f32[1,64], index: 6, kind: input, shape index: {}]   ;;  %s24495_s7 = inlined_call_operand.vmem [shape: bf16[2,256,64], index: 7, kind: output, shape index: {}]  }
   0x1 LB: > { %s14914_s25 = sadd.s32 4294967295, %s20415_s24   ;;  %p14918_p0 = scmp.ge.s32.totalorder %s20415_s24, 1  ;;  %s20415_s24 = sphi %s20460_s24, %s17_s24  }
   0x2   : > { %p237_p1 = scmp.lt.s32.totalorder %s20415_s24, 3 }
   0x4   : > { %p238_p2 = pnand %p14918_p0, %p237_p1 }
   0x6   : > { %241 = sbr.rel (%p238_p2) target bundleno = 2348 (0x92c), region = 48 }
   0xd   : > { %v19757_v0 = vld [vmem:[%s24489_s1 + $0x40] sm:$0xff]   ;;  %v19758_v1 = vld [vmem:[%s24489_s1 + $0x48] sm:$0xff]   ;;  %v20417_v2 = vmov 0.0   ;;  %p269_p3 = scmp.lt.s32.totalorder %s14914_s25, 1  ;;  %vm20418_vm0 = vmmov 0   ;;  %v19759_v4 = vld [vmem:[%s24489_s1 + $0x50] sm:$0xff]  }
   0xe   : > { %18841 = vmatprep.subr.bf16.mxu1 %v20417_v2  ;;  %16993 = vmatprep.subr.bf16.mxu0 %v19757_v0  ;;  %v20478_v3 = vld [vmem:[%s24489_s1 + $0x40] sm:$0xff]   ;;  %v20491_v5 = vld [vmem:[%s24489_s1 + $0x48] sm:$0xff]   ;;  %v19761_v6 = vld [vmem:[%s24489_s1 + $0x58] sm:$0xff]   ;;  %vm2075_vm1 = vsmask.f32 7424  ;;  %vm4197_vm3 = vcmask 1044480  }
   0xf   : > { %16994 = vmatpush3.bf16.msra.mxu0 %v19757_v0  ;;  %s25087_s25 = smov (!%p269_p3, %s14914_s25), 1  ;;  %17125 = vmatprep.mubr.msk.bf16.mxu1 %vm20418_vm0, %v20417_v2  ;;  %v20502_v7 = vld [vmem:[%s24489_s1 + $0x50] sm:$0xff]   ;;  %v19763_v8 = vld [vmem:[%s24489_s1 + $0x60] sm:$0xff]   ;;  %v20517_v9 = vld [vmem:[%s24489_s1 + $0x58] sm:$0xff]   ;;  %vm2989_vm2 = vsmask.f32 6400 }
  0x10   : > { %16995 = vmatprep.subr.bf16.mxu0 %v19758_v1  ;;  %18849 = vmatpush3.bf16.msra.mxu1 %v20478_v3  ;;  %s19745_s13 = smul.u32 200, %s25087_s25  ;;  %v19765_v14 = vld [vmem:[%s24489_s1 + $0x68] sm:$0xff]   ;;  %v20529_v15 = vld [vmem:[%s24489_s1 + $0x60] sm:$0xff]   ;;  %v19767_v17 = vld [vmem:[%s24489_s1 + $0x70] sm:$0xff]   ;;  %vm4508_vm4 = vsmask.f32 4352 }
  0x11   : > { %18842 = vmatprep.subr.bf16.mxu1 %v20417_v2  ;;  %v20539_v18 = vld [vmem:[%s24489_s1 + $0x68] sm:$0xff]   ;;  %v19769_v19 = vld [vmem:[%s24489_s1 + $0x78] sm:$0xff]   ;;  %v20550_v22 = vld [vmem:[%s24489_s1 + $0x70] sm:$0xff]   ;;  %vm2678_vm5 = vcmask 1046528   ;;  %vm3456_vm6 = vcmask 1045504   ;;  %s15687_s29 = sshll.u32 %s25087_s25, 7 }
  0x12   : > { %s20508_s20 = scalar_lea.vmem %s24488_s0, %s19745_s13  ;;  %v19771_v31 = vld [vmem:[%s24489_s1] sm:$0xff]   ;;  %v20565_v34 = vld [vmem:[%s24489_s1 + $0x78] sm:$0xff]   ;;  %v19774_v38 = vld [vmem:[%s24489_s1 + $0x8] sm:$0xff]   ;;  %vm3767_vm7 = vsmask.f32 5376  ;;  %s24390_s9 = scalar_lea.vmem %s24495_s7, %s15687_s29  ;;  %vm14826_vm8 = vcmask 519168  }
  0x13   : > { %16996 = vmatpush3.bf16.msra.mxu0 %v19758_v1  ;;  %v362_v10 = vld [vmem:[%s20508_s20 + $0x2] sm:$0x3]  ;;  %v363_v11 = vld [vmem:[%s20508_s20 + $0x6] sm:$0x3]  ;;  %v364_v20 = vld [vmem:[%s20508_s20 + $0xa] sm:$0x3] }
  0x14   : > { %16997 = vmatprep.subr.bf16.mxu0 %v19759_v4  ;;  %18850 = vmatpush3.bf16.msra.mxu1 %v20491_v5  ;;  %v394_v12 = vunpack.c.l.u8.bf16 %v362_v10  ;;  %v395_v13 = vunpack.c.l.u8.bf16 %v363_v11  ;;  %v365_v21 = vld [vmem:[%s20508_s20 + $0xe] sm:$0x3]  ;;  %v366_v23 = vld [vmem:[%s20508_s20 + $0x12] sm:$0x3]  ;;  %v367_v24 = vld [vmem:[%s20508_s20 + $0x16] sm:$0x3]  ;;  %v396_v27 = vunpack.c.l.u8.bf16 %v364_v20 }
  0x15   : > { %18843 = vmatprep.subr.bf16.mxu1 %v20417_v2  ;;  %v1344_v25 = vld [vmem:[%s20508_s20 + $0xaa] sm:$0x3]  ;;  %v1345_v26 = vld [vmem:[%s20508_s20 + $0xae] sm:$0x3]  ;;  %v397_v28 = vunpack.c.l.u8.bf16 %v365_v21  ;;  %v398_v29 = vunpack.c.l.u8.bf16 %v366_v23  ;;  %v399_v30 = vunpack.c.l.u8.bf16 %v367_v24  ;;  %v368_v35 = vld [vmem:[%s20508_s20 + $0x1a] sm:$0x3] }
  0x16   : > { %v14922_v16 = vcombine.low %v394_v12, %v395_v13  ;;  %v1362_v32 = vunpack.c.l.u8.bf16 %v1344_v25  ;;  %v1363_v33 = vunpack.c.l.u8.bf16 %v1345_v26  ;;  %v369_v36 = vld [vmem:[%s20508_s20 + $0x1e] sm:$0x3]  ;;  %v370_v40 = vld [vmem:[%s20508_s20 + $0x22] sm:$0x3]  ;;  %v371_v42 = vld [vmem:[%s20508_s20 + $0x26] sm:$0x3]  ;;  %v400_v46 = vunpack.c.l.u8.bf16 %v368_v35 }
  0x17   : > { %16998 = vmatpush3.bf16.msra.mxu0 %v19759_v4  ;;  %v14923_v37 = vcombine.low %v396_v27, %v397_v28  ;;  %v14924_v39 = vcombine.low %v398_v29, %v399_v30  ;;  %v19775_v43 = vld [vmem:[%s24489_s1] sm:$0xff]   ;;  %v1346_v44 = vld [vmem:[%s20508_s20 + $0xb2] sm:$0x3]  ;;  %v1347_v45 = vld [vmem:[%s20508_s20 + $0xb6] sm:$0x3]  ;;  %v401_v47 = vunpack.c.l.u8.bf16 %v369_v36  ;;  %v402_v48 = vunpack.c.l.u8.bf16 %v370_v40 }
  0x18   : > { %16999 = vmatprep.subr.bf16.mxu0 %v19761_v6  ;;  %18851 = vmatpush3.bf16.msra.mxu1 %v20502_v7  ;;  %v15008_v41 = vcombine.low %v1362_v32, %v1363_v33  ;;  %v403_v49 = vunpack.c.l.u8.bf16 %v371_v42  ;;  %v1364_v50 = vunpack.c.l.u8.bf16 %v1346_v44  ;;  %v1365_v51 = vunpack.c.l.u8.bf16 %v1347_v45  ;;  %v19777_v52 = vld [vmem:[%s24489_s1 + $0x10] sm:$0xff]   ;;  %v19776_v53 = vld [vmem:[%s24489_s1 + $0x8] sm:$0xff]   ;;  %v19780_v61 = vld [vmem:[%s24489_s1 + $0x18] sm:$0xff]  }
  0x19   : > { %18844 = vmatprep.subr.bf16.mxu1 %v20417_v2  ;;  %17009 = vmatprep.mubr.bf16.mxu0 %v14922_v16  ;;  %v14925_v54 = vcombine.low %v400_v46, %v401_v47  ;;  %v372_v55 = vld [vmem:[%s20508_s20 + $0x2a] sm:$0x3]  ;;  %v373_v57 = vld [vmem:[%s20508_s20 + $0x2e] sm:$0x3]  ;;  %v374_v58 = vld [vmem:[%s20508_s20 + $0x32] sm:$0x3] }
  0x1a   : > { %v14926_v56 = vcombine.low %v402_v48, %v403_v49  ;;  %v375_v59 = vld [vmem:[%s20508_s20 + $0x36] sm:$0x3]  ;;  %v15009_v60 = vcombine.low %v1364_v50, %v1365_v51  ;;  %v1348_v63 = vld [vmem:[%s20508_s20 + $0xba] sm:$0x3]  ;;  %v1349_v0 = vld [vmem:[%s20508_s20 + $0xbe] sm:$0x3]  ;;  %v404_v1 = vunpack.c.l.u8.bf16 %v372_v55  ;;  %v405_v4 = vunpack.c.l.u8.bf16 %v373_v57 }
  0x1b   : > { %17000 = vmatpush3.bf16.msra.mxu0 %v19761_v6  ;;  %v19778_v62 = vld [vmem:[%s24489_s1 + $0x10] sm:$0xff]   ;;  %v406_v6 = vunpack.c.l.u8.bf16 %v374_v58  ;;  %v1366_v10 = vunpack.c.l.u8.bf16 %v1348_v63  ;;  %v1367_v11 = vunpack.c.l.u8.bf16 %v1349_v0  ;;  %v19783_v12 = vld [vmem:[%s24489_s1 + $0x20] sm:$0xff]   ;;  %v19779_v13 = vld [vmem:[%s24489_s1 + $0x18] sm:$0xff]  }
  0x1c   : > { %17001 = vmatprep.subr.bf16.mxu0 %v19763_v8  ;;  %18852 = vmatpush3.bf16.msra.mxu1 %v20517_v9  ;;  %v378_v21 = vld [vmem:[%s20508_s20 + $0x42] sm:$0x3]  ;;  %v379_v23 = vld [vmem:[%s20508_s20 + $0x46] sm:$0x3]  ;;  %v19786_v24 = vld [vmem:[%s24489_s1 + $0x28] sm:$0xff]  }
  0x1d   : > { %18845 = vmatprep.subr.bf16.mxu1 %v20417_v2  ;;  %v15010_v20 = vcombine.low %v1366_v10, %v1367_v11  ;;  %v19781_v25 = vld [vmem:[%s24489_s1 + $0x20] sm:$0xff]   ;;  %v410_v30 = vunpack.c.l.u8.bf16 %v378_v21  ;;  %v19787_v35 = vld [vmem:[%s24489_s1 + $0x30] sm:$0xff]   ;;  %v19782_v36 = vld [vmem:[%s24489_s1 + $0x28] sm:$0xff]  }
  0x1e   : > { %v1350_v26 = vld [vmem:[%s20508_s20 + $0xc2] sm:$0x3]  ;;  %v1351_v27 = vld [vmem:[%s20508_s20 + $0xc6] sm:$0x3]  ;;  %v381_v40 = vld [vmem:[%s20508_s20 + $0x4e] sm:$0x3] }
  0x1f   : > { %17002 = vmatpush3.bf16.msra.mxu0 %v19763_v8  ;;  %v407_v8 = vunpack.c.l.u8.bf16 %v375_v59  ;;  %v1368_v32 = vunpack.c.l.u8.bf16 %v1350_v26  ;;  %v1369_v33 = vunpack.c.l.u8.bf16 %v1351_v27  ;;  %v382_v42 = vld [vmem:[%s20508_s20 + $0x52] sm:$0x3]  ;;  %v19788_v44 = vld [vmem:[%s24489_s1 + $0x38] sm:$0xff]   ;;  %v1282_v46 = vld [vmem:[%s20508_s20 + $0x80] sm:$0x3]  ;;  %v413_v49 = vunpack.c.l.u8.bf16 %v381_v40 }
  0x20   : > { %17003 = vmatprep.subr.bf16.mxu0 %v19765_v14  ;;  %18853 = vmatpush3.bf16.msra.mxu1 %v20529_v15  ;;  %v19784_v45 = vld [vmem:[%s24489_s1 + $0x30] sm:$0xff]   ;;  %v1283_v47 = vld [vmem:[%s20508_s20 + $0x84] sm:$0x3]  ;;  %v414_v50 = vunpack.c.l.u8.bf16 %v382_v42  ;;  %v384_v57 = vld [vmem:[%s20508_s20 + $0x5a] sm:$0x3] }
  0x21   : > { %18846 = vmatprep.subr.bf16.mxu1 %v20417_v2  ;;  %v14928_v16 = vcombine.low %v406_v6, %v407_v8  ;;  %v385_v58 = vld [vmem:[%s20508_s20 + $0x5e] sm:$0x3]  ;;  %v1285_v63 = vld [vmem:[%s20508_s20 + $0x8c] sm:$0x3]  ;;  %v416_v0 = vunpack.c.l.u8.bf16 %v384_v57  ;;  %v388_v11 = vld [vmem:[%s20508_s20 + $0x6a] sm:$0x3] }
  0x22   : > { %v1303_v10 = vunpack.c.l.u8.bf16 %v1285_v63  ;;  %v290_v63 = vld [vmem:[%s20508_s20 + $0x20] sm:$0x3] }
  0x23   : > { %17004 = vmatpush3.bf16.msra.mxu0 %v19765_v14  ;;  %v14927_v14 = vcombine.low %v404_v1, %v405_v4  ;;  %v417_v1 = vunpack.c.l.u8.bf16 %v385_v58 }
  0x24   : > { %17005 = vmatprep.subr.bf16.mxu0 %v19767_v17  ;;  %18854 = vmatpush3.bf16.msra.mxu1 %v20539_v18 }
  0x25   : > { %18847 = vmatprep.subr.bf16.mxu1 %v20417_v2 }
  0x27   : > { %17006 = vmatpush3.bf16.msra.mxu0 %v19767_v17  ;;  %v376_v17 = vld [vmem:[%s20508_s20 + $0x3a] sm:$0x3] }
  0x28   : > { %17007 = vmatprep.subr.bf16.mxu0 %v19769_v19  ;;  %18855 = vmatpush3.bf16.msra.mxu1 %v20550_v22  ;;  %v408_v28 = vunpack.c.l.u8.bf16 %v376_v17 }
  0x29   : > { %18848 = vmatprep.subr.bf16.mxu1 %v20417_v2 }
  0x2b   : > { %17008 = vmatpush3.bf16.msra.mxu0 %v19769_v19  ;;  %v377_v19 = vld [vmem:[%s20508_s20 + $0x3e] sm:$0x3] }
  0x2c   : > { %17041 = vmatprep.subr.bf16.mxu0 %v19771_v31  ;;  %18856 = vmatpush3.bf16.msra.mxu1 %v20565_v34  ;;  %v409_v29 = vunpack.c.l.u8.bf16 %v377_v19  ;;  %v1286_v19 = vld [vmem:[%s20508_s20 + $0x90] sm:$0x3] }
  0x2d   : > { %17141 = vmatprep.subr.bf16.mxu1 %v20417_v2  ;;  %v1304_v27 = vunpack.c.l.u8.bf16 %v1286_v19  ;;  %v293_v19 = vld [vmem:[%s20508_s20 + $0x2c] sm:$0x3] }
  0x2e   : > { %17010 = vmatmul.mubr.bf16.vlgmr.msra.gmra.mrb[0].mxu0 %v14923_v37  ;;  %v14929_v37 = vcombine.low %v408_v28, %v409_v29  ;;  %v392_v29 = vld [vmem:[%s20508_s20 + $0x7a] sm:$0x3] }
  0x2f   : > { %17042 = vmatpush3.bf16.msra.mxu0 %v19771_v31  ;;  %17013 = vmatprep.mubr.bf16.mxu0 %v14924_v39  ;;  %v411_v31 = vunpack.c.l.u8.bf16 %v379_v23  ;;  %v380_v39 = vld [vmem:[%s20508_s20 + $0x4a] sm:$0x3]  ;;  %v420_v23 = vunpack.c.l.u8.bf16 %v388_v11 }
  0x30   : > { %17126 = vmatmul.mubr.bf16.vlgmr.msra.gmra.mrb[0].mxu1 %v15008_v41  ;;  %17043 = vmatprep.subr.bf16.mxu0 %v19774_v38  ;;  %v15011_v41 = vcombine.low %v1368_v32, %v1369_v33  ;;  %v412_v48 = vunpack.c.l.u8.bf16 %v380_v39  ;;  %v282_v32 = vld [vmem:[%s20508_s20] sm:$0x3]  ;;  %v283_v33 = vld [vmem:[%s20508_s20 + $0x4] sm:$0x3]  ;;  %v424_v39 = vunpack.c.l.u8.bf16 %v392_v29 }
  0x31   : > { %17142 = vmatpush3.bf16.msra.mxu1 %v19775_v43  ;;  %17129 = vmatprep.mubr.msk.bf16.mxu1 %vm20418_vm0, %v20417_v2  ;;  %v383_v43 = vld [vmem:[%s20508_s20 + $0x56] sm:$0x3]  ;;  %v315_v42 = vunpack.c.l.u8.bf16 %v283_v33  ;;  %v297_v33 = vld [vmem:[%s20508_s20 + $0x3c] sm:$0x3] }
  0x32   : > { %17143 = vmatprep.subr.bf16.mxu1 %v20417_v2  ;;  %v415_v51 = vunpack.c.l.u8.bf16 %v383_v43  ;;  %v14931_v55 = vcombine.low %v412_v48, %v413_v49  ;;  %v286_v48 = vld [vmem:[%s20508_s20 + $0x10] sm:$0x3]  ;;  %v287_v49 = vld [vmem:[%s20508_s20 + $0x14] sm:$0x3] }
  0x33   : > { %17044 = vmatpush3.bf16.msra.mxu0 %v19774_v38  ;;  %v14930_v38 = vcombine.low %v410_v30, %v411_v31  ;;  %v393_v30 = vld [vmem:[%s20508_s20 + $0x7e] sm:$0x3]  ;;  %v319_v57 = vunpack.c.l.u8.bf16 %v287_v49  ;;  %v302_v49 = vld [vmem:[%s20508_s20 + $0x50] sm:$0x3] }
  0x34   : > { %17045 = vmatprep.subr.bf16.mxu0 %v19777_v52  ;;  %v425_v40 = vunpack.c.l.u8.bf16 %v393_v30 }
  0x35   : > { %17144 = vmatpush3.bf16.msra.mxu1 %v19776_v53  ;;  %v1301_v53 = vunpack.c.l.u8.bf16 %v1283_v47 }
  0x36   : > { %17014 = vmatmul.mubr.bf16.gmra.mrb[4].mxu0 %v14925_v54  ;;  %17145 = vmatprep.subr.bf16.mxu1 %v20417_v2  ;;  %v19785_v54 = vld [vmem:[%s24489_s1 + $0x38] sm:$0xff]   ;;  %v14937_v47 = vcombine.low %v424_v39, %v425_v40 }
  0x37   : > { %17017 = vmatprep.mubr.bf16.mxu0 %v14926_v56  ;;  %17046 = vmatpush3.bf16.msra.mxu0 %v19777_v52  ;;  %v1300_v52 = vunpack.c.l.u8.bf16 %v1282_v46  ;;  %v14932_v56 = vcombine.low %v414_v50, %v415_v51  ;;  %v285_v46 = vld [vmem:[%s20508_s20 + $0xc] sm:$0x3]  ;;  %v1290_v51 = vld [vmem:[%s20508_s20 + $0xa0] sm:$0x3]  ;;  %v1297_v39 = vld [vmem:[%s20508_s20 + $0xbc] sm:$0x3] }
  0x38   : > { %17130 = vmatmul.mubr.bf16.gmra.mrb[4].mxu1 %v15009_v60  ;;  %17047 = vmatprep.subr.bf16.mxu0 %v19780_v61  ;;  %v386_v60 = vld [vmem:[%s20508_s20 + $0x62] sm:$0x3]  ;;  %v1308_v58 = vunpack.c.l.u8.bf16 %v1290_v51 }
  0x39   : > { %17146 = vmatpush3.bf16.msra.mxu1 %v19778_v62  ;;  %17133 = vmatprep.mubr.msk.bf16.mxu1 %vm20418_vm0, %v20417_v2  ;;  %v15020_v59 = vcombine.low %v1300_v52, %v1301_v53  ;;  %v1284_v62 = vld [vmem:[%s20508_s20 + $0x88] sm:$0x3]  ;;  %v418_v4 = vunpack.c.l.u8.bf16 %v386_v60  ;;  %v1291_v52 = vld [vmem:[%s20508_s20 + $0xa4] sm:$0x3]  ;;  %v288_v60 = vld [vmem:[%s20508_s20 + $0x18] sm:$0x3] }
  0x3a   : > { %17147 = vmatprep.subr.bf16.mxu1 %v20417_v2  ;;  %v1302_v8 = vunpack.c.l.u8.bf16 %v1284_v62 }
  0x3b   : > { %17048 = vmatpush3.bf16.msra.mxu0 %v19780_v61  ;;  %v387_v61 = vld [vmem:[%s20508_s20 + $0x66] sm:$0x3] }
  0x3c   : > { %17049 = vmatprep.subr.bf16.mxu0 %v19783_v12  ;;  %v419_v6 = vunpack.c.l.u8.bf16 %v387_v61  ;;  %v15021_v21 = vcombine.low %v1302_v8, %v1303_v10  ;;  %v289_v61 = vld [vmem:[%s20508_s20 + $0x1c] sm:$0x3]  ;;  %v320_v10 = vunpack.c.l.u8.bf16 %v288_v60 }
  0x3d   : > { %17148 = vmatpush3.bf16.msra.mxu1 %v19779_v13  ;;  %v14933_v13 = vcombine.low %v416_v0, %v417_v1  ;;  %v291_v0 = vld [vmem:[%s20508_s20 + $0x24] sm:$0x3]  ;;  %v321_v11 = vunpack.c.l.u8.bf16 %v289_v61  ;;  %v305_v60 = vld [vmem:[%s20508_s20 + $0x5c] sm:$0x3] }
  0x3e   : > { %17018 = vmatmul.mubr.bf16.gmra.mrb[8].mxu0 %v14927_v14  ;;  %17149 = vmatprep.subr.bf16.mxu1 %v20417_v2  ;;  %v390_v14 = vld [vmem:[%s20508_s20 + $0x72] sm:$0x3]  ;;  %v14934_v17 = vcombine.low %v418_v4, %v419_v6  ;;  %v1292_v4 = vld [vmem:[%s20508_s20 + $0xa8] sm:$0x3]  ;;  %v1293_v6 = vld [vmem:[%s20508_s20 + $0xac] sm:$0x3] }
  0x3f   : > { %17021 = vmatprep.mubr.bf16.mxu0 %v14928_v16  ;;  %17050 = vmatpush3.bf16.msra.mxu0 %v19783_v12  ;;  %v389_v12 = vld [vmem:[%s20508_s20 + $0x6e] sm:$0x3]  ;;  %v391_v16 = vld [vmem:[%s20508_s20 + $0x76] sm:$0x3] }
  0x40   : > { %17134 = vmatmul.mubr.bf16.gmra.mrb[8].mxu1 %v15010_v20  ;;  %17051 = vmatprep.subr.bf16.mxu0 %v19786_v24  ;;  %v1287_v20 = vld [vmem:[%s20508_s20 + $0x94] sm:$0x3]  ;;  %v423_v26 = vunpack.c.l.u8.bf16 %v391_v16  ;;  %v1311_v16 = vunpack.c.l.u8.bf16 %v1293_v6  ;;  %v19789_v6 = vld [vmem:[%s24491_s3 + $0x40] sm:$0xff]  }
  0x41   : > { %17150 = vmatpush3.bf16.msra.mxu1 %v19781_v25  ;;  %17137 = vmatprep.mubr.msk.bf16.mxu1 %vm20418_vm0, %v20417_v2  ;;  %v422_v25 = vunpack.c.l.u8.bf16 %v390_v14  ;;  %v1305_v28 = vunpack.c.l.u8.bf16 %v1287_v20  ;;  %v1310_v14 = vunpack.c.l.u8.bf16 %v1292_v4  ;;  %v14949_v20 = vcombine.low %v320_v10, %v321_v11  ;;  %v308_v11 = vld [vmem:[%s20508_s20 + $0x68] sm:$0x3] }
  0x42   : > { %17151 = vmatprep.subr.bf16.mxu1 %v20417_v2  ;;  %v337_v4 = vunpack.c.l.u8.bf16 %v305_v60 }
  0x43   : > { %17052 = vmatpush3.bf16.msra.mxu0 %v19786_v24  ;;  %v421_v24 = vunpack.c.l.u8.bf16 %v389_v12  ;;  %v322_v12 = vunpack.c.l.u8.bf16 %v290_v63  ;;  %v307_v63 = vld [vmem:[%s20508_s20 + $0x64] sm:$0x3] }
  0x44   : > { %17053 = vmatprep.subr.bf16.mxu0 %v19787_v35  ;;  %v339_v10 = vunpack.c.l.u8.bf16 %v307_v63 }
  0x45   : > { %17152 = vmatpush3.bf16.msra.mxu1 %v19782_v36  ;;  %v14935_v31 = vcombine.low %v420_v23, %v421_v24  ;;  %v1288_v36 = vld [vmem:[%s20508_s20 + $0x98] sm:$0x3]  ;;  %v295_v23 = vld [vmem:[%s20508_s20 + $0x34] sm:$0x3]  ;;  %v1294_v24 = vld [vmem:[%s20508_s20 + $0xb0] sm:$0x3] }
  0x46   : > { %17022 = vmatmul.mubr.bf16.gmra.mrb[12].mxu0 %v14929_v37  ;;  %17153 = vmatprep.subr.bf16.mxu1 %v20417_v2  ;;  %v1289_v37 = vld [vmem:[%s20508_s20 + $0x9c] sm:$0x3]  ;;  %v1306_v43 = vunpack.c.l.u8.bf16 %v1288_v36  ;;  %v1312_v30 = vunpack.c.l.u8.bf16 %v1294_v24  ;;  %v298_v36 = vld [vmem:[%s20508_s20 + $0x40] sm:$0x3]  ;;  %v312_v24 = vld [vmem:[%s20508_s20 + $0x78] sm:$0x3] }
  0x47   : > { %17025 = vmatprep.mubr.bf16.mxu0 %v14930_v38  ;;  %17054 = vmatpush3.bf16.msra.mxu0 %v19787_v35  ;;  %v14936_v35 = vcombine.low %v422_v25, %v423_v26  ;;  %v15022_v38 = vcombine.low %v1304_v27, %v1305_v28  ;;  %v1295_v25 = vld [vmem:[%s20508_s20 + $0xb4] sm:$0x3]  ;;  %v15025_v26 = vcombine.low %v1310_v14, %v1311_v16  ;;  %v325_v28 = vunpack.c.l.u8.bf16 %v293_v19  ;;  %v310_v14 = vld [vmem:[%s20508_s20 + $0x70] sm:$0x3] }
  0x48   : > { %17138 = vmatmul.mubr.bf16.gmra.mrb[12].mxu1 %v15011_v41  ;;  %17055 = vmatprep.subr.bf16.mxu0 %v19788_v44  ;;  %v314_v41 = vunpack.c.l.u8.bf16 %v282_v32  ;;  %v296_v32 = vld [vmem:[%s20508_s20 + $0x38] sm:$0x3] }
  0x49   : > { %17154 = vmatpush3.bf16.msra.mxu1 %v19784_v45  ;;  %17157 = vmatprep.mubr.msk.bf16.mxu1 %vm20418_vm0, %v20417_v2  ;;  %v284_v45 = vld [vmem:[%s20508_s20 + $0x8] sm:$0x3] }
  0x4a   : > { %17155 = vmatprep.subr.bf16.mxu1 %v20417_v2  ;;  %v14946_v50 = vcombine.low %v314_v41, %v315_v42  ;;  %v328_v41 = vunpack.c.l.u8.bf16 %v296_v32  ;;  %v329_v42 = vunpack.c.l.u8.bf16 %v297_v33  ;;  %v1336_v32 = vld [vmem:[%s20508_s20 + $0x8a] sm:$0x3]  ;;  %v1337_v33 = vld [vmem:[%s20508_s20 + $0x8e] sm:$0x3] }
  0x4b   : > { %17056 = vmatpush3.bf16.msra.mxu0 %v19788_v44  ;;  %v1307_v44 = vunpack.c.l.u8.bf16 %v1289_v37  ;;  %v299_v37 = vld [vmem:[%s20508_s20 + $0x44] sm:$0x3] }
  0x4c   : > { %17089 = vmatprep.subr.bf16.mxu0 %v20417_v2 }
  0x4d   : > { %17156 = vmatpush3.bf16.msra.mxu1 %v19785_v54  ;;  %v15023_v53 = vcombine.low %v1306_v43, %v1307_v44  ;;  %v316_v54 = vunpack.c.l.u8.bf16 %v284_v45  ;;  %v330_v43 = vunpack.c.l.u8.bf16 %v298_v36  ;;  %v331_v44 = vunpack.c.l.u8.bf16 %v299_v37  ;;  %v19790_v36 = vld [vmem:[%s24491_s3 + $0x48] sm:$0xff]  }
  0x4e   : > { %17026 = vmatmul.mubr.bf16.gmra.mrb[16].mxu0 %v14931_v55  ;;  %v317_v55 = vunpack.c.l.u8.bf16 %v285_v46  ;;  %v1315_v45 = vunpack.c.l.u8.bf16 %v1297_v39  ;;  %v300_v46 = vld [vmem:[%s20508_s20 + $0x48] sm:$0x3]  ;;  %v1354_v37 = vunpack.c.l.u8.bf16 %v1336_v32  ;;  %v1339_v39 = vld [vmem:[%s20508_s20 + $0x96] sm:$0x3] }
  0x4f   : > { %17029 = vmatprep.mubr.bf16.mxu0 %v14932_v56  ;;  %v318_v56 = vunpack.c.l.u8.bf16 %v286_v48  ;;  %v14953_v48 = vcombine.low %v328_v41, %v329_v42  ;;  %v14954_v51 = vcombine.low %v330_v43, %v331_v44  ;;  %v1357_v42 = vunpack.c.l.u8.bf16 %v1339_v39  ;;  %v1340_v43 = vld [vmem:[%s20508_s20 + $0x9a] sm:$0x3]  ;;  %v1341_v44 = vld [vmem:[%s20508_s20 + $0x9e] sm:$0x3] }
  0x50   : > { %17158 = vmatmul.mubr.bf16.vlgmr.msra.gmra.mrb[16].mxu1 %v15020_v59  ;;  %v1309_v59 = vunpack.c.l.u8.bf16 %v1291_v52  ;;  %v14947_v62 = vcombine.low %v316_v54, %v317_v55  ;;  %v1298_v52 = vld [vmem:[%s20508_s20 + $0xc0] sm:$0x3]  ;;  %v332_v54 = vunpack.c.l.u8.bf16 %v300_v46  ;;  %v1359_v46 = vunpack.c.l.u8.bf16 %v1341_v44 }
  0x51   : > { %17161 = vmatprep.mubr.msk.bf16.mxu1 %vm20418_vm0, %v20417_v2  ;;  %v14948_v1 = vcombine.low %v318_v56, %v319_v57  ;;  %v334_v56 = vunpack.c.l.u8.bf16 %v302_v49 }
  0x52   : > { %v15024_v8 = vcombine.low %v1308_v58, %v1309_v59  ;;  %v1316_v58 = vunpack.c.l.u8.bf16 %v1298_v52  ;;  %v19791_v52 = vld [vmem:[%s24491_s3 + $0x50] sm:$0xff]  }
  0x56   : > { %17030 = vmatmul.mubr.bf16.gmra.mrb[20].mxu0 %v14933_v13  ;;  %v323_v13 = vunpack.c.l.u8.bf16 %v291_v0 }
  0x57   : > { %17033 = vmatprep.mubr.bf16.mxu0 %v14934_v17  ;;  %v292_v17 = vld [vmem:[%s20508_s20 + $0x28] sm:$0x3] }
  0x58   : > { %17162 = vmatmul.mubr.bf16.gmra.mrb[20].mxu1 %v15021_v21  ;;  %v294_v21 = vld [vmem:[%s20508_s20 + $0x30] sm:$0x3]  ;;  %v324_v27 = vunpack.c.l.u8.bf16 %v292_v17  ;;  %v340_v17 = vunpack.c.l.u8.bf16 %v308_v11 }
  0x59   : > { %17165 = vmatprep.mubr.msk.bf16.mxu1 %vm20418_vm0, %v20417_v2  ;;  %v326_v29 = vunpack.c.l.u8.bf16 %v294_v21 }
  0x5e   : > { %17034 = vmatmul.mubr.bf16.gmra.mrb[24].mxu0 %v14935_v31  ;;  %v1313_v31 = vunpack.c.l.u8.bf16 %v1295_v25  ;;  %v313_v25 = vld [vmem:[%s20508_s20 + $0x7c] sm:$0x3] }
  0x5f   : > { %17037 = vmatprep.mubr.bf16.mxu0 %v14936_v35  ;;  %v14951_v35 = vcombine.low %v324_v27, %v325_v28  ;;  %v345_v27 = vunpack.c.l.u8.bf16 %v313_v25  ;;  %v1334_v28 = vld [vmem:[%s20508_s20 + $0x82] sm:$0x3] }
  0x60   : > { %17166 = vmatmul.mubr.bf16.gmra.mrb[24].mxu1 %v15022_v38  ;;  %v15026_v40 = vcombine.low %v1312_v30, %v1313_v31  ;;  %v1352_v30 = vunpack.c.l.u8.bf16 %v1334_v28 }
  0x61   : > { %17169 = vmatprep.mubr.msk.bf16.mxu1 %vm20418_vm0, %v20417_v2 }
  0x66   : > { %17038 = vmatmul.mubr.bf16.gmra.mrb[28].mxu0 %v14937_v47  ;;  %v301_v47 = vld [vmem:[%s20508_s20 + $0x4c] sm:$0x3] }
  0x67   : > { %17057 = vmatprep.mubr.bf16.mxu0 %v14946_v50  ;;  %v303_v50 = vld [vmem:[%s20508_s20 + $0x54] sm:$0x3]  ;;  %v333_v55 = vunpack.c.l.u8.bf16 %v301_v47  ;;  %v1342_v47 = vld [vmem:[%s20508_s20 + $0xa2] sm:$0x3] }
  0x68   : > { %17170 = vmatmul.mubr.bf16.gmra.mrb[28].mxu1 %v15023_v53  ;;  %v1299_v53 = vld [vmem:[%s20508_s20 + $0xc4] sm:$0x3]  ;;  %v335_v57 = vunpack.c.l.u8.bf16 %v303_v50  ;;  %v1360_v50 = vunpack.c.l.u8.bf16 %v1342_v47 }
  0x69   : > { %17173 = vmatprep.mubr.msk.bf16.mxu1 %vm20418_vm0, %v20417_v2  ;;  %v1317_v59 = vunpack.c.l.u8.bf16 %v1299_v53  ;;  %v14955_v61 = vcombine.low %v332_v54, %v333_v55  ;;  %v19793_v54 = vld [vmem:[%s24491_s3 + $0x60] sm:$0xff]   ;;  %v19795_v55 = vld [vmem:[%s24491_s3 + $0x70] sm:$0xff]  }
  0x6a   : > { %v14956_v0 = vcombine.low %v334_v56, %v335_v57  ;;  %v19798_v56 = vld [vmem:[%s24491_s3 + $0x78] sm:$0xff]   ;;  %v20791_v57 = vld [vmem:[%s24491_s3] sm:$0xff]  }
  0x6e   : > { %17058 = vmatmul.mubr.bf16.vlgmr.msra.gmra.mrb[0].mxu0 %v14947_v62  ;;  %v306_v62 = vld [vmem:[%s20508_s20 + $0x60] sm:$0x3] }
  0x6f   : > { %17090 = vmatpush3.bf16.msra.mxu0 %v20478_v3  ;;  %17061 = vmatprep.mubr.bf16.mxu0 %v14948_v1  ;;  %v14950_v3 = vcombine.low %v322_v12, %v323_v13  ;;  %v309_v12 = vld [vmem:[%s20508_s20 + $0x6c] sm:$0x3] }
  0x70   : > { %17174 = vmatmul.mubr.bf16.gmra.mrb[32].mxu1 %v15024_v8  ;;  %17091 = vmatprep.subr.bf16.mxu0 %v20417_v2  ;;  %v338_v8 = vunpack.c.l.u8.bf16 %v306_v62  ;;  %v341_v19 = vunpack.c.l.u8.bf16 %v309_v12 }
  0x71   : > { %17177 = vmatprep.mubr.msk.bf16.mxu1 %vm20418_vm0, %v20417_v2 }
  0x72   : > { %v14958_v16 = vcombine.low %v338_v8, %v339_v10  ;;  %v19823_v10 = vld [vmem:[%s24491_s3 + $0x58] sm:$0xff]  }
  0x73   : > { %17092 = vmatpush3.bf16.msra.mxu0 %v20491_v5  ;;  %v327_v5 = vunpack.c.l.u8.bf16 %v295_v23  ;;  %v14959_v23 = vcombine.low %v340_v17, %v341_v19 }
  0x74   : > { %17093 = vmatprep.subr.bf16.mxu0 %v20417_v2 }
  0x75   : > { %v14952_v38 = vcombine.low %v326_v29, %v327_v5  ;;  %v1335_v29 = vld [vmem:[%s20508_s20 + $0x86] sm:$0x3] }
  0x76   : > { %17062 = vmatmul.mubr.bf16.gmra.mrb[4].mxu0 %v14949_v20  ;;  %v342_v20 = vunpack.c.l.u8.bf16 %v310_v14  ;;  %v1353_v31 = vunpack.c.l.u8.bf16 %v1335_v29 }
  0x77   : > { %17065 = vmatprep.mubr.bf16.mxu0 %v14950_v3  ;;  %17094 = vmatpush3.bf16.msra.mxu0 %v20502_v7  ;;  %v1296_v7 = vld [vmem:[%s20508_s20 + $0xb8] sm:$0x3] }
  0x78   : > { %17178 = vmatmul.mubr.bf16.gmra.mrb[36].mxu1 %v15025_v26  ;;  %17095 = vmatprep.subr.bf16.mxu0 %v20417_v2  ;;  %v344_v26 = vunpack.c.l.u8.bf16 %v312_v24 }
  0x79   : > { %17181 = vmatprep.mubr.msk.bf16.mxu1 %vm20418_vm0, %v20417_v2 }
  0x7a   : > { %v14961_v5 = vcombine.low %v344_v26, %v345_v27  ;;  %v19833_v26 = vld [vmem:[%s24491_s3] sm:$0xff]  }
  0x7b   : > { %17096 = vmatpush3.bf16.msra.mxu0 %v20517_v9  ;;  %v1314_v9 = vunpack.c.l.u8.bf16 %v1296_v7  ;;  %v1338_v7 = vld [vmem:[%s20508_s20 + $0x92] sm:$0x3] }
  0x7c   : > { %17097 = vmatprep.subr.bf16.mxu0 %v20417_v2  ;;  %v1356_v41 = vunpack.c.l.u8.bf16 %v1338_v7  ;;  %v20856_v7 = vld [vmem:[%s24490_s2] ss:$0 sm:$0xff] }
  0x7e   : > { %17066 = vmatmul.mubr.bf16.gmra.mrb[8].mxu0 %v14951_v35  ;;  %v15003_v35 = vcombine.low %v1352_v30, %v1353_v31 }
  0x7f   : > { %17069 = vmatprep.mubr.bf16.mxu0 %v14952_v38  ;;  %17098 = vmatpush3.bf16.msra.mxu0 %v20529_v15  ;;  %v15027_v15 = vcombine.low %v1314_v9, %v1315_v45  ;;  %v1355_v38 = vunpack.c.l.u8.bf16 %v1337_v33  ;;  %v15005_v9 = vcombine.low %v1356_v41, %v1357_v42  ;;  %v1358_v45 = vunpack.c.l.u8.bf16 %v1340_v43 }
  0x80   : > { %17182 = vmatmul.mubr.bf16.gmra.mrb[40].mxu1 %v15026_v40  ;;  %17099 = vmatprep.subr.bf16.mxu0 %v20417_v2 }
  0x81   : > { %17185 = vmatprep.mubr.msk.bf16.mxu1 %vm20418_vm0, %v20417_v2  ;;  %v15004_v40 = vcombine.low %v1354_v37, %v1355_v38  ;;  %v15006_v49 = vcombine.low %v1358_v45, %v1359_v46 }
  0x83   : > { %17100 = vmatpush3.bf16.msra.mxu0 %v20539_v18  ;;  %v304_v18 = vld [vmem:[%s20508_s20 + $0x58] sm:$0x3] }
  0x84   : > { %17101 = vmatprep.subr.bf16.mxu0 %v20417_v2  ;;  %v336_v1 = vunpack.c.l.u8.bf16 %v304_v18 }
  0x86   : > { %17070 = vmatmul.mubr.bf16.gmra.mrb[12].mxu0 %v14953_v48  ;;  %v14957_v13 = vcombine.low %v336_v1, %v337_v4  ;;  %v1343_v48 = vld [vmem:[%s20508_s20 + $0xa6] sm:$0x3]  ;;  %v19820_v4 = vld [vmem:[%s24491_s3 + $0x50] sm:$0xff]  }
  0x87   : > { %17073 = vmatprep.mubr.bf16.mxu0 %v14954_v51  ;;  %17102 = vmatpush3.bf16.msra.mxu0 %v20550_v22  ;;  %v15028_v22 = vcombine.low %v1316_v58, %v1317_v59  ;;  %v1361_v51 = vunpack.c.l.u8.bf16 %v1343_v48 }
  0x88   : > { %17186 = vmatmul.mubr.bf16.gmra.mrb[44].mxu1 %v15027_v15  ;;  %17103 = vmatprep.subr.bf16.mxu0 %v20417_v2  ;;  %v19792_v15 = vld [vmem:[%s24491_s3 + $0x58] sm:$0xff]  }
  0x89   : > { %17189 = vmatprep.mubr.msk.bf16.mxu1 %vm20418_vm0, %v20417_v2  ;;  %v15007_v53 = vcombine.low %v1360_v50, %v1361_v51 }
  0x8b   : > { %17104 = vmatpush3.bf16.msra.mxu0 %v20565_v34  ;;  %v311_v34 = vld [vmem:[%s20508_s20 + $0x74] sm:$0x3] }
  0x8c   : > { %17193 = vmatprep.subr.bf16.mxu0 %v19789_v6  ;;  %v343_v21 = vunpack.c.l.u8.bf16 %v311_v34 }
  0x8e   : > { %17074 = vmatmul.mubr.bf16.gmra.mrb[16].mxu0 %v14955_v61  ;;  %v14960_v3 = vcombine.low %v342_v20, %v343_v21  ;;  %v19815_v61 = vld [vmem:[%s24491_s3 + $0x40] sm:$0xff]   ;;  %v19828_v20 = vld [vmem:[%s24491_s3 + $0x70] sm:$0xff]  }
  0x8f   : > { %17077 = vmatprep.mubr.bf16.mxu0 %v14956_v0  ;;  %17961 = vmatprep.subr.bf16.mxu1 %v19815_v61  ;;  %v19818_v0 = vld [vmem:[%s24491_s3 + $0x48] sm:$0xff]  }
  0x90   : > { %17190 = vmatmul.mubr.bf16.gmra.mrb[48].mxu1 %v15028_v22 }
  0x91   : > { %17962 = vmatpush3.bf16.msra.mxu1 %v19815_v61 }
  0x92   : > { %17963 = vmatprep.subr.bf16.mxu1 %v19818_v0 }
  0x95   : > { %17964 = vmatpush3.bf16.msra.mxu1 %v19818_v0 }
  0x96   : > { %17078 = vmatmul.mubr.bf16.gmra.mrb[20].mxu0 %v14957_v13  ;;  %17965 = vmatprep.subr.bf16.mxu1 %v19820_v4  ;;  %v19824_v13 = vld [vmem:[%s24491_s3 + $0x60] sm:$0xff]  }
  0x97   : > { %17081 = vmatprep.mubr.bf16.mxu0 %v14958_v16  ;;  %v19827_v16 = vld [vmem:[%s24491_s3 + $0x68] sm:$0xff]  }
  0x99   : > { %17966 = vmatpush3.bf16.msra.mxu1 %v19820_v4 }
  0x9a   : > { %17967 = vmatprep.subr.bf16.mxu1 %v19823_v10 }
  0x9d   : > { %17968 = vmatpush3.bf16.msra.mxu1 %v19823_v10 }
  0x9e   : > { %17082 = vmatmul.mubr.bf16.gmra.mrb[24].mxu0 %v14959_v23  ;;  %17969 = vmatprep.subr.bf16.mxu1 %v19824_v13 }
  0x9f   : > { %17085 = vmatprep.mubr.bf16.mxu0 %v14960_v3  ;;  %v19832_v3 = vld [vmem:[%s24491_s3 + $0x78] sm:$0xff]  }
  0xa1   : > { %17970 = vmatpush3.bf16.msra.mxu1 %v19824_v13 }
  0xa2   : > { %17971 = vmatprep.subr.bf16.mxu1 %v19827_v16 }
  0xa5   : > { %17972 = vmatpush3.bf16.msra.mxu1 %v19827_v16 }
  0xa6   : > { %17086 = vmatmul.mubr.bf16.gmra.mrb[28].mxu0 %v14961_v5  ;;  %17973 = vmatprep.subr.bf16.mxu1 %v19828_v20 }
  0xa7   : > { %17105 = vmatprep.mubr.msk.bf16.mxu0 %vm20418_vm0, %v20417_v2 }
  0xa9   : > { %17974 = vmatpush3.bf16.msra.mxu1 %v19828_v20 }
  0xaa   : > { %17975 = vmatprep.subr.bf16.mxu1 %v19832_v3 }
  0xad   : > { %17976 = vmatpush3.bf16.msra.mxu1 %v19832_v3 }
  0xae   : > { %17106 = vmatmul.mubr.bf16.vlgmr.msra.gmra.mrb[32].mxu0 %v15003_v35  ;;  %17989 = vmatprep.subr.bf16.mxu1 %v19833_v26 }
  0xaf   : > { %17109 = vmatprep.mubr.msk.bf16.mxu0 %vm20418_vm0, %v20417_v2  ;;  %17194 = vmatpush3.bf16.msra.mxu0 %v19789_v6 }
  0xb0   : > { %17195 = vmatprep.subr.bf16.mxu0 %v19790_v36 }
  0xb3   : > { %17196 = vmatpush3.bf16.msra.mxu0 %v19790_v36 }
  0xb4   : > { %17197 = vmatprep.subr.bf16.mxu0 %v19791_v52 }
  0xb6   : > { %17110 = vmatmul.mubr.bf16.gmra.mrb[36].mxu0 %v15004_v40 }
  0xb7   : > { %17113 = vmatprep.mubr.msk.bf16.mxu0 %vm20418_vm0, %v20417_v2  ;;  %17198 = vmatpush3.bf16.msra.mxu0 %v19791_v52 }
  0xb8   : > { %17199 = vmatprep.subr.bf16.mxu0 %v19792_v15 }
  0xbb   : > { %17200 = vmatpush3.bf16.msra.mxu0 %v19792_v15 }
  0xbc   : > { %17201 = vmatprep.subr.bf16.mxu0 %v19793_v54 }
  0xbe   : > { %17114 = vmatmul.mubr.bf16.gmra.mrb[40].mxu0 %v15005_v9 }
  0xbf   : > { %17117 = vmatprep.mubr.msk.bf16.mxu0 %vm20418_vm0, %v20417_v2  ;;  %17202 = vmatpush3.bf16.msra.mxu0 %v19793_v54 }
  0xc6   : > { %17118 = vmatmul.mubr.bf16.gmra.mrb[44].mxu0 %v15006_v49 }
  0xc7   : > { %17121 = vmatprep.mubr.msk.bf16.mxu0 %vm20418_vm0, %v20417_v2  ;;  %v19794_v2 = vld [vmem:[%s24491_s3 + $0x68] sm:$0xff]  }
  0xc8   : > { %17203 = vmatprep.subr.bf16.mxu0 %v19794_v2 }
  0xc9   : > { %17204 = vmatpush3.bf16.msra.mxu0 %v19794_v2 }
  0xca   : > { %17205 = vmatprep.subr.bf16.mxu0 %v19795_v55 }
  0xcd   : > { %17206 = vmatpush3.bf16.msra.mxu0 %v19795_v55 }
  0xce   : > { %17122 = vmatmul.mubr.bf16.gmra.mrb[48].mxu0 %v15007_v53  ;;  %17207 = vmatprep.subr.bf16.mxu0 %v19798_v56 }
  0xd1   : > { %17208 = vmatpush3.bf16.msra.mxu0 %v19798_v56 }
  0xd2   : > { %17241 = vmatprep.subr.bf16.mxu0 %v20791_v57 }
 0x103   : > { %v20794_v58 = vpop.f32.mrb[0].mxu1 }
 0x104   : > { %v17127_v59 = vpop.f32.mrb[1].mxu1 }
 0x105   : > { %v20796_v18 = vpop.f32.mrb[2].mxu1 }
 0x106   : > { %v17128_v60 = vpop.f32.mrb[3].mxu1 }
 0x10b   : > { %v20801_v62 = vpop.f32.mrb[4].mxu1 }
 0x10c   : > { %v17131_v63 = vpop.f32.mrb[5].mxu1 }
 0x10d   : > { %v20806_v22 = vpop.f32.mrb[6].mxu1 }
 0x10e   : > { %v17132_v1 = vpop.f32.mrb[7].mxu1 }
 0x113   : > { %v20811_v6 = vpop.f32.mrb[8].mxu1 }
 0x114   : > { %v17135_v8 = vpop.f32.mrb[9].mxu1 }
 0x115   : > { %v20816_v11 = vpop.f32.mrb[10].mxu1 }
 0x116   : > { %v17136_v12 = vpop.f32.mrb[11].mxu1 }
 0x11b   : > { %v20821_v14 = vpop.f32.mrb[12].mxu1 }
 0x11c   : > { %v17139_v34 = vpop.f32.mrb[13].mxu1 }
 0x11d   : > { %v20826_v17 = vpop.f32.mrb[14].mxu1 }
 0x11e   : > { %v17140_v19 = vpop.f32.mrb[15].mxu1 }
 0x123   : > { %v20831_v21 = vpop.f32.mrb[16].mxu1 }
 0x124   : > { %v17159_v23 = vpop.f32.mrb[17].mxu1 }
 0x125   : > { %v20836_v24 = vpop.f32.mrb[18].mxu1 }
 0x126   : > { %v17160_v25 = vpop.f32.mrb[19].mxu1 }
 0x12b   : > { %v20841_v27 = vpop.f32.mrb[20].mxu1 }
 0x12c   : > { %v17163_v28 = vpop.f32.mrb[21].mxu1 }
 0x12d   : > { %v20843_v29 = vpop.f32.mrb[22].mxu1 }
 0x12e   : > { %v17164_v5 = vpop.f32.mrb[23].mxu1 }
 0x133   : > { %v20845_v30 = vpop.f32.mrb[24].mxu1 }
 0x134   : > { %v17167_v31 = vpop.f32.mrb[25].mxu1 }
 0x135   : > { %v20847_v32 = vpop.f32.mrb[26].mxu1 }
 0x136   : > { %v17168_v33 = vpop.f32.mrb[27].mxu1 }
 0x13b   : > { %v20849_v35 = vpop.f32.mrb[28].mxu1 }
 0x13c   : > { %v17171_v36 = vpop.f32.mrb[29].mxu1 }
 0x13d   : > { %v20851_v37 = vpop.f32.mrb[30].mxu1 }
 0x13e   : > { %v17172_v38 = vpop.f32.mrb[31].mxu1 }
 0x141   : > { %v17059_v39 = vpop.f32.mrb[0].mxu0 }
 0x142   : > { %v1060_v40 = vadd.f32 %v17059_v39, %v20856_v7  ;;  %v925_v41 = vpop.f32.mrb[1].mxu0 }
 0x143   : > { %v1058_v42 = vadd.f32 %v20856_v7, %v925_v41  ;;  %v17060_v43 = vpop.f32.mrb[2].mxu0  ;;  %v20860_v44 = vpop.f32.mrb[32].mxu1 }
 0x144   : > { %v1061_v9 = vadd.f32 %v17060_v43, %v20856_v7  ;;  %v928_v45 = vpop.f32.mrb[3].mxu0  ;;  %v17175_v46 = vpop.f32.mrb[33].mxu1  ;;  %v1092_v49 = vmax.f32 %v1060_v40, 0.0 }
 0x145   : > { %v1059_v47 = vadd.f32 %v20856_v7, %v928_v45  ;;  %v20864_v48 = vpop.f32.mrb[34].mxu1  ;;  %v1090_v52 = vmax.f32 %v1058_v42, 0.0 }
 0x146   : > { %v1093_v50 = vmax.f32 %v1061_v9, 0.0  ;;  %v17176_v51 = vpop.f32.mrb[35].mxu1 }
 0x147   : > { %v1091_v53 = vmax.f32 %v1059_v47, 0.0 }
 0x148   : > { %v15821_v15 = vpack.c.bf16 %v1093_v50, %v1092_v49 }
 0x149   : > { %v15816_v54 = vpack.c.bf16 %v1091_v53, %v1090_v52  ;;  %v17063_v2 = vpop.f32.mrb[4].mxu0 }
 0x14a   : > { %16043 = vst [vmem:[#allocation2 + $0x8] sm:$0xff] %v15821_v15   ;;  %v1064_v55 = vadd.f32 %v17063_v2, %v20856_v7  ;;  %v941_v56 = vpop.f32.mrb[5].mxu0 }
 0x14b   : > { %15817 = vst [vmem:[#allocation2] sm:$0xff] %v15816_v54   ;;  %v1062_v59 = vadd.f32 %v20856_v7, %v941_v56  ;;  %v17064_v60 = vpop.f32.mrb[6].mxu0  ;;  %v1769_v61 = vpop.f32.mrb[36].mxu1 }
 0x14c   : > { %v1065_v63 = vadd.f32 %v17064_v60, %v20856_v7  ;;  %v944_v0 = vpop.f32.mrb[7].mxu0  ;;  %v1770_v1 = vadd.f32 %v1769_v61, %v20794_v58  ;;  %v17179_v4 = vpop.f32.mrb[37].mxu1  ;;  %v1096_v12 = vmax.f32 %v1064_v55, 0.0 }
 0x14d   : > { %v1063_v8 = vadd.f32 %v20856_v7, %v944_v0  ;;  %v1772_v10 = vpop.f32.mrb[38].mxu1  ;;  %v1094_v20 = vmax.f32 %v1062_v59, 0.0 }
 0x14e   : > { %v1097_v13 = vmax.f32 %v1065_v63, 0.0  ;;  %v1810_v34 = vadd.f32 %v20856_v7, %v1770_v1  ;;  %v1773_v16 = vadd.f32 %v1772_v10, %v20796_v18  ;;  %v17180_v19 = vpop.f32.mrb[39].mxu1 }
 0x14f   : > { %v1095_v23 = vmax.f32 %v1063_v8, 0.0 }
 0x150   : > { %v15831_v3 = vpack.c.bf16 %v1097_v13, %v1096_v12  ;;  %v1828_v25 = vmax.f32 %v1810_v34, 0.0  ;;  %v1811_v26 = vadd.f32 %v20856_v7, %v1773_v16 }
 0x151   : > { %v15826_v28 = vpack.c.bf16 %v1095_v23, %v1094_v20  ;;  %v17067_v5 = vpop.f32.mrb[8].mxu0  ;;  %v20874_v58 = vld [vmem:[#allocation2 + $0x8] sm:$0xff]  }
 0x152   : > { %16045 = vst [vmem:[#allocation2 + $0x18] sm:$0xff] %v15831_v3   ;;  %v1068_v31 = vadd.f32 %v17067_v5, %v20856_v7  ;;  %v957_v33 = vpop.f32.mrb[9].mxu0  ;;  %v1829_v36 = vmax.f32 %v1811_v26, 0.0  ;;  %v1927_v38 = vld [vmem:[#allocation2] sm:$0xf]  ;;  %v2084_v47 = vshll.u32 %v20874_v58, 16 }
 0x153   : > { %v20877_v39 = vld [vmem:[#allocation2 + $0x4] sm:$0xf]  ;;  %16044 = vst [vmem:[#allocation2 + $0x10] sm:$0xff] %v15826_v28   ;;  %v1066_v18 = vadd.f32 %v20856_v7, %v957_v33  ;;  %v17068_v40 = vpop.f32.mrb[10].mxu0  ;;  %v1777_v41 = vpop.f32.mrb[40].mxu1  ;;  %v2088_v23 = vshrl.u32 %v20874_v58, 16 }
 0x154   : > { %v20881_v42 = vcombine.low %v1927_v38, %v20877_v39  ;;  %v1069_v43 = vadd.f32 %v17068_v40, %v20856_v7  ;;  %v960_v9 = vpop.f32.mrb[11].mxu0  ;;  %v15921_v45 = vpack.c.bf16 %v1829_v36, %v1828_v25  ;;  %v1778_v46 = vadd.f32 %v1777_v41, %v20801_v62  ;;  %v17183_v49 = vpop.f32.mrb[41].mxu1 }
 0x155   : > { %v1067_v50 = vadd.f32 %v20856_v7, %v960_v9  ;;  %v1780_v52 = vpop.f32.mrb[42].mxu1  ;;  %v1100_v53 = vmax.f32 %v1068_v31, 0.0  ;;  %v1098_v56 = vmax.f32 %v1066_v18, 0.0  ;;  %v2086_v0 = vrot.slane %v2084_v47, 1 }
 0x156   : > { %v2079_v51 = vshll.u32 %v20881_v42, 16  ;;  %v1101_v15 = vmax.f32 %v1069_v43, 0.0  ;;  %16063 = vst [vmem:[#allocation2 + $0xa8] sm:$0xff] %v15921_v45   ;;  %v1812_v54 = vadd.f32 %v20856_v7, %v1778_v46  ;;  %v1781_v2 = vadd.f32 %v1780_v52, %v20806_v22  ;;  %v17184_v55 = vpop.f32.mrb[43].mxu1 }
 0x157   : > { %v1099_v59 = vmax.f32 %v1067_v50, 0.0  ;;  %v2077_v62 = vshrl.u32 %v20881_v42, 16  ;;  %v2090_v18 = vor.u32 %v2088_v23, %v2086_v0 }
 0x158   : > { %v2081_v60 = vrot.slane %v2079_v51, 1  ;;  %v15841_v61 = vpack.c.bf16 %v1101_v15, %v1100_v53  ;;  %v1830_v63 = vmax.f32 %v1812_v54, 0.0  ;;  %v1813_v1 = vadd.f32 %v20856_v7, %v1781_v2  ;;  %v19803_v53 = vld [vmem:[%s24491_s3 + $0x8] sm:$0xff]  }
 0x159   : > { %v15836_v4 = vpack.c.bf16 %v1099_v59, %v1098_v56  ;;  %v17071_v8 = vpop.f32.mrb[12].mxu0  ;;  %v20894_v12 = vld [vmem:[#allocation2 + $0x18] sm:$0xff]  }
 0x15a   : > { %v2082_v10 = vor.u32 %v2081_v60, %v2077_v62  ;;  %16047 = vst [vmem:[#allocation2 + $0x28] sm:$0xff] %v15841_v61   ;;  %v1072_v22 = vadd.f32 %v17071_v8, %v20856_v7  ;;  %v973_v13 = vpop.f32.mrb[13].mxu0  ;;  %v1831_v34 = vmax.f32 %v1813_v1, 0.0  ;;  %v20900_v25 = vld [vmem:[#allocation2 + $0x10] sm:$0xff]   ;;  %v2100_v36 = vshll.u32 %v20894_v12, 16 }
 0x15b   : > { %16046 = vst [vmem:[#allocation2 + $0x20] sm:$0xff] %v15836_v4   ;;  %v1070_v16 = vadd.f32 %v20856_v7, %v973_v13  ;;  %v17072_v19 = vpop.f32.mrb[14].mxu0  ;;  %v1785_v3 = vpop.f32.mrb[44].mxu1  ;;  %v2092_v41 = vshll.u32 %v20900_v25, 16  ;;  %v2096_v52 = vshrl.u32 %v20900_v25, 16  ;;  %v2104_v13 = vshrl.u32 %v20894_v12, 16 }
 0x15c   : > { %v2087_v20 = vsel %vm2075_vm1, %v2082_v10, %v2086_v0  ;;  %v1073_v26 = vadd.f32 %v17072_v19, %v20856_v7  ;;  %v976_v28 = vpop.f32.mrb[15].mxu0  ;;  %v15926_v5 = vpack.c.bf16 %v1831_v34, %v1830_v63  ;;  %v1786_v31 = vadd.f32 %v1785_v3, %v20811_v6  ;;  %v17187_v33 = vpop.f32.mrb[45].mxu1 }
 0x15d   : > { %17209 = vmatprep.mubr.bf16.mxu0 %v2087_v20  ;;  %v1071_v38 = vadd.f32 %v20856_v7, %v976_v28  ;;  %v1788_v40 = vpop.f32.mrb[46].mxu1  ;;  %v1104_v43 = vmax.f32 %v1072_v22, 0.0  ;;  %v1102_v6 = vmax.f32 %v1070_v16, 0.0  ;;  %v2094_v51 = vrot.slane %v2092_v41, 1 }
 0x15e   : > { %v1105_v9 = vmax.f32 %v1073_v26, 0.0  ;;  %16064 = vst [vmem:[#allocation2 + $0xb0] sm:$0xff] %v15926_v5   ;;  %v1814_v45 = vadd.f32 %v20856_v7, %v1786_v31  ;;  %v1789_v46 = vadd.f32 %v1788_v40, %v20816_v11  ;;  %v17188_v49 = vpop.f32.mrb[47].mxu1  ;;  %v2102_v55 = vrot.slane %v2100_v36, 1 }
 0x15f   : > { %v1103_v50 = vmax.f32 %v1071_v38, 0.0  ;;  %v2095_v59 = vsel %vm2075_vm1, %v2090_v18, %v2094_v51  ;;  %v2098_v62 = vor.u32 %v2096_v52, %v2094_v51 }
 0x160   : > { %v15851_v15 = vpack.c.bf16 %v1105_v9, %v1104_v43  ;;  %v1832_v54 = vmax.f32 %v1814_v45, 0.0  ;;  %v1815_v2 = vadd.f32 %v20856_v7, %v1789_v46  ;;  %17210 = vmatmul.mubr.bf16.vlgmr.msra.gmra.mrb[52].mxu0 %v2095_v59  ;;  %v2106_v31 = vor.u32 %v2104_v13, %v2102_v55  ;;  %v19809_v43 = vld [vmem:[%s24491_s3 + $0x18] sm:$0xff]  }
 0x161   : > { %v15846_v11 = vpack.c.bf16 %v1103_v50, %v1102_v6  ;;  %v17075_v56 = vpop.f32.mrb[16].mxu0  ;;  %v20923_v60 = vld [vmem:[#allocation2 + $0x28] sm:$0xff]   ;;  %v2103_v8 = vsel %vm2075_vm1, %v2098_v62, %v2102_v55  ;;  %17242 = vmatpush3.bf16.msra.mxu0 %v20791_v57  ;;  %v19806_v57 = vld [vmem:[%s24491_s3 + $0x10] sm:$0xff]  }
 0x162   : > { %16049 = vst [vmem:[#allocation2 + $0x38] sm:$0xff] %v15851_v15   ;;  %v1076_v61 = vadd.f32 %v17075_v56, %v20856_v7  ;;  %v989_v63 = vpop.f32.mrb[17].mxu0  ;;  %v1833_v0 = vmax.f32 %v1815_v2, 0.0  ;;  %v20929_v22 = vld [vmem:[#allocation2 + $0x20] sm:$0xff]   ;;  %17213 = vmatprep.mubr.bf16.mxu0 %v2103_v8  ;;  %17243 = vmatprep.subr.bf16.mxu0 %v19803_v53  ;;  %v2116_v26 = vshll.u32 %v20923_v60, 16 }
 0x163   : > { %16048 = vst [vmem:[#allocation2 + $0x30] sm:$0xff] %v15846_v11   ;;  %v1074_v1 = vadd.f32 %v20856_v7, %v989_v63  ;;  %v17076_v4 = vpop.f32.mrb[18].mxu0  ;;  %v1793_v10 = vpop.f32.mrb[48].mxu1  ;;  %v2108_v33 = vshll.u32 %v20929_v22, 16  ;;  %v2112_v49 = vshrl.u32 %v20929_v22, 16 }
 0x164   : > { %v15931_v34 = vpack.c.bf16 %v1833_v0, %v1832_v54  ;;  %v1077_v16 = vadd.f32 %v17076_v4, %v20856_v7  ;;  %v992_v19 = vpop.f32.mrb[19].mxu0  ;;  %v1794_v20 = vadd.f32 %v1793_v10, %v20821_v14  ;;  %v17191_v3 = vpop.f32.mrb[49].mxu1  ;;  %v1108_v38 = vmax.f32 %v1076_v61, 0.0 }
 0x165   : > { %v1075_v28 = vadd.f32 %v20856_v7, %v992_v19  ;;  %v1796_v5 = vpop.f32.mrb[50].mxu1  ;;  %v1106_v9 = vmax.f32 %v1074_v1, 0.0  ;;  %v2110_v46 = vrot.slane %v2108_v33, 1  ;;  %17244 = vmatpush3.bf16.msra.mxu0 %v19803_v53  ;;  %v2118_v15 = vrot.slane %v2116_v26, 1 }
 0x166   : > { %16065 = vst [vmem:[#allocation2 + $0xb8] sm:$0xff] %v15931_v34   ;;  %v1109_v18 = vmax.f32 %v1077_v16, 0.0  ;;  %v1816_v14 = vadd.f32 %v20856_v7, %v1794_v20  ;;  %v1797_v40 = vadd.f32 %v1796_v5, %v20826_v17  ;;  %17245 = vmatprep.subr.bf16.mxu0 %v19806_v57  ;;  %v2120_v10 = vshrl.u32 %v20923_v60, 16  ;;  %v19812_v16 = vld [vmem:[%s24491_s3 + $0x20] sm:$0xff]  }
 0x167   : > { %v1107_v45 = vmax.f32 %v1075_v28, 0.0  ;;  %v2111_v2 = vsel %vm2075_vm1, %v2106_v31, %v2110_v46  ;;  %v2114_v55 = vor.u32 %v2112_v49, %v2110_v46 }
 0x168   : > { %v15861_v6 = vpack.c.bf16 %v1109_v18, %v1108_v38  ;;  %v1834_v50 = vmax.f32 %v1816_v14, 0.0  ;;  %v1817_v51 = vadd.f32 %v20856_v7, %v1797_v40  ;;  %17214 = vmatmul.mubr.bf16.gmra.mrb[56].mxu0 %v2111_v2  ;;  %v2122_v28 = vor.u32 %v2120_v10, %v2118_v15 }
 0x169   : > { %v15856_v17 = vpack.c.bf16 %v1107_v45, %v1106_v9  ;;  %v17079_v54 = vpop.f32.mrb[20].mxu0  ;;  %v20956_v11 = vld [vmem:[#allocation2 + $0x38] sm:$0xff]   ;;  %v2119_v63 = vsel %vm2075_vm1, %v2114_v55, %v2118_v15  ;;  %17246 = vmatpush3.bf16.msra.mxu0 %v19806_v57  ;;  %v19816_v9 = vld [vmem:[%s24491_s3 + $0x28] sm:$0xff]  }
 0x16a   : > { %16051 = vst [vmem:[#allocation2 + $0x48] sm:$0xff] %v15861_v6   ;;  %v1080_v53 = vadd.f32 %v17079_v54, %v20856_v7  ;;  %v1005_v56 = vpop.f32.mrb[21].mxu0  ;;  %v1835_v59 = vmax.f32 %v1817_v51, 0.0  ;;  %v20961_v0 = vld [vmem:[#allocation2 + $0x30] sm:$0xff]   ;;  %17217 = vmatprep.mubr.bf16.mxu0 %v2119_v63  ;;  %v2132_v34 = vshll.u32 %v20956_v11, 16  ;;  %17247 = vmatprep.subr.bf16.mxu0 %v19809_v43 }
 0x16b   : > { %16050 = vst [vmem:[#allocation2 + $0x40] sm:$0xff] %v15856_v17   ;;  %v1078_v62 = vadd.f32 %v20856_v7, %v1005_v56  ;;  %v17080_v61 = vpop.f32.mrb[22].mxu0  ;;  %v2124_v20 = vshll.u32 %v20961_v0, 16  ;;  %v2128_v18 = vshrl.u32 %v20961_v0, 16  ;;  %v19821_v63 = vld [vmem:[%s24491_s3 + $0x30] sm:$0xff]  }
 0x16c   : > { %v15936_v1 = vpack.c.bf16 %v1835_v59, %v1834_v50  ;;  %v1081_v4 = vadd.f32 %v17080_v61, %v20856_v7  ;;  %v1008_v8 = vpop.f32.mrb[23].mxu0  ;;  %v1112_v3 = vmax.f32 %v1080_v53, 0.0  ;;  %v2134_v40 = vrot.slane %v2132_v34, 1 }
 0x16d   : > { %v1079_v19 = vadd.f32 %v20856_v7, %v1008_v8  ;;  %v1110_v5 = vmax.f32 %v1078_v62, 0.0  ;;  %v2126_v38 = vrot.slane %v2124_v20, 1  ;;  %17248 = vmatpush3.bf16.msra.mxu0 %v19809_v43  ;;  %v2136_v53 = vshrl.u32 %v20956_v11, 16 }
 0x16e   : > { %16066 = vst [vmem:[#allocation2 + $0xc0] sm:$0xff] %v15936_v1   ;;  %v1113_v57 = vmax.f32 %v1081_v4, 0.0  ;;  %17249 = vmatprep.subr.bf16.mxu0 %v19812_v16 }
 0x16f   : > { %v1111_v31 = vmax.f32 %v1079_v19, 0.0  ;;  %v2127_v6 = vsel %vm2075_vm1, %v2122_v28, %v2126_v38  ;;  %v2130_v50 = vor.u32 %v2128_v18, %v2126_v38  ;;  %v2138_v4 = vor.u32 %v2136_v53, %v2134_v40 }
 0x170   : > { %v15871_v14 = vpack.c.bf16 %v1113_v57, %v1112_v3  ;;  %17218 = vmatmul.mubr.bf16.gmra.mrb[60].mxu0 %v2127_v6 }
 0x171   : > { %v15866_v45 = vpack.c.bf16 %v1111_v31, %v1110_v5  ;;  %v17083_v46 = vpop.f32.mrb[24].mxu0  ;;  %v20984_v51 = vld [vmem:[#allocation2 + $0x48] sm:$0xff]   ;;  %v2135_v55 = vsel %vm2075_vm1, %v2130_v50, %v2134_v40  ;;  %17250 = vmatpush3.bf16.msra.mxu0 %v19812_v16  ;;  %v19826_v40 = vld [vmem:[%s24491_s3 + $0x38] sm:$0xff]  }
 0x172   : > { %16053 = vst [vmem:[#allocation2 + $0x58] sm:$0xff] %v15871_v14   ;;  %v1084_v43 = vadd.f32 %v17083_v46, %v20856_v7  ;;  %v1021_v15 = vpop.f32.mrb[25].mxu0  ;;  %v20987_v17 = vld [vmem:[#allocation2 + $0x40] sm:$0xff]   ;;  %17221 = vmatprep.mubr.bf16.mxu0 %v2135_v55  ;;  %v2148_v61 = vshll.u32 %v20984_v51, 16  ;;  %17251 = vmatprep.subr.bf16.mxu0 %v19816_v9 }
 0x173   : > { %16052 = vst [vmem:[#allocation2 + $0x50] sm:$0xff] %v15866_v45   ;;  %v1082_v54 = vadd.f32 %v20856_v7, %v1021_v15  ;;  %v17084_v2 = vpop.f32.mrb[26].mxu0  ;;  %v2140_v62 = vshll.u32 %v20987_v17, 16  ;;  %v2144_v3 = vshrl.u32 %v20987_v17, 16  ;;  %v17192_v45 = vpop.f32.mrb[51].mxu1 }
 0x174   : > { %v1085_v56 = vadd.f32 %v17084_v2, %v20856_v7  ;;  %v1024_v59 = vpop.f32.mrb[27].mxu0  ;;  %v1116_v8 = vmax.f32 %v1084_v43, 0.0  ;;  %v2150_v14 = vrot.slane %v2148_v61, 1 }
 0x175   : > { %v1083_v1 = vadd.f32 %v20856_v7, %v1024_v59  ;;  %v2142_v19 = vrot.slane %v2140_v62, 1  ;;  %v1114_v57 = vmax.f32 %v1082_v54, 0.0  ;;  %17252 = vmatpush3.bf16.msra.mxu0 %v19816_v9 }
 0x176   : > { %v1117_v16 = vmax.f32 %v1085_v56, 0.0  ;;  %17253 = vmatprep.subr.bf16.mxu0 %v19821_v63  ;;  %v2152_v56 = vshrl.u32 %v20984_v51, 16 }
 0x177   : > { %v1115_v28 = vmax.f32 %v1083_v1, 0.0  ;;  %v2143_v31 = vsel %vm2075_vm1, %v2138_v4, %v2142_v19  ;;  %v2146_v38 = vor.u32 %v2144_v3, %v2142_v19 }
 0x178   : > { %v15881_v5 = vpack.c.bf16 %v1117_v16, %v1116_v8  ;;  %17222 = vmatmul.mubr.bf16.gmra.mrb[64].mxu0 %v2143_v31  ;;  %v21026_v16 = vld [vmem:[%s24491_s3 + $0x80] sm:$0xff]  }
 0x179   : > { %v15876_v46 = vpack.c.bf16 %v1115_v28, %v1114_v57  ;;  %v17087_v6 = vpop.f32.mrb[28].mxu0  ;;  %v21012_v50 = vld [vmem:[#allocation2 + $0x58] sm:$0xff]   ;;  %v2151_v15 = vsel %vm2075_vm1, %v2146_v38, %v2150_v14  ;;  %17254 = vmatpush3.bf16.msra.mxu0 %v19821_v63  ;;  %v2154_v57 = vor.u32 %v2152_v56, %v2150_v14 }
 0x17a   : > { %16055 = vst [vmem:[#allocation2 + $0x68] sm:$0xff] %v15881_v5   ;;  %v1088_v9 = vadd.f32 %v17087_v6, %v20856_v7  ;;  %v1037_v43 = vpop.f32.mrb[29].mxu0  ;;  %v21016_v54 = vld [vmem:[#allocation2 + $0x50] sm:$0xff]   ;;  %17225 = vmatprep.mubr.bf16.mxu0 %v2151_v15  ;;  %v24497_v8 = vshll.u32 %v21012_v50, 16  ;;  %17255 = vmatprep.subr.bf16.mxu0 %v19826_v40 }
 0x17b   : > { %16054 = vst [vmem:[#allocation2 + $0x60] sm:$0xff] %v15876_v46   ;;  %v1086_v2 = vadd.f32 %v20856_v7, %v1037_v43  ;;  %v17088_v55 = vpop.f32.mrb[30].mxu0  ;;  %v24505_v4 = vshll.u32 %v21016_v54, 16  ;;  %v2160_v31 = vshrl.u32 %v21016_v54, 16  ;;  %v2658_v46 = vld [vmem:[#allocation2] sm:$0xe] }
 0x17c   : > { %v1089_v59 = vadd.f32 %v17088_v55, %v20856_v7  ;;  %v1040_v1 = vpop.f32.mrb[31].mxu0  ;;  %v1120_v28 = vmax.f32 %v1088_v9, 0.0  ;;  %v2166_v14 = vrot.slane %v24497_v8, 1 }
 0x17d   : > { %v1087_v19 = vadd.f32 %v20856_v7, %v1040_v1  ;;  %v2158_v5 = vrot.slane %v24505_v4, 1  ;;  %v1118_v38 = vmax.f32 %v1086_v2, 0.0  ;;  %17256 = vmatpush3.bf16.msra.mxu0 %v19826_v40 }
 0x17e   : > { %v1121_v63 = vmax.f32 %v1089_v59, 0.0  ;;  %17289 = vmatprep.subr.bf16.mxu0 %v21026_v16 }
 0x17f   : > { %v1119_v45 = vmax.f32 %v1087_v19, 0.0  ;;  %v2159_v43 = vsel %vm2075_vm1, %v2154_v57, %v2158_v5  ;;  %v2162_v15 = vor.u32 %v2160_v31, %v2158_v5 }
 0x180   : > { %v15891_v6 = vpack.c.bf16 %v1121_v63, %v1120_v28  ;;  %17226 = vmatmul.mubr.bf16.gmra.mrb[68].mxu0 %v2159_v43  ;;  %v21048_v63 = vcombine.low %v2658_v46, %v20877_v39 }
 0x181   : > { %v15886_v9 = vpack.c.bf16 %v1119_v45, %v1118_v38  ;;  %v1522_v55 = vpop.f32.mrb[32].mxu0  ;;  %v21040_v59 = vld [vmem:[#allocation2 + $0x68] sm:$0xff]   ;;  %v2167_v1 = vsel %vm2075_vm1, %v2162_v15, %v2166_v14 }
 0x182   : > { %16057 = vst [vmem:[#allocation2 + $0x78] sm:$0xff] %v15891_v6   ;;  %v1730_v2 = vadd.f32 %v20831_v21, %v1522_v55  ;;  %v17107_v40 = vpop.f32.mrb[33].mxu0  ;;  %v21044_v19 = vld [vmem:[#allocation2 + $0x60] sm:$0xff]   ;;  %17229 = vmatprep.mubr.bf16.mxu0 %v2167_v1  ;;  %v24498_v28 = vshll.u32 %v21040_v59, 16  ;;  %v24500_v21 = vshrl.u32 %v21012_v50, 16  ;;  %v2991_v1 = vshrl.u32 %v21048_v63, 16 }
 0x183   : > { %16056 = vst [vmem:[#allocation2 + $0x70] sm:$0xff] %v15886_v9   ;;  %v1525_v57 = vpop.f32.mrb[34].mxu0  ;;  %v24496_v6 = vshll.u32 %v21044_v19, 16  ;;  %v24499_v39 = vshrl.u32 %v21044_v19, 16 }
 0x184   : > { %v1800_v5 = vadd.f32 %v20856_v7, %v1730_v2  ;;  %v1733_v38 = vadd.f32 %v20836_v24, %v1525_v57  ;;  %v17108_v45 = vpop.f32.mrb[35].mxu0  ;;  %v2170_v15 = vor.u32 %v24500_v21, %v2166_v14  ;;  %v2182_v55 = vrot.slane %v24498_v28, 1 }
 0x185   : > { %v2174_v9 = vrot.slane %v24496_v6, 1  ;;  %v3002_v28 = vrot.slane %v2096_v52, 1 }
 0x186   : > { %v1801_v43 = vadd.f32 %v20856_v7, %v1733_v38  ;;  %v1818_v46 = vmax.f32 %v1800_v5, 0.0 }
 0x187   : > { %v2175_v2 = vsel %vm2075_vm1, %v2170_v15, %v2174_v9  ;;  %v2178_v40 = vor.u32 %v24499_v39, %v2174_v9  ;;  %v24504_v15 = vshrl.u32 %v21040_v59, 16 }
 0x188   : > { %v1819_v24 = vmax.f32 %v1801_v43, 0.0  ;;  %17230 = vmatmul.mubr.bf16.gmra.mrb[72].mxu0 %v2175_v2 }
 0x189   : > { %v1530_v57 = vpop.f32.mrb[36].mxu0  ;;  %v21066_v38 = vld [vmem:[#allocation2 + $0x78] sm:$0xff]   ;;  %v2183_v5 = vsel %vm2075_vm1, %v2178_v40, %v2182_v55  ;;  %v2186_v2 = vor.u32 %v24504_v15, %v2182_v55 }
 0x18a   : > { %v15896_v14 = vpack.c.bf16 %v1819_v24, %v1818_v46  ;;  %v1738_v45 = vadd.f32 %v20841_v27, %v1530_v57  ;;  %v17111_v6 = vpop.f32.mrb[37].mxu0  ;;  %v21070_v8 = vld [vmem:[#allocation2 + $0x70] sm:$0xff]   ;;  %17233 = vmatprep.mubr.bf16.mxu0 %v2183_v5  ;;  %v24502_v9 = vshll.u32 %v21066_v38, 16  ;;  %v2993_v57 = vrot.slane %v2991_v1, 1 }
 0x18b   : > { %v1533_v43 = vpop.f32.mrb[38].mxu0  ;;  %v24501_v24 = vshll.u32 %v21070_v8, 16  ;;  %v24503_v40 = vshrl.u32 %v21070_v8, 16  ;;  %v2994_v5 = vshll.u32 %v21048_v63, 16 }
 0x18c   : > { %16058 = vst [vmem:[#allocation2 + $0x80] sm:$0xff] %v15896_v14   ;;  %v1802_v46 = vadd.f32 %v20856_v7, %v1738_v45  ;;  %v1741_v27 = vadd.f32 %v20843_v29, %v1533_v43  ;;  %v17112_v6 = vpop.f32.mrb[39].mxu0  ;;  %v2998_v29 = vrot.slane %v2088_v23, 1  ;;  %v2198_v14 = vrot.slane %v24502_v9, 1 }
 0x18d   : > { %v2190_v52 = vrot.slane %v24501_v24, 1  ;;  %v2996_v45 = vrot.slane %v2994_v5, 2  ;;  %v3003_v24 = vrot.slane %v2092_v41, 2  ;;  %v3006_v23 = vrot.slane %v2104_v13, 1 }
 0x18e   : > { %v1820_v39 = vmax.f32 %v1802_v46, 0.0  ;;  %v1803_v21 = vadd.f32 %v20856_v7, %v1741_v27  ;;  %v2999_v46 = vrot.slane %v2084_v47, 2  ;;  %v3007_v5 = vrot.slane %v2100_v36, 2 }
 0x18f   : > { %v2191_v55 = vsel %vm2075_vm1, %v2186_v2, %v2190_v52  ;;  %v2194_v1 = vor.u32 %v24503_v40, %v2190_v52  ;;  %v2997_v6 = vor.u32 %v2996_v45, %v2993_v57  ;;  %v3004_v45 = vor.u32 %v3003_v24, %v3002_v28 }
 0x190   : > { %v1821_v43 = vmax.f32 %v1803_v21, 0.0  ;;  %17234 = vmatmul.mubr.bf16.gmra.mrb[76].mxu0 %v2191_v55  ;;  %v3000_v40 = vor.u32 %v2999_v46, %v2998_v29  ;;  %v3008_v15 = vor.u32 %v3007_v5, %v3006_v23  ;;  %v3011_v5 = vrot.slane %v2108_v33, 2 }
 0x191   : > { %v1538_v27 = vpop.f32.mrb[40].mxu0  ;;  %v2199_v52 = vsel %vm2075_vm1, %v2194_v1, %v2198_v14  ;;  %v3014_v33 = vrot.slane %v2120_v10, 1 }
 0x192   : > { %v15901_v21 = vpack.c.bf16 %v1821_v43, %v1820_v39  ;;  %v1746_v2 = vadd.f32 %v20845_v30, %v1538_v27  ;;  %v17115_v9 = vpop.f32.mrb[41].mxu0  ;;  %17237 = vmatprep.mubr.bf16.mxu0 %v2199_v52  ;;  %v21108_v30 = vsel %vm2989_vm2, %v2997_v6, %v3000_v40  ;;  %v21115_v28 = vsel %vm2989_vm2, %v3000_v40, %v3004_v45 }
 0x193   : > { %v1541_v47 = vpop.f32.mrb[42].mxu0  ;;  %v19825_v57 = vld [vmem:[#allocation2 + $0x80] ss:$0 sps:$4 sm:$0x11]   ;;  %v21105_v39 = vld [vmem:[#allocation2 + $0x84] sm:$0xf] }
 0x194   : > { %16059 = vst [vmem:[#allocation2 + $0x88] sm:$0xff] %v15901_v21   ;;  %v1804_v41 = vadd.f32 %v20856_v7, %v1746_v2  ;;  %v1749_v13 = vadd.f32 %v20847_v32, %v1541_v47  ;;  %v17116_v4 = vpop.f32.mrb[43].mxu0  ;;  %v8158_v36 = vld [vmem:[#allocation2 + $0x80] sm:$0xf]  ;;  %v2200_v9 = vshrl.u32 %v21066_v38, 16  ;;  %v2204_v29 = vshll.u32 %v19825_v57, 16 }
 0x195   : > { %v21112_v43 = vcombine.low %v8158_v36, %v21105_v39  ;;  %v21119_v32 = vsel %vm2989_vm2, %v3004_v45, %v3008_v15  ;;  %v3010_v40 = vrot.slane %v2112_v49, 1 }
 0x196   : > { %v1822_v24 = vmax.f32 %v1804_v41, 0.0  ;;  %v1805_v55 = vadd.f32 %v20856_v7, %v1749_v13  ;;  %v2202_v4 = vor.u32 %v2200_v9, %v2198_v14  ;;  %v2206_v1 = vrot.slane %v2204_v29, 1 }
 0x197   : > { %v8235_v46 = vshll.u32 %v21112_v43, 16  ;;  %v3012_v45 = vor.u32 %v3011_v5, %v3010_v40  ;;  %v8233_v36 = vshrl.u32 %v21112_v43, 16  ;;  %v3019_v40 = vrot.slane %v2124_v20, 2 }
 0x198   : > { %v1823_v27 = vmax.f32 %v1805_v55, 0.0  ;;  %v2207_v6 = vsel %vm2075_vm1, %v2202_v4, %v2206_v1  ;;  %v3015_v4 = vrot.slane %v2116_v26, 2 }
 0x199   : > { %v1546_v23 = vpop.f32.mrb[44].mxu0  ;;  %17238 = vmatmul.mubr.bf16.gmra.mrb[80].mxu0 %v2207_v6  ;;  %v8237_v47 = vrot.slane %v8235_v46, 1  ;;  %v19834_v6 = vld [vmem:[%s24491_s3 + $0x88] sm:$0xff]  }
 0x19a   : > { %v15906_v21 = vpack.c.bf16 %v1823_v27, %v1822_v24  ;;  %v1754_v2 = vadd.f32 %v20849_v35, %v1546_v23  ;;  %v17119_v52 = vpop.f32.mrb[45].mxu0  ;;  %17257 = vmatprep.mubr.bf16.mxu0 %v20881_v42  ;;  %v21141_v42 = vsel %vm2989_vm2, %v3008_v15, %v3012_v45  ;;  %v3016_v23 = vor.u32 %v3015_v4, %v3014_v33 }
 0x19b   : > { %v1549_v14 = vpop.f32.mrb[46].mxu0  ;;  %v21131_v57 = vld [vmem:[#allocation2 + $0x88] sm:$0xff]   ;;  %v3018_v15 = vrot.slane %v2128_v18, 1  ;;  %v3022_v33 = vrot.slane %v2136_v53, 1  ;;  %v3026_v53 = vrot.slane %v2144_v3, 1 }
 0x19c   : > { %16060 = vst [vmem:[#allocation2 + $0x90] sm:$0xff] %v15906_v21   ;;  %v1806_v41 = vadd.f32 %v20856_v7, %v1754_v2  ;;  %v1757_v49 = vadd.f32 %v20851_v37, %v1549_v14  ;;  %v17120_v13 = vpop.f32.mrb[47].mxu0  ;;  %v8240_v35 = vshll.u32 %v21131_v57, 16  ;;  %v8244_v29 = vshrl.u32 %v21131_v57, 16  ;;  %v19838_v14 = vld [vmem:[%s24491_s3 + $0x90] sm:$0xff]  }
 0x19d   : > { %v8238_v37 = vor.u32 %v8237_v47, %v8233_v36  ;;  %v21162_v18 = vsel %vm2989_vm2, %v3012_v45, %v3016_v23 }
 0x19e   : > { %v1824_v24 = vmax.f32 %v1806_v41, 0.0  ;;  %v1807_v55 = vadd.f32 %v20856_v7, %v1757_v49  ;;  %v8242_v1 = vrot.slane %v8240_v35, 1  ;;  %v8752_v46 = vrot.slane %v8244_v29, 1 }
 0x19f   : > { %v8753_v27 = vrot.slane %v8240_v35, 2  ;;  %v3020_v49 = vor.u32 %v3019_v40, %v3018_v15  ;;  %v21197_v15 = vld [vmem:[#allocation2 + $0xa8] sm:$0xf]  ;;  %v8724_v40 = vld [vmem:[#allocation2 + $0xac] sm:$0x3] }
 0x1a0   : > { %v1825_v10 = vmax.f32 %v1807_v55, 0.0  ;;  %v8243_v21 = vsel %vm2075_vm1, %v8238_v37, %v8242_v1  ;;  %v8246_v45 = vor.u32 %v8244_v29, %v8242_v1  ;;  %v19836_v1 = vld [vmem:[%s24491_s3 + $0x8] sm:$0xff]  }
 0x1a1   : > { %v1554_v5 = vpop.f32.mrb[48].mxu0  ;;  %v21154_v26 = vor.u32 %v8753_v27, %v8752_v46  ;;  %17258 = vmatmul.mubr.bf16.vlgmr.msra.gmra.mrb[52].mxu0 %v20874_v58  ;;  %17977 = vmatprep.mubr.bf16.mxu1 %v8243_v21  ;;  %v19842_v46 = vld [vmem:[%s24491_s3 + $0x98] sm:$0xff]  }
 0x1a2   : > { %v15911_v2 = vpack.c.bf16 %v1825_v10, %v1824_v24  ;;  %v1762_v52 = vadd.f32 %v20860_v44, %v1554_v5  ;;  %v17123_v47 = vpop.f32.mrb[49].mxu0  ;;  %17261 = vmatprep.mubr.bf16.mxu0 %v20900_v25  ;;  %17290 = vmatpush3.bf16.msra.mxu0 %v21026_v16  ;;  %v21175_v16 = vsel %vm2989_vm2, %v3016_v23, %v3020_v49  ;;  %v19837_v23 = vld [vmem:[%s24491_s3 + $0x10] sm:$0xff]  }
 0x1a3   : > { %v1557_v20 = vpop.f32.mrb[50].mxu0  ;;  %v21166_v41 = vld [vmem:[#allocation2 + $0x90] sm:$0xff]   ;;  %17291 = vmatprep.subr.bf16.mxu0 %v19834_v6 }
 0x1a4   : > { %16061 = vst [vmem:[#allocation2 + $0x98] sm:$0xff] %v15911_v2   ;;  %v1808_v44 = vadd.f32 %v20856_v7, %v1762_v52  ;;  %v1765_v58 = vadd.f32 %v20864_v48, %v1557_v20  ;;  %v17124_v13 = vpop.f32.mrb[51].mxu0  ;;  %v8248_v36 = vshll.u32 %v21166_v41, 16  ;;  %v8252_v25 = vshrl.u32 %v21166_v41, 16  ;;  %v20342_v7 = vld [vmem:[%s24490_s2] ss:$0 sm:$0xff] }
 0x1a5   : > { %v3023_v48 = vrot.slane %v2132_v34, 2  ;;  %v3027_v34 = vrot.slane %v2140_v62, 2  ;;  %v3030_v62 = vrot.slane %v2152_v56, 1  ;;  %v20343_v2 = vld [vmem:[%s24491_s3] sm:$0xff]   ;;  %v3031_v20 = vrot.slane %v2148_v61, 2  ;;  %v19839_v61 = vld [vmem:[%s24491_s3 + $0x18] sm:$0xff]  }
 0x1a6   : > { %v1826_v35 = vmax.f32 %v1808_v44, 0.0  ;;  %v1809_v24 = vadd.f32 %v20342_v7, %v1765_v58  ;;  %v8250_v29 = vrot.slane %v8248_v36, 1  ;;  %17292 = vmatpush3.bf16.msra.mxu0 %v19834_v6  ;;  %v8756_v55 = vrot.slane %v8252_v25, 1  ;;  %v19847_v56 = vld [vmem:[%s24491_s3 + $0xa0] sm:$0xff]   ;;  %v8185_v58 = vld [vmem:[#allocation2 + $0xac] sm:$0x1] }
 0x1a7   : > { %v8757_v4 = vrot.slane %v8248_v36, 2  ;;  %17293 = vmatprep.subr.bf16.mxu0 %v19838_v14  ;;  %v3024_v27 = vor.u32 %v3023_v48, %v3022_v33  ;;  %v3028_v21 = vor.u32 %v3027_v34, %v3026_v53  ;;  %v15342_v13 = vcombine.low %v21197_v15, %v8724_v40  ;;  %v19841_v34 = vld [vmem:[%s24491_s3 + $0x20] sm:$0xff]  }
 0x1a8   : > { %v1827_v37 = vmax.f32 %v1809_v24, 0.0  ;;  %v8251_v3 = vsel %vm2075_vm1, %v8246_v45, %v8250_v29  ;;  %v3034_v33 = vrot.slane %v2160_v31, 1  ;;  %v24585_v45 = vshll.u32 %v21016_v54, 16  ;;  %v19850_v31 = vld [vmem:[%s24491_s3 + $0xa8] sm:$0xff]  }
 0x1a9   : > { %v8758_v10 = vor.u32 %v8757_v4, %v8756_v55  ;;  %17262 = vmatmul.mubr.bf16.gmra.mrb[56].mxu0 %v20894_v12  ;;  %17978 = vmatmul.mubr.bf16.vlgmr.msra.gmra.mrb[52].mxu1 %v8251_v3  ;;  %v21200_v5 = vsel %vm2989_vm2, %v3020_v49, %v3024_v27  ;;  %v21218_v47 = vsel %vm2989_vm2, %v3024_v27, %v3028_v21  ;;  %v8772_v3 = vshll.u32 %v15342_v13, 16 }
 0x1aa   : > { %v15916_v6 = vpack.c.bf16 %v1827_v37, %v1826_v35  ;;  %17990 = vmatpush3.bf16.msra.mxu1 %v20343_v2  ;;  %17265 = vmatprep.mubr.bf16.mxu0 %v20929_v22  ;;  %v8254_v22 = vor.u32 %v8252_v25, %v8250_v29  ;;  %v3035_v36 = vrot.slane %v24585_v45, 2  ;;  %v21233_v24 = vcombine.low %v21197_v15, %v8185_v58 }
 0x1ab   : > { %v21208_v12 = vld [vmem:[#allocation2 + $0x98] sm:$0xff]   ;;  %v21212_v52 = vsel %vm2989_vm2, %v21154_v26, %v8758_v10  ;;  %17991 = vmatprep.subr.bf16.mxu1 %v19836_v1  ;;  %17294 = vmatpush3.bf16.msra.mxu0 %v19838_v14  ;;  %v3032_v14 = vor.u32 %v3031_v20, %v3030_v62  ;;  %v24587_v29 = vshrl.u32 %v21012_v50, 16  ;;  %v24590_v40 = vshrl.u32 %v21044_v19, 16 }
 0x1ac   : > { %16062 = vst [vmem:[#allocation2 + $0xa0] sm:$0xff] %v15916_v6   ;;  %v8256_v49 = vshll.u32 %v21208_v12, 16  ;;  %17295 = vmatprep.subr.bf16.mxu0 %v19842_v46  ;;  %v8260_v44 = vshrl.u32 %v21208_v12, 16  ;;  %v3036_v53 = vor.u32 %v3035_v36, %v3034_v33  ;;  %v24591_v62 = vshll.u32 %v21044_v19, 16 }
 0x1ad   : > { %v21239_v48 = vsel %vm2989_vm2, %v3028_v21, %v3032_v14  ;;  %v3038_v55 = vrot.slane %v24587_v29, 1  ;;  %v3042_v21 = vrot.slane %v24590_v40, 1  ;;  %v8272_v58 = vshll.u32 %v21233_v24, 16 }
 0x1ae   : > { %17992 = vmatpush3.bf16.msra.mxu1 %v19836_v1  ;;  %v8258_v25 = vrot.slane %v8256_v49, 1  ;;  %v8760_v35 = vrot.slane %v8260_v44, 1  ;;  %v8761_v7 = vrot.slane %v8256_v49, 2  ;;  %24586 = vst [vmem:[#allocation4_spill] sm:$0xff] %v21239_v48  ;;  %v8769_v1 = vshrl.u32 %v15342_v13, 16 }
 0x1af   : > { %17993 = vmatprep.subr.bf16.mxu1 %v19837_v23  ;;  %17296 = vmatpush3.bf16.msra.mxu0 %v19842_v46  ;;  %v24588_v46 = vshll.u32 %v21012_v50, 16  ;;  %v21251_v6 = vsel %vm2989_vm2, %v3032_v14, %v3036_v53  ;;  %v3043_v2 = vrot.slane %v24591_v62, 2  ;;  %v24592_v14 = vshrl.u32 %v21040_v59, 16 }
 0x1b0   : > { %v8259_v4 = vsel %vm2075_vm1, %v8254_v22, %v8258_v25  ;;  %17297 = vmatprep.subr.bf16.mxu0 %v19847_v56  ;;  %v8762_v37 = vor.u32 %v8761_v7, %v8760_v35  ;;  %24589 = vst [vmem:[#allocation5_spill] sm:$0xff] %v21251_v6  ;;  %v8262_v49 = vor.u32 %v8260_v44, %v8258_v25  ;;  %v24594_v44 = vshll.u32 %v21040_v59, 16 }
 0x1b1   : > { %v3039_v27 = vrot.slane %v24588_v46, 2  ;;  %17266 = vmatmul.mubr.bf16.gmra.mrb[60].mxu0 %v20923_v60  ;;  %17981 = vmatprep.mubr.bf16.mxu1 %v8259_v4  ;;  %v3044_v13 = vor.u32 %v3043_v2, %v3042_v21  ;;  %v3046_v33 = vrot.slane %v24592_v14, 1  ;;  %v8774_v25 = vrot.slane %v8772_v3, 2  ;;  %v19846_v21 = vld [vmem:[%s24491_s3 + $0x30] sm:$0xff]  }
 0x1b2   : > { %17994 = vmatpush3.bf16.msra.mxu1 %v19837_v23  ;;  %17269 = vmatprep.mubr.bf16.mxu0 %v20961_v0  ;;  %v21261_v60 = vsel %vm2989_vm2, %v8758_v10, %v8762_v37  ;;  %v19853_v0 = vld [vmem:[%s24491_s3 + $0xb0] sm:$0xff]   ;;  %v3047_v36 = vrot.slane %v24594_v44, 2  ;;  %v24599_v14 = vshll.u32 %v21066_v38, 16 }
 0x1b3   : > { %v21258_v20 = vld [vmem:[#allocation2 + $0xa0] sm:$0xff]   ;;  %v3040_v22 = vor.u32 %v3039_v27, %v3038_v55  ;;  %17995 = vmatprep.subr.bf16.mxu1 %v19839_v61  ;;  %17298 = vmatpush3.bf16.msra.mxu0 %v19847_v56  ;;  %v8771_v56 = vrot.slane %v8769_v1, 1  ;;  %v19845_v55 = vld [vmem:[%s24491_s3 + $0x28] sm:$0xff]   ;;  %v8274_v27 = vrot.slane %v8272_v58, 1 }
 0x1b4   : > { %v8264_v45 = vshll.u32 %v21258_v20, 16  ;;  %v8268_v23 = vshrl.u32 %v21258_v20, 16  ;;  %17299 = vmatprep.subr.bf16.mxu0 %v19850_v31  ;;  %v3048_v1 = vor.u32 %v3047_v36, %v3046_v33  ;;  %v3055_v33 = vrot.slane %v24599_v14, 2  ;;  %v21321_v44 = vld [vmem:[#allocation2 + $0xa0] sm:$0xff]  }
 0x1b5   : > { %v21272_v10 = vsel %vm2989_vm2, %v3036_v53, %v3040_v22  ;;  %v21277_v35 = vsel %vm2989_vm2, %v3040_v22, %v3044_v13  ;;  %v21287_v40 = vor.u32 %v8774_v25, %v8771_v56  ;;  %v19849_v25 = vld [vmem:[%s24491_s3 + $0x80] sm:$0xff]  }
 0x1b6   : > { %24593 = vst [vmem:[#allocation6_spill] sm:$0xff] %v21272_v10  ;;  %24595 = vst [vmem:[#allocation7_spill] sm:$0xff] %v21277_v35  ;;  %17996 = vmatpush3.bf16.msra.mxu1 %v19839_v61  ;;  %v8266_v7 = vrot.slane %v8264_v45, 1  ;;  %v8764_v29 = vrot.slane %v8268_v23, 1  ;;  %v8765_v4 = vrot.slane %v8264_v45, 2  ;;  %v19856_v61 = vld [vmem:[%s24491_s3 + $0xb8] sm:$0xff]   ;;  %v21305_v22 = vsel %vm2989_vm2, %v3044_v13, %v3048_v1 }
 0x1b7   : > { %17997 = vmatprep.subr.bf16.mxu1 %v19841_v34  ;;  %17300 = vmatpush3.bf16.msra.mxu0 %v19850_v31  ;;  %24597 = vst [vmem:[#allocation8_spill] sm:$0xff] %v21305_v22  ;;  %v21319_v13 = vld [vmem:[%s24491_s3 + $0xc0] sm:$0xff]   ;;  %v21564_v22 = vld [vmem:[#allocation2 + $0x70] sm:$0xff]  }
 0x1b8   : > { %v8267_v53 = vsel %vm2075_vm1, %v8262_v49, %v8266_v7  ;;  %v8270_v46 = vor.u32 %v8268_v23, %v8266_v7  ;;  %17301 = vmatprep.subr.bf16.mxu0 %v19853_v0  ;;  %v8766_v3 = vor.u32 %v8765_v4, %v8764_v29  ;;  %v24598_v49 = vshll.u32 %v21070_v8, 16  ;;  %v19848_v23 = vld [vmem:[%s24491_s3 + $0x38] sm:$0xff]   ;;  %v21338_v7 = vld [vmem:[#allocation2 + $0xa8] sm:$0xff]   ;;  %v21345_v29 = vld [vmem:[#allocation2 + $0xb0] sm:$0xf] }
 0x1b9   : > { %17270 = vmatmul.mubr.bf16.gmra.mrb[64].mxu0 %v20956_v11  ;;  %17982 = vmatmul.mubr.bf16.gmra.mrb[56].mxu1 %v8267_v53  ;;  %v8276_v11 = vshrl.u32 %v21233_v24, 16  ;;  %v9530_v4 = vld [vmem:[#allocation2 + $0xb4] sm:$0xf]  ;;  %v24510_v53 = vshll.u32 %v21321_v44, 16 }
 0x1ba   : > { %17998 = vmatpush3.bf16.msra.mxu1 %v19841_v34  ;;  %17273 = vmatprep.mubr.bf16.mxu0 %v20987_v17  ;;  %v8275_v31 = vsel %vm2075_vm1, %v8270_v46, %v8274_v27  ;;  %v21296_v62 = vsel %vm2989_vm2, %v8762_v37, %v8766_v3  ;;  %v21300_v2 = vsel %vm2989_vm2, %v8766_v3, %v21287_v40  ;;  %v24596_v34 = vshrl.u32 %v21070_v8, 16 }
 0x1bb   : > { %17985 = vmatprep.mubr.bf16.mxu1 %v8275_v31  ;;  %17999 = vmatprep.subr.bf16.mxu1 %v19845_v55  ;;  %v3051_v58 = vrot.slane %v24598_v49, 2  ;;  %v3054_v37 = vrot.slane %v2200_v9, 1  ;;  %v8278_v45 = vor.u32 %v8276_v11, %v8274_v27  ;;  %v24509_v46 = vshrl.u32 %v21338_v7, 16  ;;  %v19854_v49 = vld [vmem:[%s24491_s3 + $0x98] sm:$0xff]  }
 0x1bc   : > { %v3050_v17 = vrot.slane %v24596_v34, 1  ;;  %17302 = vmatpush3.bf16.msra.mxu0 %v19853_v0  ;;  %v24508_v27 = vshll.u32 %v21338_v7, 16  ;;  %v9567_v31 = vrot.slane %v24510_v53, 4 }
 0x1bd   : > { %17303 = vmatprep.subr.bf16.mxu0 %v19856_v61  ;;  %v21323_v36 = vor.u32 %v3055_v33, %v3054_v37  ;;  %v8548_v33 = vld [vmem:[#allocation2 + $0x80] sm:$0xe] }
 0x1be   : > { %18000 = vmatpush3.bf16.msra.mxu1 %v19845_v55  ;;  %v3052_v0 = vor.u32 %v3051_v58, %v3050_v17  ;;  %v24506_v55 = vrot.slane %v21338_v7, 3 }
 0x1bf   : > { %18001 = vmatprep.subr.bf16.mxu1 %v19846_v21  ;;  %24600 = vst [vmem:[#allocation9_spill] sm:$0xff] %v21323_v36 }
 0x1c0   : > { %17304 = vmatpush3.bf16.msra.mxu0 %v19856_v61  ;;  %v21327_v9 = vsel %vm2989_vm2, %v3048_v1, %v3052_v0  ;;  %v21332_v56 = vsel %vm2989_vm2, %v3052_v0, %v21323_v36  ;;  %v15383_v61 = vcombine.low %v21345_v29, %v9530_v4  ;;  %v19855_v0 = vld [vmem:[%s24491_s3 + $0xa0] sm:$0xff]   ;;  %v15324_v4 = vcombine.low %v21197_v15, %v21197_v15  ;;  %v19861_v15 = vld [vmem:[%s24491_s3 + $0xb0] sm:$0xff]  }
 0x1c1   : > { %17274 = vmatmul.mubr.bf16.gmra.mrb[68].mxu0 %v20984_v51  ;;  %17986 = vmatmul.mubr.bf16.gmra.mrb[60].mxu1 %v8278_v45  ;;  %24601 = vst [vmem:[#allocation10_spill] sm:$0xff] %v21327_v9  ;;  %24602 = vst [vmem:[#allocation11_spill] sm:$0xff] %v21332_v56  ;;  %v9379_v51 = vrot.slane %v21321_v44, 3 }
 0x1c2   : > { %18002 = vmatpush3.bf16.msra.mxu1 %v19846_v21  ;;  %17277 = vmatprep.mubr.bf16.mxu0 %v21016_v54  ;;  %v19851_v54 = vld [vmem:[%s24491_s3 + $0x88] sm:$0xff]   ;;  %v9570_v21 = vrot.slane %v24509_v46, 3  ;;  %v9575_v34 = vshrl.u32 %v15383_v61, 16  ;;  %v9578_v17 = vshll.u32 %v15383_v61, 16 }
 0x1c3   : > { %18005 = vmatprep.mubr.bf16.mxu1 %v21112_v43  ;;  %18003 = vmatprep.subr.bf16.mxu1 %v19848_v23  ;;  %v24511_v43 = vshrl.u32 %v21321_v44, 16  ;;  %v21359_v1 = vsel %vm4197_vm3, %v9379_v51, %v24506_v55  ;;  %v20344_v61 = vld [vmem:[#allocation2 + $0x8] sm:$0xff]  }
 0x1c4   : > { %17337 = vmatprep.subr.bf16.mxu0 %v21319_v13  ;;  %24603 = vst [vmem:[#allocation12_spill] sm:$0xff] %v21359_v1  ;;  %v9577_v37 = vrot.slane %v9575_v34, 3  ;;  %v9580_v14 = vrot.slane %v9578_v17, 4  ;;  %v21545_v1 = vld [vmem:[#allocation2 + $0x68] sm:$0xff]  }
 0x1c5   : > { %v9566_v3 = vrot.slane %v24511_v43, 3 }
 0x1c6   : > { %18004 = vmatpush3.bf16.msra.mxu1 %v19848_v23  ;;  %v21387_v23 = vor.u32 %v9580_v14, %v9577_v37  ;;  %v8571_v37 = vrot.slane %v21166_v41, 1  ;;  %v19864_v14 = vld [vmem:[%s24491_s3 + $0xc0] sm:$0xff]  }
 0x1c7   : > { %18017 = vmatprep.subr.bf16.mxu1 %v19849_v25  ;;  %v21375_v11 = vor.u32 %v9567_v31, %v9566_v3  ;;  %v20345_v31 = vld [vmem:[#allocation2 + $0x10] sm:$0xff]  }
 0x1c8   : > { %24605 = vst [vmem:[#allocation14_spill] sm:$0xff] %v21387_v23 }
 0x1c9   : > { %17278 = vmatmul.mubr.bf16.gmra.mrb[72].mxu0 %v21012_v50  ;;  %18006 = vmatmul.mubr.bf16.vlgmr.msra.gmra.mrb[52].mxu1 %v21131_v57  ;;  %v19852_v50 = vld [vmem:[%s24491_s3 + $0x90] sm:$0xff]  }
 0x1ca   : > { %18018 = vmatpush3.bf16.msra.mxu1 %v19849_v25  ;;  %17281 = vmatprep.mubr.bf16.mxu0 %v21044_v19  ;;  %v9571_v19 = vrot.slane %v24508_v27, 4  ;;  %v21493_v27 = vld [vmem:[#allocation2 + $0x48] sm:$0xff]  }
 0x1cb   : > { %18019 = vmatprep.subr.bf16.mxu1 %v19851_v54  ;;  %18009 = vmatprep.mubr.bf16.mxu1 %v21166_v41  ;;  %v20348_v41 = vld [vmem:[#allocation2 + $0x28] sm:$0xff]  }
 0x1cc   : > { %v9572_v58 = vor.u32 %v9571_v19, %v9570_v21  ;;  %v2682_v21 = vrot.slane %v20345_v31, 1  ;;  %v20346_v19 = vld [vmem:[#allocation2 + $0x18] sm:$0xff]  }
 0x1cd   : > { %v2684_v34 = vrot.slane %v20346_v19, 1 }
 0x1ce   : > { %18020 = vmatpush3.bf16.msra.mxu1 %v19851_v54  ;;  %v21384_v45 = vsel %vm4508_vm4, %v21375_v11, %v9572_v58  ;;  %v21398_v25 = vsel %vm4508_vm4, %v9572_v58, %v21387_v23  ;;  %v2679_v54 = vrot.slane %v21048_v63, 1  ;;  %v20353_v23 = vld [vmem:[#allocation2 + $0x50] sm:$0xff]  }
 0x1cf   : > { %18021 = vmatprep.subr.bf16.mxu1 %v19852_v50  ;;  %24604 = vst [vmem:[#allocation13_spill] sm:$0xff] %v21384_v45  ;;  %24606 = vst [vmem:[#allocation15_spill] sm:$0xff] %v21398_v25  ;;  %v2685_v58 = vsel %vm2678_vm5, %v2682_v21, %v2684_v34 }
 0x1d1   : > { %17282 = vmatmul.mubr.bf16.gmra.mrb[76].mxu0 %v21040_v59  ;;  %18010 = vmatmul.mubr.bf16.gmra.mrb[56].mxu1 %v21208_v12  ;;  %v21394_v59 = vcombine.low %v8548_v33, %v21105_v39  ;;  %v19860_v39 = vld [vmem:[%s24491_s3 + $0xa8] sm:$0xff]   ;;  %v20347_v33 = vld [vmem:[#allocation2 + $0x20] sm:$0xff]  }
 0x1d2   : > { %18022 = vmatpush3.bf16.msra.mxu1 %v19852_v50  ;;  %17285 = vmatprep.mubr.bf16.mxu0 %v21070_v8  ;;  %v8569_v8 = vrot.slane %v21131_v57, 1  ;;  %v2680_v50 = vrot.slane %v20344_v61, 1  ;;  %v21431_v61 = vld [vmem:[#allocation2 + $0x90] sm:$0xff]  }
 0x1d3   : > { %18023 = vmatprep.subr.bf16.mxu1 %v19854_v49  ;;  %18013 = vmatprep.mubr.bf16.mxu1 %v21258_v20  ;;  %v8568_v3 = vrot.slane %v21394_v59, 1  ;;  %v24618_v56 = vshll.u32 %v21431_v61, 16 }
 0x1d4   : > { %v2681_v63 = vsel %vm2678_vm5, %v2679_v54, %v2680_v50  ;;  %v2683_v17 = vsel %vm2678_vm5, %v2680_v50, %v2682_v21  ;;  %v8573_v54 = vrot.slane %v21208_v12, 1  ;;  %v21433_v50 = vld [vmem:[#allocation2 + $0x98] sm:$0xff]   ;;  %v19866_v12 = vld [vmem:[%s24491_s3 + $0xc8] sm:$0xff]  }
 0x1d5   : > { %v8570_v57 = vsel %vm2678_vm5, %v8568_v3, %v8569_v8  ;;  %v24507_v3 = vrot.slane %v21431_v61, 3  ;;  %v19871_v21 = vld [vmem:[%s24491_s3 + $0xd8] sm:$0xff]   ;;  %v9559_v9 = vrot.slane %v24618_v56, 4 }
 0x1d6   : > { %18024 = vmatpush3.bf16.msra.mxu1 %v19854_v49  ;;  %v19865_v49 = vld [vmem:[%s24491_s3 + $0xc8] sm:$0xff]  }
 0x1d7   : > { %18025 = vmatprep.subr.bf16.mxu1 %v19855_v0 }
 0x1d9   : > { %17286 = vmatmul.mubr.bf16.gmra.mrb[80].mxu0 %v21066_v38  ;;  %18014 = vmatmul.mubr.bf16.gmra.mrb[64].mxu1 %v15324_v4  ;;  %v19863_v38 = vld [vmem:[%s24491_s3 + $0xb8] sm:$0xff]   ;;  %v19868_v4 = vld [vmem:[%s24491_s3 + $0xd0] sm:$0xff]  }
 0x1da   : > { %18026 = vmatpush3.bf16.msra.mxu1 %v19855_v0  ;;  %17305 = vmatprep.mubr.bf16.mxu0 %v2681_v63  ;;  %v2686_v0 = vrot.slane %v20347_v33, 1  ;;  %v9377_v63 = vrot.slane %v21433_v50, 3  ;;  %v20350_v33 = vld [vmem:[#allocation2 + $0x38] sm:$0xff]  }
 0x1db   : > { %18033 = vmatprep.mubr.bf16.mxu1 %v8570_v57  ;;  %18027 = vmatprep.subr.bf16.mxu1 %v19860_v39 }
 0x1dc   : > { %v2687_v57 = vsel %vm2678_vm5, %v2684_v34, %v2686_v0  ;;  %v21446_v31 = vsel %vm4197_vm3, %v24507_v3, %v9377_v63  ;;  %v21455_v19 = vsel %vm4197_vm3, %v9377_v63, %v9379_v51  ;;  %v19867_v34 = vld [vmem:[%s24491_s3 + $0xd0] sm:$0xff]   ;;  %v8577_v63 = vrot.slane %v21233_v24, 1 }
 0x1dd   : > { %24607 = vst [vmem:[#allocation16_spill] sm:$0xff] %v21446_v31  ;;  %24608 = vst [vmem:[#allocation17_spill] sm:$0xff] %v21455_v19  ;;  %v21463_v51 = vld [vmem:[#allocation2 + $0x10] sm:$0xff]  }
 0x1de   : > { %18028 = vmatpush3.bf16.msra.mxu1 %v19860_v39  ;;  %v8572_v39 = vsel %vm2678_vm5, %v8569_v8, %v8571_v37  ;;  %24609 = vst [vmem:[#allocation18_spill] sm:$0xff] %v21463_v51 }
 0x1df   : > { %18029 = vmatprep.subr.bf16.mxu1 %v19861_v15 }
 0x1e1   : > { %17306 = vmatmul.mubr.bf16.vlgmr.msra.gmra.mrb[52].mxu0 %v2683_v17  ;;  %v8575_v17 = vrot.slane %v21258_v20, 1  ;;  %v19869_v20 = vld [vmem:[%s24491_s3 + $0xd8] sm:$0xff]  }
 0x1e2   : > { %18030 = vmatpush3.bf16.msra.mxu1 %v19861_v15  ;;  %17309 = vmatprep.mubr.bf16.mxu0 %v2685_v58  ;;  %v8574_v15 = vsel %vm2678_vm5, %v8571_v37, %v8573_v54  ;;  %v4177_v37 = vld [vmem:[#allocation2 + $0x8] sm:$0x8] }
 0x1e3   : > { %17338 = vmatpush3.bf16.msra.mxu0 %v21319_v13  ;;  %18031 = vmatprep.subr.bf16.mxu1 %v19863_v38  ;;  %v2688_v13 = vrot.slane %v20348_v41, 1  ;;  %v8745_v41 = vshrl.u32 %v21394_v59, 16  ;;  %v8578_v24 = vsel %vm2678_vm5, %v8575_v17, %v8577_v63 }
 0x1e4   : > { %17339 = vmatprep.subr.bf16.mxu0 %v19865_v49 }
 0x1e5   : > { %v2689_v8 = vsel %vm2678_vm5, %v2686_v0, %v2688_v13  ;;  %v2692_v0 = vrot.slane %v20350_v33, 1  ;;  %v21489_v33 = vld [vmem:[#allocation2 + $0x38] sm:$0xff]   ;;  %v8747_v55 = vrot.slane %v8745_v41, 1 }
 0x1e6   : > { %18032 = vmatpush3.bf16.msra.mxu1 %v19863_v38  ;;  %v21460_v38 = vld [vmem:[#allocation2 + $0xc] sm:$0xf] }
 0x1e7   : > { %18045 = vmatprep.subr.bf16.mxu1 %v19864_v14  ;;  %17340 = vmatpush3.bf16.msra.mxu0 %v19865_v49  ;;  %v20349_v49 = vld [vmem:[#allocation2 + $0x30] sm:$0xff]  }
 0x1e8   : > { %17341 = vmatprep.subr.bf16.mxu0 %v19868_v4  ;;  %v2690_v58 = vrot.slane %v20349_v49, 1  ;;  %v21487_v49 = vld [vmem:[#allocation2 + $0x30] sm:$0xff]  }
 0x1e9   : > { %18034 = vmatmul.mubr.bf16.vlgmr.msra.gmra.mrb[52].mxu1 %v8572_v39  ;;  %17310 = vmatmul.mubr.bf16.gmra.mrb[56].mxu0 %v2687_v57  ;;  %v8748_v39 = vshll.u32 %v21394_v59, 16  ;;  %v21474_v57 = vld [vmem:[#allocation2 + $0x20] sm:$0xff]   ;;  %v4207_v46 = vrot.slane %v21487_v49, 3 }
 0x1ea   : > { %18046 = vmatpush3.bf16.msra.mxu1 %v19864_v14  ;;  %17313 = vmatprep.mubr.bf16.mxu0 %v2689_v8  ;;  %v8576_v14 = vsel %vm2678_vm5, %v8573_v54, %v8575_v17  ;;  %v2691_v54 = vsel %vm2678_vm5, %v2688_v13, %v2690_v58  ;;  %v19874_v59 = vld [vmem:[%s24491_s3 + $0xe0] sm:$0xff]   ;;  %v2693_v8 = vsel %vm2678_vm5, %v2690_v58, %v2692_v0  ;;  %v19877_v17 = vld [vmem:[%s24491_s3 + $0xe8] sm:$0xff]  }
 0x1eb   : > { %18047 = vmatprep.subr.bf16.mxu1 %v19866_v12  ;;  %18037 = vmatprep.mubr.bf16.mxu1 %v8574_v15  ;;  %v21477_v15 = vcombine.low %v4177_v37, %v21460_v38  ;;  %v21491_v37 = vld [vmem:[#allocation2 + $0x40] sm:$0xff]   ;;  %v8750_v3 = vrot.slane %v8748_v39, 2  ;;  %v21499_v58 = vld [vmem:[#allocation2 + $0x48] sm:$0xff]   ;;  %v4199_v39 = vrot.slane %v21463_v51, 3 }
 0x1ec   : > { %17342 = vmatpush3.bf16.msra.mxu0 %v19868_v4  ;;  %v21472_v4 = vld [vmem:[#allocation2 + $0x18] sm:$0xff]   ;;  %v20351_v13 = vld [vmem:[#allocation2 + $0x40] sm:$0xff]  }
 0x1ed   : > { %17343 = vmatprep.subr.bf16.mxu0 %v19871_v21  ;;  %v4198_v41 = vrot.slane %v21477_v15, 3  ;;  %v24637_v36 = vshrl.u32 %v21472_v4, 16  ;;  %v24638_v48 = vshll.u32 %v21472_v4, 16 }
 0x1ee   : > { %18048 = vmatpush3.bf16.msra.mxu1 %v19866_v12  ;;  %v21483_v12 = vld [vmem:[#allocation2 + $0x28] sm:$0xff]  }
 0x1ef   : > { %18049 = vmatprep.subr.bf16.mxu1 %v19867_v34  ;;  %v21513_v53 = vsel %vm4197_vm3, %v4198_v41, %v4199_v39  ;;  %v8751_v41 = vor.u32 %v8750_v3, %v8747_v55  ;;  %v4213_v55 = vrot.slane %v21499_v58, 3 }
 0x1f0   : > { %17344 = vmatpush3.bf16.msra.mxu0 %v19871_v21  ;;  %v2694_v21 = vrot.slane %v20351_v13, 1  ;;  %v4203_v13 = vrot.slane %v21474_v57, 3  ;;  %24610 = vst [vmem:[#allocation19_spill] sm:$0xff] %v21513_v53  ;;  %v21534_v53 = vld [vmem:[#allocation2 + $0x60] sm:$0xff]  }
 0x1f1   : > { %18038 = vmatmul.mubr.bf16.gmra.mrb[56].mxu1 %v8576_v14  ;;  %17314 = vmatmul.mubr.bf16.gmra.mrb[60].mxu0 %v2691_v54  ;;  %v21504_v54 = vld [vmem:[#allocation2 + $0x50] sm:$0xff]   ;;  %v8755_v3 = vsel %vm2989_vm2, %v8751_v41, %v21154_v26  ;;  %v24616_v26 = vrot.slane %v21493_v27, 1 }
 0x1f2   : > { %18041 = vmatprep.mubr.bf16.mxu1 %v8578_v24  ;;  %18050 = vmatpush3.bf16.msra.mxu1 %v19867_v34  ;;  %v19870_v34 = vld [vmem:[%s24491_s3 + $0xe0] sm:$0xff]   ;;  %v4201_v24 = vrot.slane %v21472_v4, 3 }
 0x1f3   : > { %17317 = vmatprep.mubr.bf16.mxu0 %v2693_v8  ;;  %18051 = vmatprep.subr.bf16.mxu1 %v19869_v20  ;;  %v4205_v8 = vrot.slane %v21483_v12, 3  ;;  %v2697_v41 = vsel %vm2678_vm5, %v2694_v21, %v24616_v26 }
 0x1f4   : > { %17345 = vmatprep.subr.bf16.mxu0 %v19874_v59  ;;  %v21516_v43 = vsel %vm4197_vm3, %v4199_v39, %v4201_v24  ;;  %v21519_v14 = vsel %vm4197_vm3, %v4201_v24, %v4203_v13  ;;  %v19872_v39 = vld [vmem:[%s24491_s3 + $0xe8] sm:$0xff]   ;;  %v4211_v24 = vrot.slane %v21491_v37, 3 }
 0x1f5   : > { %17346 = vmatpush3.bf16.msra.mxu0 %v19874_v59  ;;  %24611 = vst [vmem:[#allocation20_spill] sm:$0xff] %v21516_v43  ;;  %24612 = vst [vmem:[#allocation21_spill] sm:$0xff] %v21519_v14  ;;  %v21523_v25 = vsel %vm4197_vm3, %v4203_v13, %v4205_v8  ;;  %v2695_v59 = vsel %vm2678_vm5, %v2692_v0, %v2694_v21  ;;  %v21530_v43 = vld [vmem:[#allocation2 + $0x58] sm:$0xff]   ;;  %v2698_v14 = vrot.slane %v20353_v23, 1  ;;  %v19873_v0 = vld [vmem:[%s24491_s3 + $0xf0] sm:$0xff]   ;;  %v24617_v23 = vshrl.u32 %v21431_v61, 16 }
 0x1f6   : > { %18052 = vmatpush3.bf16.msra.mxu1 %v19869_v20  ;;  %17347 = vmatprep.subr.bf16.mxu0 %v19877_v17  ;;  %24613 = vst [vmem:[#allocation22_spill] sm:$0xff] %v21523_v25  ;;  %v4209_v20 = vrot.slane %v21489_v33, 3  ;;  %v20354_v13 = vld [vmem:[#allocation2 + $0x58] sm:$0xff]   ;;  %v21537_v45 = vsel %vm4197_vm3, %v4205_v8, %v4207_v46  ;;  %v19880_v8 = vld [vmem:[%s24491_s3 + $0xf0] sm:$0xff]   ;;  %v21573_v21 = vsel %vm4197_vm3, %v4211_v24, %v4213_v55 }
 0x1f7   : > { %18053 = vmatprep.subr.bf16.mxu1 %v19870_v34  ;;  %v2700_v25 = vrot.slane %v20354_v13, 1  ;;  %24614 = vst [vmem:[#allocation23_spill] sm:$0xff] %v21537_v45  ;;  %v21551_v13 = vld [vmem:[#allocation2 + $0x68] sm:$0xff]   ;;  %v20356_v45 = vld [vmem:[#allocation2 + $0x60] sm:$0xff]   ;;  %v9558_v31 = vrot.slane %v24617_v23, 3  ;;  %24620 = vst [vmem:[#allocation26_spill] sm:$0xff] %v21573_v21 }
 0x1f8   : > { %v2702_v19 = vrot.slane %v20356_v45, 1  ;;  %v4217_v45 = vrot.slane %v21530_v43, 3  ;;  %v21576_v23 = vld [vmem:[#allocation2 + $0x78] sm:$0xff]   ;;  %v19995_v21 = vld [vmem:[#allocation2 + $0x88] ss:$0 sps:$4 sm:$0x77]  }
 0x1f9   : > { %18042 = vmatmul.mubr.bf16.gmra.mrb[68].mxu1 %v8577_v63  ;;  %17318 = vmatmul.mubr.bf16.gmra.mrb[64].mxu0 %v2695_v59  ;;  %v21554_v63 = vsel %vm4197_vm3, %v4207_v46, %v4209_v20  ;;  %v4215_v59 = vrot.slane %v21504_v54, 3  ;;  %v21566_v46 = vld [vmem:[#allocation2 + $0x70] sm:$0xff]   ;;  %v21579_v26 = vor.u32 %v9559_v9, %v9558_v31  ;;  %v4219_v9 = vrot.slane %v21534_v53, 3 }
 0x1fa   : > { %24615 = vst [vmem:[#allocation24_spill] sm:$0xff] %v21554_v63  ;;  %18054 = vmatpush3.bf16.msra.mxu1 %v19870_v34  ;;  %18061 = vmatprep.mubr.bf16.mxu1 %v8755_v3  ;;  %v21570_v3 = vsel %vm4197_vm3, %v4209_v20, %v4211_v24  ;;  %v19875_v20 = vld [vmem:[%s24491_s3 + $0xf8] sm:$0xff]   ;;  %v21592_v24 = vld [vmem:[#allocation2 + $0x80] sm:$0xff]   ;;  %v4221_v31 = vrot.slane %v21551_v13, 3  ;;  %v2703_v35 = vsel %vm2678_vm5, %v2700_v25, %v2702_v19  ;;  %v4229_v10 = vrot.slane %v19995_v21, 3 }
 0x1fb   : > { %17321 = vmatprep.mubr.bf16.mxu0 %v2697_v41  ;;  %18055 = vmatprep.subr.bf16.mxu1 %v19872_v39  ;;  %24619 = vst [vmem:[#allocation25_spill] sm:$0xff] %v21570_v3  ;;  %v21581_v41 = vld [vmem:[#allocation2 + $0x78] sm:$0xff]   ;;  %v21584_v63 = vsel %vm4197_vm3, %v4213_v55, %v4215_v59  ;;  %v21595_v56 = vsel %vm4197_vm3, %v4215_v59, %v4217_v45  ;;  %v24623_v55 = vrot.slane %v21493_v27, 1  ;;  %v4223_v3 = vrot.slane %v21564_v22, 3  ;;  %v21608_v59 = vld [vmem:[%s24491_s3 + $0x100] sm:$0xff]  }
 0x1fc   : > { %17348 = vmatpush3.bf16.msra.mxu0 %v19877_v17  ;;  %24621 = vst [vmem:[#allocation27_spill] sm:$0xff] %v21584_v63  ;;  %v19884_v17 = vld [vmem:[%s24491_s3 + $0xf8] sm:$0xff]   ;;  %24622 = vst [vmem:[#allocation28_spill] sm:$0xff] %v21595_v56  ;;  %v2701_v63 = vsel %vm2678_vm5, %v2698_v14, %v2700_v25  ;;  %v21615_v27 = vsel %vm4197_vm3, %v4219_v9, %v4221_v31  ;;  %v19876_v56 = vld [vmem:[%s24491_s3 + $0x100] sm:$0xff]  }
 0x1fd   : > { %17349 = vmatprep.subr.bf16.mxu0 %v19880_v8  ;;  %v2699_v34 = vsel %vm2678_vm5, %v24623_v55, %v2698_v14  ;;  %24625 = vst [vmem:[#allocation30_spill] sm:$0xff] %v21615_v27  ;;  %v24626_v14 = vrot.slane %v21545_v1, 1  ;;  %v21623_v6 = vsel %vm4197_vm3, %v4221_v31, %v4223_v3  ;;  %v4225_v27 = vrot.slane %v21581_v41, 3 }
 0x1fe   : > { %18056 = vmatpush3.bf16.msra.mxu1 %v19872_v39  ;;  %v21612_v39 = vsel %vm4197_vm3, %v4217_v45, %v4219_v9  ;;  %24627 = vst [vmem:[#allocation31_spill] sm:$0xff] %v21623_v6  ;;  %v4510_v31 = vshrl.u32 %v21477_v15, 16  ;;  %v24633_v9 = vshrl.u32 %v21463_v51, 16 }
 0x1ff   : > { %18057 = vmatprep.subr.bf16.mxu1 %v19873_v0  ;;  %24624 = vst [vmem:[#allocation29_spill] sm:$0xff] %v21612_v39  ;;  %v2705_v55 = vsel %vm2678_vm5, %v2702_v19, %v24626_v14  ;;  %v8922_v19 = vld [vmem:[#allocation2 + $0x88] sm:$0xc]  ;;  %v21641_v45 = vsel %vm4197_vm3, %v4223_v3, %v4225_v27  ;;  %v4513_v14 = vshll.u32 %v21477_v15, 16  ;;  %v24636_v3 = vrot.slane %v21545_v1, 1 }
 0x200   : > { %17350 = vmatpush3.bf16.msra.mxu0 %v19880_v8  ;;  %v21629_v8 = vld [vmem:[#allocation2 + $0x8c] sm:$0xf]  ;;  %24628 = vst [vmem:[#allocation32_spill] sm:$0xff] %v21641_v45  ;;  %v24516_v1 = vshll.u32 %v21491_v37, 16 }
 0x201   : > { %17322 = vmatmul.mubr.bf16.gmra.mrb[68].mxu0 %v2699_v34  ;;  %17351 = vmatprep.subr.bf16.mxu0 %v19884_v17  ;;  %v4227_v34 = vrot.slane %v21592_v24, 3  ;;  %v4515_v6 = vrot.slane %v4513_v14, 4 }
 0x202   : > { %18058 = vmatpush3.bf16.msra.mxu1 %v19873_v0  ;;  %17325 = vmatprep.mubr.bf16.mxu0 %v2701_v63  ;;  %v19878_v0 = vld [vmem:[%s24491_s3 + $0x108] sm:$0xff]  }
 0x203   : > { %18059 = vmatprep.subr.bf16.mxu1 %v19875_v20  ;;  %v21646_v21 = vsel %vm4197_vm3, %v4225_v27, %v4227_v34  ;;  %v21649_v25 = vsel %vm4197_vm3, %v4227_v34, %v4229_v10  ;;  %v24631_v27 = vshrl.u32 %v21433_v50, 16  ;;  %v24632_v10 = vshll.u32 %v21433_v50, 16 }
 0x204   : > { %17352 = vmatpush3.bf16.msra.mxu0 %v19884_v17  ;;  %24629 = vst [vmem:[#allocation33_spill] sm:$0xff] %v21646_v21  ;;  %24630 = vst [vmem:[#allocation34_spill] sm:$0xff] %v21649_v25  ;;  %v4517_v25 = vrot.slane %v24633_v9, 3  ;;  %v24634_v21 = vshll.u32 %v21463_v51, 16  ;;  %v24635_v17 = vrot.slane %v21566_v46, 1  ;;  %v4521_v9 = vrot.slane %v24637_v36, 3 }
 0x205   : > { %17385 = vmatprep.subr.bf16.mxu0 %v21608_v59  ;;  %v9562_v63 = vrot.slane %v24631_v27, 3  ;;  %v9563_v34 = vrot.slane %v24632_v10, 4  ;;  %v4512_v27 = vrot.slane %v4510_v31, 3  ;;  %v24640_v31 = vshll.u32 %v21474_v57, 16 }
 0x206   : > { %18060 = vmatpush3.bf16.msra.mxu1 %v19875_v20  ;;  %v4518_v45 = vrot.slane %v24634_v21, 4  ;;  %v2707_v15 = vsel %vm2678_vm5, %v24636_v3, %v24635_v17  ;;  %v21673_v20 = vcombine.low %v8922_v19, %v21629_v8  ;;  %v4522_v21 = vrot.slane %v24638_v48, 4 }
 0x207   : > { %18073 = vmatprep.subr.bf16.mxu1 %v19876_v56  ;;  %v9564_v39 = vor.u32 %v9563_v34, %v9562_v63  ;;  %v4516_v51 = vor.u32 %v4515_v6, %v4512_v27  ;;  %v24639_v3 = vshrl.u32 %v21474_v57, 16  ;;  %v4526_v14 = vrot.slane %v24640_v31, 4 }
 0x208   : > { %v4519_v10 = vor.u32 %v4518_v45, %v4517_v25  ;;  %v24517_v63 = vshll.u32 %v21499_v58, 16  ;;  %v24646_v27 = vshll.u32 %v21487_v49, 16 }
 0x209   : > { %18062 = vmatmul.mubr.bf16.vlgmr.msra.gmra.mrb[52].mxu1 %v21212_v52  ;;  %17326 = vmatmul.mubr.bf16.gmra.mrb[72].mxu0 %v2703_v35  ;;  %v4525_v19 = vrot.slane %v24639_v3, 3  ;;  %v21687_v36 = vsel %vm4508_vm4, %v21579_v26, %v9564_v39  ;;  %v21691_v48 = vsel %vm4508_vm4, %v9564_v39, %v21375_v11  ;;  %v4523_v52 = vor.u32 %v4522_v21, %v4521_v9 }
 0x20a   : > { %18074 = vmatpush3.bf16.msra.mxu1 %v19876_v56  ;;  %17329 = vmatprep.mubr.bf16.mxu0 %v2705_v55  ;;  %v24641_v35 = vshrl.u32 %v21483_v12, 16  ;;  %v19879_v56 = vld [vmem:[%s24491_s3 + $0x110] sm:$0xff]   ;;  %v24519_v55 = vshrl.u32 %v21499_v58, 16  ;;  %v21701_v25 = vsel %vm4508_vm4, %v4516_v51, %v4519_v10  ;;  %v24643_v11 = vshll.u32 %v21483_v12, 16 }
 0x20b   : > { %18075 = vmatprep.subr.bf16.mxu1 %v19878_v0  ;;  %18065 = vmatprep.mubr.bf16.mxu1 %v21261_v60  ;;  %24642 = vst [vmem:[#allocation35_spill] sm:$0xff] %v21701_v25  ;;  %v4527_v45 = vor.u32 %v4526_v14, %v4525_v19  ;;  %v21707_v17 = vsel %vm4508_vm4, %v4519_v10, %v4523_v52  ;;  %v24645_v60 = vshrl.u32 %v21487_v49, 16  ;;  %v4534_v9 = vrot.slane %v24646_v27, 4  ;;  %v24728_v25 = vld [vmem:[#allocation7_spill] sm:$0xff] }
 0x20c   : > { %v4529_v6 = vrot.slane %v24641_v35, 3  ;;  %v4530_v39 = vrot.slane %v24643_v11, 4  ;;  %24644 = vst [vmem:[#allocation36_spill] sm:$0xff] %v21707_v17  ;;  %v24518_v21 = vshrl.u32 %v21504_v54, 16  ;;  %v24648_v19 = vshrl.u32 %v21489_v33, 16 }
 0x20d   : > { %v4533_v34 = vrot.slane %v24645_v60, 3  ;;  %v21715_v51 = vsel %vm4508_vm4, %v4523_v52, %v4527_v45  ;;  %v24520_v14 = vshll.u32 %v21504_v54, 16  ;;  %v24649_v35 = vshll.u32 %v21489_v33, 16  ;;  %v19882_v60 = vld [vmem:[%s24491_s3 + $0x118] sm:$0xff]  }
 0x20e   : > { %24647 = vst [vmem:[#allocation37_spill] sm:$0xff] %v21715_v51  ;;  %v4531_v3 = vor.u32 %v4530_v39, %v4529_v6  ;;  %v4537_v31 = vrot.slane %v24648_v19, 3  ;;  %18076 = vmatpush3.bf16.msra.mxu1 %v19878_v0  ;;  %v20419_v6 = vmov 0   ;;  %v24651_v0 = vshrl.u32 %v21491_v37, 16 }
 0x20f   : > { %v4535_v10 = vor.u32 %v4534_v9, %v4533_v34  ;;  %v4538_v11 = vrot.slane %v24649_v35, 4  ;;  %18077 = vmatprep.subr.bf16.mxu1 %v19879_v56  ;;  %280 = vst [vmem:[#allocation2 + $0xc8] sm:$0xf] %v20419_v6  ;;  %v4542_v34 = vrot.slane %v24516_v1, 4  ;;  %v4545_v35 = vrot.slane %v24519_v55, 3 }
 0x210   : > { %v21727_v52 = vsel %vm4508_vm4, %v4527_v45, %v4531_v3  ;;  %v4541_v39 = vrot.slane %v24651_v0, 3  ;;  %v4546_v27 = vrot.slane %v24517_v63, 4  ;;  %v24521_v45 = vshll.u32 %v21530_v43, 16 }
 0x211   : > { %24650 = vst [vmem:[#allocation38_spill] sm:$0xff] %v21727_v52  ;;  %v21734_v9 = vsel %vm4508_vm4, %v4531_v3, %v4535_v10  ;;  %v4539_v19 = vor.u32 %v4538_v11, %v4537_v31  ;;  %18066 = vmatmul.mubr.bf16.gmra.mrb[56].mxu1 %v21296_v62  ;;  %17330 = vmatmul.mubr.bf16.gmra.mrb[76].mxu0 %v2707_v15  ;;  %v24522_v6 = vshrl.u32 %v21534_v53, 16  ;;  %v24523_v0 = vshll.u32 %v21534_v53, 16 }
 0x212   : > { %24652 = vst [vmem:[#allocation39_spill] sm:$0xff] %v21734_v9  ;;  %v4543_v1 = vor.u32 %v4542_v34, %v4541_v39  ;;  %18069 = vmatprep.mubr.bf16.mxu1 %v21300_v2  ;;  %18078 = vmatpush3.bf16.msra.mxu1 %v19879_v56  ;;  %v24653_v3 = vrot.slane %v21576_v23, 1  ;;  %v24654_v31 = vrot.slane %v21566_v46, 1  ;;  %v4547_v62 = vor.u32 %v4546_v27, %v4545_v35  ;;  %v19883_v2 = vld [vmem:[%s24491_s3 + $0x120] sm:$0xff]   ;;  %v22127_v9 = vld [vmem:[#allocation2 + $0x8c] sm:$0xff]  }
 0x213   : > { %v21751_v63 = vsel %vm4508_vm4, %v4535_v10, %v4539_v19  ;;  %v4549_v15 = vrot.slane %v24518_v21, 3  ;;  %18079 = vmatprep.subr.bf16.mxu1 %v19882_v60  ;;  %v20359_v56 = vld [vmem:[#allocation2 + $0x80] ss:$0 sps:$4 sm:$0x11]   ;;  %v8980_v10 = vrot.slane %v21673_v20, 2  ;;  %v4550_v35 = vrot.slane %v24520_v14, 4 }
 0x214   : > { %v2709_v11 = vsel %vm2678_vm5, %v24654_v31, %v24653_v3  ;;  %24655 = vst [vmem:[#allocation40_spill] sm:$0xff] %v21751_v63  ;;  %v2710_v39 = vrot.slane %v20359_v56, 1  ;;  %v21760_v46 = vsel %vm4508_vm4, %v4539_v19, %v4543_v1  ;;  %v21764_v27 = vsel %vm4508_vm4, %v4543_v1, %v4547_v62 }
 0x215   : > { %17333 = vmatprep.mubr.bf16.mxu0 %v2709_v11  ;;  %24656 = vst [vmem:[#allocation41_spill] sm:$0xff] %v21760_v46  ;;  %24657 = vst [vmem:[#allocation42_spill] sm:$0xff] %v21764_v27  ;;  %v24658_v3 = vshrl.u32 %v21530_v43, 16  ;;  %v4554_v56 = vrot.slane %v24521_v45, 4  ;;  %v4557_v19 = vrot.slane %v24522_v6, 3  ;;  %v4558_v21 = vrot.slane %v24523_v0, 4 }
 0x216   : > { %18080 = vmatpush3.bf16.msra.mxu1 %v19882_v60  ;;  %v4551_v55 = vor.u32 %v4550_v35, %v4549_v15  ;;  %v24524_v14 = vshrl.u32 %v21564_v22, 16  ;;  %v24659_v6 = vrot.slane %v21576_v23, 1  ;;  %v24660_v60 = vrot.slane %v21431_v61, 2  ;;  %v21854_v27 = vld [vmem:[#allocation2 + $0xbc] sm:$0xff]  }
 0x217   : > { %v4553_v31 = vrot.slane %v24658_v3, 3  ;;  %18081 = vmatprep.subr.bf16.mxu1 %v19883_v2  ;;  %v19885_v3 = vld [vmem:[%s24491_s3 + $0x128] sm:$0xff]   ;;  %v4559_v34 = vor.u32 %v4558_v21, %v4557_v19  ;;  %v24525_v35 = vshrl.u32 %v21581_v41, 16  ;;  %v24664_v23 = vshrl.u32 %v21551_v13, 16  ;;  %v21816_v19 = vld [vmem:[#allocation2 + $0xb4] sm:$0x3] }
 0x218   : > { %v2711_v0 = vsel %vm2678_vm5, %v24659_v6, %v2710_v39  ;;  %v8982_v1 = vsel %vm3456_vm6, %v8980_v10, %v24660_v60  ;;  %v21790_v15 = vsel %vm4508_vm4, %v4547_v62, %v4551_v55  ;;  %v24526_v62 = vshll.u32 %v21581_v41, 16  ;;  %24674 = vst [vmem:[#allocation51_spill] sm:$0xff] %v21854_v27 }
 0x219   : > { %v4555_v11 = vor.u32 %v4554_v56, %v4553_v31  ;;  %24661 = vst [vmem:[#allocation43_spill] sm:$0xff] %v21790_v15  ;;  %18070 = vmatmul.mubr.bf16.gmra.mrb[72].mxu1 %v21287_v40  ;;  %17334 = vmatmul.mubr.bf16.gmra.mrb[80].mxu0 %v2711_v0  ;;  %v4561_v6 = vrot.slane %v24664_v23, 3  ;;  %v24665_v39 = vshll.u32 %v21551_v13, 16  ;;  %v24527_v0 = vshrl.u32 %v21592_v24, 16 }
 0x21a   : > { %18082 = vmatpush3.bf16.msra.mxu1 %v19883_v2  ;;  %17353 = vmatprep.mubr.bf16.mxu0 %v21108_v30  ;;  %v4565_v10 = vrot.slane %v24524_v14, 3  ;;  %v24666_v2 = vshll.u32 %v21564_v22, 16  ;;  %v8983_v56 = vrot.slane %v21433_v50, 2  ;;  %v4569_v23 = vrot.slane %v24525_v35, 3  ;;  %v21823_v14 = vld [vmem:[#allocation2 + $0xa4] sm:$0xff]  }
 0x21b   : > { %v21795_v45 = vsel %vm4508_vm4, %v4551_v55, %v4555_v11  ;;  %v21798_v21 = vsel %vm4508_vm4, %v4555_v11, %v4559_v34  ;;  %v4562_v40 = vrot.slane %v24665_v39, 4  ;;  %18083 = vmatprep.subr.bf16.mxu1 %v19885_v3  ;;  %v19886_v55 = vld [vmem:[%s24491_s3 + $0x130] sm:$0xff]   ;;  %18089 = vmatprep.mubr.bf16.mxu1 %v8982_v1  ;;  %v19888_v1 = vld [vmem:[%s24491_s3 + $0x138] sm:$0xff]   ;;  %24667 = vst [vmem:[#allocation46_spill] sm:$0xff] %v21823_v14  ;;  %v19893_v30 = vld [vmem:[%s24491_s3 + $0x108] sm:$0xff]  }
 0x21c   : > { %24662 = vst [vmem:[#allocation44_spill] sm:$0xff] %v21795_v45  ;;  %24663 = vst [vmem:[#allocation45_spill] sm:$0xff] %v21798_v21  ;;  %v4566_v31 = vrot.slane %v24666_v2, 4  ;;  %v9136_v39 = vld [vmem:[#allocation2 + $0xb4] sm:$0x7]  ;;  %v24673_v45 = vrot.slane %v21431_v61, 2 }
 0x21d   : > { %v4563_v11 = vor.u32 %v4562_v40, %v4561_v6  ;;  %v4570_v6 = vrot.slane %v24526_v62, 4  ;;  %v10553_v40 = vld [vmem:[#allocation2 + $0xa0] sm:$0xf]  ;;  %v10984_v35 = vld [vmem:[#allocation2 + $0x9c] sm:$0x8]  ;;  %v24672_v62 = vshll.u32 %v21592_v24, 16  ;;  %v21852_v15 = vcombine.low %v21345_v29, %v9136_v39 }
 0x21e   : > { %v4567_v60 = vor.u32 %v4566_v31, %v4565_v10  ;;  %18084 = vmatpush3.bf16.msra.mxu1 %v19885_v3  ;;  %v21830_v10 = vld [vmem:[#allocation2 + $0xac] sm:$0xff]   ;;  %v4573_v3 = vrot.slane %v24527_v0, 3  ;;  %v15356_v0 = vcombine.low %v21345_v29, %v21816_v19  ;;  %v19892_v29 = vld [vmem:[%s24491_s3 + $0x140] sm:$0xff]   ;;  %v11160_v19 = vld [vmem:[#allocation2 + $0xc8] sm:$0xf] }
 0x21f   : > { %v21826_v2 = vsel %vm4508_vm4, %v4559_v34, %v4563_v11  ;;  %18085 = vmatprep.subr.bf16.mxu1 %v19886_v55  ;;  %24669 = vst [vmem:[#allocation48_spill] sm:$0xff] %v21830_v10  ;;  %v21840_v34 = vld [vmem:[#allocation2 + $0xb4] sm:$0xff]   ;;  %v4574_v21 = vrot.slane %v24672_v62, 4 }
 0x220   : > { %24668 = vst [vmem:[#allocation47_spill] sm:$0xff] %v21826_v2  ;;  %v21833_v31 = vsel %vm4508_vm4, %v4563_v11, %v4567_v60  ;;  %24671 = vst [vmem:[#allocation50_spill] sm:$0xff] %v21840_v34  ;;  %v4571_v2 = vor.u32 %v4570_v6, %v4569_v23  ;;  %v8984_v11 = vsel %vm3456_vm6, %v24673_v45, %v8983_v56  ;;  %v11005_v45 = vrot.slane %v21823_v14, 3 }
 0x221   : > { %24670 = vst [vmem:[#allocation49_spill] sm:$0xff] %v21833_v31  ;;  %17354 = vmatmul.mubr.bf16.vlgmr.msra.gmra.mrb[52].mxu0 %v21115_v28  ;;  %v21860_v28 = vor.u32 %v4574_v21, %v4573_v3  ;;  %v15461_v23 = vcombine.low %v10984_v35, %v10553_v40  ;;  %v19898_v35 = vld [vmem:[%s24491_s3 + $0x110] sm:$0xff]   ;;  %v10562_v21 = vld [vmem:[#allocation2 + $0xc4] sm:$0xf]  ;;  %v11007_v6 = vrot.slane %v21830_v10, 3  ;;  %v11009_v40 = vrot.slane %v21840_v34, 3 }
 0x222   : > { %18086 = vmatpush3.bf16.msra.mxu1 %v19886_v55  ;;  %17357 = vmatprep.mubr.bf16.mxu0 %v21119_v32  ;;  %v21858_v62 = vsel %vm4508_vm4, %v4567_v60, %v4571_v2  ;;  %v24529_v55 = vrot.slane %v21854_v27, 3  ;;  %v19894_v60 = vld [vmem:[%s24491_s3 + $0x148] sm:$0xff]   ;;  %v24681_v32 = vrot.slane %v21321_v44, 2 }
 0x223   : > { %24675 = vst [vmem:[#allocation52_spill] sm:$0xff] %v21858_v62  ;;  %24676 = vst [vmem:[#allocation53_spill] sm:$0xff] %v21860_v28  ;;  %17386 = vmatpush3.bf16.msra.mxu0 %v21608_v59  ;;  %18087 = vmatprep.subr.bf16.mxu1 %v19888_v1  ;;  %v21876_v59 = vsel %vm4508_vm4, %v4571_v2, %v21860_v28  ;;  %v11004_v39 = vrot.slane %v15461_v23, 3  ;;  %v21888_v2 = vsel %vm4197_vm3, %v11005_v45, %v11007_v6  ;;  %v20360_v3 = vld [vmem:[#allocation2 + $0xa8] sm:$0xff]  }
 0x224   : > { %17387 = vmatprep.subr.bf16.mxu0 %v19893_v30  ;;  %24677 = vst [vmem:[#allocation54_spill] sm:$0xff] %v21876_v59  ;;  %24679 = vst [vmem:[#allocation56_spill] sm:$0xff] %v21888_v2  ;;  %v21891_v28 = vsel %vm4197_vm3, %v11007_v6, %v11009_v40  ;;  %v11181_v59 = vshrl.u32 %v15461_v23, 16  ;;  %v11184_v6 = vshll.u32 %v15461_v23, 16  ;;  %v24683_v2 = vshrl.u32 %v21823_v14, 16 }
 0x225   : > { %v21885_v31 = vsel %vm4197_vm3, %v11004_v39, %v11005_v45  ;;  %24680 = vst [vmem:[#allocation57_spill] sm:$0xff] %v21891_v28  ;;  %v8987_v39 = vrot.slane %v20360_v3, 2  ;;  %v21902_v45 = vsel %vm4197_vm3, %v11009_v40, %v24529_v55  ;;  %v15470_v62 = vcombine.low %v10562_v21, %v11160_v19 }
 0x226   : > { %18088 = vmatpush3.bf16.msra.mxu1 %v19888_v1  ;;  %24678 = vst [vmem:[#allocation55_spill] sm:$0xff] %v21885_v31  ;;  %v8986_v1 = vsel %vm3456_vm6, %v8983_v56, %v24681_v32  ;;  %24682 = vst [vmem:[#allocation58_spill] sm:$0xff] %v21902_v45  ;;  %v11188_v31 = vrot.slane %v24683_v2, 3  ;;  %v21908_v56 = vrot.slane %v15356_v0, 2  ;;  %v19903_v32 = vld [vmem:[%s24491_s3 + $0x118] sm:$0xff]   ;;  %v11186_v40 = vrot.slane %v11184_v6, 4 }
 0x227   : > { %18101 = vmatprep.subr.bf16.mxu1 %v19892_v29  ;;  %17388 = vmatpush3.bf16.msra.mxu0 %v19893_v30  ;;  %v11183_v30 = vrot.slane %v11181_v59, 3  ;;  %v24684_v23 = vshll.u32 %v21823_v14, 16  ;;  %v24685_v55 = vshrl.u32 %v21830_v10, 16  ;;  %v24688_v21 = vshll.u32 %v21840_v34, 16 }
 0x228   : > { %17389 = vmatprep.subr.bf16.mxu0 %v19898_v35  ;;  %v24689_v6 = vshrl.u32 %v21854_v27, 16 }
 0x229   : > { %18090 = vmatmul.mubr.bf16.vlgmr.msra.gmra.mrb[52].mxu1 %v8984_v11  ;;  %17358 = vmatmul.mubr.bf16.gmra.mrb[56].mxu0 %v21141_v42  ;;  %v11189_v3 = vrot.slane %v24684_v23, 4  ;;  %v11192_v59 = vrot.slane %v24685_v55, 3  ;;  %v24686_v11 = vshll.u32 %v21830_v10, 16  ;;  %v24687_v42 = vshrl.u32 %v21840_v34, 16 }
 0x22a   : > { %18102 = vmatpush3.bf16.msra.mxu1 %v19892_v29  ;;  %17361 = vmatprep.mubr.bf16.mxu0 %v21162_v18  ;;  %v11197_v2 = vrot.slane %v24688_v21, 4  ;;  %v11200_v28 = vrot.slane %v24689_v6, 3  ;;  %v19897_v29 = vld [vmem:[%s24491_s3 + $0x150] sm:$0xff]   ;;  %v9157_v18 = vshrl.u32 %v21673_v20, 16  ;;  %v9160_v55 = vshll.u32 %v21673_v20, 16 }
 0x22b   : > { %v11193_v19 = vrot.slane %v24686_v11, 4  ;;  %v11196_v0 = vrot.slane %v24687_v42, 3  ;;  %18103 = vmatprep.subr.bf16.mxu1 %v19894_v60  ;;  %18093 = vmatprep.mubr.bf16.mxu1 %v8986_v1  ;;  %v11187_v23 = vor.u32 %v11186_v40, %v11183_v30  ;;  %v11190_v11 = vor.u32 %v11189_v3, %v11188_v31  ;;  %v19915_v6 = vld [vmem:[#allocation2 + $0x80] ss:$0 sps:$4 sm:$0x33]   ;;  %v19901_v3 = vld [vmem:[%s24491_s3 + $0x158] sm:$0xff]  }
 0x22c   : > { %17390 = vmatpush3.bf16.msra.mxu0 %v19898_v35  ;;  %v24690_v21 = vshll.u32 %v21854_v27, 16  ;;  %v11205_v10 = vshrl.u32 %v15470_v62, 16  ;;  %v8990_v1 = vsel %vm3456_vm6, %v8987_v39, %v21908_v56  ;;  %v24692_v20 = vrot.slane %v21321_v44, 2 }
 0x22d   : > { %v11194_v42 = vor.u32 %v11193_v19, %v11192_v59  ;;  %v11198_v45 = vor.u32 %v11197_v2, %v11196_v0  ;;  %17391 = vmatprep.subr.bf16.mxu0 %v19903_v32  ;;  %v21936_v46 = vsel %vm4508_vm4, %v11187_v23, %v11190_v11  ;;  %v9159_v59 = vrot.slane %v9157_v18, 2 }
 0x22e   : > { %v11201_v34 = vrot.slane %v24690_v21, 4  ;;  %24691 = vst [vmem:[#allocation59_spill] sm:$0xff] %v21936_v46  ;;  %18104 = vmatpush3.bf16.msra.mxu1 %v19894_v60  ;;  %v8988_v31 = vsel %vm3456_vm6, %v24692_v20, %v8987_v39  ;;  %v9162_v19 = vrot.slane %v9160_v55, 3  ;;  %v11207_v0 = vrot.slane %v11205_v10, 3 }
 0x22f   : > { %v21942_v35 = vsel %vm4508_vm4, %v11190_v11, %v11194_v42  ;;  %v21945_v30 = vsel %vm4508_vm4, %v11194_v42, %v11198_v45  ;;  %18105 = vmatprep.subr.bf16.mxu1 %v19897_v29  ;;  %v11208_v60 = vshll.u32 %v15470_v62, 16  ;;  %v24695_v2 = vshrl.u32 %v21431_v61, 16 }
 0x230   : > { %24693 = vst [vmem:[#allocation60_spill] sm:$0xff] %v21942_v35  ;;  %24694 = vst [vmem:[#allocation61_spill] sm:$0xff] %v21945_v30  ;;  %v11202_v40 = vor.u32 %v11201_v34, %v11200_v28  ;;  %v24696_v39 = vshll.u32 %v21431_v61, 16  ;;  %17392 = vmatpush3.bf16.msra.mxu0 %v19903_v32  ;;  %v19906_v34 = vld [vmem:[%s24491_s3 + $0x120] sm:$0xff]   ;;  %v9201_v28 = vshrl.u32 %v21852_v15, 16  ;;  %v9204_v10 = vshll.u32 %v21852_v15, 16 }
 0x231   : > { %v9167_v23 = vrot.slane %v24695_v2, 2  ;;  %18094 = vmatmul.mubr.bf16.gmra.mrb[56].mxu1 %v8988_v31  ;;  %17362 = vmatmul.mubr.bf16.gmra.mrb[60].mxu0 %v21175_v16  ;;  %v3059_v62 = vshrl.u32 %v19915_v6, 16  ;;  %v3062_v18 = vshll.u32 %v19915_v6, 16  ;;  %v11210_v55 = vrot.slane %v11208_v60, 4  ;;  %v19909_v32 = vld [vmem:[%s24491_s3 + $0x128] sm:$0xff]  }
 0x232   : > { %v9170_v11 = vrot.slane %v24696_v39, 3  ;;  %v21959_v42 = vsel %vm4508_vm4, %v11198_v45, %v11202_v40  ;;  %18097 = vmatprep.mubr.bf16.mxu1 %v8990_v1  ;;  %18106 = vmatpush3.bf16.msra.mxu1 %v19897_v29  ;;  %v19902_v45 = vld [vmem:[%s24491_s3 + $0x160] sm:$0xff]   ;;  %v24698_v16 = vshrl.u32 %v21321_v44, 16  ;;  %v24699_v20 = vshll.u32 %v21321_v44, 16  ;;  %v9354_v31 = vld [vmem:[#allocation2 + $0x88] sm:$0x8] }
 0x233   : > { %24697 = vst [vmem:[#allocation62_spill] sm:$0xff] %v21959_v42  ;;  %17365 = vmatprep.mubr.bf16.mxu0 %v21200_v5  ;;  %18107 = vmatprep.subr.bf16.mxu1 %v19901_v3  ;;  %v24700_v1 = vshrl.u32 %v21338_v7, 16  ;;  %v21976_v60 = vor.u32 %v11210_v55, %v11207_v0  ;;  %v9163_v2 = vor.u32 %v9162_v19, %v9159_v59  ;;  %v24702_v5 = vshll.u32 %v21338_v7, 16  ;;  %v3324_v35 = vld [vmem:[#allocation2 + $0x8] sm:$0xc] }
 0x234   : > { %v9185_v21 = vrot.slane %v24698_v16, 2  ;;  %v9188_v6 = vrot.slane %v24699_v20, 3  ;;  %v9171_v39 = vor.u32 %v9170_v11, %v9167_v23  ;;  %17393 = vmatprep.subr.bf16.mxu0 %v19906_v34  ;;  %v9203_v30 = vrot.slane %v9201_v28, 2  ;;  %v19904_v11 = vld [vmem:[%s24491_s3 + $0x168] sm:$0xff]   ;;  %v22021_v20 = vld [vmem:[#allocation2 + $0x3c] sm:$0xff]  }
 0x235   : > { %v9194_v29 = vrot.slane %v24700_v1, 2  ;;  %24701 = vst [vmem:[#allocation63_spill] sm:$0xff] %v21976_v60  ;;  %v9197_v42 = vrot.slane %v24702_v5, 3  ;;  %17394 = vmatpush3.bf16.msra.mxu0 %v19906_v34  ;;  %v9206_v46 = vrot.slane %v9204_v10, 3  ;;  %v3061_v16 = vrot.slane %v3059_v62, 1  ;;  %v21997_v28 = vld [vmem:[#allocation2 + $0x24] sm:$0xff]  }
 0x236   : > { %v3064_v27 = vrot.slane %v3062_v18, 2  ;;  %v21982_v44 = vsel %vm4508_vm4, %v11202_v40, %v21976_v60  ;;  %18108 = vmatpush3.bf16.msra.mxu1 %v19901_v3  ;;  %v24704_v0 = vshrl.u32 %v21433_v50, 16  ;;  %v24705_v59 = vshll.u32 %v21433_v50, 16  ;;  %17395 = vmatprep.subr.bf16.mxu0 %v19909_v32 }
 0x237   : > { %24703 = vst [vmem:[#allocation64_spill] sm:$0xff] %v21982_v44  ;;  %v21989_v23 = vcombine.low %v9354_v31, %v21629_v8  ;;  %18109 = vmatprep.subr.bf16.mxu1 %v19902_v45  ;;  %v21995_v34 = vcombine.low %v3324_v35, %v21460_v38  ;;  %v9189_v40 = vor.u32 %v9188_v6, %v9185_v21  ;;  %v19912_v8 = vld [vmem:[%s24491_s3 + $0x130] sm:$0xff]   ;;  %v24706_v38 = vld [vmem:[#allocation18_spill] sm:$0xff]  ;;  %v22009_v21 = vld [vmem:[#allocation2 + $0x1c] sm:$0xff]   ;;  %v5772_v44 = vrot.slane %v21997_v28, 1 }
 0x238   : > { %v9176_v55 = vrot.slane %v24704_v0, 2  ;;  %v9179_v19 = vrot.slane %v24705_v59, 3  ;;  %v9198_v3 = vor.u32 %v9197_v42, %v9194_v29  ;;  %v9172_v50 = vsel %vm3767_vm7, %v9163_v2, %v9171_v39  ;;  %24708 = vst [vmem:[#allocation18_spill] sm:$0xff] %v22021_v20  ;;  %v19907_v6 = vld [vmem:[%s24491_s3 + $0x178] sm:$0xff]   ;;  %v24709_v31 = vld [vmem:[#allocation9_spill] sm:$0xff]  ;;  %v22047_v0 = vld [vmem:[#allocation2 + $0x4c] sm:$0xff]  }
 0x239   : > { %18098 = vmatmul.mubr.bf16.gmra.mrb[76].mxu1 %v21908_v56  ;;  %17366 = vmatmul.mubr.bf16.gmra.mrb[64].mxu0 %v21218_v47  ;;  %v22005_v10 = vor.u32 %v9206_v46, %v9203_v30  ;;  %v3065_v62 = vor.u32 %v3064_v27, %v3061_v16  ;;  %v24536_v35 = vrot.slane %v24706_v38, 2  ;;  %v9374_v18 = vrot.slane %v21989_v23, 3  ;;  %v24707_v56 = vld [vmem:[#allocation4_spill] sm:$0xff]  ;;  %v19905_v47 = vld [vmem:[%s24491_s3 + $0x170] sm:$0xff]   ;;  %v22045_v16 = vld [vmem:[#allocation2 + $0x44] sm:$0xff]   ;;  %24711 = vst [vmem:[#allocation9_spill] sm:$0xff] %v22047_v0 }
 0x23a   : > { %18110 = vmatpush3.bf16.msra.mxu1 %v19902_v45  ;;  %18117 = vmatprep.mubr.bf16.mxu1 %v9172_v50  ;;  %v9180_v42 = vor.u32 %v9179_v19, %v9176_v55  ;;  %v3457_v46 = vrot.slane %v21995_v34, 2  ;;  %v22016_v30 = vld [vmem:[#allocation2 + $0x2c] sm:$0xff]   ;;  %v24537_v27 = vshrl.u32 %v21997_v28, 16  ;;  %v22019_v45 = vld [vmem:[#allocation2 + $0x34] sm:$0xff]   ;;  %v22027_v1 = vsel %vm3767_vm7, %v9189_v40, %v9198_v3  ;;  %24710 = vst [vmem:[#allocation4_spill] sm:$0xff] %v22045_v16 }
 0x23b   : > { %17369 = vmatprep.mubr.bf16.mxu0 %v24707_v56  ;;  %18111 = vmatprep.subr.bf16.mxu1 %v19904_v11  ;;  %v22031_v29 = vsel %vm3767_vm7, %v9198_v3, %v22005_v10  ;;  %v19916_v2 = vld [vmem:[%s24491_s3 + $0x138] sm:$0xff]   ;;  %v24712_v19 = vrot.slane %v21431_v61, 3  ;;  %v22069_v61 = vld [vmem:[#allocation2 + $0x64] sm:$0xff]   ;;  %v5774_v14 = vrot.slane %v22016_v30, 1 }
 0x23c   : > { %17396 = vmatpush3.bf16.msra.mxu0 %v19909_v32  ;;  %v22035_v32 = vsel %vm2989_vm2, %v24709_v31, %v3065_v62  ;;  %v22043_v5 = vsel %vm3456_vm6, %v3457_v46, %v24536_v35  ;;  %v22050_v55 = vsel %vm3767_vm7, %v9171_v39, %v9180_v42  ;;  %v22053_v59 = vsel %vm3767_vm7, %v9180_v42, %v9189_v40  ;;  %v5229_v50 = vld [vmem:[#allocation2 + $0x18] sm:$0xf]  ;;  %v22063_v46 = vld [vmem:[#allocation2 + $0x5c] sm:$0xff]   ;;  %v5749_v39 = vld [vmem:[#allocation2 + $0x14] sm:$0xe] }
 0x23d   : > { %17397 = vmatprep.subr.bf16.mxu0 %v19912_v8  ;;  %v22058_v3 = vsel %vm4197_vm3, %v9374_v18, %v24712_v19  ;;  %v22061_v56 = vld [vmem:[#allocation2 + $0x54] sm:$0xff]   ;;  %24714 = vst [vmem:[#allocation66_spill] sm:$0xff] %v22063_v46  ;;  %24715 = vst [vmem:[#allocation67_spill] sm:$0xff] %v22069_v61  ;;  %v22071_v18 = vld [vmem:[#allocation2 + $0x6c] sm:$0xff]   ;;  %v22075_v31 = vrot.slane %v24537_v27, 1  ;;  %v22119_v42 = vsel %vm2678_vm5, %v5772_v44, %v5774_v14 }
 0x23e   : > { %18112 = vmatpush3.bf16.msra.mxu1 %v19904_v11  ;;  %24713 = vst [vmem:[#allocation65_spill] sm:$0xff] %v22061_v56  ;;  %24716 = vst [vmem:[#allocation68_spill] sm:$0xff] %v22071_v18  ;;  %v24717_v11 = vld [vmem:[#allocation5_spill] sm:$0xff]  ;;  %v22090_v35 = vld [vmem:[#allocation2 + $0x74] sm:$0xff]   ;;  %v5784_v17 = vrot.slane %v22061_v56, 1 }
 0x23f   : > { %18113 = vmatprep.subr.bf16.mxu1 %v19905_v47  ;;  %v22084_v40 = vld [vmem:[%s24491_s3 + $0x140] sm:$0xff]   ;;  %24718 = vst [vmem:[#allocation5_spill] sm:$0xff] %v22090_v35  ;;  %v24719_v62 = vld [vmem:[#allocation6_spill] sm:$0xff]  ;;  %24723 = vst [vmem:[#allocation71_spill] sm:$0xff] %v22119_v42 }
 0x240   : > { %17398 = vmatpush3.bf16.msra.mxu0 %v19912_v8  ;;  %v19908_v27 = vld [vmem:[%s24491_s3 + $0x180] sm:$0xff]   ;;  %v5780_v8 = vrot.slane %v22045_v16, 1  ;;  %v19910_v19 = vld [vmem:[%s24491_s3 + $0x188] sm:$0xff]  }
 0x241   : > { %17370 = vmatmul.mubr.bf16.gmra.mrb[68].mxu0 %v24717_v11  ;;  %17399 = vmatprep.subr.bf16.mxu0 %v19916_v2  ;;  %v5778_v11 = vrot.slane %v22021_v20, 1 }
 0x242   : > { %18114 = vmatpush3.bf16.msra.mxu1 %v19905_v47  ;;  %17373 = vmatprep.mubr.bf16.mxu0 %v24719_v62  ;;  %v15207_v47 = vcombine.low %v5749_v39, %v5229_v50  ;;  %v5770_v62 = vrot.slane %v22009_v21, 1  ;;  %v5776_v50 = vrot.slane %v22019_v45, 1  ;;  %v22111_v39 = vld [vmem:[#allocation2 + $0x7c] sm:$0xff]  }
 0x243   : > { %18115 = vmatprep.subr.bf16.mxu1 %v19907_v6  ;;  %24720 = vst [vmem:[#allocation6_spill] sm:$0xff] %v22111_v39  ;;  %v22140_v51 = vsel %vm2678_vm5, %v5778_v11, %v5780_v8 }
 0x244   : > { %17400 = vmatpush3.bf16.msra.mxu0 %v19916_v2  ;;  %v5769_v63 = vrot.slane %v15207_v47, 1  ;;  %v22113_v2 = vld [vmem:[#allocation2 + $0x84] sm:$0xff]   ;;  %v22116_v60 = vsel %vm2678_vm5, %v5770_v62, %v5772_v44  ;;  %v5782_v44 = vrot.slane %v22047_v0, 1  ;;  %v22137_v42 = vsel %vm2678_vm5, %v5776_v50, %v5778_v11  ;;  %24727 = vst [vmem:[#allocation75_spill] sm:$0xff] %v22140_v51 }
 0x245   : > { %17433 = vmatprep.subr.bf16.mxu0 %v22084_v40  ;;  %24721 = vst [vmem:[#allocation69_spill] sm:$0xff] %v22113_v2  ;;  %24722 = vst [vmem:[#allocation70_spill] sm:$0xff] %v22116_v60  ;;  %v22133_v60 = vsel %vm2678_vm5, %v5774_v14, %v5776_v50  ;;  %v5788_v14 = vrot.slane %v22069_v61, 1  ;;  %v5792_v50 = vrot.slane %v22090_v35, 1 }
 0x246   : > { %18116 = vmatpush3.bf16.msra.mxu1 %v19907_v6  ;;  %v22130_v52 = vsel %vm2678_vm5, %v5769_v63, %v5770_v62  ;;  %24725 = vst [vmem:[#allocation73_spill] sm:$0xff] %v22133_v60  ;;  %24726 = vst [vmem:[#allocation74_spill] sm:$0xff] %v22137_v42  ;;  %v5786_v6 = vrot.slane %v22063_v46, 1  ;;  %v22147_v63 = vsel %vm2678_vm5, %v5780_v8, %v5782_v44  ;;  %v5790_v62 = vrot.slane %v22071_v18, 1  ;;  %v24732_v8 = vld [vmem:[#allocation8_spill] sm:$0xff] }
 0x247   : > { %18129 = vmatprep.subr.bf16.mxu1 %v19908_v27  ;;  %24724 = vst [vmem:[#allocation72_spill] sm:$0xff] %v22130_v52  ;;  %24729 = vst [vmem:[#allocation7_spill] sm:$0xff] %v22147_v63  ;;  %v22154_v11 = vsel %vm2678_vm5, %v5782_v44, %v5784_v17  ;;  %v19911_v63 = vld [vmem:[%s24491_s3 + $0x190] sm:$0xff]   ;;  %v24541_v44 = vrot.slane %v22127_v9, 1  ;;  %v6083_v42 = vshll.u32 %v15207_v47, 16  ;;  %v24745_v52 = vld [vmem:[#allocation10_spill] sm:$0xff] }
 0x248   : > { %24730 = vst [vmem:[#allocation76_spill] sm:$0xff] %v22154_v11  ;;  %v22157_v51 = vsel %vm2678_vm5, %v5784_v17, %v5786_v6  ;;  %v22172_v17 = vsel %vm2678_vm5, %v5790_v62, %v5792_v50  ;;  %v6080_v11 = vshrl.u32 %v15207_v47, 16 }
 0x249   : > { %18118 = vmatmul.mubr.bf16.vlgmr.msra.gmra.mrb[52].mxu1 %v22050_v55  ;;  %17374 = vmatmul.mubr.bf16.gmra.mrb[72].mxu0 %v24728_v25  ;;  %24731 = vst [vmem:[#allocation77_spill] sm:$0xff] %v22157_v51  ;;  %v5794_v25 = vrot.slane %v22111_v39, 1  ;;  %v5796_v55 = vrot.slane %v22113_v2, 1  ;;  %24735 = vst [vmem:[#allocation79_spill] sm:$0xff] %v22172_v17 }
 0x24a   : > { %18121 = vmatprep.mubr.bf16.mxu1 %v22053_v59  ;;  %18130 = vmatpush3.bf16.msra.mxu1 %v19908_v27  ;;  %v22166_v59 = vsel %vm2678_vm5, %v5786_v6, %v5788_v14  ;;  %v22169_v27 = vsel %vm2678_vm5, %v5788_v14, %v5790_v62  ;;  %v24739_v14 = vshrl.u32 %v22009_v21, 16  ;;  %v24740_v62 = vshll.u32 %v22009_v21, 16 }
 0x24b   : > { %17377 = vmatprep.mubr.bf16.mxu0 %v24732_v8  ;;  %18131 = vmatprep.subr.bf16.mxu1 %v19910_v19  ;;  %24733 = vst [vmem:[#allocation8_spill] sm:$0xff] %v22166_v59  ;;  %24734 = vst [vmem:[#allocation78_spill] sm:$0xff] %v22169_v27  ;;  %v22176_v51 = vsel %vm2678_vm5, %v5792_v50, %v5794_v25  ;;  %v22179_v8 = vsel %vm2678_vm5, %v5794_v25, %v5796_v55  ;;  %v24741_v59 = vshll.u32 %v21997_v28, 16 }
 0x24c   : > { %24736 = vst [vmem:[#allocation80_spill] sm:$0xff] %v22176_v51  ;;  %24737 = vst [vmem:[#allocation81_spill] sm:$0xff] %v22179_v8  ;;  %v22184_v6 = vsel %vm2678_vm5, %v5796_v55, %v24541_v44  ;;  %v6087_v27 = vrot.slane %v24739_v14, 1  ;;  %v6088_v17 = vrot.slane %v24740_v62, 2  ;;  %v6082_v47 = vrot.slane %v6080_v11, 1  ;;  %v19913_v55 = vld [vmem:[%s24491_s3 + $0x198] sm:$0xff]  }
 0x24d   : > { %24738 = vst [vmem:[#allocation82_spill] sm:$0xff] %v22184_v6  ;;  %v6092_v50 = vrot.slane %v24741_v59, 2  ;;  %v6085_v51 = vrot.slane %v6083_v42, 2  ;;  %v24742_v62 = vshrl.u32 %v22016_v30, 16  ;;  %v24743_v59 = vshll.u32 %v22016_v30, 16 }
 0x24e   : > { %18132 = vmatpush3.bf16.msra.mxu1 %v19910_v19  ;;  %v6089_v44 = vor.u32 %v6088_v17, %v6087_v27  ;;  %v24744_v42 = vshrl.u32 %v22019_v45, 16  ;;  %v24747_v17 = vshll.u32 %v22019_v45, 16  ;;  %v24757_v8 = vshrl.u32 %v22061_v56, 16 }
 0x24f   : > { %18133 = vmatprep.subr.bf16.mxu1 %v19911_v63  ;;  %v6093_v14 = vor.u32 %v6092_v50, %v22075_v31  ;;  %v6095_v6 = vrot.slane %v24742_v62, 1  ;;  %v6096_v19 = vrot.slane %v24743_v59, 2  ;;  %v6086_v11 = vor.u32 %v6085_v51, %v6082_v47 }
 0x250   : > { %v6099_v60 = vrot.slane %v24744_v42, 1  ;;  %v6100_v50 = vrot.slane %v24747_v17, 2  ;;  %v24748_v62 = vshrl.u32 %v22021_v20, 16  ;;  %v24751_v42 = vshrl.u32 %v22045_v16, 16  ;;  %v19914_v17 = vld [vmem:[%s24491_s3 + $0x1a0] sm:$0xff]  }
 0x251   : > { %18122 = vmatmul.mubr.bf16.gmra.mrb[56].mxu1 %v22027_v1  ;;  %17378 = vmatmul.mubr.bf16.gmra.mrb[76].mxu0 %v24745_v52  ;;  %v22209_v31 = vsel %vm2989_vm2, %v6089_v44, %v6093_v14  ;;  %v6097_v27 = vor.u32 %v6096_v19, %v6095_v6  ;;  %v22218_v47 = vsel %vm2989_vm2, %v6086_v11, %v6089_v44  ;;  %v24750_v52 = vshll.u32 %v22021_v20, 16  ;;  %v24752_v19 = vld [vmem:[#allocation11_spill] sm:$0xff] }
 0x252   : > { %24746 = vst [vmem:[#allocation10_spill] sm:$0xff] %v22209_v31  ;;  %v6103_v59 = vrot.slane %v24748_v62, 1  ;;  %18125 = vmatprep.mubr.bf16.mxu1 %v22031_v29  ;;  %18134 = vmatpush3.bf16.msra.mxu1 %v19911_v63  ;;  %24749 = vst [vmem:[#allocation83_spill] sm:$0xff] %v22218_v47  ;;  %v6107_v6 = vrot.slane %v24751_v42, 1  ;;  %v6101_v63 = vor.u32 %v6100_v50, %v6099_v60  ;;  %v24754_v44 = vshll.u32 %v22045_v16, 16 }
 0x253   : > { %v6104_v1 = vrot.slane %v24750_v52, 2  ;;  %17381 = vmatprep.mubr.bf16.mxu0 %v24752_v19  ;;  %18135 = vmatprep.subr.bf16.mxu1 %v19913_v55  ;;  %v22229_v29 = vsel %vm2989_vm2, %v6093_v14, %v6097_v27  ;;  %v24755_v62 = vshrl.u32 %v22047_v0, 16  ;;  %v24756_v19 = vshll.u32 %v22047_v0, 16 }
 0x254   : > { %24753 = vst [vmem:[#allocation11_spill] sm:$0xff] %v22229_v29  ;;  %v6108_v11 = vrot.slane %v24754_v44, 2  ;;  %v6115_v31 = vrot.slane %v24757_v8, 1  ;;  %v22241_v47 = vsel %vm2989_vm2, %v6097_v27, %v6101_v63  ;;  %v24759_v60 = vshll.u32 %v22061_v56, 16  ;;  %v19920_v27 = vld [vmem:[%s24491_s3 + $0x1a8] sm:$0xff]  }
 0x255   : > { %v6111_v52 = vrot.slane %v24755_v62, 1  ;;  %v6105_v42 = vor.u32 %v6104_v1, %v6103_v59  ;;  %v6112_v25 = vrot.slane %v24756_v19, 2  ;;  %24758 = vst [vmem:[#allocation84_spill] sm:$0xff] %v22241_v47  ;;  %v24760_v44 = vshrl.u32 %v22063_v46, 16 }
 0x256   : > { %v6109_v14 = vor.u32 %v6108_v11, %v6107_v6  ;;  %v6116_v50 = vrot.slane %v24759_v60, 2  ;;  %18136 = vmatpush3.bf16.msra.mxu1 %v19913_v55  ;;  %v24762_v1 = vshll.u32 %v22063_v46, 16  ;;  %v24763_v8 = vshrl.u32 %v22069_v61, 16  ;;  %v22441_v46 = vld [vmem:[#allocation2 + $0x7c] sm:$0xff]  }
 0x257   : > { %v6119_v29 = vrot.slane %v24760_v44, 1  ;;  %v22248_v62 = vsel %vm2989_vm2, %v6101_v63, %v6105_v42  ;;  %v6113_v59 = vor.u32 %v6112_v25, %v6111_v52  ;;  %18137 = vmatprep.subr.bf16.mxu1 %v19914_v17  ;;  %v24765_v55 = vshll.u32 %v22069_v61, 16  ;;  %v7264_v61 = vld [vmem:[#allocation2 + $0x1c] sm:$0x8] }
 0x258   : > { %24761 = vst [vmem:[#allocation85_spill] sm:$0xff] %v22248_v62  ;;  %v6120_v19 = vrot.slane %v24762_v1, 2  ;;  %v6123_v51 = vrot.slane %v24763_v8, 1  ;;  %v22258_v6 = vsel %vm2989_vm2, %v6105_v42, %v6109_v14  ;;  %v6117_v11 = vor.u32 %v6116_v50, %v6115_v31 }
 0x259   : > { %24764 = vst [vmem:[#allocation86_spill] sm:$0xff] %v22258_v6  ;;  %v6124_v63 = vrot.slane %v24765_v55, 2  ;;  %v24766_v25 = vshrl.u32 %v22071_v18, 16  ;;  %v22265_v60 = vsel %vm2989_vm2, %v6109_v14, %v6113_v59  ;;  %v24768_v1 = vshll.u32 %v22071_v18, 16  ;;  %18126 = vmatmul.mubr.bf16.gmra.mrb[80].mxu1 %v22005_v10  ;;  %17382 = vmatmul.mubr.bf16.gmra.mrb[80].mxu0 %v22035_v32  ;;  %v6414_v6 = vld [vmem:[#allocation2 + $0x20] sm:$0xf] }
 0x25a   : > { %24767 = vst [vmem:[#allocation87_spill] sm:$0xff] %v22265_v60  ;;  %v6121_v44 = vor.u32 %v6120_v19, %v6119_v29  ;;  %v24769_v62 = vshrl.u32 %v22090_v35, 16  ;;  %v22274_v31 = vsel %vm2989_vm2, %v6113_v59, %v6117_v11  ;;  %v24771_v50 = vshll.u32 %v22090_v35, 16  ;;  %18138 = vmatpush3.bf16.msra.mxu1 %v19914_v17  ;;  %18145 = vmatprep.mubr.bf16.mxu1 %v22058_v3  ;;  %v22452_v18 = vld [vmem:[#allocation2 + $0x84] sm:$0xff]  }
 0x25b   : > { %v6127_v52 = vrot.slane %v24766_v25, 1  ;;  %v6128_v8 = vrot.slane %v24768_v1, 2  ;;  %24770 = vst [vmem:[#allocation88_spill] sm:$0xff] %v22274_v31  ;;  %v6125_v42 = vor.u32 %v6124_v63, %v6123_v51  ;;  %v24772_v14 = vshrl.u32 %v22111_v39, 16  ;;  %17401 = vmatprep.mubr.bf16.mxu0 %v22043_v5  ;;  %18139 = vmatprep.subr.bf16.mxu1 %v19920_v27  ;;  %v19921_v51 = vld [vmem:[%s24491_s3 + $0x1b0] sm:$0xff]  }
 0x25c   : > { %v6131_v47 = vrot.slane %v24769_v62, 1  ;;  %v6132_v55 = vrot.slane %v24771_v50, 2  ;;  %v22282_v19 = vsel %vm2989_vm2, %v6117_v11, %v6121_v44  ;;  %v24774_v10 = vshll.u32 %v22111_v39, 16 }
 0x25d   : > { %v6135_v29 = vrot.slane %v24772_v14, 1  ;;  %24773 = vst [vmem:[#allocation89_spill] sm:$0xff] %v22282_v19  ;;  %v6129_v62 = vor.u32 %v6128_v8, %v6127_v52  ;;  %v24775_v59 = vshrl.u32 %v22113_v2, 16  ;;  %v22293_v17 = vsel %vm2989_vm2, %v6121_v44, %v6125_v42  ;;  %v20361_v8 = vld [vmem:[#allocation2 + $0x18] sm:$0xff]   ;;  %v20362_v19 = vld [vmem:[#allocation2 + $0x20] sm:$0xff]  }
 0x25e   : > { %v6136_v32 = vrot.slane %v24774_v10, 2  ;;  %24776 = vst [vmem:[#allocation90_spill] sm:$0xff] %v22293_v17  ;;  %v6133_v3 = vor.u32 %v6132_v55, %v6131_v47  ;;  %v24777_v11 = vshll.u32 %v22113_v2, 16  ;;  %v24778_v52 = vshrl.u32 %v22127_v9, 16  ;;  %18140 = vmatpush3.bf16.msra.mxu1 %v19920_v27  ;;  %v19928_v27 = vld [vmem:[%s24491_s3 + $0x148] sm:$0xff]   ;;  %v22424_v2 = vld [vmem:[#allocation2 + $0x5c] sm:$0xff]  }
 0x25f   : > { %v6139_v25 = vrot.slane %v24775_v59, 1  ;;  %v3460_v50 = vrot.slane %v20361_v8, 2  ;;  %v22300_v14 = vsel %vm2989_vm2, %v6125_v42, %v6129_v62  ;;  %v24780_v10 = vshll.u32 %v22127_v9, 16  ;;  %18141 = vmatprep.subr.bf16.mxu1 %v19921_v51  ;;  %v19925_v42 = vld [vmem:[%s24491_s3 + $0x1b8] sm:$0xff]   ;;  %v20364_v8 = vld [vmem:[#allocation2 + $0x30] sm:$0xff]  }
 0x260   : > { %v6140_v63 = vrot.slane %v24777_v11, 2  ;;  %v6143_v1 = vrot.slane %v24778_v52, 1  ;;  %24779 = vst [vmem:[#allocation91_spill] sm:$0xff] %v22300_v14  ;;  %v6137_v5 = vor.u32 %v6136_v32, %v6135_v29  ;;  %v3462_v31 = vrot.slane %v20362_v19, 2 }
 0x261   : > { %v6144_v59 = vrot.slane %v24780_v10, 2  ;;  %v22305_v44 = vsel %vm2989_vm2, %v6129_v62, %v6133_v3  ;;  %v24785_v19 = vrot.slane %v24706_v38, 2  ;;  %v19938_v10 = vld [vmem:[%s24491_s3 + $0x158] sm:$0xff]   ;;  %v24797_v17 = vshrl.u32 %v24706_v38, 16 }
 0x262   : > { %24781 = vst [vmem:[#allocation92_spill] sm:$0xff] %v22305_v44  ;;  %v6141_v47 = vor.u32 %v6140_v63, %v6139_v25  ;;  %v22308_v55 = vsel %vm2989_vm2, %v6133_v3, %v6137_v5  ;;  %v3463_v25 = vsel %vm3456_vm6, %v3460_v50, %v3462_v31  ;;  %18142 = vmatpush3.bf16.msra.mxu1 %v19921_v51  ;;  %v19926_v3 = vld [vmem:[%s24491_s3 + $0x1c0] sm:$0xff]   ;;  %v20363_v63 = vld [vmem:[#allocation2 + $0x28] sm:$0xff]   ;;  %v24789_v44 = vld [vmem:[#allocation12_spill] sm:$0xff]  ;;  %v24798_v56 = vrot.slane %v21852_v15, 3 }
 0x263   : > { %24782 = vst [vmem:[#allocation93_spill] sm:$0xff] %v22308_v55  ;;  %v22310_v11 = vor.u32 %v6144_v59, %v6143_v1  ;;  %v3461_v62 = vsel %vm3456_vm6, %v24785_v19, %v3460_v50  ;;  %18143 = vmatprep.subr.bf16.mxu1 %v19925_v42  ;;  %v3464_v52 = vrot.slane %v20363_v63, 2  ;;  %v19933_v1 = vld [vmem:[%s24491_s3 + $0x150] sm:$0xff]   ;;  %v24787_v50 = vld [vmem:[#allocation16_spill] sm:$0xff]  ;;  %v9551_v59 = vshrl.u32 %v21989_v23, 16 }
 0x264   : > { %v22316_v29 = vsel %vm2989_vm2, %v6137_v5, %v6141_v47  ;;  %17402 = vmatmul.mubr.bf16.vlgmr.msra.gmra.mrb[52].mxu0 %v3461_v62  ;;  %v3466_v5 = vrot.slane %v20364_v8, 2  ;;  %v20365_v62 = vld [vmem:[#allocation2 + $0x38] sm:$0xff]   ;;  %v22422_v60 = vrot.slane %v24797_v17, 2  ;;  %v22458_v17 = vld [vmem:[#allocation2 + $0x8c] sm:$0xff]   ;;  %v22463_v39 = vcombine.low %v7264_v61, %v6414_v6 }
 0x265   : > { %24783 = vst [vmem:[#allocation94_spill] sm:$0xff] %v22310_v11  ;;  %24784 = vst [vmem:[#allocation95_spill] sm:$0xff] %v22316_v29  ;;  %v22326_v32 = vsel %vm2989_vm2, %v6141_v47, %v22310_v11  ;;  %17405 = vmatprep.mubr.bf16.mxu0 %v3463_v25  ;;  %17434 = vmatpush3.bf16.msra.mxu0 %v22084_v40  ;;  %v19930_v40 = vld [vmem:[%s24491_s3 + $0x1c8] sm:$0xff]   ;;  %v3465_v51 = vsel %vm3456_vm6, %v3462_v31, %v3464_v52  ;;  %v9554_v47 = vshll.u32 %v21989_v23, 16  ;;  %v19931_v31 = vld [vmem:[%s24491_s3 + $0x1d0] sm:$0xff]  }
 0x266   : > { %24786 = vst [vmem:[#allocation96_spill] sm:$0xff] %v22326_v32  ;;  %17435 = vmatprep.subr.bf16.mxu0 %v19928_v27  ;;  %18144 = vmatpush3.bf16.msra.mxu1 %v19925_v42  ;;  %v24788_v42 = vld [vmem:[#allocation17_spill] sm:$0xff]  ;;  %v3467_v19 = vsel %vm3456_vm6, %v3464_v52, %v3466_v5  ;;  %v9553_v63 = vrot.slane %v9551_v59, 3  ;;  %v19935_v52 = vld [vmem:[%s24491_s3 + $0x1d8] sm:$0xff]   ;;  %v20371_v59 = vld [vmem:[#allocation2 + $0x68] sm:$0xff]  }
 0x267   : > { %18157 = vmatprep.subr.bf16.mxu1 %v19926_v3  ;;  %v9556_v8 = vrot.slane %v9554_v47, 4  ;;  %v20366_v23 = vld [vmem:[#allocation2 + $0x40] sm:$0xff]   ;;  %v20369_v11 = vld [vmem:[#allocation2 + $0x58] sm:$0xff]   ;;  %v3480_v47 = vrot.slane %v20371_v59, 2 }
 0x268   : > { %v20373_v29 = vld [vmem:[#allocation2 + $0x78] sm:$0xff]  }
 0x269   : > { %17436 = vmatpush3.bf16.msra.mxu0 %v19928_v27  ;;  %18146 = vmatmul.mubr.bf16.vlgmr.msra.gmra.mrb[52].mxu1 %v24787_v50  ;;  %v3468_v27 = vrot.slane %v20365_v62, 2  ;;  %v3476_v62 = vrot.slane %v20369_v11, 2  ;;  %v3484_v55 = vrot.slane %v20373_v29, 2  ;;  %v24790_v11 = vrot.slane %v21852_v15, 3 }
 0x26a   : > { %17437 = vmatprep.subr.bf16.mxu0 %v19933_v1  ;;  %18149 = vmatprep.mubr.bf16.mxu1 %v24788_v42  ;;  %v20368_v42 = vld [vmem:[#allocation2 + $0x50] sm:$0xff]  }
 0x26b   : > { %18158 = vmatpush3.bf16.msra.mxu1 %v19926_v3  ;;  %v20367_v3 = vld [vmem:[#allocation2 + $0x48] sm:$0xff]   ;;  %v3469_v25 = vsel %vm3456_vm6, %v3466_v5, %v3468_v27 }
 0x26c   : > { %17406 = vmatmul.mubr.bf16.gmra.mrb[56].mxu0 %v3465_v51  ;;  %18159 = vmatprep.subr.bf16.mxu1 %v19930_v40  ;;  %v3470_v51 = vrot.slane %v20366_v23, 2  ;;  %v3472_v50 = vrot.slane %v20367_v3, 2  ;;  %v20372_v23 = vld [vmem:[#allocation2 + $0x70] sm:$0xff]  }
 0x26d   : > { %17409 = vmatprep.mubr.bf16.mxu0 %v3467_v19  ;;  %17438 = vmatpush3.bf16.msra.mxu0 %v19933_v1  ;;  %v3474_v19 = vrot.slane %v20368_v42, 2  ;;  %v20370_v1 = vld [vmem:[#allocation2 + $0x60] sm:$0xff]   ;;  %v3482_v3 = vrot.slane %v20372_v23, 2  ;;  %v24791_v42 = vrot.slane %v21338_v7, 3  ;;  %v22377_v7 = vld [vmem:[#allocation2 + $0x2c] sm:$0xff]  }
 0x26e   : > { %17439 = vmatprep.subr.bf16.mxu0 %v19938_v10  ;;  %v3478_v32 = vrot.slane %v20370_v1, 2  ;;  %v22365_v1 = vld [vmem:[#allocation2 + $0x80] sm:$0xff]   ;;  %v3471_v59 = vsel %vm3456_vm6, %v3468_v27, %v3470_v51  ;;  %v3473_v29 = vsel %vm3456_vm6, %v3470_v51, %v3472_v50  ;;  %24793 = vst [vmem:[#allocation17_spill] sm:$0xff] %v22377_v7  ;;  %v22389_v51 = vld [vmem:[#allocation2 + $0x34] sm:$0xff]   ;;  %v7287_v15 = vrot.slane %v22377_v7, 3 }
 0x26f   : > { %18160 = vmatpush3.bf16.msra.mxu1 %v19930_v40  ;;  %v19943_v40 = vld [vmem:[%s24491_s3 + $0x160] sm:$0xff]   ;;  %v9384_v5 = vsel %vm4197_vm3, %v24791_v42, %v24790_v11  ;;  %v22384_v27 = vsel %vm3456_vm6, %v3474_v19, %v3476_v62  ;;  %24794 = vst [vmem:[#allocation12_spill] sm:$0xff] %v22389_v51  ;;  %v22397_v42 = vsel %vm3456_vm6, %v3480_v47, %v3482_v3  ;;  %v24818_v16 = vshll.u32 %v22389_v51, 16 }
 0x270   : > { %18161 = vmatprep.subr.bf16.mxu1 %v19931_v31  ;;  %v22391_v23 = vld [vmem:[#allocation2 + $0x3c] sm:$0xff]   ;;  %v22394_v11 = vsel %vm3456_vm6, %v3478_v32, %v3480_v47  ;;  %v24796_v47 = vrot.slane %v22365_v1, 2 }
 0x271   : > { %17440 = vmatpush3.bf16.msra.mxu0 %v19938_v10  ;;  %18150 = vmatmul.mubr.bf16.gmra.mrb[56].mxu1 %v24789_v44  ;;  %v9557_v10 = vor.u32 %v9556_v8, %v9553_v63  ;;  %v22373_v44 = vld [vmem:[%s24491_s3 + $0x168] sm:$0xff]   ;;  %v19936_v63 = vld [vmem:[%s24491_s3 + $0x1e0] sm:$0xff]   ;;  %v22387_v8 = vsel %vm3456_vm6, %v3476_v62, %v3478_v32  ;;  %24795 = vst [vmem:[#allocation97_spill] sm:$0xff] %v22391_v23  ;;  %v7611_v20 = vrot.slane %v24818_v16, 4 }
 0x272   : > { %18153 = vmatprep.mubr.bf16.mxu1 %v9384_v5  ;;  %17441 = vmatprep.subr.bf16.mxu0 %v19943_v40  ;;  %v22400_v5 = vsel %vm3456_vm6, %v3482_v3, %v3484_v55  ;;  %v22405_v62 = vld [vmem:[#allocation2 + $0x4c] sm:$0xff]   ;;  %v22417_v3 = vsel %vm3456_vm6, %v3484_v55, %v24796_v47 }
 0x273   : > { %18162 = vmatpush3.bf16.msra.mxu1 %v19931_v31  ;;  %v3475_v31 = vsel %vm3456_vm6, %v3472_v50, %v3474_v19  ;;  %v22403_v19 = vld [vmem:[#allocation2 + $0x44] sm:$0xff]   ;;  %v9561_v14 = vsel %vm4508_vm4, %v9557_v10, %v21579_v26  ;;  %v22431_v10 = vld [vmem:[#allocation2 + $0x74] sm:$0xff]  }
 0x274   : > { %17410 = vmatmul.mubr.bf16.gmra.mrb[60].mxu0 %v3469_v25  ;;  %v22375_v25 = vld [vmem:[#allocation2 + $0x24] sm:$0xff]   ;;  %18163 = vmatprep.subr.bf16.mxu1 %v19935_v52  ;;  %v19941_v47 = vld [vmem:[%s24491_s3 + $0x1f0] sm:$0xff]   ;;  %v19959_v50 = vld [vmem:[%s24491_s3 + $0x178] sm:$0xff]   ;;  %v7293_v35 = vrot.slane %v22403_v19, 3  ;;  %v24822_v16 = vshll.u32 %v22403_v19, 16 }
 0x275   : > { %24792 = vst [vmem:[#allocation16_spill] sm:$0xff] %v22375_v25  ;;  %17413 = vmatprep.mubr.bf16.mxu0 %v3471_v59  ;;  %v22407_v59 = vld [vmem:[#allocation2 + $0x54] sm:$0xff]   ;;  %v19940_v32 = vld [vmem:[%s24491_s3 + $0x1e8] sm:$0xff]   ;;  %17442 = vmatpush3.bf16.msra.mxu0 %v19943_v40 }
 0x276   : > { %v22426_v26 = vld [vmem:[#allocation2 + $0x64] sm:$0xff]   ;;  %17443 = vmatprep.subr.bf16.mxu0 %v22373_v44  ;;  %v22429_v40 = vld [vmem:[#allocation2 + $0x6c] sm:$0xff]   ;;  %v7297_v61 = vrot.slane %v22407_v59, 3 }
 0x277   : > { %18164 = vmatpush3.bf16.msra.mxu1 %v19935_v52  ;;  %v19953_v52 = vld [vmem:[%s24491_s3 + $0x170] sm:$0xff]   ;;  %v7301_v0 = vrot.slane %v22426_v26, 3 }
 0x278   : > { %18165 = vmatprep.subr.bf16.mxu1 %v19936_v63 }
 0x279   : > { %18154 = vmatmul.mubr.bf16.gmra.mrb[84].mxu1 %v24798_v56  ;;  %17444 = vmatpush3.bf16.msra.mxu0 %v22373_v44  ;;  %v7289_v44 = vrot.slane %v22389_v51, 3  ;;  %v19945_v56 = vld [vmem:[%s24491_s3 + $0x1f8] sm:$0xff]  }
 0x27a   : > { %18173 = vmatprep.mubr.bf16.mxu1 %v9561_v14  ;;  %17445 = vmatprep.subr.bf16.mxu0 %v19953_v52  ;;  %v7305_v14 = vrot.slane %v22431_v10, 3 }
 0x27b   : > { %18166 = vmatpush3.bf16.msra.mxu1 %v19936_v63  ;;  %v7285_v63 = vrot.slane %v22375_v25, 3 }
 0x27c   : > { %17414 = vmatmul.mubr.bf16.gmra.mrb[64].mxu0 %v3473_v29  ;;  %18167 = vmatprep.subr.bf16.mxu1 %v19940_v32  ;;  %v7291_v29 = vrot.slane %v22391_v23, 3 }
 0x27d   : > { %17417 = vmatprep.mubr.bf16.mxu0 %v3475_v31  ;;  %v7284_v31 = vrot.slane %v22463_v39, 3  ;;  %v22483_v55 = vsel %vm4197_vm3, %v7285_v63, %v7287_v15  ;;  %17446 = vmatpush3.bf16.msra.mxu0 %v19953_v52 }
 0x27e   : > { %24799 = vst [vmem:[#allocation98_spill] sm:$0xff] %v22483_v55  ;;  %v22497_v55 = vsel %vm4197_vm3, %v7287_v15, %v7289_v44  ;;  %17447 = vmatprep.subr.bf16.mxu0 %v19959_v50  ;;  %v22513_v15 = vld [vmem:[%s24491_s3 + $0x180] sm:$0xff]  }
 0x27f   : > { %18168 = vmatpush3.bf16.msra.mxu1 %v19940_v32  ;;  %v22488_v6 = vsel %vm4197_vm3, %v7284_v31, %v7285_v63  ;;  %24801 = vst [vmem:[#allocation100_spill] sm:$0xff] %v22497_v55  ;;  %v7295_v32 = vrot.slane %v22405_v62, 3  ;;  %v22502_v63 = vsel %vm4197_vm3, %v7289_v44, %v7291_v29  ;;  %v22505_v31 = vsel %vm4197_vm3, %v7291_v29, %v7293_v35 }
 0x280   : > { %24800 = vst [vmem:[#allocation99_spill] sm:$0xff] %v22488_v6  ;;  %18169 = vmatprep.subr.bf16.mxu1 %v19941_v47  ;;  %24802 = vst [vmem:[#allocation101_spill] sm:$0xff] %v22502_v63  ;;  %v7299_v6 = vrot.slane %v22424_v2, 3  ;;  %v7303_v29 = vrot.slane %v22429_v40, 3  ;;  %v7307_v63 = vrot.slane %v22441_v46, 3 }
 0x281   : > { %24803 = vst [vmem:[#allocation102_spill] sm:$0xff] %v22505_v31  ;;  %v22516_v52 = vsel %vm4197_vm3, %v7293_v35, %v7295_v32  ;;  %v22519_v44 = vsel %vm4197_vm3, %v7295_v32, %v7297_v61  ;;  %v7309_v35 = vrot.slane %v22452_v18, 3  ;;  %v19946_v32 = vld [vmem:[%s24491_s3 + $0x200] sm:$0xff]   ;;  %17448 = vmatpush3.bf16.msra.mxu0 %v19959_v50  ;;  %v24814_v50 = vshll.u32 %v22375_v25, 16 }
 0x282   : > { %24804 = vst [vmem:[#allocation103_spill] sm:$0xff] %v22516_v52  ;;  %24805 = vst [vmem:[#allocation104_spill] sm:$0xff] %v22519_v44  ;;  %v22528_v31 = vsel %vm4197_vm3, %v7299_v6, %v7301_v0  ;;  %v22536_v44 = vsel %vm4197_vm3, %v7301_v0, %v7303_v29  ;;  %v24812_v52 = vshrl.u32 %v22375_v25, 16  ;;  %17481 = vmatprep.subr.bf16.mxu0 %v22513_v15  ;;  %v24825_v25 = vshrl.u32 %v22407_v59, 16 }
 0x283   : > { %18170 = vmatpush3.bf16.msra.mxu1 %v19941_v47  ;;  %24807 = vst [vmem:[#allocation106_spill] sm:$0xff] %v22528_v31  ;;  %24808 = vst [vmem:[#allocation107_spill] sm:$0xff] %v22536_v44  ;;  %v24563_v47 = vrot.slane %v22458_v17, 3  ;;  %v22547_v31 = vsel %vm4197_vm3, %v7307_v63, %v7309_v35 }
 0x284   : > { %17418 = vmatmul.mubr.bf16.gmra.mrb[68].mxu0 %v22384_v27  ;;  %v22525_v27 = vsel %vm4197_vm3, %v7297_v61, %v7299_v6  ;;  %18171 = vmatprep.subr.bf16.mxu1 %v19945_v56  ;;  %v7595_v61 = vshrl.u32 %v22463_v39, 16  ;;  %v22544_v6 = vsel %vm4197_vm3, %v7305_v14, %v7307_v63  ;;  %24811 = vst [vmem:[#allocation110_spill] sm:$0xff] %v22547_v31  ;;  %v7602_v0 = vrot.slane %v24812_v52, 3 }
 0x285   : > { %17421 = vmatprep.mubr.bf16.mxu0 %v22387_v8  ;;  %24806 = vst [vmem:[#allocation105_spill] sm:$0xff] %v22525_v27  ;;  %v22539_v8 = vsel %vm4197_vm3, %v7303_v29, %v7305_v14  ;;  %24810 = vst [vmem:[#allocation109_spill] sm:$0xff] %v22544_v6  ;;  %v7598_v27 = vshll.u32 %v22463_v39, 16  ;;  %v22556_v29 = vsel %vm4197_vm3, %v7309_v35, %v24563_v47  ;;  %v7603_v14 = vrot.slane %v24814_v50, 4  ;;  %v19950_v35 = vld [vmem:[%s24491_s3 + $0x208] sm:$0xff]  }
 0x286   : > { %24809 = vst [vmem:[#allocation108_spill] sm:$0xff] %v22539_v8  ;;  %24813 = vst [vmem:[#allocation111_spill] sm:$0xff] %v22556_v29  ;;  %v7597_v8 = vrot.slane %v7595_v61, 3  ;;  %v24815_v6 = vshrl.u32 %v22377_v7, 16  ;;  %v24816_v39 = vshll.u32 %v22377_v7, 16  ;;  %v24817_v52 = vshrl.u32 %v22389_v51, 16 }
 0x287   : > { %18172 = vmatpush3.bf16.msra.mxu1 %v19945_v56  ;;  %v7600_v31 = vrot.slane %v7598_v27, 4  ;;  %v7604_v61 = vor.u32 %v7603_v14, %v7602_v0  ;;  %v24819_v50 = vshrl.u32 %v22391_v23, 16  ;;  %v24820_v56 = vshll.u32 %v22391_v23, 16 }
 0x288   : > { %v7606_v63 = vrot.slane %v24815_v6, 3  ;;  %v7607_v44 = vrot.slane %v24816_v39, 4  ;;  %v7610_v55 = vrot.slane %v24817_v52, 3  ;;  %18185 = vmatprep.subr.bf16.mxu1 %v19946_v32  ;;  %v24821_v39 = vshrl.u32 %v22403_v19, 16 }
 0x289   : > { %v7614_v6 = vrot.slane %v24819_v50, 3  ;;  %v7615_v27 = vrot.slane %v24820_v56, 4  ;;  %v7601_v29 = vor.u32 %v7600_v31, %v7597_v8  ;;  %v7619_v51 = vrot.slane %v24822_v16, 4 }
 0x28a   : > { %v7618_v47 = vrot.slane %v24821_v39, 3  ;;  %v7608_v52 = vor.u32 %v7607_v44, %v7606_v63  ;;  %v7612_v7 = vor.u32 %v7611_v20, %v7610_v55  ;;  %18174 = vmatmul.mubr.bf16.vlgmr.msra.gmra.mrb[52].mxu1 %v21687_v36  ;;  %v24823_v14 = vshrl.u32 %v22405_v62, 16 }
 0x28b   : > { %v7616_v0 = vor.u32 %v7615_v27, %v7614_v6  ;;  %v24824_v23 = vshll.u32 %v22405_v62, 16  ;;  %v7626_v39 = vrot.slane %v24825_v25, 3  ;;  %18177 = vmatprep.mubr.bf16.mxu1 %v21691_v48  ;;  %18186 = vmatpush3.bf16.msra.mxu1 %v19946_v32  ;;  %v22589_v20 = vsel %vm4508_vm4, %v7601_v29, %v7604_v61  ;;  %v19951_v48 = vld [vmem:[%s24491_s3 + $0x210] sm:$0xff]  }
 0x28c   : > { %17422 = vmatmul.mubr.bf16.gmra.mrb[72].mxu0 %v22394_v11  ;;  %v7622_v50 = vrot.slane %v24823_v14, 3  ;;  %v22592_v36 = vsel %vm4508_vm4, %v7604_v61, %v7608_v52  ;;  %v22595_v11 = vsel %vm4508_vm4, %v7608_v52, %v7612_v7  ;;  %v24826_v55 = vshll.u32 %v22407_v59, 16  ;;  %18187 = vmatprep.subr.bf16.mxu1 %v19950_v35  ;;  %v20116_v25 = vld [vmem:[#allocation2 + $0x94] ss:$0 sps:$4 sm:$0x11]  }
 0x28d   : > { %v7623_v56 = vrot.slane %v24824_v23, 4  ;;  %17425 = vmatprep.mubr.bf16.mxu0 %v22397_v42  ;;  %v22604_v23 = vsel %vm4508_vm4, %v7612_v7, %v7616_v0  ;;  %v7620_v44 = vor.u32 %v7619_v51, %v7618_v47  ;;  %v24827_v8 = vshrl.u32 %v22424_v2, 16 }
 0x28e   : > { %v7627_v31 = vrot.slane %v24826_v55, 4  ;;  %v24828_v61 = vshll.u32 %v22424_v2, 16  ;;  %v24829_v42 = vshrl.u32 %v22426_v26, 16  ;;  %v24830_v52 = vshll.u32 %v22426_v26, 16 }
 0x28f   : > { %v7624_v32 = vor.u32 %v7623_v56, %v7622_v50  ;;  %v7630_v29 = vrot.slane %v24827_v8, 3  ;;  %v22615_v14 = vsel %vm4508_vm4, %v7616_v0, %v7620_v44  ;;  %v24832_v51 = vshrl.u32 %v22429_v40, 16  ;;  %18188 = vmatpush3.bf16.msra.mxu1 %v19950_v35 }
 0x290   : > { %v7628_v63 = vor.u32 %v7627_v31, %v7626_v39  ;;  %v7631_v6 = vrot.slane %v24828_v61, 4  ;;  %v7634_v27 = vrot.slane %v24829_v42, 3  ;;  %v7635_v16 = vrot.slane %v24830_v52, 4  ;;  %v19958_v39 = vld [vmem:[#allocation2 + $0x88] ss:$0 sps:$4 sm:$0x33]   ;;  %18189 = vmatprep.subr.bf16.mxu1 %v19951_v48 }
 0x291   : > { %v22618_v7 = vsel %vm4508_vm4, %v7620_v44, %v7624_v32  ;;  %v7638_v47 = vrot.slane %v24832_v51, 3  ;;  %v24833_v50 = vshll.u32 %v22429_v40, 16  ;;  %v24834_v61 = vshrl.u32 %v22431_v10, 16  ;;  %v19956_v44 = vld [vmem:[%s24491_s3 + $0x218] sm:$0xff]  }
 0x292   : > { %24831 = vst [vmem:[#allocation112_spill] sm:$0xff] %v22618_v7  ;;  %v22625_v55 = vsel %vm4508_vm4, %v7624_v32, %v7628_v63  ;;  %v7632_v31 = vor.u32 %v7631_v6, %v7630_v29  ;;  %v7636_v8 = vor.u32 %v7635_v16, %v7634_v27  ;;  %v5800_v42 = vrot.slane %v20116_v25, 1  ;;  %v24841_v25 = vld [vmem:[#allocation13_spill] sm:$0xff] }
 0x293   : > { %v7639_v56 = vrot.slane %v24833_v50, 4  ;;  %v7642_v0 = vrot.slane %v24834_v61, 3  ;;  %v24835_v51 = vshll.u32 %v22431_v10, 16  ;;  %v24836_v35 = vshrl.u32 %v22441_v46, 16  ;;  %18178 = vmatmul.mubr.bf16.gmra.mrb[56].mxu1 %v24841_v25 }
 0x294   : > { %v22637_v32 = vsel %vm4508_vm4, %v7628_v63, %v7632_v31  ;;  %v22640_v29 = vsel %vm4508_vm4, %v7632_v31, %v7636_v8  ;;  %v24839_v6 = vshll.u32 %v22441_v46, 16  ;;  %v24840_v16 = vshrl.u32 %v22452_v18, 16  ;;  %17426 = vmatmul.mubr.bf16.gmra.mrb[76].mxu0 %v22400_v5  ;;  %18190 = vmatpush3.bf16.msra.mxu1 %v19951_v48 }
 0x295   : > { %v7640_v52 = vor.u32 %v7639_v56, %v7638_v47  ;;  %v7643_v50 = vrot.slane %v24835_v51, 4  ;;  %v7646_v7 = vrot.slane %v24836_v35, 3  ;;  %24837 = vst [vmem:[#allocation113_spill] sm:$0xff] %v22637_v32  ;;  %24838 = vst [vmem:[#allocation114_spill] sm:$0xff] %v22640_v29  ;;  %v24842_v47 = vrot.slane %v22127_v9, 1  ;;  %17429 = vmatprep.mubr.bf16.mxu0 %v22417_v3  ;;  %18191 = vmatprep.subr.bf16.mxu1 %v19956_v44 }
 0x296   : > { %v7647_v27 = vrot.slane %v24839_v6, 4  ;;  %v7650_v61 = vrot.slane %v24840_v16, 3  ;;  %v24843_v51 = vshll.u32 %v22452_v18, 16  ;;  %v24844_v6 = vld [vmem:[#allocation15_spill] sm:$0xff]  ;;  %v24845_v16 = vshll.u32 %v24706_v38, 16 }
 0x297   : > { %v22651_v56 = vsel %vm2678_vm5, %v24842_v47, %v5800_v42  ;;  %v22654_v63 = vsel %vm4508_vm4, %v7636_v8, %v7640_v52  ;;  %v7644_v31 = vor.u32 %v7643_v50, %v7642_v0  ;;  %18181 = vmatprep.mubr.bf16.mxu1 %v24844_v6  ;;  %v24846_v5 = vshrl.u32 %v22458_v17, 16  ;;  %v19957_v8 = vld [vmem:[%s24491_s3 + $0x220] sm:$0xff]   ;;  %v22672_v50 = vpop.f32.mrb[60].mxu1 }
 0x298   : > { %v7651_v35 = vrot.slane %v24843_v51, 4  ;;  %v3782_v25 = vrot.slane %v24845_v16, 3  ;;  %v7648_v29 = vor.u32 %v7647_v27, %v7646_v7  ;;  %v24847_v42 = vshll.u32 %v22458_v17, 16  ;;  %18192 = vmatpush3.bf16.msra.mxu1 %v19956_v44 }
 0x299   : > { %v7654_v32 = vrot.slane %v24846_v5, 3  ;;  %v3488_v0 = vrot.slane %v19958_v39, 2  ;;  %v22670_v48 = vsel %vm4508_vm4, %v7640_v52, %v7644_v31  ;;  %v24848_v7 = vshrl.u32 %v21995_v34, 16  ;;  %v22683_v5 = vpop.f32.mrb[61].mxu1  ;;  %18193 = vmatprep.subr.bf16.mxu1 %v19957_v8 }
 0x29a   : > { %v7655_v47 = vrot.slane %v24847_v42, 4  ;;  %v7652_v38 = vor.u32 %v7651_v35, %v7650_v61  ;;  %v24849_v51 = vshll.u32 %v21995_v34, 16  ;;  %v22679_v3 = vsel %vm4508_vm4, %v7644_v31, %v7648_v29  ;;  %v17988_v52 = vpop.f32.mrb[62].mxu1  ;;  %v19960_v42 = vld [vmem:[#allocation2 + $0x94] sm:$0xff]  }
 0x29b   : > { %v3771_v27 = vrot.slane %v24848_v7, 2  ;;  %24850 = vst [vmem:[#allocation13_spill] sm:$0xff] %v22679_v3  ;;  %v3783_v61 = vor.u32 %v3782_v25, %v22422_v60  ;;  %v22693_v34 = vpop.f32.mrb[63].mxu1  ;;  %v24853_v31 = vrot.slane %v22365_v1, 2  ;;  %v24855_v25 = vshll.u32 %v21472_v4, 16  ;;  %v24856_v7 = vld [vmem:[#allocation14_spill] sm:$0xff] }
 0x29c   : > { %v3774_v6 = vrot.slane %v24849_v51, 3  ;;  %v22681_v16 = vor.u32 %v7655_v47, %v7654_v32  ;;  %v22686_v39 = vsel %vm4508_vm4, %v7648_v29, %v7652_v38  ;;  %v19961_v32 = vld [vmem:[%s24491_s3 + $0x228] sm:$0xff]   ;;  %v24854_v47 = vshrl.u32 %v21472_v4, 16  ;;  %18182 = vmatmul.mubr.bf16.gmra.mrb[88].mxu1 %v24856_v7  ;;  %v19962_v4 = vld [vmem:[%s24491_s3 + $0x230] sm:$0xff]  }
 0x29d   : > { %24851 = vst [vmem:[#allocation15_spill] sm:$0xff] %v22686_v39  ;;  %v3489_v29 = vsel %vm3456_vm6, %v24853_v31, %v3488_v0  ;;  %v24857_v51 = vshrl.u32 %v21474_v57, 16  ;;  %18194 = vmatpush3.bf16.msra.mxu1 %v19957_v8  ;;  %18201 = vmatprep.mubr.bf16.mxu1 %v19960_v42  ;;  %v24859_v8 = vshrl.u32 %v21483_v12, 16  ;;  %v24860_v31 = vshll.u32 %v21483_v12, 16  ;;  %v19967_v42 = vld [vmem:[%s24491_s3 + $0x188] sm:$0xff]   ;;  %v19966_v12 = vld [vmem:[%s24491_s3 + $0x240] sm:$0xff]  }
 0x29e   : > { %v22691_v35 = vsel %vm4508_vm4, %v7652_v38, %v22681_v16  ;;  %v3775_v44 = vor.u32 %v3774_v6, %v3771_v27  ;;  %v3788_v60 = vrot.slane %v24854_v47, 2  ;;  %v3791_v38 = vrot.slane %v24855_v25, 3  ;;  %17430 = vmatmul.mubr.bf16.gmra.mrb[80].mxu0 %v3489_v29  ;;  %18195 = vmatprep.subr.bf16.mxu1 %v19961_v32  ;;  %v19964_v6 = vld [vmem:[%s24491_s3 + $0x238] sm:$0xff]   ;;  %v19972_v25 = vld [vmem:[%s24491_s3 + $0x190] sm:$0xff]  }
 0x29f   : > { %24852 = vst [vmem:[#allocation115_spill] sm:$0xff] %v22691_v35  ;;  %v3797_v52 = vrot.slane %v24857_v51, 2  ;;  %v24858_v35 = vshll.u32 %v21474_v57, 16  ;;  %v3809_v29 = vrot.slane %v24860_v31, 3  ;;  %v9928_v7 = vld [vmem:[#allocation2 + $0x94] sm:$0xf] }
 0x2a0   : > { %v3784_v1 = vsel %vm3767_vm7, %v3775_v44, %v3783_v61  ;;  %v3792_v0 = vor.u32 %v3791_v38, %v3788_v60  ;;  %v22737_v51 = vld [vmem:[#allocation2 + $0x98] sm:$0xf]  ;;  %v24865_v31 = vshrl.u32 %v21491_v37, 16 }
 0x2a1   : > { %v3800_v39 = vrot.slane %v24858_v35, 3  ;;  %17449 = vmatprep.mubr.bf16.mxu0 %v3784_v1  ;;  %18196 = vmatpush3.bf16.msra.mxu1 %v19961_v32  ;;  %v3806_v35 = vrot.slane %v24859_v8, 2  ;;  %v24861_v32 = vshrl.u32 %v21487_v49, 16  ;;  %v19968_v1 = vld [vmem:[#allocation2 + $0xa4] sm:$0xff]   ;;  %v19977_v8 = vld [vmem:[%s24491_s3 + $0x198] sm:$0xff]  }
 0x2a2   : > { %18197 = vmatprep.subr.bf16.mxu1 %v19962_v4  ;;  %v3793_v57 = vsel %vm3767_vm7, %v3783_v61, %v3792_v0  ;;  %v24862_v61 = vshll.u32 %v21487_v49, 16  ;;  %v19965_v49 = vld [vmem:[#allocation2 + $0x9c] sm:$0xff]  }
 0x2a3   : > { %v3801_v27 = vor.u32 %v3800_v39, %v3797_v52  ;;  %v3815_v44 = vrot.slane %v24861_v32, 2  ;;  %v3810_v60 = vor.u32 %v3809_v29, %v3806_v35  ;;  %v15406_v35 = vcombine.low %v9928_v7, %v22737_v51 }
 0x2a4   : > { %v3818_v47 = vrot.slane %v24862_v61, 3  ;;  %v3833_v29 = vrot.slane %v24865_v31, 2 }
 0x2a5   : > { %v3802_v39 = vsel %vm3767_vm7, %v3792_v0, %v3801_v27  ;;  %18198 = vmatpush3.bf16.msra.mxu1 %v19962_v4  ;;  %v3811_v52 = vsel %vm3767_vm7, %v3801_v27, %v3810_v60  ;;  %v24863_v4 = vshrl.u32 %v21489_v33, 16  ;;  %v9987_v31 = vshrl.u32 %v15406_v35, 16 }
 0x2a6   : > { %17450 = vmatmul.mubr.bf16.vlgmr.msra.gmra.mrb[52].mxu0 %v3793_v57  ;;  %18199 = vmatprep.subr.bf16.mxu1 %v19964_v6  ;;  %v3819_v38 = vor.u32 %v3818_v47, %v3815_v44  ;;  %v24864_v57 = vshll.u32 %v21489_v33, 16 }
 0x2a7   : > { %17453 = vmatprep.mubr.bf16.mxu0 %v3802_v39  ;;  %17482 = vmatpush3.bf16.msra.mxu0 %v22513_v15  ;;  %v19969_v15 = vld [vmem:[%s24491_s3 + $0x248] sm:$0xff]   ;;  %v3824_v0 = vrot.slane %v24863_v4, 2  ;;  %v19971_v39 = vld [vmem:[%s24491_s3 + $0x250] sm:$0xff]  }
 0x2a8   : > { %17483 = vmatprep.subr.bf16.mxu0 %v19967_v42  ;;  %v3820_v27 = vsel %vm3767_vm7, %v3810_v60, %v3819_v38 }
 0x2a9   : > { %18200 = vmatpush3.bf16.msra.mxu1 %v19964_v6  ;;  %v3827_v6 = vrot.slane %v24864_v57, 3  ;;  %v24868_v57 = vshll.u32 %v21499_v58, 16 }
 0x2aa   : > { %18213 = vmatprep.subr.bf16.mxu1 %v19966_v12 }
 0x2ab   : > { %17484 = vmatpush3.bf16.msra.mxu0 %v19967_v42  ;;  %v24866_v42 = vshll.u32 %v21491_v37, 16  ;;  %v3828_v44 = vor.u32 %v3827_v6, %v3824_v0  ;;  %v19973_v0 = vld [vmem:[#allocation2 + $0xb4] sm:$0xff]   ;;  %v3845_v6 = vrot.slane %v24868_v57, 3 }
 0x2ac   : > { %17485 = vmatprep.subr.bf16.mxu0 %v19972_v25  ;;  %18202 = vmatmul.mubr.bf16.vlgmr.msra.gmra.mrb[52].mxu1 %v19965_v49  ;;  %v18015_v32 = vpop.f32.mrb[64].mxu1 }
 0x2ad   : > { %18205 = vmatprep.mubr.bf16.mxu1 %v19968_v1  ;;  %18214 = vmatpush3.bf16.msra.mxu1 %v19966_v12  ;;  %v3836_v33 = vrot.slane %v24866_v42, 3  ;;  %v22760_v61 = vadd.f32 %v18015_v32, %v22672_v50  ;;  %v8534_v47 = vpop.f32.mrb[65].mxu1  ;;  %v9989_v12 = vshll.u32 %v15406_v35, 16  ;;  %v19974_v1 = vld [vmem:[%s24491_s3 + $0x258] sm:$0xff]   ;;  %v3829_v4 = vsel %vm3767_vm7, %v3819_v38, %v3828_v44  ;;  %v19976_v35 = vld [vmem:[%s24491_s3 + $0x260] sm:$0xff]  }
 0x2ae   : > { %17454 = vmatmul.mubr.bf16.gmra.mrb[56].mxu0 %v3811_v52  ;;  %18215 = vmatprep.subr.bf16.mxu1 %v19969_v15  ;;  %v22763_v60 = vadd.f32 %v8534_v47, %v22683_v5  ;;  %v18016_v37 = vpop.f32.mrb[66].mxu1  ;;  %v19970_v52 = vld [vmem:[#allocation2 + $0xac] sm:$0xff]   ;;  %v24867_v5 = vshrl.u32 %v21499_v58, 16  ;;  %v24869_v38 = vshrl.u32 %v21504_v54, 16 }
 0x2af   : > { %17457 = vmatprep.mubr.bf16.mxu0 %v3820_v27  ;;  %17486 = vmatpush3.bf16.msra.mxu0 %v19972_v25  ;;  %v3837_v7 = vor.u32 %v3836_v33, %v3833_v29  ;;  %v8537_v49 = vpop.f32.mrb[67].mxu1  ;;  %v22768_v25 = vld [vmem:[#allocation2 + $0x9c] sm:$0xff]   ;;  %v9991_v29 = vrot.slane %v9989_v12, 1  ;;  %v24870_v33 = vshll.u32 %v21504_v54, 16  ;;  %v19980_v37 = vld [vmem:[%s24491_s3 + $0x268] sm:$0xff]  }
 0x2b0   : > { %17487 = vmatprep.subr.bf16.mxu0 %v19977_v8  ;;  %v22771_v50 = vadd.f32 %v8537_v49, %v22693_v34  ;;  %v19982_v27 = vld [vmem:[%s24491_s3 + $0x1a0] sm:$0xff]   ;;  %v3851_v42 = vrot.slane %v24869_v38, 2  ;;  %v19975_v54 = vld [vmem:[#allocation2 + $0xbc] ss:$0 sps:$4 sm:$0xff]  }
 0x2b1   : > { %18216 = vmatpush3.bf16.msra.mxu1 %v19969_v15  ;;  %v3842_v15 = vrot.slane %v24867_v5, 2  ;;  %v3838_v34 = vsel %vm3767_vm7, %v3828_v44, %v3837_v7  ;;  %v3854_v58 = vrot.slane %v24870_v33, 3  ;;  %v9992_v44 = vor.u32 %v9991_v29, %v9987_v31  ;;  %v22808_v31 = vld [vmem:[#allocation2 + $0xa4] sm:$0xff]   ;;  %v22814_v29 = vld [vmem:[#allocation2 + $0x94] sm:$0xff]  }
 0x2b2   : > { %18217 = vmatprep.subr.bf16.mxu1 %v19971_v39  ;;  %v19996_v33 = vld [vmem:[%s24491_s3 + $0x1b8] sm:$0xff]  }
 0x2b3   : > { %17488 = vmatpush3.bf16.msra.mxu0 %v19977_v8  ;;  %v19986_v8 = vld [vmem:[%s24491_s3 + $0x1a8] sm:$0xff]   ;;  %v3846_v32 = vor.u32 %v3845_v6, %v3842_v15  ;;  %v3855_v47 = vor.u32 %v3854_v58, %v3851_v42  ;;  %v24873_v15 = vshrl.u32 %v21534_v53, 16  ;;  %v24874_v6 = vshll.u32 %v21534_v53, 16 }
 0x2b4   : > { %18206 = vmatmul.mubr.bf16.gmra.mrb[56].mxu1 %v19970_v52  ;;  %17489 = vmatprep.subr.bf16.mxu0 %v19982_v27  ;;  %v24871_v52 = vshrl.u32 %v21530_v43, 16  ;;  %v24572_v42 = vshll.u32 %v22808_v31, 16  ;;  %v22823_v58 = vld [vmem:[#allocation2 + $0xac] sm:$0xff]  }
 0x2b5   : > { %18209 = vmatprep.mubr.bf16.mxu1 %v19973_v0  ;;  %18218 = vmatpush3.bf16.msra.mxu1 %v19971_v39  ;;  %v24574_v39 = vshll.u32 %v22768_v25, 16  ;;  %v3847_v49 = vsel %vm3767_vm7, %v3837_v7, %v3846_v32  ;;  %v24872_v0 = vshll.u32 %v21530_v43, 16  ;;  %v3869_v57 = vrot.slane %v24873_v15, 2  ;;  %v19991_v7 = vld [vmem:[%s24491_s3 + $0x1b0] sm:$0xff]   ;;  %v22843_v15 = vld [vmem:[#allocation2 + $0xbc] sm:$0xf] }
 0x2b6   : > { %17458 = vmatmul.mubr.bf16.gmra.mrb[60].mxu0 %v3829_v4  ;;  %18219 = vmatprep.subr.bf16.mxu1 %v19974_v1  ;;  %v3860_v4 = vrot.slane %v24871_v52, 2  ;;  %v3856_v43 = vsel %vm3767_vm7, %v3846_v32, %v3855_v47  ;;  %v19983_v32 = vld [vmem:[%s24491_s3 + $0x278] sm:$0xff]   ;;  %v24575_v52 = vshrl.u32 %v22768_v25, 16 }
 0x2b7   : > { %17461 = vmatprep.mubr.bf16.mxu0 %v3838_v34  ;;  %17490 = vmatpush3.bf16.msra.mxu0 %v19982_v27  ;;  %v9996_v12 = vrot.slane %v24574_v39, 1  ;;  %v3863_v5 = vrot.slane %v24872_v0, 3  ;;  %v3872_v27 = vrot.slane %v24874_v6, 3  ;;  %v19981_v34 = vld [vmem:[%s24491_s3 + $0x270] sm:$0xff]   ;;  %v24576_v6 = vshll.u32 %v22823_v58, 16 }
 0x2b8   : > { %17491 = vmatprep.subr.bf16.mxu0 %v19986_v8 }
 0x2b9   : > { %18220 = vmatpush3.bf16.msra.mxu1 %v19974_v1  ;;  %v9997_v1 = vsel %vm2075_vm1, %v9992_v44, %v9996_v12  ;;  %v3864_v53 = vor.u32 %v3863_v5, %v3860_v4  ;;  %v3873_v38 = vor.u32 %v3872_v27, %v3869_v57  ;;  %v10000_v57 = vor.u32 %v24575_v52, %v9996_v12  ;;  %v22861_v12 = vld [vmem:[#allocation2 + $0xb4] sm:$0xff]  }
 0x2ba   : > { %18221 = vmatprep.subr.bf16.mxu1 %v19976_v35  ;;  %v24878_v27 = vshrl.u32 %v21564_v22, 16  ;;  %v24579_v39 = vshll.u32 %v22861_v12, 16 }
 0x2bb   : > { %17492 = vmatpush3.bf16.msra.mxu0 %v19986_v8  ;;  %v24875_v8 = vshrl.u32 %v21551_v13, 16  ;;  %v3865_v4 = vsel %vm3767_vm7, %v3855_v47, %v3864_v53  ;;  %v3874_v5 = vsel %vm3767_vm7, %v3864_v53, %v3873_v38  ;;  %v22848_v47 = vld [vmem:[%s24491_s3 + $0x1c0] sm:$0xff]  }
 0x2bc   : > { %18210 = vmatmul.mubr.bf16.gmra.mrb[92].mxu1 %v19975_v54  ;;  %17493 = vmatprep.subr.bf16.mxu0 %v19991_v7  ;;  %v24876_v54 = vshll.u32 %v21551_v13, 16  ;;  %v9939_v13 = vld [vmem:[#allocation2 + $0xc0] sm:$0x1] }
 0x2bd   : > { %18222 = vmatpush3.bf16.msra.mxu1 %v19976_v35  ;;  %18229 = vmatprep.mubr.bf16.mxu1 %v9997_v1  ;;  %v7313_v35 = vrot.slane %v22814_v29, 3  ;;  %v3878_v44 = vrot.slane %v24875_v8, 2  ;;  %v10004_v1 = vrot.slane %v24572_v42, 1  ;;  %v20168_v8 = vld [vmem:[#allocation2 + $0x9c] ss:$0 sps:$4 sm:$0x77]  }
 0x2be   : > { %17462 = vmatmul.mubr.bf16.gmra.mrb[64].mxu0 %v3847_v49  ;;  %18223 = vmatprep.subr.bf16.mxu1 %v19980_v37  ;;  %v3881_v49 = vrot.slane %v24876_v54, 3  ;;  %v19985_v54 = vld [vmem:[%s24491_s3 + $0x280] sm:$0xff]  }
 0x2bf   : > { %17465 = vmatprep.mubr.bf16.mxu0 %v3856_v43  ;;  %17494 = vmatpush3.bf16.msra.mxu0 %v19991_v7  ;;  %v3887_v7 = vrot.slane %v24878_v27, 2  ;;  %v24879_v43 = vshll.u32 %v21564_v22, 16  ;;  %v22868_v27 = vcombine.low %v22843_v15, %v9939_v13  ;;  %v24580_v13 = vshrl.u32 %v22823_v58, 16 }
 0x2c0   : > { %17495 = vmatprep.subr.bf16.mxu0 %v19996_v33 }
 0x2c1   : > { %18224 = vmatpush3.bf16.msra.mxu1 %v19980_v37  ;;  %v24877_v37 = vrot.slane %v22458_v17, 3  ;;  %v3890_v53 = vrot.slane %v24879_v43, 3 }
 0x2c2   : > { %18225 = vmatprep.subr.bf16.mxu1 %v19981_v34 }
 0x2c3   : > { %v22838_v0 = vsel %vm4197_vm3, %v24877_v37, %v7313_v35  ;;  %v24573_v37 = vshrl.u32 %v22808_v31, 16  ;;  %17496 = vmatpush3.bf16.msra.mxu0 %v19996_v33  ;;  %v3891_v43 = vor.u32 %v3890_v53, %v3887_v7  ;;  %v7315_v33 = vrot.slane %v20168_v8, 3 }
 0x2c4   : > { %17529 = vmatprep.subr.bf16.mxu0 %v22848_v47 }
 0x2c5   : > { %18226 = vmatpush3.bf16.msra.mxu1 %v19981_v34  ;;  %v24577_v34 = vshrl.u32 %v22814_v29, 16  ;;  %v10008_v22 = vor.u32 %v24573_v37, %v10004_v1  ;;  %v19988_v37 = vld [vmem:[%s24491_s3 + $0x288] sm:$0xff]   ;;  %v22885_v7 = vsel %vm4197_vm3, %v7313_v35, %v7315_v33  ;;  %v24883_v33 = vshll.u32 %v21592_v24, 16 }
 0x2c6   : > { %17466 = vmatmul.mubr.bf16.gmra.mrb[68].mxu0 %v3865_v4  ;;  %18227 = vmatprep.subr.bf16.mxu1 %v19983_v32  ;;  %v3882_v4 = vor.u32 %v3881_v49, %v3878_v44  ;;  %v10005_v44 = vsel %vm2075_vm1, %v10000_v57, %v10004_v1  ;;  %v10012_v49 = vrot.slane %v24576_v6, 1  ;;  %v24881_v1 = vshll.u32 %v21581_v41, 16 }
 0x2c7   : > { %17469 = vmatprep.mubr.bf16.mxu0 %v3874_v5  ;;  %v24578_v5 = vshll.u32 %v22814_v29, 16  ;;  %v10026_v6 = vshll.u32 %v22868_v27, 16 }
 0x2c8   : > { %v3883_v42 = vsel %vm3767_vm7, %v3873_v38, %v3882_v4  ;;  %v3899_v57 = vrot.slane %v24881_v1, 3  ;;  %v7658_v38 = vrot.slane %v24577_v34, 3  ;;  %v10013_v8 = vsel %vm2075_vm1, %v10008_v22, %v10012_v49 }
 0x2c9   : > { %18228 = vmatpush3.bf16.msra.mxu1 %v19983_v32  ;;  %v24880_v32 = vshrl.u32 %v21581_v41, 16  ;;  %v7659_v53 = vrot.slane %v24578_v5, 4  ;;  %v3892_v41 = vsel %vm3767_vm7, %v3882_v4, %v3891_v43  ;;  %v3908_v1 = vrot.slane %v24883_v33, 3 }
 0x2ca   : > { %18241 = vmatprep.subr.bf16.mxu1 %v19985_v54  ;;  %v10020_v22 = vrot.slane %v24579_v39, 1  ;;  %v10022_v4 = vshrl.u32 %v22861_v12, 16  ;;  %v10028_v5 = vrot.slane %v10026_v6, 1 }
 0x2cb   : > { %v3896_v52 = vrot.slane %v24880_v32, 2  ;;  %v24882_v32 = vshrl.u32 %v21592_v24, 16  ;;  %v22898_v34 = vor.u32 %v7659_v53, %v7658_v38  ;;  %v20375_v24 = vld [vmem:[#allocation2 + $0x88] ss:$0 sps:$4 sm:$0x77]  }
 0x2cc   : > { %18230 = vmatmul.mubr.bf16.vlgmr.msra.gmra.mrb[52].mxu1 %v10005_v44  ;;  %v18043_v44 = vpop.f32.mrb[68].mxu1  ;;  %v3915_v38 = vshll.u32 %v20375_v24, 16  ;;  %v10024_v33 = vor.u32 %v10022_v4, %v10020_v22 }
 0x2cd   : > { %18233 = vmatprep.mubr.bf16.mxu1 %v10013_v8  ;;  %18242 = vmatpush3.bf16.msra.mxu1 %v19985_v54  ;;  %v3905_v35 = vrot.slane %v24882_v32, 2  ;;  %v19990_v54 = vld [vmem:[%s24491_s3 + $0x290] sm:$0xff]   ;;  %v3900_v8 = vor.u32 %v3899_v57, %v3896_v52  ;;  %v3912_v32 = vshrl.u32 %v20375_v24, 16  ;;  %v22911_v53 = vsel %vm4508_vm4, %v22681_v16, %v22898_v34  ;;  %v19993_v16 = vld [vmem:[%s24491_s3 + $0x298] sm:$0xff]  }
 0x2ce   : > { %17470 = vmatmul.mubr.bf16.gmra.mrb[72].mxu0 %v3883_v42  ;;  %18243 = vmatprep.subr.bf16.mxu1 %v19988_v37  ;;  %v10016_v42 = vor.u32 %v24580_v13, %v10012_v49  ;;  %v22914_v49 = vadd.f32 %v18043_v44, %v22760_v61  ;;  %v10178_v24 = vld [vmem:[#allocation2 + $0x94] sm:$0xe] }
 0x2cf   : > { %17473 = vmatprep.mubr.bf16.mxu0 %v3892_v41  ;;  %v8699_v41 = vpop.f32.mrb[69].mxu1  ;;  %v3909_v57 = vor.u32 %v3908_v1, %v3905_v35  ;;  %v3901_v6 = vsel %vm3767_vm7, %v3891_v43, %v3900_v8  ;;  %v3914_v44 = vrot.slane %v3912_v32, 2  ;;  %v22931_v35 = vcombine.low %v10178_v24, %v22737_v51  ;;  %v19994_v43 = vld [vmem:[%s24491_s3 + $0x2a0] sm:$0xff]   ;;  %v24884_v32 = vld [vmem:[#allocation19_spill] sm:$0xff] }
 0x2d0   : > { %v22919_v39 = vadd.f32 %v8699_v41, %v22763_v60  ;;  %v18044_v52 = vpop.f32.mrb[70].mxu1  ;;  %v10021_v3 = vsel %vm2075_vm1, %v10016_v42, %v10020_v22  ;;  %v3917_v60 = vrot.slane %v3915_v38, 3  ;;  %v10199_v51 = vrot.slane %v22768_v25, 1  ;;  %v19999_v22 = vld [vmem:[%s24491_s3 + $0x2a8] sm:$0xff]   ;;  %v20002_v38 = vld [vmem:[%s24491_s3 + $0x2b8] sm:$0xff]  }
 0x2d1   : > { %18244 = vmatpush3.bf16.msra.mxu1 %v19988_v37  ;;  %v8702_v13 = vpop.f32.mrb[71].mxu1  ;;  %v10029_v37 = vsel %vm2075_vm1, %v10024_v33, %v10028_v5  ;;  %v3910_v1 = vsel %vm3767_vm7, %v3900_v8, %v3909_v57  ;;  %v20004_v41 = vld [vmem:[%s24491_s3 + $0x1c8] sm:$0xff]   ;;  %v24885_v33 = vld [vmem:[#allocation20_spill] sm:$0xff]  ;;  %v24886_v52 = vld [vmem:[#allocation21_spill] sm:$0xff]  ;;  %v10201_v24 = vrot.slane %v22808_v31, 1 }
 0x2d2   : > { %18245 = vmatprep.subr.bf16.mxu1 %v19990_v54  ;;  %v22926_v61 = vadd.f32 %v8702_v13, %v22771_v50  ;;  %v10030_v50 = vshrl.u32 %v22868_v27, 16  ;;  %v3918_v13 = vor.u32 %v3917_v60, %v3914_v44  ;;  %v24887_v60 = vld [vmem:[#allocation22_spill] sm:$0xff] }
 0x2d3   : > { %v10202_v44 = vsel %vm2678_vm5, %v10199_v51, %v10201_v24 }
 0x2d4   : > { %18234 = vmatmul.mubr.bf16.gmra.mrb[56].mxu1 %v10021_v3  ;;  %v10198_v3 = vrot.slane %v22931_v35, 1  ;;  %v10032_v42 = vor.u32 %v10030_v50, %v10028_v5  ;;  %v20000_v5 = vld [vmem:[%s24491_s3 + $0x2b0] sm:$0xff]  }
 0x2d5   : > { %18237 = vmatprep.mubr.bf16.mxu1 %v10029_v37  ;;  %18246 = vmatpush3.bf16.msra.mxu1 %v19990_v54  ;;  %v3919_v54 = vsel %vm3767_vm7, %v3909_v57, %v3918_v13  ;;  %v20003_v57 = vld [vmem:[%s24491_s3 + $0x2c0] sm:$0xff]   ;;  %v24888_v50 = vld [vmem:[#allocation23_spill] sm:$0xff] }
 0x2d6   : > { %17474 = vmatmul.mubr.bf16.gmra.mrb[76].mxu0 %v3901_v6  ;;  %18247 = vmatprep.subr.bf16.mxu1 %v19993_v16  ;;  %v10200_v8 = vsel %vm2678_vm5, %v10198_v3, %v10199_v51  ;;  %v10203_v6 = vrot.slane %v22823_v58, 1  ;;  %v10205_v3 = vrot.slane %v22861_v12, 1 }
 0x2d7   : > { %17477 = vmatprep.mubr.bf16.mxu0 %v3910_v1  ;;  %v20010_v1 = vld [vmem:[%s24491_s3 + $0x1d8] sm:$0xff]  }
 0x2d8   : > { %v10204_v37 = vsel %vm2678_vm5, %v10201_v24, %v10203_v6  ;;  %v24890_v24 = vld [vmem:[#allocation25_spill] sm:$0xff] }
 0x2d9   : > { %18248 = vmatpush3.bf16.msra.mxu1 %v19993_v16  ;;  %v20007_v16 = vld [vmem:[%s24491_s3 + $0x1d0] sm:$0xff]  }
 0x2da   : > { %18249 = vmatprep.subr.bf16.mxu1 %v19994_v43 }
 0x2dc   : > { %18238 = vmatmul.mubr.bf16.gmra.mrb[96].mxu1 %v10032_v42 }
 0x2dd   : > { %18250 = vmatpush3.bf16.msra.mxu1 %v19994_v43  ;;  %18257 = vmatprep.mubr.bf16.mxu1 %v10200_v8  ;;  %v20006_v43 = vld [vmem:[%s24491_s3 + $0x2d0] sm:$0xff]   ;;  %v10378_v8 = vshll.u32 %v22931_v35, 16 }
 0x2de   : > { %17478 = vmatmul.mubr.bf16.gmra.mrb[80].mxu0 %v3919_v54  ;;  %18251 = vmatprep.subr.bf16.mxu1 %v19999_v22  ;;  %v10375_v54 = vshrl.u32 %v22931_v35, 16  ;;  %v20013_v35 = vld [vmem:[%s24491_s3 + $0x1e0] sm:$0xff]  }
 0x2df   : > { %17497 = vmatprep.mubr.bf16.mxu0 %v24884_v32 }
 0x2e1   : > { %18252 = vmatpush3.bf16.msra.mxu1 %v19999_v22  ;;  %v10207_v22 = vrot.slane %v22868_v27, 1  ;;  %v10206_v27 = vsel %vm2678_vm5, %v10203_v6, %v10205_v3  ;;  %v24891_v6 = vshrl.u32 %v22768_v25, 16 }
 0x2e2   : > { %18253 = vmatprep.subr.bf16.mxu1 %v20000_v5 }
 0x2e5   : > { %18254 = vmatpush3.bf16.msra.mxu1 %v20000_v5 }
 0x2e6   : > { %17498 = vmatmul.mubr.bf16.vlgmr.msra.gmra.mrb[52].mxu0 %v24885_v33  ;;  %18255 = vmatprep.subr.bf16.mxu1 %v20002_v38  ;;  %v10208_v33 = vsel %vm2678_vm5, %v10205_v3, %v10207_v22  ;;  %v24894_v3 = vld [vmem:[#allocation27_spill] sm:$0xff] }
 0x2e7   : > { %17501 = vmatprep.mubr.bf16.mxu0 %v24886_v52  ;;  %17530 = vmatpush3.bf16.msra.mxu0 %v22848_v47  ;;  %v20005_v47 = vld [vmem:[%s24491_s3 + $0x2c8] sm:$0xff]   ;;  %v10377_v52 = vrot.slane %v10375_v54, 1  ;;  %v10354_v54 = vld [vmem:[#allocation2 + $0xc0] sm:$0x3] }
 0x2e8   : > { %17531 = vmatprep.subr.bf16.mxu0 %v20004_v41 }
 0x2e9   : > { %18256 = vmatpush3.bf16.msra.mxu1 %v20002_v38 }
 0x2ea   : > { %18269 = vmatprep.subr.bf16.mxu1 %v20003_v57 }
 0x2eb   : > { %17532 = vmatpush3.bf16.msra.mxu0 %v20004_v41 }
 0x2ec   : > { %17533 = vmatprep.subr.bf16.mxu0 %v20007_v16  ;;  %18258 = vmatmul.mubr.bf16.vlgmr.msra.gmra.mrb[52].mxu1 %v10202_v44  ;;  %v18071_v13 = vpop.f32.mrb[72].mxu1  ;;  %v24892_v44 = vshll.u32 %v22768_v25, 16  ;;  %v20019_v25 = vld [vmem:[%s24491_s3 + $0x1f0] sm:$0xff]  }
 0x2ed   : > { %18261 = vmatprep.mubr.bf16.mxu1 %v10204_v37  ;;  %18270 = vmatpush3.bf16.msra.mxu1 %v20003_v57  ;;  %v22981_v42 = vadd.f32 %v18071_v13, %v22914_v49  ;;  %v8897_v51 = vpop.f32.mrb[73].mxu1  ;;  %v20008_v49 = vld [vmem:[%s24491_s3 + $0x2d8] sm:$0xff]   ;;  %v10380_v57 = vrot.slane %v10378_v8, 2 }
 0x2ee   : > { %17502 = vmatmul.mubr.bf16.gmra.mrb[56].mxu0 %v24887_v60  ;;  %18271 = vmatprep.subr.bf16.mxu1 %v20005_v47  ;;  %v22987_v32 = vadd.f32 %v8897_v51, %v22919_v39  ;;  %v18072_v5 = vpop.f32.mrb[74].mxu1  ;;  %v24889_v39 = vld [vmem:[#allocation24_spill] sm:$0xff]  ;;  %v10383_v60 = vrot.slane %v24892_v44, 2  ;;  %v20012_v51 = vld [vmem:[%s24491_s3 + $0x2f0] sm:$0xff]  }
 0x2ef   : > { %17505 = vmatprep.mubr.bf16.mxu0 %v24888_v50  ;;  %17534 = vmatpush3.bf16.msra.mxu0 %v20007_v16  ;;  %v8900_v38 = vpop.f32.mrb[75].mxu1  ;;  %v20009_v16 = vld [vmem:[%s24491_s3 + $0x2e0] sm:$0xff]   ;;  %v10381_v37 = vor.u32 %v10380_v57, %v10377_v52  ;;  %v20011_v50 = vld [vmem:[%s24491_s3 + $0x2e8] sm:$0xff]   ;;  %v20014_v8 = vld [vmem:[%s24491_s3 + $0x2f8] sm:$0xff]   ;;  %v24895_v5 = vshrl.u32 %v22808_v31, 16  ;;  %v24899_v57 = vshrl.u32 %v22823_v58, 16 }
 0x2f0   : > { %17535 = vmatprep.subr.bf16.mxu0 %v20010_v1  ;;  %v22993_v41 = vadd.f32 %v8900_v38, %v22926_v61  ;;  %v20016_v61 = vld [vmem:[%s24491_s3 + $0x1e8] sm:$0xff]   ;;  %v24898_v52 = vld [vmem:[#allocation29_spill] sm:$0xff] }
 0x2f1   : > { %18272 = vmatpush3.bf16.msra.mxu1 %v20005_v47  ;;  %v10382_v47 = vrot.slane %v24891_v6, 1  ;;  %v10386_v38 = vrot.slane %v24895_v5, 1 }
 0x2f2   : > { %18273 = vmatprep.subr.bf16.mxu1 %v20006_v43 }
 0x2f3   : > { %17536 = vmatpush3.bf16.msra.mxu0 %v20010_v1  ;;  %v10384_v1 = vor.u32 %v10383_v60, %v10382_v47  ;;  %v20017_v60 = vld [vmem:[%s24491_s3 + $0x308] sm:$0xff]  }
 0x2f4   : > { %18262 = vmatmul.mubr.bf16.gmra.mrb[56].mxu1 %v10206_v27  ;;  %17537 = vmatprep.subr.bf16.mxu0 %v20013_v35 }
 0x2f5   : > { %18265 = vmatprep.mubr.bf16.mxu1 %v10208_v33  ;;  %18274 = vmatpush3.bf16.msra.mxu1 %v20006_v43  ;;  %v24893_v43 = vld [vmem:[#allocation26_spill] sm:$0xff]  ;;  %v10385_v13 = vsel %vm2989_vm2, %v10381_v37, %v10384_v1  ;;  %v23039_v33 = vld [vmem:[%s24491_s3 + $0x200] sm:$0xff]  }
 0x2f6   : > { %17506 = vmatmul.mubr.bf16.gmra.mrb[60].mxu0 %v24889_v39  ;;  %18275 = vmatprep.subr.bf16.mxu1 %v20008_v49  ;;  %v15429_v39 = vcombine.low %v22843_v15, %v10354_v54 }
 0x2f7   : > { %17509 = vmatprep.mubr.bf16.mxu0 %v24890_v24  ;;  %17538 = vmatpush3.bf16.msra.mxu0 %v20013_v35  ;;  %v24897_v35 = vld [vmem:[#allocation28_spill] sm:$0xff]  ;;  %v24900_v24 = vshll.u32 %v22823_v58, 16  ;;  %v24901_v58 = vshll.u32 %v22861_v12, 16 }
 0x2f8   : > { %17539 = vmatprep.subr.bf16.mxu0 %v20016_v61  ;;  %v10399_v6 = vshrl.u32 %v15429_v39, 16  ;;  %v10402_v47 = vshll.u32 %v15429_v39, 16  ;;  %v20021_v39 = vld [vmem:[%s24491_s3 + $0x318] sm:$0xff]  }
 0x2f9   : > { %18276 = vmatpush3.bf16.msra.mxu1 %v20008_v49  ;;  %v24896_v49 = vshll.u32 %v22808_v31, 16  ;;  %v20015_v31 = vld [vmem:[%s24491_s3 + $0x300] sm:$0xff]   ;;  %v10391_v15 = vrot.slane %v24900_v24, 2 }
 0x2fa   : > { %18277 = vmatprep.subr.bf16.mxu1 %v20009_v16  ;;  %v24905_v24 = vld [vmem:[#allocation33_spill] sm:$0xff] }
 0x2fb   : > { %17540 = vmatpush3.bf16.msra.mxu0 %v20016_v61  ;;  %v10387_v27 = vrot.slane %v24896_v49, 2  ;;  %v10390_v61 = vrot.slane %v24899_v57, 1  ;;  %v20376_v57 = vld [vmem:[#allocation2 + $0xa0] sm:$0xf] }
 0x2fc   : > { %18266 = vmatmul.mubr.bf16.gmra.mrb[100].mxu1 %v10207_v22  ;;  %17541 = vmatprep.subr.bf16.mxu0 %v20019_v25  ;;  %v20023_v22 = vld [vmem:[%s24491_s3 + $0x1f8] sm:$0xff]  }
 0x2fd   : > { %18278 = vmatpush3.bf16.msra.mxu1 %v20009_v16  ;;  %18285 = vmatprep.mubr.bf16.mxu1 %v10385_v13  ;;  %v10388_v16 = vor.u32 %v10387_v27, %v10386_v38  ;;  %v10392_v44 = vor.u32 %v10391_v15, %v10390_v61  ;;  %v24902_v13 = vld [vmem:[#allocation30_spill] sm:$0xff]  ;;  %v10552_v27 = vld [vmem:[#allocation2 + $0x9c] sm:$0xc] }
 0x2fe   : > { %17510 = vmatmul.mubr.bf16.gmra.mrb[64].mxu0 %v24893_v43  ;;  %18279 = vmatprep.subr.bf16.mxu1 %v20011_v50  ;;  %v10395_v43 = vrot.slane %v24901_v58, 2  ;;  %v23079_v61 = vcombine.low %v10552_v27, %v20376_v57  ;;  %v20029_v58 = vld [vmem:[%s24491_s3 + $0x338] sm:$0xff]  }
 0x2ff   : > { %17513 = vmatprep.mubr.bf16.mxu0 %v24894_v3  ;;  %17542 = vmatpush3.bf16.msra.mxu0 %v20019_v25  ;;  %v10389_v37 = vsel %vm2989_vm2, %v10384_v1, %v10388_v16  ;;  %v10393_v25 = vsel %vm2989_vm2, %v10388_v16, %v10392_v44  ;;  %v10401_v3 = vrot.slane %v10399_v6, 1  ;;  %v20018_v1 = vld [vmem:[%s24491_s3 + $0x310] sm:$0xff]   ;;  %v20377_v16 = vld [vmem:[#allocation2 + $0xa4] sm:$0xff]  }
 0x300   : > { %17543 = vmatprep.subr.bf16.mxu0 %v20023_v22  ;;  %v10610_v15 = vrot.slane %v23079_v61, 2  ;;  %v10611_v6 = vrot.slane %v20377_v16, 2 }
 0x301   : > { %18280 = vmatpush3.bf16.msra.mxu1 %v20011_v50  ;;  %v10394_v50 = vrot.slane %v10022_v4, 1 }
 0x302   : > { %18281 = vmatprep.subr.bf16.mxu1 %v20012_v51 }
 0x303   : > { %17544 = vmatpush3.bf16.msra.mxu0 %v20023_v22  ;;  %v24903_v22 = vld [vmem:[#allocation31_spill] sm:$0xff]  ;;  %v10396_v54 = vor.u32 %v10395_v43, %v10394_v50  ;;  %v20032_v43 = vld [vmem:[%s24491_s3 + $0x208] sm:$0xff]  }
 0x304   : > { %17577 = vmatprep.subr.bf16.mxu0 %v23039_v33  ;;  %v20027_v50 = vld [vmem:[%s24491_s3 + $0x330] sm:$0xff]  }
 0x305   : > { %18282 = vmatpush3.bf16.msra.mxu1 %v20012_v51  ;;  %v10404_v51 = vrot.slane %v10402_v47, 2  ;;  %v20026_v47 = vld [vmem:[%s24491_s3 + $0x328] sm:$0xff]  }
 0x306   : > { %17514 = vmatmul.mubr.bf16.gmra.mrb[68].mxu0 %v24897_v35  ;;  %18283 = vmatprep.subr.bf16.mxu1 %v20014_v8 }
 0x307   : > { %17517 = vmatprep.mubr.bf16.mxu0 %v24898_v52  ;;  %v10405_v5 = vor.u32 %v10404_v51, %v10401_v3  ;;  %v20031_v3 = vld [vmem:[%s24491_s3 + $0x340] sm:$0xff]   ;;  %v20037_v51 = vld [vmem:[%s24491_s3 + $0x210] sm:$0xff]  }
 0x309   : > { %18284 = vmatpush3.bf16.msra.mxu1 %v20014_v8 }
 0x30a   : > { %18297 = vmatprep.subr.bf16.mxu1 %v20015_v31 }
 0x30c   : > { %18286 = vmatmul.mubr.bf16.vlgmr.msra.gmra.mrb[52].mxu1 %v10389_v37  ;;  %v18099_v4 = vpop.f32.mrb[76].mxu1  ;;  %v24907_v37 = vld [vmem:[#allocation35_spill] sm:$0xff] }
 0x30d   : > { %18289 = vmatprep.mubr.bf16.mxu1 %v10393_v25  ;;  %18298 = vmatpush3.bf16.msra.mxu1 %v20015_v31  ;;  %v23065_v12 = vadd.f32 %v18099_v4, %v22981_v42  ;;  %v9111_v8 = vpop.f32.mrb[77].mxu1  ;;  %v10397_v42 = vsel %vm2989_vm2, %v10392_v44, %v10396_v54  ;;  %v24904_v31 = vld [vmem:[#allocation32_spill] sm:$0xff]  ;;  %v24906_v44 = vld [vmem:[#allocation34_spill] sm:$0xff]  ;;  %v24909_v25 = vld [vmem:[#allocation37_spill] sm:$0xff] }
 0x30e   : > { %17518 = vmatmul.mubr.bf16.gmra.mrb[72].mxu0 %v24902_v13  ;;  %18299 = vmatprep.subr.bf16.mxu1 %v20017_v60  ;;  %v23068_v38 = vadd.f32 %v9111_v8, %v22987_v32  ;;  %v18100_v49 = vpop.f32.mrb[78].mxu1  ;;  %v10406_v32 = vsel %vm2989_vm2, %v10396_v54, %v10405_v5  ;;  %v24908_v13 = vld [vmem:[#allocation36_spill] sm:$0xff]  ;;  %v10563_v8 = vld [vmem:[#allocation2 + $0xc8] sm:$0x3] }
 0x30f   : > { %17521 = vmatprep.mubr.bf16.mxu0 %v24903_v22  ;;  %v9114_v35 = vpop.f32.mrb[79].mxu1  ;;  %v20378_v22 = vld [vmem:[#allocation2 + $0xac] sm:$0xff]   ;;  %v20379_v4 = vld [vmem:[#allocation2 + $0xb4] sm:$0xff]  }
 0x310   : > { %v23074_v52 = vadd.f32 %v9114_v35, %v22993_v41  ;;  %v20022_v41 = vld [vmem:[%s24491_s3 + $0x320] sm:$0xff]   ;;  %v10615_v54 = vrot.slane %v20379_v4, 2  ;;  %v24910_v49 = vld [vmem:[#allocation38_spill] sm:$0xff] }
 0x311   : > { %18300 = vmatpush3.bf16.msra.mxu1 %v20017_v60  ;;  %v10612_v60 = vsel %vm3456_vm6, %v10610_v15, %v10611_v6  ;;  %v23116_v35 = vld [vmem:[#allocation2 + $0xc4] sm:$0xf]  ;;  %v10787_v15 = vshrl.u32 %v23079_v61, 16 }
 0x312   : > { %18301 = vmatprep.subr.bf16.mxu1 %v20018_v1 }
 0x314   : > { %18290 = vmatmul.mubr.bf16.gmra.mrb[56].mxu1 %v10397_v42  ;;  %v20042_v42 = vld [vmem:[%s24491_s3 + $0x218] sm:$0xff]  }
 0x315   : > { %18293 = vmatprep.mubr.bf16.mxu1 %v10406_v32  ;;  %18302 = vmatpush3.bf16.msra.mxu1 %v20018_v1  ;;  %v10613_v1 = vrot.slane %v20378_v22, 2  ;;  %v20036_v32 = vld [vmem:[%s24491_s3 + $0x350] sm:$0xff]  }
 0x316   : > { %17522 = vmatmul.mubr.bf16.gmra.mrb[76].mxu0 %v24904_v31  ;;  %18303 = vmatprep.subr.bf16.mxu1 %v20021_v39  ;;  %v24911_v31 = vld [vmem:[#allocation39_spill] sm:$0xff] }
 0x317   : > { %17525 = vmatprep.mubr.bf16.mxu0 %v24905_v24  ;;  %v10616_v27 = vsel %vm3456_vm6, %v10613_v1, %v10615_v54  ;;  %v20381_v24 = vld [vmem:[#allocation2 + $0xbc] sm:$0xff]  }
 0x319   : > { %18304 = vmatpush3.bf16.msra.mxu1 %v20021_v39  ;;  %v15443_v39 = vcombine.low %v23116_v35, %v10563_v8  ;;  %v24916_v8 = vld [vmem:[#allocation41_spill] sm:$0xff] }
 0x31a   : > { %18305 = vmatprep.subr.bf16.mxu1 %v20022_v41 }
 0x31c   : > { %18294 = vmatmul.mubr.bf16.gmra.mrb[104].mxu1 %v10405_v5  ;;  %v10614_v5 = vsel %vm3456_vm6, %v10611_v6, %v10613_v1 }
 0x31d   : > { %18306 = vmatpush3.bf16.msra.mxu1 %v20022_v41  ;;  %18313 = vmatprep.mubr.bf16.mxu1 %v10612_v60  ;;  %v10617_v41 = vrot.slane %v20381_v24, 2  ;;  %v10766_v24 = vld [vmem:[#allocation2 + $0xc8] sm:$0x7] }
 0x31e   : > { %17526 = vmatmul.mubr.bf16.gmra.mrb[80].mxu0 %v24906_v44  ;;  %18307 = vmatprep.subr.bf16.mxu1 %v20026_v47  ;;  %v10790_v44 = vshll.u32 %v23079_v61, 16  ;;  %v24912_v61 = vld [vmem:[#allocation40_spill] sm:$0xff] }
 0x31f   : > { %17545 = vmatprep.mubr.bf16.mxu0 %v24907_v37 }
 0x321   : > { %18308 = vmatpush3.bf16.msra.mxu1 %v20026_v47  ;;  %v10619_v47 = vrot.slane %v15443_v39, 2  ;;  %v24917_v39 = vld [vmem:[#allocation42_spill] sm:$0xff] }
 0x322   : > { %18309 = vmatprep.subr.bf16.mxu1 %v20027_v50 }
 0x325   : > { %18310 = vmatpush3.bf16.msra.mxu1 %v20027_v50 }
 0x326   : > { %17546 = vmatmul.mubr.bf16.vlgmr.msra.gmra.mrb[52].mxu0 %v24908_v13  ;;  %18311 = vmatprep.subr.bf16.mxu1 %v20029_v58  ;;  %v10789_v13 = vrot.slane %v10787_v15, 2  ;;  %v20046_v15 = vld [vmem:[%s24491_s3 + $0x378] sm:$0xff]  }
 0x327   : > { %17549 = vmatprep.mubr.bf16.mxu0 %v24909_v25  ;;  %17578 = vmatpush3.bf16.msra.mxu0 %v23039_v33  ;;  %v20034_v33 = vld [vmem:[%s24491_s3 + $0x348] sm:$0xff]   ;;  %v10620_v25 = vsel %vm3456_vm6, %v10617_v41, %v10619_v47 }
 0x328   : > { %17579 = vmatprep.subr.bf16.mxu0 %v20032_v43 }
 0x329   : > { %18312 = vmatpush3.bf16.msra.mxu1 %v20029_v58  ;;  %v20040_v58 = vld [vmem:[%s24491_s3 + $0x358] sm:$0xff]  }
 0x32a   : > { %18325 = vmatprep.subr.bf16.mxu1 %v20031_v3 }
 0x32b   : > { %17580 = vmatpush3.bf16.msra.mxu0 %v20032_v43 }
 0x32c   : > { %17581 = vmatprep.subr.bf16.mxu0 %v20037_v51  ;;  %18314 = vmatmul.mubr.bf16.vlgmr.msra.gmra.mrb[52].mxu1 %v10614_v5  ;;  %v18127_v57 = vpop.f32.mrb[80].mxu1 }
 0x32d   : > { %18317 = vmatprep.mubr.bf16.mxu1 %v10616_v27  ;;  %18326 = vmatpush3.bf16.msra.mxu1 %v20031_v3  ;;  %v23128_v16 = vadd.f32 %v18127_v57, %v23065_v12  ;;  %v9329_v6 = vpop.f32.mrb[81].mxu1  ;;  %v10618_v12 = vsel %vm3456_vm6, %v10615_v54, %v10617_v41  ;;  %v10792_v3 = vrot.slane %v10790_v44, 3  ;;  %v20048_v54 = vld [vmem:[%s24491_s3 + $0x228] sm:$0xff]   ;;  %v20044_v57 = vld [vmem:[%s24491_s3 + $0x370] sm:$0xff]   ;;  %v20055_v41 = vld [vmem:[%s24491_s3 + $0x238] sm:$0xff]  }
 0x32e   : > { %17550 = vmatmul.mubr.bf16.gmra.mrb[56].mxu0 %v24910_v49  ;;  %18327 = vmatprep.subr.bf16.mxu1 %v20034_v33  ;;  %v23132_v60 = vadd.f32 %v9329_v6, %v23068_v38  ;;  %v18128_v37 = vpop.f32.mrb[82].mxu1  ;;  %v20045_v38 = vld [vmem:[%s24491_s3 + $0x220] sm:$0xff]   ;;  %v20043_v27 = vld [vmem:[%s24491_s3 + $0x368] sm:$0xff]   ;;  %v23176_v6 = vcombine.low %v23116_v35, %v10766_v24  ;;  %v24920_v44 = vld [vmem:[#allocation48_spill] sm:$0xff] }
 0x32f   : > { %17553 = vmatprep.mubr.bf16.mxu0 %v24911_v31  ;;  %17582 = vmatpush3.bf16.msra.mxu0 %v20037_v51  ;;  %v9332_v50 = vpop.f32.mrb[83].mxu1  ;;  %v24913_v51 = vld [vmem:[#allocation46_spill] sm:$0xff]  ;;  %v10793_v5 = vor.u32 %v10792_v3, %v10789_v13  ;;  %v20051_v31 = vld [vmem:[%s24491_s3 + $0x230] sm:$0xff]   ;;  %v24921_v37 = vshrl.u32 %v24920_v44, 16  ;;  %v23190_v35 = vld [vmem:[%s24491_s3 + $0x240] sm:$0xff]  }
 0x330   : > { %17583 = vmatprep.subr.bf16.mxu0 %v20042_v42  ;;  %v23138_v43 = vadd.f32 %v9332_v50, %v23074_v52  ;;  %v24914_v22 = vshrl.u32 %v24913_v51, 16  ;;  %v24915_v52 = vshll.u32 %v24913_v51, 16  ;;  %v24923_v13 = vld [vmem:[#allocation50_spill] sm:$0xff]  ;;  %v24926_v51 = vld [vmem:[#allocation45_spill] sm:$0xff] }
 0x331   : > { %18328 = vmatpush3.bf16.msra.mxu1 %v20034_v33  ;;  %v20041_v33 = vld [vmem:[%s24491_s3 + $0x360] sm:$0xff]   ;;  %v10806_v50 = vrot.slane %v24921_v37, 2 }
 0x332   : > { %18329 = vmatprep.subr.bf16.mxu1 %v20036_v32  ;;  %v10797_v1 = vrot.slane %v24914_v22, 2  ;;  %v10800_v4 = vrot.slane %v24915_v52, 3  ;;  %v20047_v22 = vld [vmem:[%s24491_s3 + $0x380] sm:$0xff]  }
 0x333   : > { %17584 = vmatpush3.bf16.msra.mxu0 %v20042_v42 }
 0x334   : > { %18318 = vmatmul.mubr.bf16.gmra.mrb[56].mxu1 %v10618_v12  ;;  %17585 = vmatprep.subr.bf16.mxu0 %v20045_v38  ;;  %v10801_v49 = vor.u32 %v10800_v4, %v10797_v1  ;;  %v10831_v4 = vshrl.u32 %v23176_v6, 16 }
 0x335   : > { %18321 = vmatprep.mubr.bf16.mxu1 %v10620_v25  ;;  %18330 = vmatpush3.bf16.msra.mxu1 %v20036_v32  ;;  %v24918_v32 = vld [vmem:[#allocation43_spill] sm:$0xff]  ;;  %v24925_v25 = vshll.u32 %v24923_v13, 16 }
 0x336   : > { %17554 = vmatmul.mubr.bf16.gmra.mrb[60].mxu0 %v24912_v61  ;;  %18331 = vmatprep.subr.bf16.mxu1 %v20040_v58  ;;  %v10802_v42 = vsel %vm3767_vm7, %v10793_v5, %v10801_v49  ;;  %v24927_v5 = vld [vmem:[#allocation51_spill] sm:$0xff] }
 0x337   : > { %17557 = vmatprep.mubr.bf16.mxu0 %v24916_v8  ;;  %17586 = vmatpush3.bf16.msra.mxu0 %v20045_v38  ;;  %v24924_v38 = vshrl.u32 %v24923_v13, 16  ;;  %v10818_v3 = vrot.slane %v24925_v25, 3  ;;  %v20049_v8 = vld [vmem:[%s24491_s3 + $0x388] sm:$0xff]  }
 0x338   : > { %17587 = vmatprep.subr.bf16.mxu0 %v20048_v54 }
 0x339   : > { %18332 = vmatpush3.bf16.msra.mxu1 %v20040_v58  ;;  %v24922_v58 = vshll.u32 %v24920_v44, 16  ;;  %v10815_v61 = vrot.slane %v24924_v38, 2 }
 0x33a   : > { %18333 = vmatprep.subr.bf16.mxu1 %v20041_v33 }
 0x33b   : > { %17588 = vmatpush3.bf16.msra.mxu0 %v20048_v54  ;;  %v10809_v12 = vrot.slane %v24922_v58, 3  ;;  %v10819_v52 = vor.u32 %v10818_v3, %v10815_v61  ;;  %v10834_v54 = vshll.u32 %v23176_v6, 16 }
 0x33c   : > { %18322 = vmatmul.mubr.bf16.gmra.mrb[108].mxu1 %v10619_v47  ;;  %17589 = vmatprep.subr.bf16.mxu0 %v20051_v31  ;;  %v24919_v47 = vld [vmem:[#allocation44_spill] sm:$0xff] }
 0x33d   : > { %18334 = vmatpush3.bf16.msra.mxu1 %v20041_v33  ;;  %18341 = vmatprep.mubr.bf16.mxu1 %v10802_v42  ;;  %v10810_v1 = vor.u32 %v10809_v12, %v10806_v50  ;;  %v24929_v42 = vshll.u32 %v24927_v5, 16 }
 0x33e   : > { %17558 = vmatmul.mubr.bf16.gmra.mrb[64].mxu0 %v24917_v39  ;;  %18335 = vmatprep.subr.bf16.mxu1 %v20043_v27 }
 0x33f   : > { %17561 = vmatprep.mubr.bf16.mxu0 %v24918_v32  ;;  %17590 = vmatpush3.bf16.msra.mxu0 %v20051_v31  ;;  %v10811_v33 = vsel %vm3767_vm7, %v10801_v49, %v10810_v1  ;;  %v10827_v31 = vrot.slane %v24929_v42, 3  ;;  %v20054_v32 = vld [vmem:[#allocation2 + $0x88] ss:$0 sps:$4 sm:$0xff]   ;;  %v10820_v24 = vsel %vm3767_vm7, %v10810_v1, %v10819_v52  ;;  %v20050_v49 = vld [vmem:[%s24491_s3 + $0x390] sm:$0xff]  }
 0x340   : > { %17591 = vmatprep.subr.bf16.mxu0 %v20055_v41  ;;  %v4578_v50 = vshrl.u32 %v20054_v32, 16  ;;  %v4581_v58 = vshll.u32 %v20054_v32, 16  ;;  %v20057_v42 = vld [vmem:[#allocation2 + $0x14] sm:$0xff]  }
 0x341   : > { %18336 = vmatpush3.bf16.msra.mxu1 %v20043_v27  ;;  %v24928_v27 = vshrl.u32 %v24927_v5, 16  ;;  %v20059_v32 = vld [vmem:[%s24491_s3 + $0x3b0] sm:$0xff]  }
 0x342   : > { %18337 = vmatprep.subr.bf16.mxu1 %v20044_v57 }
 0x343   : > { %17592 = vmatpush3.bf16.msra.mxu0 %v20055_v41  ;;  %v10824_v39 = vrot.slane %v24928_v27, 2  ;;  %v10833_v41 = vrot.slane %v10831_v4, 2  ;;  %v4583_v4 = vrot.slane %v4581_v58, 4  ;;  %v24934_v27 = vld [vmem:[#allocation53_spill] sm:$0xff]  ;;  %v20076_v58 = vld [vmem:[%s24491_s3 + $0x258] sm:$0xff]  }
 0x344   : > { %17625 = vmatprep.subr.bf16.mxu0 %v23190_v35 }
 0x345   : > { %18338 = vmatpush3.bf16.msra.mxu1 %v20044_v57  ;;  %v24930_v57 = vld [vmem:[#allocation47_spill] sm:$0xff]  ;;  %v10828_v37 = vor.u32 %v10827_v31, %v10824_v39 }
 0x346   : > { %17562 = vmatmul.mubr.bf16.gmra.mrb[68].mxu0 %v24919_v47  ;;  %18339 = vmatprep.subr.bf16.mxu1 %v20046_v15  ;;  %v24931_v47 = vld [vmem:[#allocation49_spill] sm:$0xff]  ;;  %v24935_v31 = vld [vmem:[#allocation55_spill] sm:$0xff] }
 0x347   : > { %17565 = vmatprep.mubr.bf16.mxu0 %v24926_v51  ;;  %v20052_v51 = vld [vmem:[%s24491_s3 + $0x398] sm:$0xff]   ;;  %v10829_v1 = vsel %vm3767_vm7, %v10819_v52, %v10828_v37  ;;  %v20058_v52 = vld [vmem:[%s24491_s3 + $0x3a8] sm:$0xff]  }
 0x349   : > { %18340 = vmatpush3.bf16.msra.mxu1 %v20046_v15  ;;  %v10836_v15 = vrot.slane %v10834_v54, 3  ;;  %v24932_v54 = vld [vmem:[#allocation52_spill] sm:$0xff] }
 0x34a   : > { %18353 = vmatprep.subr.bf16.mxu1 %v20047_v22 }
 0x34b   : > { %v10837_v38 = vor.u32 %v10836_v15, %v10833_v41  ;;  %v20062_v41 = vld [vmem:[#allocation2 + $0x24] sm:$0xff]  }
 0x34c   : > { %18342 = vmatmul.mubr.bf16.vlgmr.msra.gmra.mrb[52].mxu1 %v10811_v33  ;;  %v18155_v44 = vpop.f32.mrb[84].mxu1  ;;  %v20053_v33 = vld [vmem:[%s24491_s3 + $0x3a0] sm:$0xff]   ;;  %v20066_v15 = vld [vmem:[%s24491_s3 + $0x248] sm:$0xff]  }
 0x34d   : > { %18345 = vmatprep.mubr.bf16.mxu1 %v10820_v24  ;;  %18354 = vmatpush3.bf16.msra.mxu1 %v20047_v22  ;;  %v23214_v12 = vadd.f32 %v18155_v44, %v23128_v16  ;;  %v9505_v13 = vpop.f32.mrb[85].mxu1  ;;  %v4580_v16 = vrot.slane %v4578_v50, 3  ;;  %v20063_v24 = vld [vmem:[%s24491_s3 + $0x3b8] sm:$0xff]   ;;  %v20065_v44 = vld [vmem:[#allocation2 + $0x2c] sm:$0xff]  }
 0x34e   : > { %17566 = vmatmul.mubr.bf16.gmra.mrb[72].mxu0 %v24930_v57  ;;  %18355 = vmatprep.subr.bf16.mxu1 %v20049_v8  ;;  %v23217_v61 = vadd.f32 %v9505_v13, %v23132_v60  ;;  %v18156_v25 = vpop.f32.mrb[86].mxu1  ;;  %v10838_v60 = vsel %vm3767_vm7, %v10828_v37, %v10837_v38  ;;  %v20060_v57 = vld [vmem:[#allocation2 + $0x1c] sm:$0xff]   ;;  %v20068_v37 = vld [vmem:[%s24491_s3 + $0x3c8] sm:$0xff]   ;;  %v20067_v50 = vld [vmem:[#allocation2 + $0x34] sm:$0xff]  }
 0x34f   : > { %17569 = vmatprep.mubr.bf16.mxu0 %v24931_v47  ;;  %v9508_v3 = vpop.f32.mrb[87].mxu1  ;;  %v20064_v47 = vld [vmem:[%s24491_s3 + $0x3c0] sm:$0xff]  }
 0x350   : > { %v23223_v22 = vadd.f32 %v9508_v3, %v23138_v43  ;;  %v4584_v43 = vor.u32 %v4583_v4, %v4580_v16  ;;  %v24937_v13 = vld [vmem:[#allocation57_spill] sm:$0xff] }
 0x351   : > { %18356 = vmatpush3.bf16.msra.mxu1 %v20049_v8  ;;  %v24933_v8 = vld [vmem:[#allocation54_spill] sm:$0xff] }
 0x352   : > { %18357 = vmatprep.subr.bf16.mxu1 %v20050_v49  ;;  %v4585_v39 = vsel %vm4508_vm4, %v24934_v27, %v4584_v43  ;;  %v20074_v27 = vld [vmem:[%s24491_s3 + $0x3e0] sm:$0xff]  }
 0x354   : > { %18346 = vmatmul.mubr.bf16.gmra.mrb[56].mxu1 %v10829_v1  ;;  %v11013_v1 = vrot.slane %v23176_v6, 3  ;;  %v20081_v6 = vld [vmem:[%s24491_s3 + $0x260] sm:$0xff]  }
 0x355   : > { %18349 = vmatprep.mubr.bf16.mxu1 %v10838_v60  ;;  %18358 = vmatpush3.bf16.msra.mxu1 %v20050_v49  ;;  %v20071_v49 = vld [vmem:[%s24491_s3 + $0x250] sm:$0xff]   ;;  %v20070_v60 = vld [vmem:[#allocation2 + $0x3c] sm:$0xff]  }
 0x356   : > { %17570 = vmatmul.mubr.bf16.gmra.mrb[76].mxu0 %v24932_v54  ;;  %18359 = vmatprep.subr.bf16.mxu1 %v20052_v51 }
 0x357   : > { %17573 = vmatprep.mubr.bf16.mxu0 %v24933_v8  ;;  %v20073_v8 = vld [vmem:[%s24491_s3 + $0x3d8] sm:$0xff]  }
 0x359   : > { %18360 = vmatpush3.bf16.msra.mxu1 %v20052_v51 }
 0x35a   : > { %18361 = vmatprep.subr.bf16.mxu1 %v20053_v33 }
 0x35c   : > { %18350 = vmatmul.mubr.bf16.gmra.mrb[112].mxu1 %v10837_v38  ;;  %v20069_v38 = vld [vmem:[%s24491_s3 + $0x3d0] sm:$0xff]  }
 0x35d   : > { %18362 = vmatpush3.bf16.msra.mxu1 %v20053_v33  ;;  %18369 = vmatprep.mubr.bf16.mxu1 %v24935_v31  ;;  %v20088_v31 = vld [vmem:[%s24491_s3 + $0x270] sm:$0xff]  }
 0x35e   : > { %17574 = vmatmul.mubr.bf16.gmra.mrb[80].mxu0 %v4585_v39  ;;  %18363 = vmatprep.subr.bf16.mxu1 %v20058_v52  ;;  %v20078_v39 = vld [vmem:[%s24491_s3 + $0x3e8] sm:$0xff]  }
 0x35f   : > { %17593 = vmatprep.mubr.bf16.mxu0 %v20057_v42  ;;  %v20077_v42 = vld [vmem:[#allocation2 + $0x54] sm:$0xff]  }
 0x361   : > { %18364 = vmatpush3.bf16.msra.mxu1 %v20058_v52  ;;  %v20072_v52 = vld [vmem:[#allocation2 + $0x44] sm:$0xff]  }
 0x362   : > { %18365 = vmatprep.subr.bf16.mxu1 %v20059_v32 }
 0x365   : > { %18366 = vmatpush3.bf16.msra.mxu1 %v20059_v32  ;;  %v24940_v32 = vld [vmem:[#allocation59_spill] sm:$0xff] }
 0x366   : > { %17594 = vmatmul.mubr.bf16.vlgmr.msra.gmra.mrb[52].mxu0 %v20060_v57  ;;  %18367 = vmatprep.subr.bf16.mxu1 %v20063_v24  ;;  %v20079_v57 = vld [vmem:[%s24491_s3 + $0x3f0] sm:$0xff]  }
 0x367   : > { %17597 = vmatprep.mubr.bf16.mxu0 %v20062_v41  ;;  %17626 = vmatpush3.bf16.msra.mxu0 %v23190_v35  ;;  %v24936_v35 = vld [vmem:[#allocation56_spill] sm:$0xff] }
 0x368   : > { %17627 = vmatprep.subr.bf16.mxu0 %v20066_v15  ;;  %v20080_v41 = vld [vmem:[#allocation2 + $0x5c] sm:$0xff]  }
 0x369   : > { %18368 = vmatpush3.bf16.msra.mxu1 %v20063_v24  ;;  %v20092_v24 = vld [vmem:[%s24491_s3 + $0x278] sm:$0xff]  }
 0x36a   : > { %18381 = vmatprep.subr.bf16.mxu1 %v20064_v47 }
 0x36b   : > { %17628 = vmatpush3.bf16.msra.mxu0 %v20066_v15  ;;  %v20083_v15 = vld [vmem:[%s24491_s3 + $0x3f8] sm:$0xff]  }
 0x36c   : > { %17629 = vmatprep.subr.bf16.mxu0 %v20071_v49  ;;  %18370 = vmatmul.mubr.bf16.vlgmr.msra.gmra.mrb[52].mxu1 %v24936_v35  ;;  %v5228_v35 = vld [vmem:[#allocation2 + $0x14] sm:$0xf] }
 0x36d   : > { %18373 = vmatprep.mubr.bf16.mxu1 %v24937_v13  ;;  %18382 = vmatpush3.bf16.msra.mxu1 %v20064_v47  ;;  %v20082_v47 = vld [vmem:[#allocation2 + $0x64] sm:$0xff]   ;;  %v20382_v13 = vld [vmem:[#allocation2 + $0x18] sm:$0xf] }
 0x36e   : > { %17598 = vmatmul.mubr.bf16.gmra.mrb[56].mxu0 %v20065_v44  ;;  %18383 = vmatprep.subr.bf16.mxu1 %v20068_v37  ;;  %v20084_v44 = vld [vmem:[#allocation2 + $0x6c] sm:$0xff]  }
 0x36f   : > { %17601 = vmatprep.mubr.bf16.mxu0 %v20067_v50  ;;  %v18183_v25 = vpop.f32.mrb[88].mxu1  ;;  %17630 = vmatpush3.bf16.msra.mxu0 %v20071_v49  ;;  %v20096_v49 = vld [vmem:[%s24491_s3 + $0x280] sm:$0xff]   ;;  %v24941_v50 = vld [vmem:[#allocation60_spill] sm:$0xff] }
 0x370   : > { %v23266_v3 = vadd.f32 %v18183_v25, %v23214_v12  ;;  %v9703_v51 = vpop.f32.mrb[89].mxu1  ;;  %17631 = vmatprep.subr.bf16.mxu0 %v20076_v58  ;;  %v24938_v12 = vld [vmem:[#allocation58_spill] sm:$0xff] }
 0x371   : > { %v23270_v16 = vadd.f32 %v9703_v51, %v23217_v61  ;;  %v18184_v4 = vpop.f32.mrb[90].mxu1  ;;  %18384 = vmatpush3.bf16.msra.mxu1 %v20068_v37  ;;  %v24939_v61 = vrot.slane %v24927_v5, 3  ;;  %v20075_v5 = vld [vmem:[#allocation2 + $0x4c] sm:$0xff]   ;;  %v20086_v37 = vld [vmem:[#allocation2 + $0x74] sm:$0xff]  }
 0x372   : > { %v9706_v54 = vpop.f32.mrb[91].mxu1  ;;  %18385 = vmatprep.subr.bf16.mxu1 %v20069_v38 }
 0x373   : > { %v23276_v33 = vadd.f32 %v9706_v54, %v23223_v22  ;;  %17632 = vmatpush3.bf16.msra.mxu0 %v20076_v58  ;;  %v11014_v43 = vsel %vm4197_vm3, %v24939_v61, %v11013_v1  ;;  %v20085_v22 = vld [vmem:[%s24491_s3 + $0x268] sm:$0xff]   ;;  %v24942_v58 = vld [vmem:[#allocation61_spill] sm:$0xff] }
 0x374   : > { %18374 = vmatmul.mubr.bf16.gmra.mrb[56].mxu1 %v24938_v12  ;;  %17633 = vmatprep.subr.bf16.mxu0 %v20081_v6  ;;  %v20090_v61 = vld [vmem:[#allocation2 + $0x84] sm:$0xff]  }
 0x375   : > { %18377 = vmatprep.mubr.bf16.mxu1 %v11014_v43  ;;  %18386 = vmatpush3.bf16.msra.mxu1 %v20069_v38  ;;  %v15182_v38 = vcombine.low %v5228_v35, %v20382_v13  ;;  %v24943_v43 = vld [vmem:[#allocation62_spill] sm:$0xff]  ;;  %v24952_v13 = vshrl.u32 %v22016_v30, 16 }
 0x376   : > { %17602 = vmatmul.mubr.bf16.gmra.mrb[60].mxu0 %v20070_v60  ;;  %18387 = vmatprep.subr.bf16.mxu1 %v20073_v8 }
 0x377   : > { %17605 = vmatprep.mubr.bf16.mxu0 %v20072_v52  ;;  %17634 = vmatpush3.bf16.msra.mxu0 %v20081_v6  ;;  %v5363_v6 = vshll.u32 %v15182_v38, 16  ;;  %v24944_v52 = vld [vmem:[#allocation64_spill] sm:$0xff] }
 0x378   : > { %17635 = vmatprep.subr.bf16.mxu0 %v20085_v22 }
 0x379   : > { %18388 = vmatpush3.bf16.msra.mxu1 %v20073_v8  ;;  %v20087_v8 = vld [vmem:[#allocation2 + $0x7c] sm:$0xff]  }
 0x37a   : > { %18389 = vmatprep.subr.bf16.mxu1 %v20074_v27 }
 0x37b   : > { %17636 = vmatpush3.bf16.msra.mxu0 %v20085_v22  ;;  %v5365_v22 = vrot.slane %v5363_v6, 1 }
 0x37c   : > { %18378 = vmatmul.mubr.bf16.gmra.mrb[116].mxu1 %v11013_v1  ;;  %17637 = vmatprep.subr.bf16.mxu0 %v20088_v31 }
 0x37d   : > { %18390 = vmatpush3.bf16.msra.mxu1 %v20074_v27  ;;  %18397 = vmatprep.mubr.bf16.mxu1 %v24940_v32  ;;  %v5361_v27 = vshrl.u32 %v15182_v38, 16 }
 0x37e   : > { %17606 = vmatmul.mubr.bf16.gmra.mrb[64].mxu0 %v20075_v5  ;;  %18391 = vmatprep.subr.bf16.mxu1 %v20078_v39 }
 0x37f   : > { %17609 = vmatprep.mubr.bf16.mxu0 %v20077_v42  ;;  %17638 = vmatpush3.bf16.msra.mxu0 %v20088_v31  ;;  %v24946_v42 = vld [vmem:[#allocation63_spill] sm:$0xff] }
 0x380   : > { %17639 = vmatprep.subr.bf16.mxu0 %v20092_v24 }
 0x381   : > { %18392 = vmatpush3.bf16.msra.mxu1 %v20078_v39  ;;  %v20091_v39 = vld [vmem:[#allocation2 + $0x8c] sm:$0xff]  }
 0x382   : > { %18393 = vmatprep.subr.bf16.mxu1 %v20079_v57 }
 0x383   : > { %17640 = vmatpush3.bf16.msra.mxu0 %v20092_v24 }
 0x384   : > { %17673 = vmatprep.subr.bf16.mxu0 %v20096_v49 }
 0x385   : > { %18394 = vmatpush3.bf16.msra.mxu1 %v20079_v57  ;;  %v24948_v57 = vshrl.u32 %v22009_v21, 16 }
 0x386   : > { %17610 = vmatmul.mubr.bf16.gmra.mrb[68].mxu0 %v20080_v41  ;;  %18395 = vmatprep.subr.bf16.mxu1 %v20083_v15  ;;  %v24949_v41 = vshll.u32 %v22016_v30, 16  ;;  %v24956_v30 = vld [vmem:[#allocation4_spill] sm:$0xff] }
 0x387   : > { %17613 = vmatprep.mubr.bf16.mxu0 %v20082_v47  ;;  %v24950_v47 = vshrl.u32 %v21997_v28, 16 }
 0x389   : > { %18396 = vmatpush3.bf16.msra.mxu1 %v20083_v15  ;;  %v5386_v15 = vrot.slane %v24949_v41, 1 }
 0x38b   : > { %v5390_v38 = vor.u32 %v24952_v13, %v5386_v15 }
 0x38c   : > { %18398 = vmatmul.mubr.bf16.vlgmr.msra.gmra.mrb[52].mxu1 %v24941_v50 }
 0x38d   : > { %18401 = vmatprep.mubr.bf16.mxu1 %v24942_v58 }
 0x38e   : > { %17614 = vmatmul.mubr.bf16.gmra.mrb[72].mxu0 %v20084_v44 }
 0x38f   : > { %17617 = vmatprep.mubr.bf16.mxu0 %v20086_v37  ;;  %v18211_v25 = vpop.f32.mrb[92].mxu1  ;;  %v20099_v37 = vld [vmem:[%s24491_s3 + $0x288] sm:$0xff]  }
 0x390   : > { %v9927_v51 = vadd.f32 %v18211_v25, %v23266_v3  ;;  %v9903_v1 = vpop.f32.mrb[93].mxu1  ;;  %v24945_v3 = vshll.u32 %v22009_v21, 16  ;;  %v24951_v21 = vshll.u32 %v22019_v45, 16  ;;  %v24953_v25 = vld [vmem:[#allocation18_spill] sm:$0xff] }
 0x391   : > { %v9925_v4 = vadd.f32 %v9903_v1, %v23270_v16  ;;  %v18212_v54 = vpop.f32.mrb[94].mxu1  ;;  %v5366_v16 = vor.u32 %v5365_v22, %v5361_v27  ;;  %v24954_v1 = vshll.u32 %v24953_v25, 16  ;;  %v24958_v27 = vshrl.u32 %v24953_v25, 16 }
 0x392   : > { %v9906_v60 = vpop.f32.mrb[95].mxu1  ;;  %v5370_v5 = vrot.slane %v24945_v3, 1  ;;  %v5394_v58 = vrot.slane %v24951_v21, 1 }
 0x393   : > { %v9926_v12 = vadd.f32 %v9906_v60, %v23276_v33  ;;  %v24947_v33 = vshll.u32 %v21997_v28, 16  ;;  %v20102_v28 = vld [vmem:[%s24491_s3 + $0x290] sm:$0xff]   ;;  %v5402_v54 = vrot.slane %v24954_v1, 1  ;;  %v24955_v60 = vshrl.u32 %v22019_v45, 16  ;;  %v20108_v45 = vld [vmem:[%s24491_s3 + $0x2a0] sm:$0xff]   ;;  %v20117_v1 = vld [vmem:[%s24491_s3 + $0x2b8] sm:$0xff]  }
 0x394   : > { %18402 = vmatmul.mubr.bf16.gmra.mrb[56].mxu1 %v24943_v43  ;;  %v5371_v31 = vsel %vm2075_vm1, %v5366_v16, %v5370_v5  ;;  %v5374_v24 = vor.u32 %v24948_v57, %v5370_v5  ;;  %v5395_v6 = vsel %vm2075_vm1, %v5390_v38, %v5394_v58  ;;  %v24957_v43 = vshll.u32 %v24956_v30, 16  ;;  %v24959_v16 = vld [vmem:[#allocation9_spill] sm:$0xff] }
 0x395   : > { %18405 = vmatprep.mubr.bf16.mxu1 %v24944_v52  ;;  %v5378_v32 = vrot.slane %v24947_v33, 1  ;;  %v5406_v3 = vor.u32 %v24958_v27, %v5402_v54  ;;  %v24964_v21 = vshrl.u32 %v24959_v16, 16 }
 0x396   : > { %17618 = vmatmul.mubr.bf16.gmra.mrb[76].mxu0 %v20087_v8  ;;  %v5398_v8 = vor.u32 %v24955_v60, %v5394_v58  ;;  %v5410_v52 = vrot.slane %v24957_v43, 1 }
 0x397   : > { %17621 = vmatprep.mubr.bf16.mxu0 %v20090_v61  ;;  %v5382_v44 = vor.u32 %v24950_v47, %v5378_v32  ;;  %v5379_v35 = vsel %vm2075_vm1, %v5374_v24, %v5378_v32  ;;  %v24961_v24 = vshrl.u32 %v24956_v30, 16 }
 0x398   : > { %v5403_v61 = vsel %vm2075_vm1, %v5398_v8, %v5402_v54  ;;  %v24968_v8 = vld [vmem:[#allocation67_spill] sm:$0xff] }
 0x399   : > { %v5387_v50 = vsel %vm2075_vm1, %v5382_v44, %v5386_v15  ;;  %v5414_v41 = vor.u32 %v24961_v24, %v5410_v52  ;;  %v20111_v15 = vld [vmem:[%s24491_s3 + $0x2a8] sm:$0xff]   ;;  %v5411_v44 = vsel %vm2075_vm1, %v5406_v3, %v5410_v52  ;;  %v24971_v52 = vld [vmem:[#allocation68_spill] sm:$0xff]  ;;  %v24973_v27 = vshrl.u32 %v24968_v8, 16 }
 0x39c   : > { %18406 = vmatmul.mubr.bf16.gmra.mrb[120].mxu1 %v24946_v42  ;;  %v24960_v42 = vshll.u32 %v24959_v16, 16 }
 0x39e   : > { %17622 = vmatmul.mubr.bf16.gmra.mrb[80].mxu0 %v20091_v39 }
 0x39f   : > { %17641 = vmatprep.mubr.bf16.mxu0 %v5371_v31  ;;  %v5418_v31 = vrot.slane %v24960_v42, 1  ;;  %v24974_v42 = vld [vmem:[#allocation5_spill] sm:$0xff] }
 0x3a1   : > { %v5422_v58 = vor.u32 %v24964_v21, %v5418_v31 }
 0x3a6   : > { %17642 = vmatmul.mubr.bf16.vlgmr.msra.gmra.mrb[52].mxu0 %v5379_v35 }
 0x3a7   : > { %17645 = vmatprep.mubr.bf16.mxu0 %v5387_v50  ;;  %17674 = vmatpush3.bf16.msra.mxu0 %v20096_v49  ;;  %v20105_v49 = vld [vmem:[%s24491_s3 + $0x298] sm:$0xff]   ;;  %v20114_v50 = vld [vmem:[%s24491_s3 + $0x2b0] sm:$0xff]  }
 0x3a8   : > { %17675 = vmatprep.subr.bf16.mxu0 %v20099_v37 }
 0x3ab   : > { %17676 = vmatpush3.bf16.msra.mxu0 %v20099_v37 }
 0x3ac   : > { %17677 = vmatprep.subr.bf16.mxu0 %v20102_v28 }
 0x3ae   : > { %17646 = vmatmul.mubr.bf16.gmra.mrb[56].mxu0 %v5395_v6 }
 0x3af   : > { %17649 = vmatprep.mubr.bf16.mxu0 %v5403_v61  ;;  %17678 = vmatpush3.bf16.msra.mxu0 %v20102_v28  ;;  %v18239_v22 = vpop.f32.mrb[96].mxu1  ;;  %v24965_v28 = vld [vmem:[#allocation66_spill] sm:$0xff]  ;;  %v20119_v61 = vld [vmem:[%s24491_s3 + $0x2c0] sm:$0xff]  }
 0x3b0   : > { %17679 = vmatprep.subr.bf16.mxu0 %v20105_v49  ;;  %v10177_v5 = vadd.f32 %v18239_v22, %v9927_v51  ;;  %v10153_v39 = vpop.f32.mrb[97].mxu1  ;;  %v5419_v51 = vsel %vm2075_vm1, %v5414_v41, %v5418_v31  ;;  %v24970_v30 = vshrl.u32 %v24965_v28, 16  ;;  %v24975_v31 = vshll.u32 %v24974_v42, 16  ;;  %v24977_v41 = vld [vmem:[#allocation6_spill] sm:$0xff] }
 0x3b1   : > { %v10175_v33 = vadd.f32 %v10153_v39, %v9925_v4  ;;  %v18240_v32 = vpop.f32.mrb[98].mxu1  ;;  %v24962_v4 = vld [vmem:[#allocation65_spill] sm:$0xff] }
 0x3b2   : > { %v10156_v57 = vpop.f32.mrb[99].mxu1  ;;  %v24963_v37 = vshll.u32 %v24962_v4, 16  ;;  %v24967_v38 = vshrl.u32 %v24962_v4, 16  ;;  %v5458_v32 = vrot.slane %v24975_v31, 1  ;;  %v24988_v31 = vld [vmem:[#allocation71_spill] sm:$0xff] }
 0x3b3   : > { %17680 = vmatpush3.bf16.msra.mxu0 %v20105_v49  ;;  %v10176_v47 = vadd.f32 %v10156_v57, %v9926_v12  ;;  %v24966_v12 = vshll.u32 %v24965_v28, 16  ;;  %v24969_v49 = vshll.u32 %v24968_v8, 16  ;;  %v24976_v57 = vshrl.u32 %v24971_v52, 16 }
 0x3b4   : > { %17681 = vmatprep.subr.bf16.mxu0 %v20108_v45  ;;  %v5426_v35 = vrot.slane %v24963_v37, 1 }
 0x3b5   : > { %v5434_v13 = vrot.slane %v24966_v12, 1  ;;  %v5442_v6 = vrot.slane %v24969_v49, 1 }
 0x3b6   : > { %17650 = vmatmul.mubr.bf16.gmra.mrb[60].mxu0 %v5411_v44  ;;  %v5430_v25 = vor.u32 %v24967_v38, %v5426_v35  ;;  %v5427_v54 = vsel %vm2075_vm1, %v5422_v58, %v5426_v35  ;;  %v24982_v38 = vshll.u32 %v22127_v9, 16 }
 0x3b7   : > { %17653 = vmatprep.mubr.bf16.mxu0 %v5419_v51  ;;  %17682 = vmatpush3.bf16.msra.mxu0 %v20108_v45  ;;  %v5438_v43 = vor.u32 %v24970_v30, %v5434_v13  ;;  %v24972_v45 = vshll.u32 %v24971_v52, 16  ;;  %v5446_v3 = vor.u32 %v24973_v27, %v5442_v6  ;;  %v24979_v51 = vshrl.u32 %v24974_v42, 16  ;;  %v24987_v42 = vld [vmem:[#allocation70_spill] sm:$0xff] }
 0x3b8   : > { %17683 = vmatprep.subr.bf16.mxu0 %v20111_v15  ;;  %v5435_v60 = vsel %vm2075_vm1, %v5430_v25, %v5434_v13  ;;  %v5482_v25 = vrot.slane %v24982_v38, 1  ;;  %v24985_v27 = vshrl.u32 %v22127_v9, 16  ;;  %v20121_v9 = vld [vmem:[%s24491_s3 + $0x2d0] sm:$0xff]   ;;  %v24994_v38 = vld [vmem:[#allocation77_spill] sm:$0xff] }
 0x3b9   : > { %v5450_v22 = vrot.slane %v24972_v45, 1  ;;  %v5443_v39 = vsel %vm2075_vm1, %v5438_v43, %v5442_v6  ;;  %v5462_v4 = vor.u32 %v24979_v51, %v5458_v32  ;;  %v20383_v45 = vld [vmem:[#allocation2 + $0x94] ss:$0 sps:$4 sm:$0x11]  }
 0x3bb   : > { %17684 = vmatpush3.bf16.msra.mxu0 %v20111_v15  ;;  %v5451_v16 = vsel %vm2075_vm1, %v5446_v3, %v5450_v22  ;;  %v5454_v24 = vor.u32 %v24976_v57, %v5450_v22  ;;  %v24978_v15 = vshll.u32 %v24977_v41, 16  ;;  %v5488_v22 = vshll.u32 %v20383_v45, 16  ;;  %v24989_v57 = vld [vmem:[#allocation73_spill] sm:$0xff] }
 0x3bc   : > { %17685 = vmatprep.subr.bf16.mxu0 %v20114_v50 }
 0x3bd   : > { %v5466_v44 = vrot.slane %v24978_v15, 1  ;;  %v5459_v37 = vsel %vm2075_vm1, %v5454_v24, %v5458_v32  ;;  %v5490_v3 = vrot.slane %v5488_v22, 1  ;;  %v20122_v32 = vld [vmem:[%s24491_s3 + $0x2d8] sm:$0xff]   ;;  %v24990_v24 = vld [vmem:[#allocation74_spill] sm:$0xff] }
 0x3be   : > { %17654 = vmatmul.mubr.bf16.gmra.mrb[64].mxu0 %v5427_v54 }
 0x3bf   : > { %17657 = vmatprep.mubr.bf16.mxu0 %v5435_v60  ;;  %17686 = vmatpush3.bf16.msra.mxu0 %v20114_v50  ;;  %v5467_v35 = vsel %vm2075_vm1, %v5462_v4, %v5466_v44  ;;  %v24980_v50 = vld [vmem:[#allocation69_spill] sm:$0xff]  ;;  %v24983_v60 = vshrl.u32 %v24977_v41, 16 }
 0x3c0   : > { %17687 = vmatprep.subr.bf16.mxu0 %v20117_v1  ;;  %v24981_v21 = vshll.u32 %v24980_v50, 16  ;;  %v24984_v6 = vshrl.u32 %v24980_v50, 16 }
 0x3c1   : > { %v5470_v8 = vor.u32 %v24983_v60, %v5466_v44  ;;  %v24997_v60 = vld [vmem:[#allocation79_spill] sm:$0xff] }
 0x3c2   : > { %v5474_v58 = vrot.slane %v24981_v21, 1  ;;  %v24991_v21 = vld [vmem:[#allocation75_spill] sm:$0xff] }
 0x3c3   : > { %17688 = vmatpush3.bf16.msra.mxu0 %v20117_v1 }
 0x3c4   : > { %17721 = vmatprep.subr.bf16.mxu0 %v20119_v61  ;;  %v5478_v30 = vor.u32 %v24984_v6, %v5474_v58  ;;  %v5475_v52 = vsel %vm2075_vm1, %v5470_v8, %v5474_v58  ;;  %v24992_v58 = vld [vmem:[#allocation7_spill] sm:$0xff]  ;;  %v24998_v8 = vld [vmem:[#allocation80_spill] sm:$0xff] }
 0x3c6   : > { %17658 = vmatmul.mubr.bf16.gmra.mrb[68].mxu0 %v5443_v39 }
 0x3c7   : > { %17661 = vmatprep.mubr.bf16.mxu0 %v5451_v16  ;;  %v24986_v16 = vld [vmem:[#allocation72_spill] sm:$0xff] }
 0x3ce   : > { %17662 = vmatmul.mubr.bf16.gmra.mrb[72].mxu0 %v5459_v37 }
 0x3cf   : > { %17665 = vmatprep.mubr.bf16.mxu0 %v5467_v35  ;;  %v18267_v28 = vpop.f32.mrb[100].mxu1  ;;  %v20124_v35 = vld [vmem:[%s24491_s3 + $0x2e8] sm:$0xff]  }
 0x3d0   : > { %v10353_v12 = vadd.f32 %v18267_v28, %v10177_v5  ;;  %v10329_v13 = vpop.f32.mrb[101].mxu1  ;;  %v5483_v5 = vsel %vm2075_vm1, %v5478_v30, %v5482_v25  ;;  %v20125_v28 = vld [vmem:[%s24491_s3 + $0x2f0] sm:$0xff]  }
 0x3d1   : > { %v10351_v1 = vadd.f32 %v10329_v13, %v10175_v33  ;;  %v18268_v54 = vpop.f32.mrb[102].mxu1  ;;  %v5486_v33 = vor.u32 %v24985_v27, %v5482_v25  ;;  %v24993_v13 = vld [vmem:[#allocation76_spill] sm:$0xff]  ;;  %v20127_v25 = vld [vmem:[%s24491_s3 + $0x300] sm:$0xff]   ;;  %v25000_v27 = vld [vmem:[#allocation82_spill] sm:$0xff] }
 0x3d2   : > { %v10332_v49 = vpop.f32.mrb[103].mxu1  ;;  %v24996_v54 = vld [vmem:[#allocation78_spill] sm:$0xff] }
 0x3d3   : > { %v10352_v43 = vadd.f32 %v10332_v49, %v10176_v47  ;;  %v5491_v39 = vsel %vm2075_vm1, %v5486_v33, %v5490_v3  ;;  %v20120_v47 = vld [vmem:[%s24491_s3 + $0x2c8] sm:$0xff]   ;;  %v25001_v33 = vld [vmem:[#allocation83_spill] sm:$0xff] }
 0x3d4   : > { %v20128_v3 = vld [vmem:[%s24491_s3 + $0x308] sm:$0xff]  }
 0x3d6   : > { %17666 = vmatmul.mubr.bf16.gmra.mrb[76].mxu0 %v5475_v52 }
 0x3d7   : > { %17669 = vmatprep.mubr.bf16.mxu0 %v5483_v5  ;;  %v24999_v5 = vld [vmem:[#allocation81_spill] sm:$0xff] }
 0x3de   : > { %17670 = vmatmul.mubr.bf16.gmra.mrb[80].mxu0 %v5491_v39  ;;  %v25002_v39 = vld [vmem:[#allocation10_spill] sm:$0xff] }
 0x3df   : > { %17689 = vmatprep.mubr.bf16.mxu0 %v24986_v16  ;;  %v25003_v16 = vld [vmem:[#allocation11_spill] sm:$0xff] }
 0x3e6   : > { %17690 = vmatmul.mubr.bf16.vlgmr.msra.gmra.mrb[52].mxu0 %v24987_v42  ;;  %v25004_v42 = vld [vmem:[#allocation84_spill] sm:$0xff] }
 0x3e7   : > { %17693 = vmatprep.mubr.bf16.mxu0 %v24988_v31  ;;  %17722 = vmatpush3.bf16.msra.mxu0 %v20119_v61  ;;  %v20123_v61 = vld [vmem:[%s24491_s3 + $0x2e0] sm:$0xff]  }
 0x3e8   : > { %17723 = vmatprep.subr.bf16.mxu0 %v20120_v47  ;;  %v25005_v31 = vld [vmem:[#allocation85_spill] sm:$0xff] }
 0x3eb   : > { %17724 = vmatpush3.bf16.msra.mxu0 %v20120_v47  ;;  %v20129_v47 = vld [vmem:[%s24491_s3 + $0x310] sm:$0xff]  }
 0x3ec   : > { %17725 = vmatprep.subr.bf16.mxu0 %v20121_v9 }
 0x3ee   : > { %17694 = vmatmul.mubr.bf16.gmra.mrb[56].mxu0 %v24989_v57 }
 0x3ef   : > { %17697 = vmatprep.mubr.bf16.mxu0 %v24990_v24  ;;  %17726 = vmatpush3.bf16.msra.mxu0 %v20121_v9  ;;  %v18295_v41 = vpop.f32.mrb[104].mxu1  ;;  %v20131_v9 = vld [vmem:[%s24491_s3 + $0x320] sm:$0xff]  }
 0x3f0   : > { %17727 = vmatprep.subr.bf16.mxu0 %v20122_v32  ;;  %v10551_v15 = vadd.f32 %v18295_v41, %v10353_v12  ;;  %v10527_v44 = vpop.f32.mrb[105].mxu1  ;;  %v20126_v12 = vld [vmem:[%s24491_s3 + $0x2f8] sm:$0xff]  }
 0x3f1   : > { %v10549_v51 = vadd.f32 %v10527_v44, %v10351_v1  ;;  %v18296_v4 = vpop.f32.mrb[106].mxu1  ;;  %v24995_v1 = vld [vmem:[#allocation8_spill] sm:$0xff]  ;;  %v20132_v44 = vld [vmem:[%s24491_s3 + $0x328] sm:$0xff]  }
 0x3f2   : > { %v10530_v37 = vpop.f32.mrb[107].mxu1  ;;  %v25006_v4 = vld [vmem:[#allocation86_spill] sm:$0xff] }
 0x3f3   : > { %17728 = vmatpush3.bf16.msra.mxu0 %v20122_v32  ;;  %v10550_v50 = vadd.f32 %v10530_v37, %v10352_v43  ;;  %v25007_v37 = vld [vmem:[#allocation87_spill] sm:$0xff] }
 0x3f4   : > { %17729 = vmatprep.subr.bf16.mxu0 %v20123_v61 }
 0x3f6   : > { %17698 = vmatmul.mubr.bf16.gmra.mrb[60].mxu0 %v24991_v21  ;;  %v25008_v21 = vld [vmem:[#allocation88_spill] sm:$0xff] }
 0x3f7   : > { %17701 = vmatprep.mubr.bf16.mxu0 %v24992_v58  ;;  %17730 = vmatpush3.bf16.msra.mxu0 %v20123_v61  ;;  %v25009_v58 = vld [vmem:[#allocation89_spill] sm:$0xff] }
 0x3f8   : > { %17731 = vmatprep.subr.bf16.mxu0 %v20124_v35 }
 0x3fb   : > { %17732 = vmatpush3.bf16.msra.mxu0 %v20124_v35  ;;  %v20133_v35 = vld [vmem:[%s24491_s3 + $0x330] sm:$0xff]  }
 0x3fc   : > { %17733 = vmatprep.subr.bf16.mxu0 %v20125_v28 }
 0x3fe   : > { %17702 = vmatmul.mubr.bf16.gmra.mrb[64].mxu0 %v24993_v13  ;;  %v25011_v13 = vld [vmem:[#allocation91_spill] sm:$0xff] }
 0x3ff   : > { %17705 = vmatprep.mubr.bf16.mxu0 %v24994_v38  ;;  %17734 = vmatpush3.bf16.msra.mxu0 %v20125_v28  ;;  %v20139_v28 = vld [vmem:[%s24491_s3 + $0x340] sm:$0xff]   ;;  %v20134_v38 = vld [vmem:[#allocation2 + $0x94] ss:$0 sps:$4 sm:$0x33]  }
 0x400   : > { %17735 = vmatprep.subr.bf16.mxu0 %v20126_v12 }
 0x403   : > { %17736 = vmatpush3.bf16.msra.mxu0 %v20126_v12  ;;  %v25010_v12 = vld [vmem:[#allocation90_spill] sm:$0xff] }
 0x404   : > { %17769 = vmatprep.subr.bf16.mxu0 %v20127_v25 }
 0x406   : > { %17706 = vmatmul.mubr.bf16.gmra.mrb[68].mxu0 %v24995_v1  ;;  %v25013_v1 = vld [vmem:[#allocation93_spill] sm:$0xff] }
 0x407   : > { %17709 = vmatprep.mubr.bf16.mxu0 %v24996_v54 }
 0x40e   : > { %17710 = vmatmul.mubr.bf16.gmra.mrb[72].mxu0 %v24997_v60  ;;  %v6148_v60 = vshrl.u32 %v20134_v38, 16 }
 0x40f   : > { %17713 = vmatprep.mubr.bf16.mxu0 %v24998_v8  ;;  %v18323_v49 = vpop.f32.mrb[108].mxu1  ;;  %v6151_v8 = vshll.u32 %v20134_v38, 16 }
 0x410   : > { %v10765_v6 = vadd.f32 %v18323_v49, %v10551_v15  ;;  %v10741_v30 = vpop.f32.mrb[109].mxu1 }
 0x411   : > { %v10763_v43 = vadd.f32 %v10741_v30, %v10549_v51  ;;  %v18324_v52 = vpop.f32.mrb[110].mxu1 }
 0x412   : > { %v10744_v45 = vpop.f32.mrb[111].mxu1 }
 0x413   : > { %v10764_v22 = vadd.f32 %v10744_v45, %v10550_v50  ;;  %v20135_v50 = vld [vmem:[%s24491_s3 + $0x338] sm:$0xff]  }
 0x416   : > { %17714 = vmatmul.mubr.bf16.gmra.mrb[76].mxu0 %v24999_v5  ;;  %v6153_v5 = vrot.slane %v6151_v8, 2 }
 0x417   : > { %17717 = vmatprep.mubr.bf16.mxu0 %v25000_v27  ;;  %v6413_v27 = vld [vmem:[#allocation2 + $0x1c] sm:$0xc] }
 0x41e   : > { %17718 = vmatmul.mubr.bf16.gmra.mrb[80].mxu0 %v22651_v56  ;;  %v20130_v56 = vld [vmem:[%s24491_s3 + $0x318] sm:$0xff]  }
 0x41f   : > { %17737 = vmatprep.mubr.bf16.mxu0 %v25001_v33  ;;  %v25014_v33 = vld [vmem:[#allocation95_spill] sm:$0xff] }
 0x426   : > { %17738 = vmatmul.mubr.bf16.vlgmr.msra.gmra.mrb[52].mxu0 %v25002_v39 }
 0x427   : > { %17741 = vmatprep.mubr.bf16.mxu0 %v25003_v16  ;;  %17770 = vmatpush3.bf16.msra.mxu0 %v20127_v25  ;;  %v25012_v25 = vld [vmem:[#allocation92_spill] sm:$0xff] }
 0x428   : > { %17771 = vmatprep.subr.bf16.mxu0 %v20128_v3  ;;  %v25015_v16 = vld [vmem:[#allocation96_spill] sm:$0xff] }
 0x42b   : > { %17772 = vmatpush3.bf16.msra.mxu0 %v20128_v3  ;;  %v20384_v3 = vld [vmem:[#allocation2 + $0x20] sm:$0xf] }
 0x42c   : > { %17773 = vmatprep.subr.bf16.mxu0 %v20129_v47  ;;  %v23502_v39 = vcombine.low %v6413_v27, %v20384_v3 }
 0x42e   : > { %17742 = vmatmul.mubr.bf16.gmra.mrb[56].mxu0 %v25004_v42  ;;  %v20385_v42 = vld [vmem:[#allocation2 + $0x24] sm:$0xff]  }
 0x42f   : > { %17745 = vmatprep.mubr.bf16.mxu0 %v25005_v31  ;;  %17774 = vmatpush3.bf16.msra.mxu0 %v20129_v47  ;;  %v18351_v32 = vpop.f32.mrb[112].mxu1  ;;  %v6546_v31 = vrot.slane %v20385_v42, 2 }
 0x430   : > { %17775 = vmatprep.subr.bf16.mxu0 %v20130_v56  ;;  %v10983_v57 = vadd.f32 %v18351_v32, %v10765_v6  ;;  %v10959_v24 = vpop.f32.mrb[113].mxu1 }
 0x431   : > { %v10981_v61 = vadd.f32 %v10959_v24, %v10763_v43  ;;  %v18352_v41 = vpop.f32.mrb[114].mxu1  ;;  %v23512_v24 = vld [vmem:[%s24492_s4] ss:$0 sm:$0xff] }
 0x432   : > { %v10962_v15 = vpop.f32.mrb[115].mxu1  ;;  %v20386_v41 = vld [vmem:[#allocation2 + $0x2c] sm:$0xff]  }
 0x433   : > { %17776 = vmatpush3.bf16.msra.mxu0 %v20130_v56  ;;  %v10982_v51 = vadd.f32 %v10962_v15, %v10764_v22  ;;  %v6150_v22 = vrot.slane %v6148_v60, 1  ;;  %v6545_v56 = vrot.slane %v23502_v39, 2  ;;  %v6548_v15 = vrot.slane %v20386_v41, 2 }
 0x434   : > { %17777 = vmatprep.subr.bf16.mxu0 %v20131_v9 }
 0x435   : > { %v6154_v47 = vor.u32 %v6153_v5, %v6150_v22  ;;  %v6549_v38 = vsel %vm3456_vm6, %v6546_v31, %v6548_v15  ;;  %v20388_v5 = vld [vmem:[#allocation2 + $0x3c] sm:$0xff]  }
 0x436   : > { %17746 = vmatmul.mubr.bf16.gmra.mrb[60].mxu0 %v25006_v4  ;;  %v20387_v4 = vld [vmem:[#allocation2 + $0x34] sm:$0xff]   ;;  %v6552_v27 = vrot.slane %v20388_v5, 2  ;;  %v20392_v5 = vld [vmem:[#allocation2 + $0x5c] sm:$0xff]  }
 0x437   : > { %17749 = vmatprep.mubr.bf16.mxu0 %v25007_v37  ;;  %17778 = vmatpush3.bf16.msra.mxu0 %v20131_v9  ;;  %v25016_v9 = vld [vmem:[#allocation94_spill] sm:$0xff]  ;;  %v6550_v37 = vrot.slane %v20387_v4, 2 }
 0x438   : > { %17779 = vmatprep.subr.bf16.mxu0 %v20132_v44  ;;  %v6155_v32 = vsel %vm2989_vm2, %v25016_v9, %v6154_v47  ;;  %v20148_v9 = vld [vmem:[%s24491_s3 + $0x358] sm:$0xff]  }
 0x43b   : > { %17780 = vmatpush3.bf16.msra.mxu0 %v20132_v44 }
 0x43c   : > { %17781 = vmatprep.subr.bf16.mxu0 %v20133_v35 }
 0x43e   : > { %17750 = vmatmul.mubr.bf16.gmra.mrb[64].mxu0 %v25008_v21 }
 0x43f   : > { %17753 = vmatprep.mubr.bf16.mxu0 %v25009_v58  ;;  %17782 = vmatpush3.bf16.msra.mxu0 %v20133_v35 }
 0x440   : > { %17783 = vmatprep.subr.bf16.mxu0 %v20135_v50 }
 0x443   : > { %17784 = vmatpush3.bf16.msra.mxu0 %v20135_v50 }
 0x444   : > { %17817 = vmatprep.subr.bf16.mxu0 %v20139_v28 }
 0x446   : > { %17754 = vmatmul.mubr.bf16.gmra.mrb[68].mxu0 %v25010_v12  ;;  %v20142_v12 = vld [vmem:[%s24491_s3 + $0x348] sm:$0xff]  }
 0x447   : > { %17757 = vmatprep.mubr.bf16.mxu0 %v25011_v13 }
 0x44e   : > { %17758 = vmatmul.mubr.bf16.gmra.mrb[72].mxu0 %v25012_v25 }
 0x44f   : > { %17761 = vmatprep.mubr.bf16.mxu0 %v25013_v1  ;;  %v18379_v54 = vpop.f32.mrb[116].mxu1 }
 0x450   : > { %v23495_v49 = vadd.f32 %v18379_v54, %v10983_v57  ;;  %v11135_v6 = vpop.f32.mrb[117].mxu1  ;;  %v6547_v57 = vsel %vm3456_vm6, %v6545_v56, %v6546_v31  ;;  %v6551_v54 = vsel %vm3456_vm6, %v6548_v15, %v6550_v37 }
 0x451   : > { %v23497_v30 = vadd.f32 %v11135_v6, %v10981_v61  ;;  %v18380_v43 = vpop.f32.mrb[118].mxu1 }
 0x452   : > { %v11138_v52 = vpop.f32.mrb[119].mxu1  ;;  %v20145_v43 = vld [vmem:[%s24491_s3 + $0x350] sm:$0xff]  }
 0x453   : > { %v23499_v45 = vadd.f32 %v11138_v52, %v10982_v51 }
 0x456   : > { %17762 = vmatmul.mubr.bf16.gmra.mrb[76].mxu0 %v25014_v33 }
 0x457   : > { %17765 = vmatprep.mubr.bf16.mxu0 %v25015_v16  ;;  %v20389_v16 = vld [vmem:[#allocation2 + $0x44] sm:$0xff]  }
 0x458   : > { %v6554_v47 = vrot.slane %v20389_v16, 2 }
 0x45a   : > { %v6555_v15 = vsel %vm3456_vm6, %v6552_v27, %v6554_v47 }
 0x45e   : > { %17766 = vmatmul.mubr.bf16.gmra.mrb[80].mxu0 %v6155_v32 }
 0x45f   : > { %17785 = vmatprep.mubr.bf16.mxu0 %v6547_v57  ;;  %v18399_v61 = vpop.f32.mrb[52].mxu1  ;;  %v6553_v57 = vsel %vm3456_vm6, %v6550_v37, %v6552_v27  ;;  %v6560_v27 = vrot.slane %v20392_v5, 2 }
 0x460   : > { %v11360_v44 = vadd.f32 %v18399_v61, %v23512_v24  ;;  %v11301_v51 = vpop.f32.mrb[53].mxu1 }
 0x461   : > { %v11358_v35 = vadd.f32 %v23512_v24, %v11301_v51  ;;  %v18400_v50 = vpop.f32.mrb[54].mxu1 }
 0x462   : > { %v11361_v21 = vadd.f32 %v18400_v50, %v23512_v24  ;;  %v11304_v58 = vpop.f32.mrb[55].mxu1  ;;  %v11371_v25 = vmax.f32 %v11360_v44, 0.0 }
 0x463   : > { %v11359_v13 = vadd.f32 %v23512_v24, %v11304_v58  ;;  %v11369_v60 = vmax.f32 %v11358_v35, 0.0  ;;  %v20151_v35 = vld [vmem:[%s24491_s3 + $0x360] sm:$0xff]   ;;  %v20390_v58 = vld [vmem:[#allocation2 + $0x4c] sm:$0xff]  }
 0x464   : > { %v11372_v1 = vmax.f32 %v11361_v21, 0.0 }
 0x465   : > { %v11370_v8 = vmax.f32 %v11359_v13, 0.0 }
 0x466   : > { %17786 = vmatmul.mubr.bf16.vlgmr.msra.gmra.mrb[52].mxu0 %v6549_v38  ;;  %v16026_v6 = vpack.c.bf16 %v11372_v1, %v11371_v25  ;;  %v20391_v38 = vld [vmem:[#allocation2 + $0x54] sm:$0xff]  }
 0x467   : > { %17789 = vmatprep.mubr.bf16.mxu0 %v6551_v54  ;;  %17818 = vmatpush3.bf16.msra.mxu0 %v20139_v28  ;;  %v16021_v52 = vpack.c.bf16 %v11370_v8, %v11369_v60  ;;  %v18403_v22 = vpop.f32.mrb[56].mxu1  ;;  %v6558_v25 = vrot.slane %v20391_v38, 2 }
 0x468   : > { %17819 = vmatprep.subr.bf16.mxu0 %v20142_v12  ;;  %16083 = vst [vmem:[#allocation3 + $0x88] sm:$0xff] %v16026_v6   ;;  %v11364_v33 = vadd.f32 %v18403_v22, %v23512_v24  ;;  %v11317_v3 = vpop.f32.mrb[57].mxu1  ;;  %v20154_v6 = vld [vmem:[%s24491_s3 + $0x368] sm:$0xff]  }
 0x469   : > { %16082 = vst [vmem:[#allocation3 + $0x80] sm:$0xff] %v16021_v52   ;;  %v11362_v56 = vadd.f32 %v23512_v24, %v11317_v3  ;;  %v18404_v28 = vpop.f32.mrb[58].mxu1  ;;  %v20393_v3 = vld [vmem:[#allocation2 + $0x64] sm:$0xff]  }
 0x46a   : > { %v11365_v42 = vadd.f32 %v18404_v28, %v23512_v24  ;;  %v11320_v31 = vpop.f32.mrb[59].mxu1  ;;  %v11375_v61 = vmax.f32 %v11364_v33, 0.0  ;;  %v6562_v16 = vrot.slane %v20393_v3, 2 }
 0x46b   : > { %17820 = vmatpush3.bf16.msra.mxu0 %v20142_v12  ;;  %v11363_v32 = vadd.f32 %v23512_v24, %v11320_v31  ;;  %v11373_v44 = vmax.f32 %v11362_v56, 0.0  ;;  %v6556_v12 = vrot.slane %v20390_v58, 2  ;;  %v20157_v56 = vld [vmem:[%s24491_s3 + $0x370] sm:$0xff]  }
 0x46c   : > { %17821 = vmatprep.subr.bf16.mxu0 %v20145_v43  ;;  %v11376_v41 = vmax.f32 %v11365_v42, 0.0  ;;  %v20160_v42 = vld [vmem:[%s24491_s3 + $0x378] sm:$0xff]  }
 0x46d   : > { %v11374_v51 = vmax.f32 %v11363_v32, 0.0  ;;  %v6557_v52 = vsel %vm3456_vm6, %v6554_v47, %v6556_v12  ;;  %v6563_v32 = vsel %vm3456_vm6, %v6560_v27, %v6562_v16 }
 0x46e   : > { %17790 = vmatmul.mubr.bf16.gmra.mrb[56].mxu0 %v6553_v57  ;;  %v16036_v4 = vpack.c.bf16 %v11376_v41, %v11375_v61  ;;  %v20161_v57 = vld [vmem:[%s24491_s3 + $0x380] sm:$0xff]   ;;  %v20394_v61 = vld [vmem:[#allocation2 + $0x6c] sm:$0xff]  }
 0x46f   : > { %17793 = vmatprep.mubr.bf16.mxu0 %v6555_v15  ;;  %17822 = vmatpush3.bf16.msra.mxu0 %v20145_v43  ;;  %v16031_v50 = vpack.c.bf16 %v11374_v51, %v11373_v44  ;;  %v18407_v21 = vpop.f32.mrb[120].mxu1  ;;  %v6564_v41 = vrot.slane %v20394_v61, 2  ;;  %v20395_v15 = vld [vmem:[#allocation2 + $0x74] sm:$0xff]  }
 0x470   : > { %17823 = vmatprep.subr.bf16.mxu0 %v20148_v9  ;;  %16085 = vst [vmem:[#allocation3 + $0x98] sm:$0xff] %v16036_v4   ;;  %v11357_v37 = vadd.f32 %v18407_v21, %v23495_v49  ;;  %v11333_v13 = vpop.f32.mrb[121].mxu1  ;;  %v6566_v44 = vrot.slane %v20395_v15, 2  ;;  %v20397_v21 = vld [vmem:[#allocation2 + $0x84] sm:$0xff]  }
 0x471   : > { %16084 = vst [vmem:[#allocation3 + $0x90] sm:$0xff] %v16031_v50   ;;  %v11355_v1 = vadd.f32 %v11333_v13, %v23497_v30  ;;  %v18408_v54 = vpop.f32.mrb[122].mxu1  ;;  %v6559_v30 = vsel %vm3456_vm6, %v6556_v12, %v6558_v25  ;;  %v6565_v51 = vsel %vm3456_vm6, %v6562_v16, %v6564_v41  ;;  %v6570_v58 = vrot.slane %v20397_v21, 2  ;;  %v20398_v13 = vld [vmem:[#allocation2 + $0x8c] sm:$0xff]   ;;  %v25026_v21 = vld [vmem:[#allocation97_spill] sm:$0xff] }
 0x472   : > { %v11368_v60 = vadd.f32 %v23512_v24, %v11357_v37  ;;  %v11336_v8 = vpop.f32.mrb[123].mxu1  ;;  %v6567_v4 = vsel %vm3456_vm6, %v6564_v41, %v6566_v44  ;;  %v6572_v38 = vrot.slane %v20398_v13, 2 }
 0x473   : > { %17824 = vmatpush3.bf16.msra.mxu0 %v20148_v9  ;;  %v11366_v43 = vadd.f32 %v23512_v24, %v11355_v1  ;;  %v11356_v49 = vadd.f32 %v11336_v8, %v23499_v45  ;;  %v6561_v9 = vsel %vm3456_vm6, %v6558_v25, %v6560_v27  ;;  %v6856_v25 = vshrl.u32 %v23502_v39, 16  ;;  %v20399_v1 = vld [vmem:[#allocation2 + $0x94] sm:$0xff]  }
 0x474   : > { %17825 = vmatprep.subr.bf16.mxu0 %v20151_v35  ;;  %v11379_v22 = vmax.f32 %v11368_v60, 0.0  ;;  %v6574_v54 = vrot.slane %v20399_v1, 2  ;;  %v6859_v60 = vshll.u32 %v23502_v39, 16  ;;  %v6573_v8 = vsel %vm3456_vm6, %v6570_v58, %v6572_v38 }
 0x475   : > { %v11367_v33 = vadd.f32 %v23512_v24, %v11356_v49  ;;  %v11377_v45 = vmax.f32 %v11366_v43, 0.0  ;;  %v6858_v43 = vrot.slane %v6856_v25, 2  ;;  %v25029_v25 = vshrl.u32 %v22403_v19, 16 }
 0x476   : > { %17794 = vmatmul.mubr.bf16.gmra.mrb[60].mxu0 %v6557_v52  ;;  %v15780_v28 = vpack.c.bf16 %v11379_v22, %v11379_v22  ;;  %v6575_v49 = vsel %vm3456_vm6, %v6572_v38, %v6574_v54  ;;  %v6861_v52 = vrot.slane %v6859_v60, 3  ;;  %v25017_v22 = vld [vmem:[#allocation16_spill] sm:$0xff] }
 0x477   : > { %17797 = vmatprep.mubr.bf16.mxu0 %v6559_v30  ;;  %17826 = vmatpush3.bf16.msra.mxu0 %v20151_v35  ;;  %v11378_v47 = vmax.f32 %v11367_v33, 0.0  ;;  %v20396_v35 = vld [vmem:[#allocation2 + $0x7c] sm:$0xff]   ;;  %v25018_v30 = vshrl.u32 %v25017_v22, 16  ;;  %v25019_v27 = vshll.u32 %v25017_v22, 16  ;;  %v6902_v1 = vrot.slane %v25029_v25, 2 }
 0x478   : > { %17827 = vmatprep.subr.bf16.mxu0 %v20154_v6  ;;  %11435 = vst [vmem:[#allocation3 + $0xa8] sm:$0xf] %v15780_v28  ;;  %v6568_v50 = vrot.slane %v20396_v35, 2  ;;  %v6862_v16 = vor.u32 %v6861_v52, %v6858_v43  ;;  %v25020_v28 = vld [vmem:[#allocation17_spill] sm:$0xff]  ;;  %v20162_v35 = vld [vmem:[%s24491_s3 + $0x388] sm:$0xff]  }
 0x479   : > { %v16041_v31 = vpack.c.bf16 %v11378_v47, %v11377_v45  ;;  %v6866_v5 = vrot.slane %v25018_v30, 2  ;;  %v6869_v33 = vrot.slane %v25019_v27, 3  ;;  %v25021_v45 = vshrl.u32 %v25020_v28, 16 }
 0x47a   : > { %v6569_v12 = vsel %vm3456_vm6, %v6566_v44, %v6568_v50  ;;  %v6571_v37 = vsel %vm3456_vm6, %v6568_v50, %v6570_v58  ;;  %v25027_v58 = vshrl.u32 %v25026_v21, 16  ;;  %v25033_v27 = vshrl.u32 %v22407_v59, 16 }
 0x47b   : > { %17828 = vmatpush3.bf16.msra.mxu0 %v20154_v6  ;;  %16086 = vst [vmem:[#allocation3 + $0xa0] sm:$0xff] %v16041_v31   ;;  %v20159_v6 = vld [vmem:[#allocation2 + $0x9c] ss:$0 sps:$4 sm:$0x33]   ;;  %v6875_v47 = vrot.slane %v25021_v45, 2 }
 0x47c   : > { %17829 = vmatprep.subr.bf16.mxu0 %v20157_v56  ;;  %v6576_v3 = vrot.slane %v20159_v6, 2 }
 0x47e   : > { %17798 = vmatmul.mubr.bf16.gmra.mrb[64].mxu0 %v6561_v9  ;;  %v6577_v39 = vsel %vm3456_vm6, %v6574_v54, %v6576_v3  ;;  %v25030_v54 = vshll.u32 %v22403_v19, 16  ;;  %v25031_v19 = vshrl.u32 %v22405_v62, 16  ;;  %v25034_v3 = vshll.u32 %v22407_v59, 16 }
 0x47f   : > { %17801 = vmatprep.mubr.bf16.mxu0 %v6563_v32  ;;  %17830 = vmatpush3.bf16.msra.mxu0 %v20157_v56  ;;  %v6870_v56 = vor.u32 %v6869_v33, %v6866_v5  ;;  %v25023_v32 = vld [vmem:[#allocation12_spill] sm:$0xff]  ;;  %v6920_v33 = vrot.slane %v25033_v27, 2  ;;  %v25035_v59 = vshrl.u32 %v22424_v2, 16 }
 0x480   : > { %17831 = vmatprep.subr.bf16.mxu0 %v20160_v42  ;;  %v25024_v61 = vshrl.u32 %v25023_v32, 16  ;;  %v25025_v15 = vshll.u32 %v25023_v32, 16  ;;  %v6905_v60 = vrot.slane %v25030_v54, 3  ;;  %v6911_v22 = vrot.slane %v25031_v19, 2 }
 0x481   : > { %v6871_v9 = vsel %vm3767_vm7, %v6862_v16, %v6870_v56  ;;  %v6923_v16 = vrot.slane %v25034_v3, 3  ;;  %v25037_v32 = vshrl.u32 %v22426_v26, 16 }
 0x482   : > { %v6884_v41 = vrot.slane %v25024_v61, 2  ;;  %v6887_v44 = vrot.slane %v25025_v15, 3  ;;  %v6906_v43 = vor.u32 %v6905_v60, %v6902_v1  ;;  %v20171_v1 = vld [vmem:[%s24491_s3 + $0x3c0] sm:$0xff]  }
 0x483   : > { %17832 = vmatpush3.bf16.msra.mxu0 %v20160_v42  ;;  %v25022_v42 = vshll.u32 %v25020_v28, 16  ;;  %v6924_v28 = vor.u32 %v6923_v16, %v6920_v33  ;;  %v6938_v61 = vrot.slane %v25037_v32, 2  ;;  %v25047_v33 = vshrl.u32 %v22458_v17, 16 }
 0x484   : > { %17865 = vmatprep.subr.bf16.mxu0 %v20161_v57 }
 0x485   : > { %v6878_v31 = vrot.slane %v25022_v42, 3  ;;  %v25036_v42 = vshll.u32 %v22424_v2, 16  ;;  %v20169_v2 = vld [vmem:[%s24491_s3 + $0x3b8] sm:$0xff]   ;;  %v6983_v3 = vrot.slane %v25047_v33, 2 }
 0x486   : > { %17802 = vmatmul.mubr.bf16.gmra.mrb[68].mxu0 %v6565_v51 }
 0x487   : > { %17805 = vmatprep.mubr.bf16.mxu0 %v6567_v4  ;;  %v6879_v51 = vor.u32 %v6878_v31, %v6875_v47  ;;  %v6888_v4 = vor.u32 %v6887_v44, %v6884_v41  ;;  %v6929_v47 = vrot.slane %v25035_v59, 2  ;;  %v6932_v31 = vrot.slane %v25036_v42, 3  ;;  %v20167_v44 = vld [vmem:[%s24491_s3 + $0x3b0] sm:$0xff]   ;;  %v20400_v59 = vld [vmem:[#allocation2 + $0x9c] ss:$0 sps:$4 sm:$0x77]  }
 0x488   : > { %v25038_v41 = vshll.u32 %v22426_v26, 16  ;;  %v25039_v26 = vshrl.u32 %v22429_v40, 16  ;;  %v7002_v42 = vshll.u32 %v20400_v59, 16 }
 0x489   : > { %v6880_v50 = vsel %vm3767_vm7, %v6870_v56, %v6879_v51  ;;  %v6889_v38 = vsel %vm3767_vm7, %v6879_v51, %v6888_v4  ;;  %v20165_v56 = vld [vmem:[%s24491_s3 + $0x3a0] sm:$0xff]   ;;  %v6933_v51 = vor.u32 %v6932_v31, %v6929_v47  ;;  %v6999_v47 = vshrl.u32 %v20400_v59, 16  ;;  %v25074_v59 = vld [vmem:[#allocation15_spill] sm:$0xff] }
 0x48a   : > { %v6941_v15 = vrot.slane %v25038_v41, 3 }
 0x48b   : > { %v7001_v32 = vrot.slane %v6999_v47, 2 }
 0x48e   : > { %17806 = vmatmul.mubr.bf16.gmra.mrb[72].mxu0 %v6569_v12  ;;  %v6893_v12 = vrot.slane %v25027_v58, 2 }
 0x48f   : > { %17809 = vmatprep.mubr.bf16.mxu0 %v6571_v37  ;;  %v25028_v37 = vshll.u32 %v25026_v21, 16  ;;  %v25040_v21 = vshll.u32 %v22429_v40, 16 }
 0x491   : > { %v6896_v13 = vrot.slane %v25028_v37, 3  ;;  %v6950_v58 = vrot.slane %v25040_v21, 3  ;;  %v25041_v37 = vshrl.u32 %v22431_v10, 16  ;;  %v25055_v21 = vld [vmem:[#allocation102_spill] sm:$0xff] }
 0x493   : > { %v6897_v6 = vor.u32 %v6896_v13, %v6893_v12  ;;  %v6956_v13 = vrot.slane %v25041_v37, 2  ;;  %v25056_v37 = vld [vmem:[#allocation103_spill] sm:$0xff] }
 0x495   : > { %v6898_v52 = vsel %vm3767_vm7, %v6888_v4, %v6897_v6  ;;  %v6907_v5 = vsel %vm3767_vm7, %v6897_v6, %v6906_v43  ;;  %v6942_v4 = vor.u32 %v6941_v15, %v6938_v61 }
 0x496   : > { %17810 = vmatmul.mubr.bf16.gmra.mrb[76].mxu0 %v6573_v8  ;;  %v20163_v8 = vld [vmem:[%s24491_s3 + $0x390] sm:$0xff]  }
 0x497   : > { %17813 = vmatprep.mubr.bf16.mxu0 %v6575_v49  ;;  %v20164_v49 = vld [vmem:[%s24491_s3 + $0x398] sm:$0xff]   ;;  %v6943_v12 = vsel %vm3767_vm7, %v6933_v51, %v6942_v4 }
 0x49e   : > { %17814 = vmatmul.mubr.bf16.gmra.mrb[80].mxu0 %v6577_v39 }
 0x49f   : > { %17833 = vmatprep.mubr.bf16.mxu0 %v6871_v9 }
 0x4a6   : > { %17834 = vmatmul.mubr.bf16.vlgmr.msra.gmra.mrb[52].mxu0 %v6880_v50  ;;  %v6947_v50 = vrot.slane %v25039_v26, 2  ;;  %v20174_v26 = vld [vmem:[%s24491_s3 + $0x3d8] sm:$0xff]  }
 0x4a7   : > { %17837 = vmatprep.mubr.bf16.mxu0 %v6889_v38  ;;  %17866 = vmatpush3.bf16.msra.mxu0 %v20161_v57  ;;  %v25032_v57 = vshll.u32 %v22405_v62, 16  ;;  %v20166_v62 = vld [vmem:[%s24491_s3 + $0x3a8] sm:$0xff]   ;;  %v25042_v38 = vshll.u32 %v22431_v10, 16 }
 0x4a8   : > { %17867 = vmatprep.subr.bf16.mxu0 %v20162_v35  ;;  %v6951_v54 = vor.u32 %v6950_v58, %v6947_v50  ;;  %v25054_v50 = vld [vmem:[#allocation101_spill] sm:$0xff] }
 0x4a9   : > { %v6914_v30 = vrot.slane %v25032_v57, 3  ;;  %v6959_v25 = vrot.slane %v25042_v38, 3  ;;  %v20175_v58 = vld [vmem:[%s24491_s3 + $0x3e0] sm:$0xff]   ;;  %v20177_v38 = vld [vmem:[%s24491_s3 + $0x3f0] sm:$0xff]  }
 0x4aa   : > { %v6952_v40 = vsel %vm3767_vm7, %v6942_v4, %v6951_v54  ;;  %v25052_v4 = vld [vmem:[#allocation98_spill] sm:$0xff] }
 0x4ab   : > { %17868 = vmatpush3.bf16.msra.mxu0 %v20162_v35  ;;  %v6915_v39 = vor.u32 %v6914_v30, %v6911_v22  ;;  %v6934_v35 = vsel %vm3767_vm7, %v6924_v28, %v6933_v51  ;;  %v6960_v60 = vor.u32 %v6959_v25, %v6956_v13  ;;  %v25046_v22 = vshll.u32 %v22452_v18, 16  ;;  %v20172_v51 = vld [vmem:[%s24491_s3 + $0x3c8] sm:$0xff]   ;;  %v25057_v13 = vld [vmem:[#allocation104_spill] sm:$0xff] }
 0x4ac   : > { %17869 = vmatprep.subr.bf16.mxu0 %v20163_v8  ;;  %v20178_v25 = vld [vmem:[%s24491_s3 + $0x3f8] sm:$0xff]  }
 0x4ad   : > { %v6916_v45 = vsel %vm3767_vm7, %v6906_v43, %v6915_v39  ;;  %v6925_v9 = vsel %vm3767_vm7, %v6915_v39, %v6924_v28  ;;  %v25044_v43 = vshll.u32 %v22441_v46, 16  ;;  %v6977_v57 = vrot.slane %v25046_v22, 3  ;;  %v23711_v22 = vld [vmem:[#allocation3 + $0x84] sm:$0xff]  }
 0x4ae   : > { %17838 = vmatmul.mubr.bf16.gmra.mrb[56].mxu0 %v6898_v52  ;;  %v25045_v52 = vshrl.u32 %v22452_v18, 16  ;;  %v25049_v39 = vshrl.u32 %v22814_v29, 16  ;;  %v25050_v18 = vshll.u32 %v22814_v29, 16  ;;  %v20180_v29 = vld [vmem:[%s24493_s5 + $0x40] sm:$0xff]   ;;  %v13244_v33 = vrot.slane %v23711_v22, 2 }
 0x4af   : > { %17841 = vmatprep.mubr.bf16.mxu0 %v6907_v5  ;;  %17870 = vmatpush3.bf16.msra.mxu0 %v20163_v8  ;;  %v25043_v8 = vshrl.u32 %v22441_v46, 16  ;;  %v6968_v10 = vrot.slane %v25044_v43, 3  ;;  %v25048_v46 = vshll.u32 %v22458_v17, 16  ;;  %v7004_v17 = vrot.slane %v7002_v42, 3  ;;  %v20332_v43 = vld [vmem:[#allocation3 + $0x88] sm:$0xff]  }
 0x4b0   : > { %17871 = vmatprep.subr.bf16.mxu0 %v20164_v49  ;;  %v6974_v19 = vrot.slane %v25045_v52, 2  ;;  %v6992_v28 = vrot.slane %v25049_v39, 2  ;;  %18409 = vmatprep.subr.bf16.mxu1 %v20180_v29 }
 0x4b1   : > { %v6965_v6 = vrot.slane %v25043_v8, 2  ;;  %v6986_v16 = vrot.slane %v25048_v46, 3  ;;  %v7005_v41 = vor.u32 %v7004_v17, %v7001_v32  ;;  %18410 = vmatpush3.bf16.msra.mxu1 %v20180_v29  ;;  %v25062_v8 = vld [vmem:[#allocation109_spill] sm:$0xff]  ;;  %v20185_v32 = vld [vmem:[%s24493_s5 + $0x68] sm:$0xff]   ;;  %v20186_v17 = vld [vmem:[%s24493_s5 + $0x70] sm:$0xff]  }
 0x4b2   : > { %v6978_v5 = vor.u32 %v6977_v57, %v6974_v19  ;;  %v25064_v19 = vld [vmem:[#allocation111_spill] sm:$0xff] }
 0x4b3   : > { %17872 = vmatpush3.bf16.msra.mxu0 %v20164_v49  ;;  %v6961_v49 = vsel %vm3767_vm7, %v6951_v54, %v6960_v60  ;;  %v6969_v30 = vor.u32 %v6968_v10, %v6965_v6  ;;  %v25059_v54 = vld [vmem:[#allocation106_spill] sm:$0xff] }
 0x4b4   : > { %17873 = vmatprep.subr.bf16.mxu0 %v20165_v56  ;;  %v25063_v6 = vld [vmem:[#allocation110_spill] sm:$0xff] }
 0x4b5   : > { %v6970_v27 = vsel %vm3767_vm7, %v6960_v60, %v6969_v30  ;;  %v25060_v60 = vld [vmem:[#allocation107_spill] sm:$0xff] }
 0x4b6   : > { %17842 = vmatmul.mubr.bf16.gmra.mrb[60].mxu0 %v6916_v45  ;;  %v6987_v45 = vor.u32 %v6986_v16, %v6983_v3  ;;  %v23706_v10 = vld [vmem:[#allocation3 + $0x80] sm:$0xff]  }
 0x4b7   : > { %17845 = vmatprep.mubr.bf16.mxu0 %v6925_v9  ;;  %17874 = vmatpush3.bf16.msra.mxu0 %v20165_v56  ;;  %v6979_v56 = vsel %vm3767_vm7, %v6969_v30, %v6978_v5  ;;  %v24583_v52 = vrot.slane %v23706_v10, 2  ;;  %v20335_v30 = vld [vmem:[#allocation3 + $0x98] sm:$0xff]  }
 0x4b8   : > { %17875 = vmatprep.subr.bf16.mxu0 %v20166_v62  ;;  %v6988_v9 = vsel %vm3767_vm7, %v6978_v5, %v6987_v45  ;;  %v23718_v5 = vld [vmem:[#allocation3 + $0x8c] sm:$0xff]   ;;  %v14365_v46 = vrot.slane %v20335_v30, 2 }
 0x4b9   : > { %v24582_v3 = vrot.slane %v23718_v5, 2 }
 0x4bb   : > { %17876 = vmatpush3.bf16.msra.mxu0 %v20166_v62  ;;  %v6995_v62 = vrot.slane %v25050_v18, 3 }
 0x4bc   : > { %17877 = vmatprep.subr.bf16.mxu0 %v20167_v44 }
 0x4bd   : > { %v6996_v31 = vor.u32 %v6995_v62, %v6992_v28  ;;  %v23737_v28 = vld [vmem:[#allocation3 + $0xa0] sm:$0xff]   ;;  %v25071_v62 = vld [vmem:[#allocation113_spill] sm:$0xff] }
 0x4be   : > { %17846 = vmatmul.mubr.bf16.gmra.mrb[64].mxu0 %v6934_v35  ;;  %v20173_v35 = vld [vmem:[%s24491_s3 + $0x3d0] sm:$0xff]   ;;  %25068 = vst [vmem:[#allocation21_spill] sm:$0xff] %v23737_v28  ;;  %v24581_v18 = vrot.slane %v23737_v28, 2 }
 0x4bf   : > { %17849 = vmatprep.mubr.bf16.mxu0 %v6943_v12  ;;  %17878 = vmatpush3.bf16.msra.mxu0 %v20167_v44  ;;  %v6997_v61 = vsel %vm3767_vm7, %v6987_v45, %v6996_v31  ;;  %v7006_v15 = vsel %vm3767_vm7, %v6996_v31, %v7005_v41  ;;  %v25051_v44 = vld [vmem:[#allocation99_spill] sm:$0xff]  ;;  %v20176_v12 = vld [vmem:[%s24491_s3 + $0x3e8] sm:$0xff]   ;;  %v23785_v41 = vld [vmem:[%s24493_s5] sm:$0xff]  }
 0x4c0   : > { %17879 = vmatprep.subr.bf16.mxu0 %v20169_v2  ;;  %v25072_v45 = vld [vmem:[#allocation114_spill] sm:$0xff]  ;;  %v25075_v31 = vld [vmem:[#allocation115_spill] sm:$0xff] }
 0x4c3   : > { %17880 = vmatpush3.bf16.msra.mxu0 %v20169_v2  ;;  %v25053_v2 = vld [vmem:[#allocation100_spill] sm:$0xff] }
 0x4c4   : > { %17913 = vmatprep.subr.bf16.mxu0 %v20171_v1 }
 0x4c6   : > { %17850 = vmatmul.mubr.bf16.gmra.mrb[68].mxu0 %v6952_v40  ;;  %v25061_v40 = vld [vmem:[#allocation108_spill] sm:$0xff] }
 0x4c7   : > { %17853 = vmatprep.mubr.bf16.mxu0 %v6961_v49  ;;  %v14361_v49 = vrot.slane %v20332_v43, 2 }
 0x4c9   : > { %v23716_v57 = vsel %vm3456_vm6, %v24583_v52, %v14361_v49  ;;  %v20249_v52 = vld [vmem:[%s24493_s5 + $0x128] sm:$0xff]  }
 0x4ca   : > { %25065 = vst [vmem:[#allocation14_spill] sm:$0xff] %v23716_v57 }
 0x4ce   : > { %17854 = vmatmul.mubr.bf16.gmra.mrb[72].mxu0 %v6970_v27  ;;  %v20334_v27 = vld [vmem:[#allocation3 + $0x90] sm:$0xff]  }
 0x4cf   : > { %17857 = vmatprep.mubr.bf16.mxu0 %v6979_v56  ;;  %v14363_v16 = vrot.slane %v20334_v27, 2 }
 0x4d1   : > { %v23731_v56 = vsel %vm3456_vm6, %v14361_v49, %v14363_v16  ;;  %v23735_v39 = vsel %vm3456_vm6, %v14363_v16, %v14365_v46 }
 0x4d2   : > { %25066 = vst [vmem:[#allocation19_spill] sm:$0xff] %v23731_v56  ;;  %25067 = vst [vmem:[#allocation20_spill] sm:$0xff] %v23735_v39 }
 0x4d6   : > { %17858 = vmatmul.mubr.bf16.gmra.mrb[76].mxu0 %v6988_v9 }
 0x4d7   : > { %17861 = vmatprep.mubr.bf16.mxu0 %v6997_v61  ;;  %v20189_v61 = vld [vmem:[%s24493_s5 + $0x78] sm:$0xff]  }
 0x4de   : > { %17862 = vmatmul.mubr.bf16.gmra.mrb[80].mxu0 %v7006_v15 }
 0x4df   : > { %17881 = vmatprep.mubr.bf16.mxu0 %v25051_v44 }
 0x4e6   : > { %17882 = vmatmul.mubr.bf16.vlgmr.msra.gmra.mrb[52].mxu0 %v25052_v4 }
 0x4e7   : > { %17885 = vmatprep.mubr.bf16.mxu0 %v25053_v2  ;;  %17914 = vmatpush3.bf16.msra.mxu0 %v20171_v1  ;;  %v25058_v1 = vld [vmem:[#allocation105_spill] sm:$0xff] }
 0x4e8   : > { %17915 = vmatprep.subr.bf16.mxu0 %v20172_v51 }
 0x4eb   : > { %17916 = vmatpush3.bf16.msra.mxu0 %v20172_v51 }
 0x4ec   : > { %17917 = vmatprep.subr.bf16.mxu0 %v20173_v35 }
 0x4ee   : > { %17886 = vmatmul.mubr.bf16.gmra.mrb[56].mxu0 %v25054_v50 }
 0x4ef   : > { %17889 = vmatprep.mubr.bf16.mxu0 %v25055_v21  ;;  %17918 = vmatpush3.bf16.msra.mxu0 %v20173_v35 }
 0x4f0   : > { %17919 = vmatprep.subr.bf16.mxu0 %v20174_v26 }
 0x4f3   : > { %17920 = vmatpush3.bf16.msra.mxu0 %v20174_v26 }
 0x4f4   : > { %17921 = vmatprep.subr.bf16.mxu0 %v20175_v58 }
 0x4f6   : > { %17890 = vmatmul.mubr.bf16.gmra.mrb[60].mxu0 %v25056_v37 }
 0x4f7   : > { %17893 = vmatprep.mubr.bf16.mxu0 %v25057_v13  ;;  %17922 = vmatpush3.bf16.msra.mxu0 %v20175_v58 }
 0x4f8   : > { %17923 = vmatprep.subr.bf16.mxu0 %v20176_v12 }
 0x4fb   : > { %17924 = vmatpush3.bf16.msra.mxu0 %v20176_v12 }
 0x4fc   : > { %17925 = vmatprep.subr.bf16.mxu0 %v20177_v38 }
 0x4fe   : > { %17894 = vmatmul.mubr.bf16.gmra.mrb[64].mxu0 %v25058_v1 }
 0x4ff   : > { %17897 = vmatprep.mubr.bf16.mxu0 %v25059_v54  ;;  %17926 = vmatpush3.bf16.msra.mxu0 %v20177_v38 }
 0x500   : > { %17927 = vmatprep.subr.bf16.mxu0 %v20178_v25 }
 0x503   : > { %17928 = vmatpush3.bf16.msra.mxu0 %v20178_v25 }
 0x506   : > { %17898 = vmatmul.mubr.bf16.gmra.mrb[68].mxu0 %v25060_v60 }
 0x507   : > { %17901 = vmatprep.mubr.bf16.mxu0 %v25061_v40 }
 0x50e   : > { %17902 = vmatmul.mubr.bf16.gmra.mrb[72].mxu0 %v25062_v8 }
 0x50f   : > { %17905 = vmatprep.mubr.bf16.mxu0 %v25063_v6 }
 0x516   : > { %17906 = vmatmul.mubr.bf16.gmra.mrb[76].mxu0 %v25064_v19 }
 0x517   : > { %17909 = vmatprep.mubr.bf16.mxu0 %v22838_v0  ;;  %v23727_v0 = vsel %vm3456_vm6, %v13244_v33, %v24582_v3 }
 0x51e   : > { %17910 = vmatmul.mubr.bf16.gmra.mrb[80].mxu0 %v22885_v7  ;;  %v23745_v7 = vsel %vm3456_vm6, %v14365_v46, %v24581_v18 }
 0x51f   : > { %17929 = vmatprep.mubr.bf16.mxu0 %v22589_v20  ;;  %25069 = vst [vmem:[#allocation22_spill] sm:$0xff] %v23745_v7  ;;  %v25070_v20 = vld [vmem:[#allocation112_spill] sm:$0xff]  ;;  %v25077_v7 = vrot.slane %v23706_v10, 2  ;;  %v20252_v10 = vld [vmem:[%s24493_s5 + $0x130] sm:$0xff]  }
 0x526   : > { %17930 = vmatmul.mubr.bf16.vlgmr.msra.gmra.mrb[52].mxu0 %v22592_v36  ;;  %v20179_v36 = vld [vmem:[#allocation2 + $0x9c] ss:$0 sps:$4 sm:$0xff]  }
 0x527   : > { %17933 = vmatprep.mubr.bf16.mxu0 %v22595_v11  ;;  %v25073_v11 = vld [vmem:[#allocation13_spill] sm:$0xff]  ;;  %v7666_v47 = vshll.u32 %v20179_v36, 16 }
 0x529   : > { %v7668_v42 = vrot.slane %v7666_v47, 4 }
 0x52e   : > { %17934 = vmatmul.mubr.bf16.gmra.mrb[56].mxu0 %v22604_v23  ;;  %v7663_v23 = vshrl.u32 %v20179_v36, 16 }
 0x52f   : > { %17937 = vmatprep.mubr.bf16.mxu0 %v22615_v14 }
 0x530   : > { %v7665_v14 = vrot.slane %v7663_v23, 3 }
 0x536   : > { %17938 = vmatmul.mubr.bf16.gmra.mrb[60].mxu0 %v25070_v20 }
 0x537   : > { %17941 = vmatprep.mubr.bf16.mxu0 %v22625_v55  ;;  %v7669_v55 = vor.u32 %v7668_v42, %v7665_v14 }
 0x539   : > { %v7670_v9 = vsel %vm4508_vm4, %v22898_v34, %v7669_v55  ;;  %v20184_v34 = vld [vmem:[%s24493_s5 + $0x60] sm:$0xff]  }
 0x53e   : > { %17942 = vmatmul.mubr.bf16.gmra.mrb[64].mxu0 %v25071_v62 }
 0x53f   : > { %17945 = vmatprep.mubr.bf16.mxu0 %v25072_v45 }
 0x546   : > { %17946 = vmatmul.mubr.bf16.gmra.mrb[68].mxu0 %v22654_v63  ;;  %v20181_v63 = vld [vmem:[%s24493_s5 + $0x48] sm:$0xff]  }
 0x547   : > { %17949 = vmatprep.mubr.bf16.mxu0 %v22670_v48  ;;  %v20182_v48 = vld [vmem:[%s24493_s5 + $0x50] sm:$0xff]   ;;  %18411 = vmatprep.subr.bf16.mxu1 %v20181_v63 }
 0x548   : > { %18412 = vmatpush3.bf16.msra.mxu1 %v20181_v63 }
 0x549   : > { %18413 = vmatprep.subr.bf16.mxu1 %v20182_v48 }
 0x54c   : > { %18414 = vmatpush3.bf16.msra.mxu1 %v20182_v48 }
 0x54e   : > { %17950 = vmatmul.mubr.bf16.gmra.mrb[72].mxu0 %v25073_v11 }
 0x54f   : > { %17953 = vmatprep.mubr.bf16.mxu0 %v25074_v59 }
 0x556   : > { %17954 = vmatmul.mubr.bf16.gmra.mrb[76].mxu0 %v25075_v31 }
 0x557   : > { %17957 = vmatprep.mubr.bf16.mxu0 %v22911_v53  ;;  %v20183_v53 = vld [vmem:[%s24493_s5 + $0x58] sm:$0xff]  }
 0x558   : > { %18415 = vmatprep.subr.bf16.mxu1 %v20183_v53 }
 0x559   : > { %18416 = vmatpush3.bf16.msra.mxu1 %v20183_v53 }
 0x55a   : > { %18417 = vmatprep.subr.bf16.mxu1 %v20184_v34 }
 0x55d   : > { %18418 = vmatpush3.bf16.msra.mxu1 %v20184_v34 }
 0x55e   : > { %17958 = vmatmul.mubr.bf16.gmra.mrb[80].mxu0 %v7670_v9  ;;  %18419 = vmatprep.subr.bf16.mxu1 %v20185_v32 }
 0x561   : > { %18420 = vmatpush3.bf16.msra.mxu1 %v20185_v32 }
 0x562   : > { %18421 = vmatprep.subr.bf16.mxu1 %v20186_v17 }
 0x565   : > { %18422 = vmatpush3.bf16.msra.mxu1 %v20186_v17 }
 0x566   : > { %18423 = vmatprep.subr.bf16.mxu1 %v20189_v61 }
 0x569   : > { %18424 = vmatpush3.bf16.msra.mxu1 %v20189_v61 }
 0x56a   : > { %18457 = vmatprep.subr.bf16.mxu1 %v23785_v41 }
 0x5f9   : > { %v17931_v15 = vpop.f32.mrb[52].mxu0 }
 0x5fa   : > { %v7936_v29 = vadd.f32 %v17931_v15, %v23512_v24  ;;  %v7769_v44 = vpop.f32.mrb[53].mxu0 }
 0x5fb   : > { %v7934_v51 = vadd.f32 %v23512_v24, %v7769_v44  ;;  %v17932_v4 = vpop.f32.mrb[54].mxu0 }
 0x5fc   : > { %v7937_v2 = vadd.f32 %v17932_v4, %v23512_v24  ;;  %v7772_v35 = vpop.f32.mrb[55].mxu0  ;;  %v7968_v50 = vmax.f32 %v7936_v29, 0.0 }
 0x5fd   : > { %v7935_v26 = vadd.f32 %v23512_v24, %v7772_v35  ;;  %v7966_v58 = vmax.f32 %v7934_v51, 0.0 }
 0x5fe   : > { %v7969_v21 = vmax.f32 %v7937_v2, 0.0 }
 0x5ff   : > { %v7967_v12 = vmax.f32 %v7935_v26, 0.0 }
 0x600   : > { %v15946_v37 = vpack.c.bf16 %v7969_v21, %v7968_v50 }
 0x601   : > { %v15941_v13 = vpack.c.bf16 %v7967_v12, %v7966_v58  ;;  %v17935_v38 = vpop.f32.mrb[56].mxu0 }
 0x602   : > { %16067 = vst [vmem:[#allocation3 + $0x8] sm:$0xff] %v15946_v37   ;;  %v7940_v25 = vadd.f32 %v17935_v38, %v23512_v24  ;;  %v7785_v1 = vpop.f32.mrb[57].mxu0  ;;  %v20194_v37 = vld [vmem:[%s24493_s5 + $0x8] sm:$0xff]  }
 0x603   : > { %15942 = vst [vmem:[#allocation3] sm:$0xff] %v15941_v13   ;;  %v7938_v54 = vadd.f32 %v23512_v24, %v7785_v1  ;;  %v17936_v60 = vpop.f32.mrb[58].mxu0 }
 0x604   : > { %v7941_v40 = vadd.f32 %v17936_v60, %v23512_v24  ;;  %v7788_v8 = vpop.f32.mrb[59].mxu0  ;;  %v7972_v43 = vmax.f32 %v7940_v25, 0.0 }
 0x605   : > { %v7939_v6 = vadd.f32 %v23512_v24, %v7788_v8  ;;  %v7970_v19 = vmax.f32 %v7938_v54, 0.0  ;;  %v20197_v8 = vld [vmem:[%s24493_s5 + $0x10] sm:$0xff]  }
 0x606   : > { %v7973_v49 = vmax.f32 %v7941_v40, 0.0 }
 0x607   : > { %v7971_v30 = vmax.f32 %v7939_v6, 0.0 }
 0x608   : > { %v15956_v27 = vpack.c.bf16 %v7973_v49, %v7972_v43 }
 0x609   : > { %v15951_v46 = vpack.c.bf16 %v7971_v30, %v7970_v19  ;;  %v17939_v16 = vpop.f32.mrb[60].mxu0  ;;  %v23796_v20 = vld [vmem:[#allocation3 + $0x8] sm:$0xff]  }
 0x60a   : > { %16069 = vst [vmem:[#allocation3 + $0x18] sm:$0xff] %v15956_v27   ;;  %v7944_v62 = vadd.f32 %v17939_v16, %v23512_v24  ;;  %v7801_v45 = vpop.f32.mrb[61].mxu0  ;;  %v23799_v36 = vld [vmem:[#allocation3 + $0x4] sm:$0xf]  ;;  %v11485_v11 = vld [vmem:[#allocation3] sm:$0xe] }
 0x60b   : > { %16068 = vst [vmem:[#allocation3 + $0x10] sm:$0xff] %v15951_v46   ;;  %v7942_v59 = vadd.f32 %v23512_v24, %v7801_v45  ;;  %v17940_v23 = vpop.f32.mrb[62].mxu0  ;;  %v15490_v47 = vcombine.low %v11485_v11, %v23799_v36  ;;  %v11587_v9 = vrot.slane %v23796_v20, 1 }
 0x60c   : > { %v7945_v14 = vadd.f32 %v17940_v23, %v23512_v24  ;;  %v7804_v42 = vpop.f32.mrb[63].mxu0  ;;  %v7976_v63 = vmax.f32 %v7944_v62, 0.0  ;;  %v20200_v23 = vld [vmem:[%s24493_s5 + $0x18] sm:$0xff]  }
 0x60d   : > { %v7943_v31 = vadd.f32 %v23512_v24, %v7804_v42  ;;  %v11586_v55 = vrot.slane %v15490_v47, 1  ;;  %v7974_v53 = vmax.f32 %v7942_v59, 0.0 }
 0x60e   : > { %v7977_v48 = vmax.f32 %v7945_v14, 0.0 }
 0x60f   : > { %v7975_v34 = vmax.f32 %v7943_v31, 0.0  ;;  %v11588_v32 = vsel %vm2678_vm5, %v11586_v55, %v11587_v9 }
 0x610   : > { %v15966_v17 = vpack.c.bf16 %v7977_v48, %v7976_v63  ;;  %18425 = vmatprep.mubr.bf16.mxu1 %v11588_v32  ;;  %v23849_v32 = vld [vmem:[%s24492_s4] ss:$0 sm:$0xff] }
 0x611   : > { %v15961_v61 = vpack.c.bf16 %v7975_v34, %v7974_v53  ;;  %v17943_v15 = vpop.f32.mrb[64].mxu0  ;;  %v23807_v29 = vld [vmem:[#allocation3 + $0x18] sm:$0xff]  }
 0x612   : > { %16071 = vst [vmem:[#allocation3 + $0x28] sm:$0xff] %v15966_v17   ;;  %v7948_v44 = vadd.f32 %v17943_v15, %v23512_v24  ;;  %v7817_v51 = vpop.f32.mrb[65].mxu0  ;;  %v23810_v4 = vld [vmem:[#allocation3 + $0x10] sm:$0xff]   ;;  %v11591_v26 = vrot.slane %v23807_v29, 1 }
 0x613   : > { %16070 = vst [vmem:[#allocation3 + $0x20] sm:$0xff] %v15961_v61   ;;  %v7946_v2 = vadd.f32 %v23512_v24, %v7817_v51  ;;  %v17944_v35 = vpop.f32.mrb[66].mxu0  ;;  %v11589_v58 = vrot.slane %v23810_v4, 1 }
 0x614   : > { %v7949_v50 = vadd.f32 %v17944_v35, %v23512_v24  ;;  %v7820_v21 = vpop.f32.mrb[67].mxu0  ;;  %v7980_v13 = vmax.f32 %v7948_v44, 0.0 }
 0x615   : > { %v7947_v12 = vadd.f32 %v23512_v24, %v7820_v21  ;;  %v11590_v25 = vsel %vm2678_vm5, %v11587_v9, %v11589_v58  ;;  %v11592_v1 = vsel %vm2678_vm5, %v11589_v58, %v11591_v26  ;;  %v7978_v54 = vmax.f32 %v7946_v2, 0.0  ;;  %v20206_v58 = vld [vmem:[%s24493_s5 + $0x28] sm:$0xff]  }
 0x616   : > { %v7981_v38 = vmax.f32 %v7949_v50, 0.0  ;;  %18426 = vmatmul.mubr.bf16.vlgmr.msra.gmra.mrb[124].mxu1 %v11590_v25 }
 0x617   : > { %v7979_v60 = vmax.f32 %v7947_v12, 0.0  ;;  %18429 = vmatprep.mubr.bf16.mxu1 %v11592_v1  ;;  %18458 = vmatpush3.bf16.msra.mxu1 %v23785_v41 }
 0x618   : > { %v15976_v40 = vpack.c.bf16 %v7981_v38, %v7980_v13  ;;  %18459 = vmatprep.subr.bf16.mxu1 %v20194_v37 }
 0x619   : > { %v15971_v6 = vpack.c.bf16 %v7979_v60, %v7978_v54  ;;  %v17947_v43 = vpop.f32.mrb[68].mxu0  ;;  %v23826_v49 = vld [vmem:[#allocation3 + $0x28] sm:$0xff]  }
 0x61a   : > { %16073 = vst [vmem:[#allocation3 + $0x38] sm:$0xff] %v15976_v40   ;;  %v7952_v19 = vadd.f32 %v17947_v43, %v23512_v24  ;;  %v7833_v30 = vpop.f32.mrb[69].mxu0  ;;  %v23829_v27 = vld [vmem:[#allocation3 + $0x20] sm:$0xff]   ;;  %v11595_v41 = vrot.slane %v23826_v49, 1 }
 0x61b   : > { %16072 = vst [vmem:[#allocation3 + $0x30] sm:$0xff] %v15971_v6   ;;  %v7950_v46 = vadd.f32 %v23512_v24, %v7833_v30  ;;  %v17948_v16 = vpop.f32.mrb[70].mxu0  ;;  %v11593_v11 = vrot.slane %v23829_v27, 1  ;;  %18460 = vmatpush3.bf16.msra.mxu1 %v20194_v37  ;;  %v20209_v54 = vld [vmem:[%s24493_s5 + $0x30] sm:$0xff]  }
 0x61c   : > { %v7953_v62 = vadd.f32 %v17948_v16, %v23512_v24  ;;  %v7836_v45 = vpop.f32.mrb[71].mxu0  ;;  %18461 = vmatprep.subr.bf16.mxu1 %v20197_v8  ;;  %v7984_v47 = vmax.f32 %v7952_v19, 0.0 }
 0x61d   : > { %v7951_v59 = vadd.f32 %v23512_v24, %v7836_v45  ;;  %v11594_v42 = vsel %vm2678_vm5, %v11591_v26, %v11593_v11  ;;  %v11596_v31 = vsel %vm2678_vm5, %v11593_v11, %v11595_v41  ;;  %v7982_v55 = vmax.f32 %v7950_v46, 0.0  ;;  %v20203_v24 = vld [vmem:[%s24493_s5 + $0x20] sm:$0xff]  }
 0x61e   : > { %v7985_v14 = vmax.f32 %v7953_v62, 0.0  ;;  %18430 = vmatmul.mubr.bf16.gmra.mrb[128].mxu1 %v11594_v42 }
 0x61f   : > { %v7983_v9 = vmax.f32 %v7951_v59, 0.0  ;;  %18433 = vmatprep.mubr.bf16.mxu1 %v11596_v31  ;;  %18462 = vmatpush3.bf16.msra.mxu1 %v20197_v8 }
 0x620   : > { %v15986_v63 = vpack.c.bf16 %v7985_v14, %v7984_v47  ;;  %18463 = vmatprep.subr.bf16.mxu1 %v20200_v23 }
 0x621   : > { %v15981_v48 = vpack.c.bf16 %v7983_v9, %v7982_v55  ;;  %v17951_v53 = vpop.f32.mrb[72].mxu0  ;;  %v23844_v34 = vld [vmem:[#allocation3 + $0x38] sm:$0xff]  }
 0x622   : > { %16075 = vst [vmem:[#allocation3 + $0x48] sm:$0xff] %v15986_v63   ;;  %v7956_v17 = vadd.f32 %v23849_v32, %v17951_v53  ;;  %v7849_v61 = vpop.f32.mrb[73].mxu0  ;;  %v23852_v15 = vld [vmem:[#allocation3 + $0x30] sm:$0xff]   ;;  %v11599_v2 = vrot.slane %v23844_v34, 1 }
 0x623   : > { %16074 = vst [vmem:[#allocation3 + $0x40] sm:$0xff] %v15981_v48   ;;  %v7954_v44 = vadd.f32 %v23849_v32, %v7849_v61  ;;  %v17952_v51 = vpop.f32.mrb[74].mxu0  ;;  %v11597_v50 = vrot.slane %v23852_v15, 1  ;;  %18464 = vmatpush3.bf16.msra.mxu1 %v20200_v23  ;;  %v20212_v23 = vld [vmem:[%s24493_s5 + $0x38] sm:$0xff]   ;;  %v20214_v63 = vld [vmem:[%s24493_s5 + $0x80] sm:$0xff]  }
 0x624   : > { %v7957_v35 = vadd.f32 %v23849_v32, %v17952_v51  ;;  %v7852_v26 = vpop.f32.mrb[75].mxu0  ;;  %18465 = vmatprep.subr.bf16.mxu1 %v20203_v24  ;;  %v7988_v12 = vmax.f32 %v7956_v17, 0.0 }
 0x625   : > { %v7955_v21 = vadd.f32 %v23849_v32, %v7852_v26  ;;  %v11598_v13 = vsel %vm2678_vm5, %v11595_v41, %v11597_v50  ;;  %v11600_v38 = vsel %vm2678_vm5, %v11597_v50, %v11599_v2  ;;  %v7986_v25 = vmax.f32 %v7954_v44, 0.0 }
 0x626   : > { %v7989_v37 = vmax.f32 %v7957_v35, 0.0  ;;  %18434 = vmatmul.mubr.bf16.gmra.mrb[132].mxu1 %v11598_v13 }
 0x627   : > { %v7987_v1 = vmax.f32 %v7955_v21, 0.0  ;;  %18437 = vmatprep.mubr.bf16.mxu1 %v11600_v38  ;;  %18466 = vmatpush3.bf16.msra.mxu1 %v20203_v24 }
 0x628   : > { %v15996_v60 = vpack.c.bf16 %v7989_v37, %v7988_v12  ;;  %18467 = vmatprep.subr.bf16.mxu1 %v20206_v58 }
 0x629   : > { %v15991_v40 = vpack.c.bf16 %v7987_v1, %v7986_v25  ;;  %v17955_v8 = vpop.f32.mrb[76].mxu0  ;;  %v23867_v6 = vld [vmem:[#allocation3 + $0x48] sm:$0xff]  }
 0x62a   : > { %16077 = vst [vmem:[#allocation3 + $0x58] sm:$0xff] %v15996_v60   ;;  %v7960_v43 = vadd.f32 %v23849_v32, %v17955_v8  ;;  %v7865_v19 = vpop.f32.mrb[77].mxu0  ;;  %v23870_v30 = vld [vmem:[#allocation3 + $0x40] sm:$0xff]   ;;  %v11603_v41 = vrot.slane %v23867_v6, 1 }
 0x62b   : > { %16076 = vst [vmem:[#allocation3 + $0x50] sm:$0xff] %v15991_v40   ;;  %v7958_v46 = vadd.f32 %v23849_v32, %v7865_v19  ;;  %v17956_v16 = vpop.f32.mrb[78].mxu0  ;;  %v11601_v11 = vrot.slane %v23870_v30, 1  ;;  %18468 = vmatpush3.bf16.msra.mxu1 %v20206_v58  ;;  %v20239_v3 = vld [vmem:[#allocation3 + $0x3c] sm:$0xff]   ;;  %v20241_v39 = vld [vmem:[#allocation3 + $0x44] sm:$0xff]  }
 0x62c   : > { %v7961_v62 = vadd.f32 %v23849_v32, %v17956_v16  ;;  %v7868_v45 = vpop.f32.mrb[79].mxu0  ;;  %18469 = vmatprep.subr.bf16.mxu1 %v20209_v54  ;;  %v7992_v47 = vmax.f32 %v7960_v43, 0.0 }
 0x62d   : > { %v7959_v59 = vadd.f32 %v23849_v32, %v7868_v45  ;;  %v11602_v42 = vsel %vm2678_vm5, %v11599_v2, %v11601_v11  ;;  %v11604_v31 = vsel %vm2678_vm5, %v11601_v11, %v11603_v41  ;;  %v7990_v55 = vmax.f32 %v7958_v46, 0.0 }
 0x62e   : > { %v7993_v14 = vmax.f32 %v7961_v62, 0.0  ;;  %18438 = vmatmul.mubr.bf16.gmra.mrb[136].mxu1 %v11602_v42  ;;  %v20211_v62 = vld [vmem:[#allocation3 + $0x80] ss:$0 sps:$4 sm:$0x11]  }
 0x62f   : > { %v7991_v9 = vmax.f32 %v7959_v59, 0.0  ;;  %18441 = vmatprep.mubr.bf16.mxu1 %v11604_v31  ;;  %18470 = vmatpush3.bf16.msra.mxu1 %v20209_v54  ;;  %v11437_v42 = vld [vmem:[#allocation3] sm:$0xf] }
 0x630   : > { %v16006_v24 = vpack.c.bf16 %v7993_v14, %v7992_v47  ;;  %18471 = vmatprep.subr.bf16.mxu1 %v20212_v23  ;;  %v11617_v14 = vrot.slane %v20211_v62, 1 }
 0x631   : > { %v16001_v48 = vpack.c.bf16 %v7991_v9, %v7990_v55  ;;  %v17959_v53 = vpop.f32.mrb[80].mxu0  ;;  %v23885_v17 = vld [vmem:[#allocation3 + $0x58] sm:$0xff]   ;;  %v15515_v55 = vcombine.low %v11437_v42, %v23799_v36 }
 0x632   : > { %16079 = vst [vmem:[#allocation3 + $0x68] sm:$0xff] %v16006_v24   ;;  %v7964_v61 = vadd.f32 %v23849_v32, %v17959_v53  ;;  %v7881_v44 = vpop.f32.mrb[81].mxu0  ;;  %v23888_v51 = vld [vmem:[#allocation3 + $0x50] sm:$0xff]   ;;  %v11607_v26 = vrot.slane %v23885_v17, 1  ;;  %v20215_v9 = vld [vmem:[%s24493_s5 + $0x88] sm:$0xff]   ;;  %v20216_v24 = vld [vmem:[%s24493_s5 + $0x90] sm:$0xff]  }
 0x633   : > { %16078 = vst [vmem:[#allocation3 + $0x60] sm:$0xff] %v16001_v48   ;;  %v7962_v2 = vadd.f32 %v23849_v32, %v7881_v44  ;;  %v17960_v35 = vpop.f32.mrb[82].mxu0  ;;  %v11605_v58 = vrot.slane %v23888_v51, 1  ;;  %18472 = vmatpush3.bf16.msra.mxu1 %v20212_v23  ;;  %v20217_v48 = vld [vmem:[%s24493_s5 + $0x98] sm:$0xff]   ;;  %v20219_v53 = vld [vmem:[%s24493_s5 + $0xa8] sm:$0xff]  }
 0x634   : > { %v7965_v50 = vadd.f32 %v23849_v32, %v17960_v35  ;;  %v7884_v21 = vpop.f32.mrb[83].mxu0  ;;  %18505 = vmatprep.subr.bf16.mxu1 %v20214_v63  ;;  %v7996_v37 = vmax.f32 %v7964_v61, 0.0  ;;  %v20220_v61 = vld [vmem:[%s24493_s5 + $0xb0] sm:$0xff]   ;;  %v20221_v44 = vld [vmem:[%s24493_s5 + $0xb8] sm:$0xff]   ;;  %v12072_v35 = vld [vmem:[#allocation3] sm:$0xc] }
 0x635   : > { %v7963_v12 = vadd.f32 %v23849_v32, %v7884_v21  ;;  %v11606_v38 = vsel %vm2678_vm5, %v11603_v41, %v11605_v58  ;;  %v11608_v25 = vsel %vm2678_vm5, %v11605_v58, %v11607_v26  ;;  %v7994_v1 = vmax.f32 %v7962_v2, 0.0  ;;  %v20223_v2 = vld [vmem:[%s24493_s5 + $0xc0] sm:$0xff]  }
 0x636   : > { %v7997_v13 = vmax.f32 %v7965_v50, 0.0  ;;  %18442 = vmatmul.mubr.bf16.gmra.mrb[140].mxu1 %v11606_v38  ;;  %v12097_v21 = vrot.slane %v23796_v20, 2 }
 0x637   : > { %v7995_v54 = vmax.f32 %v7963_v12, 0.0  ;;  %18445 = vmatprep.mubr.bf16.mxu1 %v11608_v25  ;;  %v12099_v12 = vrot.slane %v23810_v4, 2  ;;  %v20226_v25 = vld [vmem:[%s24493_s5 + $0xd8] sm:$0xff]  }
 0x638   : > { %v16016_v60 = vpack.c.bf16 %v7997_v13, %v7996_v37  ;;  %v12101_v37 = vrot.slane %v23807_v29, 2  ;;  %v20224_v13 = vld [vmem:[%s24493_s5 + $0xc8] sm:$0xff]  }
 0x639   : > { %v16011_v40 = vpack.c.bf16 %v7995_v54, %v7994_v1  ;;  %v23897_v8 = vld [vmem:[#allocation3 + $0x68] sm:$0xff]  }
 0x63a   : > { %16081 = vst [vmem:[#allocation3 + $0x78] sm:$0xff] %v16016_v60   ;;  %v23899_v43 = vld [vmem:[#allocation3 + $0x60] sm:$0xff]   ;;  %v11611_v32 = vrot.slane %v23897_v8, 1  ;;  %v12102_v38 = vsel %vm3456_vm6, %v12099_v12, %v12101_v37  ;;  %v12109_v60 = vrot.slane %v23844_v34, 2 }
 0x63b   : > { %16080 = vst [vmem:[#allocation3 + $0x70] sm:$0xff] %v16011_v40   ;;  %v11609_v19 = vrot.slane %v23899_v43, 1  ;;  %v20228_v40 = vld [vmem:[%s24493_s5 + $0xe8] sm:$0xff]  }
 0x63d   : > { %v11610_v46 = vsel %vm2678_vm5, %v11607_v26, %v11609_v19  ;;  %v11612_v16 = vsel %vm2678_vm5, %v11609_v19, %v11611_v32  ;;  %v15524_v26 = vcombine.low %v12072_v35, %v23799_v36  ;;  %v12100_v36 = vsel %vm3456_vm6, %v12097_v21, %v12099_v12  ;;  %v14314_v35 = vld [vmem:[#allocation3 + $0x28] sm:$0xc]  ;;  %v24033_v12 = vld [vmem:[#allocation3 + $0x30] sm:$0xff]  }
 0x63e   : > { %18446 = vmatmul.mubr.bf16.gmra.mrb[144].mxu1 %v11610_v46  ;;  %v12113_v46 = vrot.slane %v23867_v6, 2 }
 0x63f   : > { %18449 = vmatprep.mubr.bf16.mxu1 %v11612_v16  ;;  %v12096_v50 = vrot.slane %v15524_v26, 2  ;;  %v20231_v16 = vld [vmem:[%s24493_s5 + $0xf8] sm:$0xff]   ;;  %v24027_v26 = vld [vmem:[#allocation3 + $0x34] sm:$0xff]  }
 0x641   : > { %v23905_v41 = vld [vmem:[#allocation3 + $0x78] sm:$0xff]   ;;  %v12098_v58 = vsel %vm3456_vm6, %v12096_v50, %v12097_v21 }
 0x642   : > { %v23907_v45 = vld [vmem:[#allocation3 + $0x70] sm:$0xff]   ;;  %v11615_v11 = vrot.slane %v23905_v41, 1  ;;  %v24029_v50 = vld [vmem:[#allocation3 + $0x38] sm:$0xff]  }
 0x643   : > { %v11613_v59 = vrot.slane %v23907_v45, 1 }
 0x644   : > { %v11618_v31 = vsel %vm2678_vm5, %v11615_v11, %v11617_v14 }
 0x645   : > { %v11614_v23 = vsel %vm2678_vm5, %v11611_v32, %v11613_v59  ;;  %v11616_v47 = vsel %vm2678_vm5, %v11613_v59, %v11615_v11  ;;  %v12117_v59 = vrot.slane %v23885_v17, 2 }
 0x646   : > { %18450 = vmatmul.mubr.bf16.gmra.mrb[148].mxu1 %v11614_v23  ;;  %v24002_v23 = vld [vmem:[#allocation3 + $0x18] sm:$0xf] }
 0x647   : > { %18453 = vmatprep.mubr.bf16.mxu1 %v11616_v47  ;;  %v13193_v47 = vld [vmem:[#allocation3 + $0x14] sm:$0xc] }
 0x64e   : > { %18454 = vmatmul.mubr.bf16.gmra.mrb[152].mxu1 %v11618_v31  ;;  %v24006_v31 = vld [vmem:[#allocation3 + $0x1c] sm:$0xff]  }
 0x64f   : > { %18473 = vmatprep.mubr.bf16.mxu1 %v15515_v55  ;;  %v24008_v55 = vld [vmem:[#allocation3 + $0x24] sm:$0xff]  }
 0x656   : > { %18474 = vmatmul.mubr.bf16.vlgmr.msra.gmra.mrb[124].mxu1 %v23796_v20  ;;  %v20225_v20 = vld [vmem:[%s24493_s5 + $0xd0] sm:$0xff]  }
 0x657   : > { %18477 = vmatprep.mubr.bf16.mxu1 %v23810_v4  ;;  %18506 = vmatpush3.bf16.msra.mxu1 %v20214_v63  ;;  %v20218_v63 = vld [vmem:[%s24493_s5 + $0xa0] sm:$0xff]   ;;  %v12103_v4 = vrot.slane %v23829_v27, 2 }
 0x658   : > { %18507 = vmatprep.subr.bf16.mxu1 %v20215_v9 }
 0x659   : > { %v12104_v1 = vsel %vm3456_vm6, %v12101_v37, %v12103_v4  ;;  %v12125_v37 = vrot.slane %v23905_v41, 2 }
 0x65b   : > { %18508 = vmatpush3.bf16.msra.mxu1 %v20215_v9  ;;  %v12121_v9 = vrot.slane %v23897_v8, 2 }
 0x65c   : > { %18509 = vmatprep.subr.bf16.mxu1 %v20216_v24 }
 0x65e   : > { %18478 = vmatmul.mubr.bf16.gmra.mrb[128].mxu1 %v23807_v29  ;;  %v12105_v29 = vrot.slane %v23826_v49, 2 }
 0x65f   : > { %18481 = vmatprep.mubr.bf16.mxu1 %v23829_v27  ;;  %18510 = vmatpush3.bf16.msra.mxu1 %v20216_v24  ;;  %v20227_v27 = vld [vmem:[%s24493_s5 + $0xe0] sm:$0xff]  }
 0x660   : > { %18511 = vmatprep.subr.bf16.mxu1 %v20217_v48  ;;  %v12106_v54 = vsel %vm3456_vm6, %v12103_v4, %v12105_v29 }
 0x663   : > { %18512 = vmatpush3.bf16.msra.mxu1 %v20217_v48  ;;  %v13218_v48 = vrot.slane %v24006_v31, 2 }
 0x664   : > { %18513 = vmatprep.subr.bf16.mxu1 %v20218_v63 }
 0x666   : > { %18482 = vmatmul.mubr.bf16.gmra.mrb[132].mxu1 %v23826_v49  ;;  %v12107_v49 = vrot.slane %v23852_v15, 2 }
 0x667   : > { %18485 = vmatprep.mubr.bf16.mxu1 %v23852_v15  ;;  %18514 = vmatpush3.bf16.msra.mxu1 %v20218_v63  ;;  %v20229_v15 = vld [vmem:[%s24493_s5 + $0xf0] sm:$0xff]   ;;  %v13220_v63 = vrot.slane %v24008_v55, 2 }
 0x668   : > { %18515 = vmatprep.subr.bf16.mxu1 %v20219_v53  ;;  %v12108_v32 = vsel %vm3456_vm6, %v12105_v29, %v12107_v49  ;;  %v12110_v19 = vsel %vm3456_vm6, %v12107_v49, %v12109_v60  ;;  %v24054_v49 = vld [vmem:[#allocation3 + $0x3c] sm:$0xff]  }
 0x66b   : > { %18516 = vmatpush3.bf16.msra.mxu1 %v20219_v53 }
 0x66c   : > { %18517 = vmatprep.subr.bf16.mxu1 %v20220_v61 }
 0x66e   : > { %18486 = vmatmul.mubr.bf16.gmra.mrb[136].mxu1 %v23844_v34  ;;  %v12111_v34 = vrot.slane %v23870_v30, 2 }
 0x66f   : > { %18489 = vmatprep.mubr.bf16.mxu1 %v23870_v30  ;;  %18518 = vmatpush3.bf16.msra.mxu1 %v20220_v61  ;;  %v23997_v30 = vld [vmem:[%s24493_s5 + $0x100] sm:$0xff]  }
 0x670   : > { %18519 = vmatprep.subr.bf16.mxu1 %v20221_v44  ;;  %v12112_v62 = vsel %vm3456_vm6, %v12109_v60, %v12111_v34  ;;  %v12114_v11 = vsel %vm3456_vm6, %v12111_v34, %v12113_v46  ;;  %v24056_v60 = vld [vmem:[#allocation3 + $0x44] sm:$0xff]   ;;  %v13226_v34 = vrot.slane %v24054_v49, 2 }
 0x673   : > { %18520 = vmatpush3.bf16.msra.mxu1 %v20221_v44  ;;  %v24020_v44 = vsel %vm3456_vm6, %v13218_v48, %v13220_v63 }
 0x674   : > { %18553 = vmatprep.subr.bf16.mxu1 %v20223_v2 }
 0x676   : > { %18490 = vmatmul.mubr.bf16.gmra.mrb[140].mxu1 %v23867_v6  ;;  %v12115_v6 = vrot.slane %v23888_v51, 2 }
 0x677   : > { %18493 = vmatprep.mubr.bf16.mxu1 %v23888_v51  ;;  %v15583_v51 = vcombine.low %v13193_v47, %v24002_v23 }
 0x678   : > { %v12116_v14 = vsel %vm3456_vm6, %v12113_v46, %v12115_v6  ;;  %v12118_v42 = vsel %vm3456_vm6, %v12115_v6, %v12117_v59  ;;  %v13228_v46 = vrot.slane %v24056_v60, 2 }
 0x679   : > { %v13217_v24 = vrot.slane %v15583_v51, 2  ;;  %v24081_v51 = vld [vmem:[#allocation3 + $0x54] sm:$0xff]  }
 0x67b   : > { %v24017_v61 = vsel %vm3456_vm6, %v13217_v24, %v13218_v48 }
 0x67e   : > { %18494 = vmatmul.mubr.bf16.gmra.mrb[144].mxu1 %v23885_v17  ;;  %v12119_v17 = vrot.slane %v23899_v43, 2 }
 0x67f   : > { %18497 = vmatprep.mubr.bf16.mxu1 %v23899_v43 }
 0x680   : > { %v12120_v53 = vsel %vm3456_vm6, %v12117_v59, %v12119_v17  ;;  %v12122_v43 = vsel %vm3456_vm6, %v12119_v17, %v12121_v9  ;;  %v24071_v59 = vsel %vm3456_vm6, %v13226_v34, %v13228_v46  ;;  %v24083_v17 = vld [vmem:[#allocation3 + $0x58] sm:$0xff]  }
 0x681   : > { %v14349_v24 = vrot.slane %v24083_v17, 2 }
 0x686   : > { %18498 = vmatmul.mubr.bf16.gmra.mrb[148].mxu1 %v23897_v8  ;;  %v24025_v8 = vld [vmem:[#allocation3 + $0x2c] sm:$0xff]  }
 0x687   : > { %18501 = vmatprep.mubr.bf16.mxu1 %v23907_v45 }
 0x68e   : > { %18502 = vmatmul.mubr.bf16.gmra.mrb[152].mxu1 %v23905_v41 }
 0x68f   : > { %18521 = vmatprep.mubr.bf16.mxu1 %v12098_v58  ;;  %v12123_v58 = vrot.slane %v23907_v45, 2 }
 0x691   : > { %v12124_v29 = vsel %vm3456_vm6, %v12121_v9, %v12123_v58  ;;  %v12126_v41 = vsel %vm3456_vm6, %v12123_v58, %v12125_v37  ;;  %v24085_v9 = vld [vmem:[#allocation3 + $0x50] sm:$0xff]  }
 0x696   : > { %18522 = vmatmul.mubr.bf16.vlgmr.msra.gmra.mrb[124].mxu1 %v12100_v36  ;;  %v13222_v36 = vrot.slane %v24025_v8, 2 }
 0x697   : > { %18525 = vmatprep.mubr.bf16.mxu1 %v12102_v38  ;;  %18554 = vmatpush3.bf16.msra.mxu1 %v20223_v2  ;;  %v24022_v2 = vld [vmem:[#allocation3 + $0x2c] sm:$0xf]  ;;  %v13224_v38 = vrot.slane %v24027_v26, 2 }
 0x698   : > { %18555 = vmatprep.subr.bf16.mxu1 %v20224_v13  ;;  %v15642_v21 = vcombine.low %v14314_v35, %v24022_v2  ;;  %v20233_v35 = vld [vmem:[#allocation3 + $0x1c] sm:$0xff]  }
 0x699   : > { %v24045_v45 = vsel %vm3456_vm6, %v13222_v36, %v13224_v38  ;;  %v24068_v6 = vsel %vm3456_vm6, %v13224_v38, %v13226_v34  ;;  %v24107_v38 = vld [vmem:[#allocation3 + $0x5c] sm:$0xff]   ;;  %v20236_v34 = vld [vmem:[#allocation3 + $0x2c] sm:$0xff]  }
 0x69a   : > { %v14338_v4 = vrot.slane %v15642_v21, 2  ;;  %v20235_v21 = vld [vmem:[#allocation3 + $0x24] sm:$0xff]  }
 0x69b   : > { %18556 = vmatpush3.bf16.msra.mxu1 %v20224_v13  ;;  %v14341_v13 = vrot.slane %v24029_v50, 2 }
 0x69c   : > { %18557 = vmatprep.subr.bf16.mxu1 %v20225_v20 }
 0x69e   : > { %18526 = vmatmul.mubr.bf16.gmra.mrb[128].mxu1 %v12104_v1 }
 0x69f   : > { %18529 = vmatprep.mubr.bf16.mxu1 %v12106_v54  ;;  %18558 = vmatpush3.bf16.msra.mxu1 %v20225_v20  ;;  %v14339_v20 = vrot.slane %v24033_v12, 2 }
 0x6a0   : > { %18559 = vmatprep.subr.bf16.mxu1 %v20226_v25 }
 0x6a1   : > { %v24049_v1 = vsel %vm3456_vm6, %v14338_v4, %v14339_v20  ;;  %v24052_v54 = vsel %vm3456_vm6, %v14339_v20, %v14341_v13  ;;  %v24109_v20 = vld [vmem:[#allocation3 + $0x64] sm:$0xff]  }
 0x6a2   : > { %v20240_v4 = vld [vmem:[%s24493_s5 + $0x110] sm:$0xff]  }
 0x6a3   : > { %18560 = vmatpush3.bf16.msra.mxu1 %v20226_v25  ;;  %v24042_v25 = vsel %vm3456_vm6, %v13220_v63, %v13222_v36  ;;  %v13232_v63 = vrot.slane %v24081_v51, 2 }
 0x6a4   : > { %18561 = vmatprep.subr.bf16.mxu1 %v20227_v27 }
 0x6a6   : > { %18530 = vmatmul.mubr.bf16.gmra.mrb[132].mxu1 %v12108_v32  ;;  %v24060_v32 = vld [vmem:[#allocation3 + $0x40] sm:$0xff]  }
 0x6a7   : > { %18533 = vmatprep.mubr.bf16.mxu1 %v12110_v19  ;;  %18562 = vmatpush3.bf16.msra.mxu1 %v20227_v27  ;;  %v20230_v27 = vld [vmem:[#allocation3 + $0x80] ss:$0 sps:$4 sm:$0x33]  }
 0x6a8   : > { %18563 = vmatprep.subr.bf16.mxu1 %v20228_v40 }
 0x6ab   : > { %18564 = vmatpush3.bf16.msra.mxu1 %v20228_v40  ;;  %v24058_v40 = vld [vmem:[#allocation3 + $0x48] sm:$0xff]  }
 0x6ac   : > { %18565 = vmatprep.subr.bf16.mxu1 %v20229_v15  ;;  %v14345_v19 = vrot.slane %v24058_v40, 2 }
 0x6ae   : > { %18534 = vmatmul.mubr.bf16.gmra.mrb[136].mxu1 %v12112_v62 }
 0x6af   : > { %18537 = vmatprep.mubr.bf16.mxu1 %v12114_v11  ;;  %18566 = vmatpush3.bf16.msra.mxu1 %v20229_v15  ;;  %v12127_v15 = vrot.slane %v20230_v27, 2  ;;  %v20232_v11 = vld [vmem:[#allocation3 + $0x14] sm:$0xff]  }
 0x6b0   : > { %18567 = vmatprep.subr.bf16.mxu1 %v20231_v16 }
 0x6b1   : > { %v12128_v62 = vsel %vm3456_vm6, %v12125_v37, %v12127_v15 }
 0x6b3   : > { %18568 = vmatpush3.bf16.msra.mxu1 %v20231_v16  ;;  %v14343_v16 = vrot.slane %v24060_v32, 2 }
 0x6b4   : > { %18601 = vmatprep.subr.bf16.mxu1 %v23997_v30 }
 0x6b5   : > { %v24074_v47 = vsel %vm3456_vm6, %v14341_v13, %v14343_v16 }
 0x6b6   : > { %18538 = vmatmul.mubr.bf16.gmra.mrb[140].mxu1 %v12116_v14  ;;  %v24077_v14 = vsel %vm3456_vm6, %v14343_v16, %v14345_v19  ;;  %v20238_v16 = vld [vmem:[#allocation3 + $0x34] sm:$0xff]  }
 0x6b7   : > { %18541 = vmatprep.mubr.bf16.mxu1 %v12118_v42  ;;  %v24079_v42 = vld [vmem:[#allocation3 + $0x4c] sm:$0xff]  }
 0x6b8   : > { %v13230_v48 = vrot.slane %v24079_v42, 2 }
 0x6ba   : > { %v24095_v58 = vsel %vm3456_vm6, %v13228_v46, %v13230_v48  ;;  %v24098_v37 = vsel %vm3456_vm6, %v13230_v48, %v13232_v63  ;;  %v20243_v46 = vld [vmem:[%s24493_s5 + $0x118] sm:$0xff]   ;;  %v24131_v48 = vld [vmem:[#allocation3 + $0x7c] sm:$0xff]  }
 0x6be   : > { %18542 = vmatmul.mubr.bf16.gmra.mrb[144].mxu1 %v12120_v53  ;;  %v14347_v53 = vrot.slane %v24085_v9, 2 }
 0x6bf   : > { %18545 = vmatprep.mubr.bf16.mxu1 %v12122_v43  ;;  %v20237_v43 = vld [vmem:[%s24493_s5 + $0x108] sm:$0xff]  }
 0x6c0   : > { %v24101_v13 = vsel %vm3456_vm6, %v14345_v19, %v14347_v53  ;;  %v24104_v36 = vsel %vm3456_vm6, %v14347_v53, %v14349_v24  ;;  %v13234_v19 = vrot.slane %v24107_v38, 2 }
 0x6c6   : > { %18546 = vmatmul.mubr.bf16.gmra.mrb[148].mxu1 %v12124_v29  ;;  %v24114_v29 = vld [vmem:[#allocation3 + $0x68] sm:$0xff]  }
 0x6c7   : > { %18549 = vmatprep.mubr.bf16.mxu1 %v12126_v41  ;;  %v24116_v41 = vld [vmem:[#allocation3 + $0x60] sm:$0xff]   ;;  %v14353_v27 = vrot.slane %v24114_v29, 2 }
 0x6c8   : > { %v14351_v15 = vrot.slane %v24116_v41, 2 }
 0x6ca   : > { %v24134_v53 = vsel %vm3456_vm6, %v14349_v24, %v14351_v15  ;;  %v13242_v24 = vrot.slane %v24131_v48, 2 }
 0x6cc   : > { %v24161_v28 = vsel %vm3456_vm6, %v13242_v24, %v13244_v33 }
 0x6ce   : > { %18550 = vmatmul.mubr.bf16.gmra.mrb[152].mxu1 %v12128_v62  ;;  %v24126_v62 = vsel %vm3456_vm6, %v13232_v63, %v13234_v19  ;;  %v20246_v63 = vld [vmem:[%s24493_s5 + $0x120] sm:$0xff]  }
 0x6cf   : > { %18569 = vmatprep.mubr.bf16.mxu1 %v20232_v11 }
 0x6d6   : > { %18570 = vmatmul.mubr.bf16.vlgmr.msra.gmra.mrb[124].mxu1 %v20233_v35  ;;  %v24137_v35 = vsel %vm3456_vm6, %v14351_v15, %v14353_v27 }
 0x6d7   : > { %18573 = vmatprep.mubr.bf16.mxu1 %v20235_v21  ;;  %18602 = vmatpush3.bf16.msra.mxu1 %v23997_v30  ;;  %v13236_v30 = vrot.slane %v24109_v20, 2  ;;  %25076 = vst [vmem:[#allocation23_spill] sm:$0xff] %v24137_v35  ;;  %v24141_v21 = vld [vmem:[#allocation3 + $0x74] sm:$0xff]  }
 0x6d8   : > { %18603 = vmatprep.subr.bf16.mxu1 %v20237_v43 }
 0x6d9   : > { %v24129_v11 = vsel %vm3456_vm6, %v13234_v19, %v13236_v30  ;;  %v24146_v19 = vld [vmem:[#allocation3 + $0x78] sm:$0xff]  }
 0x6da   : > { %v14357_v15 = vrot.slane %v24146_v19, 2 }
 0x6db   : > { %18604 = vmatpush3.bf16.msra.mxu1 %v20237_v43  ;;  %v24139_v43 = vld [vmem:[#allocation3 + $0x6c] sm:$0xff]  }
 0x6dc   : > { %18605 = vmatprep.subr.bf16.mxu1 %v20240_v4 }
 0x6de   : > { %18574 = vmatmul.mubr.bf16.gmra.mrb[128].mxu1 %v20236_v34  ;;  %v24148_v34 = vld [vmem:[#allocation3 + $0x70] sm:$0xff]  }
 0x6df   : > { %18577 = vmatprep.mubr.bf16.mxu1 %v20238_v16  ;;  %18606 = vmatpush3.bf16.msra.mxu1 %v20240_v4  ;;  %v13238_v4 = vrot.slane %v24139_v43, 2  ;;  %v13240_v16 = vrot.slane %v24141_v21, 2  ;;  %v14355_v18 = vrot.slane %v24148_v34, 2 }
 0x6e0   : > { %18607 = vmatprep.subr.bf16.mxu1 %v20243_v46 }
 0x6e1   : > { %v24169_v56 = vsel %vm3456_vm6, %v13236_v30, %v13238_v4  ;;  %v24172_v57 = vsel %vm3456_vm6, %v13238_v4, %v13240_v16  ;;  %v24175_v35 = vsel %vm3456_vm6, %v13240_v16, %v13242_v24  ;;  %v24178_v22 = vsel %vm3456_vm6, %v14353_v27, %v14355_v18  ;;  %v20244_v30 = vld [vmem:[#allocation3 + $0x54] sm:$0xff]   ;;  %v20247_v27 = vld [vmem:[#allocation3 + $0x64] sm:$0xff]   ;;  %v20251_v24 = vld [vmem:[#allocation3 + $0x7c] sm:$0xff]  }
 0x6e2   : > { %v24181_v33 = vsel %vm3456_vm6, %v14355_v18, %v14357_v15  ;;  %v20245_v18 = vld [vmem:[#allocation3 + $0x5c] sm:$0xff]   ;;  %v12771_v4 = vld [vmem:[#allocation3 + $0x14] sm:$0xe] }
 0x6e3   : > { %18608 = vmatpush3.bf16.msra.mxu1 %v20243_v46  ;;  %v24166_v46 = vsel %vm3456_vm6, %v14357_v15, %v25077_v7  ;;  %v20242_v7 = vld [vmem:[#allocation3 + $0x4c] sm:$0xff]   ;;  %v20253_v15 = vld [vmem:[#allocation3 + $0x84] sm:$0xff]   ;;  %v15558_v16 = vcombine.low %v12771_v4, %v24002_v23  ;;  %v12916_v4 = vrot.slane %v24079_v42, 1  ;;  %v12918_v42 = vrot.slane %v24081_v51, 1  ;;  %v20282_v51 = vld [vmem:[%s24493_s5 + $0x180] sm:$0xff]  }
 0x6e4   : > { %18609 = vmatprep.subr.bf16.mxu1 %v20246_v63 }
 0x6e6   : > { %18578 = vmatmul.mubr.bf16.gmra.mrb[132].mxu1 %v20239_v3  ;;  %v20255_v3 = vld [vmem:[%s24493_s5 + $0x138] sm:$0xff]  }
 0x6e7   : > { %18581 = vmatprep.mubr.bf16.mxu1 %v20241_v39  ;;  %18610 = vmatpush3.bf16.msra.mxu1 %v20246_v63  ;;  %v20259_v39 = vld [vmem:[%s24493_s5 + $0x140] sm:$0xff]  }
 0x6e8   : > { %18611 = vmatprep.subr.bf16.mxu1 %v20249_v52  ;;  %v20250_v63 = vld [vmem:[#allocation3 + $0x74] sm:$0xff]  }
 0x6eb   : > { %18612 = vmatpush3.bf16.msra.mxu1 %v20249_v52  ;;  %v20248_v52 = vld [vmem:[#allocation3 + $0x6c] sm:$0xff]  }
 0x6ec   : > { %18613 = vmatprep.subr.bf16.mxu1 %v20252_v10 }
 0x6ee   : > { %18582 = vmatmul.mubr.bf16.gmra.mrb[136].mxu1 %v20242_v7  ;;  %v20254_v7 = vld [vmem:[#allocation3 + $0x8c] sm:$0xff]  }
 0x6ef   : > { %18585 = vmatprep.mubr.bf16.mxu1 %v20244_v30  ;;  %18614 = vmatpush3.bf16.msra.mxu1 %v20252_v10  ;;  %v12904_v10 = vrot.slane %v24006_v31, 1  ;;  %v20265_v31 = vld [vmem:[%s24493_s5 + $0x150] sm:$0xff]  }
 0x6f0   : > { %18615 = vmatprep.subr.bf16.mxu1 %v20255_v3 }
 0x6f3   : > { %18616 = vmatpush3.bf16.msra.mxu1 %v20255_v3  ;;  %v12903_v3 = vrot.slane %v15558_v16, 1  ;;  %v20274_v16 = vld [vmem:[%s24493_s5 + $0x168] sm:$0xff]  }
 0x6f4   : > { %18649 = vmatprep.subr.bf16.mxu1 %v20259_v39 }
 0x6f5   : > { %v12905_v30 = vsel %vm2678_vm5, %v12903_v3, %v12904_v10  ;;  %v12920_v3 = vrot.slane %v24107_v38, 1  ;;  %v12922_v38 = vrot.slane %v24109_v20, 1  ;;  %v20402_v20 = vld [vmem:[#allocation3 + $0x8c] sm:$0xff]  }
 0x6f6   : > { %18586 = vmatmul.mubr.bf16.gmra.mrb[140].mxu1 %v20245_v18  ;;  %v12906_v18 = vrot.slane %v24008_v55, 1  ;;  %v12910_v55 = vrot.slane %v24027_v26, 1  ;;  %v20271_v26 = vld [vmem:[%s24493_s5 + $0x160] sm:$0xff]  }
 0x6f7   : > { %18589 = vmatprep.mubr.bf16.mxu1 %v20247_v27  ;;  %v12908_v27 = vrot.slane %v24025_v8, 1  ;;  %v12912_v8 = vrot.slane %v24054_v49, 1  ;;  %v12914_v49 = vrot.slane %v24056_v60, 1  ;;  %v20277_v60 = vld [vmem:[%s24493_s5 + $0x170] sm:$0xff]  }
 0x6f9   : > { %v12909_v23 = vsel %vm2678_vm5, %v12906_v18, %v12908_v27 }
 0x6fe   : > { %18590 = vmatmul.mubr.bf16.gmra.mrb[144].mxu1 %v20248_v52  ;;  %v20262_v52 = vld [vmem:[%s24493_s5 + $0x148] sm:$0xff]  }
 0x6ff   : > { %18593 = vmatprep.mubr.bf16.mxu1 %v20250_v63  ;;  %v12907_v63 = vsel %vm2678_vm5, %v12904_v10, %v12906_v18  ;;  %v12915_v10 = vsel %vm2678_vm5, %v12912_v8, %v12914_v49  ;;  %v12919_v18 = vsel %vm2678_vm5, %v12916_v4, %v12918_v42 }
 0x706   : > { %18594 = vmatmul.mubr.bf16.gmra.mrb[148].mxu1 %v20251_v24  ;;  %v20268_v24 = vld [vmem:[%s24493_s5 + $0x158] sm:$0xff]  }
 0x707   : > { %18597 = vmatprep.mubr.bf16.mxu1 %v20253_v15  ;;  %v12911_v15 = vsel %vm2678_vm5, %v12908_v27, %v12910_v55  ;;  %v12921_v27 = vsel %vm2678_vm5, %v12918_v42, %v12920_v3  ;;  %v20305_v42 = vld [vmem:[%s24493_s5 + $0x1e0] sm:$0xff]  }
 0x70e   : > { %18598 = vmatmul.mubr.bf16.gmra.mrb[152].mxu1 %v20254_v7  ;;  %v12917_v7 = vsel %vm2678_vm5, %v12914_v49, %v12916_v4  ;;  %v20279_v49 = vld [vmem:[#allocation3 + $0x94] ss:$0 sps:$4 sm:$0x11]  }
 0x70f   : > { %18617 = vmatprep.mubr.bf16.mxu1 %v12905_v30  ;;  %v20280_v30 = vld [vmem:[%s24493_s5 + $0x178] sm:$0xff]  }
 0x716   : > { %18618 = vmatmul.mubr.bf16.vlgmr.msra.gmra.mrb[124].mxu1 %v12907_v63  ;;  %v12923_v63 = vsel %vm2678_vm5, %v12920_v3, %v12922_v38  ;;  %v20298_v3 = vld [vmem:[#allocation3 + $0x50] sm:$0xff]  }
 0x717   : > { %18621 = vmatprep.mubr.bf16.mxu1 %v12909_v23  ;;  %18650 = vmatpush3.bf16.msra.mxu1 %v20259_v39  ;;  %v12913_v39 = vsel %vm2678_vm5, %v12910_v55, %v12912_v8  ;;  %v12928_v55 = vrot.slane %v24131_v48, 1 }
 0x718   : > { %18651 = vmatprep.subr.bf16.mxu1 %v20262_v52 }
 0x71b   : > { %18652 = vmatpush3.bf16.msra.mxu1 %v20262_v52  ;;  %v12924_v52 = vrot.slane %v24139_v43, 1  ;;  %v12932_v43 = vrot.slane %v20402_v20, 1  ;;  %v20312_v20 = vld [vmem:[#allocation3 + $0x98] sm:$0xff]  }
 0x71c   : > { %18653 = vmatprep.subr.bf16.mxu1 %v20265_v31 }
 0x71d   : > { %v12925_v23 = vsel %vm2678_vm5, %v12922_v38, %v12924_v52  ;;  %v20314_v38 = vld [vmem:[%s24493_s5 + $0x1f8] sm:$0xff]  }
 0x71e   : > { %18622 = vmatmul.mubr.bf16.gmra.mrb[128].mxu1 %v12911_v15  ;;  %v20403_v15 = vld [vmem:[#allocation3 + $0x84] sm:$0xff]  }
 0x71f   : > { %18625 = vmatprep.mubr.bf16.mxu1 %v12913_v39  ;;  %18654 = vmatpush3.bf16.msra.mxu1 %v20265_v31  ;;  %v12926_v31 = vrot.slane %v24141_v21, 1  ;;  %v12930_v39 = vrot.slane %v20403_v15, 1  ;;  %v12934_v21 = vrot.slane %v20279_v49, 1 }
 0x720   : > { %18655 = vmatprep.subr.bf16.mxu1 %v20268_v24 }
 0x721   : > { %v12927_v8 = vsel %vm2678_vm5, %v12924_v52, %v12926_v31  ;;  %v12933_v4 = vsel %vm2678_vm5, %v12930_v39, %v12932_v43  ;;  %v12935_v48 = vsel %vm2678_vm5, %v12932_v43, %v12934_v21  ;;  %v20303_v52 = vld [vmem:[#allocation3 + $0x68] sm:$0xff]   ;;  %v14027_v21 = vrot.slane %v24029_v50, 1 }
 0x722   : > { %v13892_v43 = vld [vmem:[#allocation3 + $0x28] sm:$0xe]  ;;  %v14031_v50 = vrot.slane %v24058_v40, 1  ;;  %v20330_v40 = vld [vmem:[%s24493_s5 + $0x220] sm:$0xff]  }
 0x723   : > { %18656 = vmatpush3.bf16.msra.mxu1 %v20268_v24  ;;  %v12929_v24 = vsel %vm2678_vm5, %v12926_v31, %v12928_v55  ;;  %v20306_v31 = vld [vmem:[#allocation3 + $0x78] sm:$0xff]   ;;  %v15617_v15 = vcombine.low %v13892_v43, %v24022_v2 }
 0x724   : > { %18657 = vmatprep.subr.bf16.mxu1 %v20271_v26 }
 0x725   : > { %v14024_v49 = vrot.slane %v15617_v15, 1 }
 0x726   : > { %18626 = vmatmul.mubr.bf16.gmra.mrb[132].mxu1 %v12915_v10  ;;  %v20284_v10 = vld [vmem:[%s24493_s5 + $0x190] sm:$0xff]  }
 0x727   : > { %18629 = vmatprep.mubr.bf16.mxu1 %v12917_v7  ;;  %18658 = vmatpush3.bf16.msra.mxu1 %v20271_v26  ;;  %v12931_v26 = vsel %vm2678_vm5, %v12928_v55, %v12930_v39  ;;  %v20307_v55 = vld [vmem:[#allocation3 + $0x80] sm:$0xff]   ;;  %v14025_v39 = vrot.slane %v24033_v12, 1 }
 0x728   : > { %18659 = vmatprep.subr.bf16.mxu1 %v20274_v16  ;;  %v20324_v12 = vld [vmem:[%s24493_s5 + $0x210] sm:$0xff]  }
 0x72b   : > { %18660 = vmatpush3.bf16.msra.mxu1 %v20274_v16  ;;  %v20283_v16 = vld [vmem:[%s24493_s5 + $0x188] sm:$0xff]  }
 0x72c   : > { %18661 = vmatprep.subr.bf16.mxu1 %v20277_v60 }
 0x72e   : > { %18630 = vmatmul.mubr.bf16.gmra.mrb[136].mxu1 %v12919_v18  ;;  %v20300_v18 = vld [vmem:[#allocation3 + $0x58] sm:$0xff]  }
 0x72f   : > { %18633 = vmatprep.mubr.bf16.mxu1 %v12921_v27  ;;  %18662 = vmatpush3.bf16.msra.mxu1 %v20277_v60  ;;  %v20291_v60 = vld [vmem:[#allocation3 + $0x28] sm:$0xff]  }
 0x730   : > { %18663 = vmatprep.subr.bf16.mxu1 %v20280_v30  ;;  %v20311_v27 = vld [vmem:[%s24493_s5 + $0x1f0] sm:$0xff]  }
 0x733   : > { %18664 = vmatpush3.bf16.msra.mxu1 %v20280_v30  ;;  %v20308_v30 = vld [vmem:[%s24493_s5 + $0x1e8] sm:$0xff]  }
 0x734   : > { %18697 = vmatprep.subr.bf16.mxu1 %v20282_v51 }
 0x736   : > { %18634 = vmatmul.mubr.bf16.gmra.mrb[140].mxu1 %v12923_v63  ;;  %v20318_v63 = vld [vmem:[%s24493_s5 + $0x200] sm:$0xff]  }
 0x737   : > { %18637 = vmatprep.mubr.bf16.mxu1 %v12925_v23  ;;  %v20304_v23 = vld [vmem:[#allocation3 + $0x70] sm:$0xff]  }
 0x73e   : > { %18638 = vmatmul.mubr.bf16.gmra.mrb[144].mxu1 %v12927_v8  ;;  %v20309_v8 = vld [vmem:[#allocation3 + $0x88] sm:$0xff]  }
 0x73f   : > { %18641 = vmatprep.mubr.bf16.mxu1 %v12929_v24  ;;  %v20310_v24 = vld [vmem:[#allocation3 + $0x90] sm:$0xff]  }
 0x746   : > { %18642 = vmatmul.mubr.bf16.gmra.mrb[148].mxu1 %v12931_v26  ;;  %v20313_v26 = vld [vmem:[#allocation3 + $0xa0] sm:$0xff]  }
 0x747   : > { %18645 = vmatprep.mubr.bf16.mxu1 %v12933_v4  ;;  %v14026_v4 = vsel %vm2678_vm5, %v14024_v49, %v14025_v39 }
 0x74e   : > { %18646 = vmatmul.mubr.bf16.gmra.mrb[152].mxu1 %v12935_v48  ;;  %v14029_v48 = vrot.slane %v24060_v32, 1  ;;  %v14033_v32 = vrot.slane %v24085_v9, 1  ;;  %v14035_v9 = vrot.slane %v24083_v17, 1  ;;  %v20336_v17 = vld [vmem:[%s24493_s5 + $0x230] sm:$0xff]  }
 0x74f   : > { %18665 = vmatprep.mubr.bf16.mxu1 %v24017_v61  ;;  %v20285_v61 = vld [vmem:[%s24493_s5 + $0x198] sm:$0xff]  }
 0x750   : > { %v14030_v2 = vsel %vm2678_vm5, %v14027_v21, %v14029_v48 }
 0x756   : > { %18666 = vmatmul.mubr.bf16.vlgmr.msra.gmra.mrb[124].mxu1 %v24020_v44  ;;  %v20286_v44 = vld [vmem:[%s24493_s5 + $0x1a0] sm:$0xff]  }
 0x757   : > { %18669 = vmatprep.mubr.bf16.mxu1 %v24042_v25  ;;  %18698 = vmatpush3.bf16.msra.mxu1 %v20282_v51  ;;  %v20287_v25 = vld [vmem:[%s24493_s5 + $0x1a8] sm:$0xff]  }
 0x758   : > { %18699 = vmatprep.subr.bf16.mxu1 %v20283_v16  ;;  %v20301_v51 = vld [vmem:[#allocation3 + $0x60] sm:$0xff]  }
 0x75b   : > { %18700 = vmatpush3.bf16.msra.mxu1 %v20283_v16  ;;  %v20321_v16 = vld [vmem:[%s24493_s5 + $0x208] sm:$0xff]  }
 0x75c   : > { %18701 = vmatprep.subr.bf16.mxu1 %v20284_v10 }
 0x75e   : > { %18670 = vmatmul.mubr.bf16.gmra.mrb[128].mxu1 %v24045_v45  ;;  %v20288_v45 = vld [vmem:[%s24493_s5 + $0x1b0] sm:$0xff]  }
 0x75f   : > { %18673 = vmatprep.mubr.bf16.mxu1 %v24068_v6  ;;  %18702 = vmatpush3.bf16.msra.mxu1 %v20284_v10  ;;  %v20290_v6 = vld [vmem:[%s24493_s5 + $0x1b8] sm:$0xff]   ;;  %v14028_v10 = vsel %vm2678_vm5, %v14025_v39, %v14027_v21 }
 0x760   : > { %18703 = vmatprep.subr.bf16.mxu1 %v20285_v61 }
 0x763   : > { %18704 = vmatpush3.bf16.msra.mxu1 %v20285_v61  ;;  %v20327_v61 = vld [vmem:[%s24493_s5 + $0x218] sm:$0xff]  }
 0x764   : > { %18705 = vmatprep.subr.bf16.mxu1 %v20286_v44 }
 0x766   : > { %18674 = vmatmul.mubr.bf16.gmra.mrb[132].mxu1 %v24071_v59  ;;  %v20293_v59 = vld [vmem:[%s24493_s5 + $0x1c0] sm:$0xff]  }
 0x767   : > { %18677 = vmatprep.mubr.bf16.mxu1 %v24095_v58  ;;  %18706 = vmatpush3.bf16.msra.mxu1 %v20286_v44  ;;  %v20289_v58 = vld [vmem:[#allocation3 + $0x94] ss:$0 sps:$4 sm:$0x33]   ;;  %v14032_v44 = vsel %vm2678_vm5, %v14029_v48, %v14031_v50 }
 0x768   : > { %18707 = vmatprep.subr.bf16.mxu1 %v20287_v25 }
 0x76b   : > { %18708 = vmatpush3.bf16.msra.mxu1 %v20287_v25  ;;  %v14034_v25 = vsel %vm2678_vm5, %v14031_v50, %v14033_v32 }
 0x76c   : > { %18709 = vmatprep.subr.bf16.mxu1 %v20288_v45 }
 0x76e   : > { %18678 = vmatmul.mubr.bf16.gmra.mrb[136].mxu1 %v24098_v37  ;;  %v13248_v37 = vrot.slane %v20289_v58, 2 }
 0x76f   : > { %18681 = vmatprep.mubr.bf16.mxu1 %v24126_v62  ;;  %18710 = vmatpush3.bf16.msra.mxu1 %v20288_v45  ;;  %v25078_v62 = vrot.slane %v23718_v5, 2  ;;  %v20295_v5 = vld [vmem:[#allocation3 + $0x40] sm:$0xff]   ;;  %v14037_v45 = vrot.slane %v24116_v41, 1  ;;  %v14039_v41 = vrot.slane %v24114_v29, 1 }
 0x770   : > { %18711 = vmatprep.subr.bf16.mxu1 %v20290_v6  ;;  %v20404_v29 = vld [vmem:[#allocation3 + $0x80] sm:$0xff]  }
 0x771   : > { %v13249_v7 = vsel %vm3456_vm6, %v25078_v62, %v13248_v37  ;;  %v14038_v58 = vsel %vm2678_vm5, %v14035_v9, %v14037_v45  ;;  %v14041_v37 = vrot.slane %v24148_v34, 1  ;;  %v20339_v62 = vld [vmem:[%s24493_s5 + $0x238] sm:$0xff]  }
 0x773   : > { %18712 = vmatpush3.bf16.msra.mxu1 %v20290_v6  ;;  %v20333_v6 = vld [vmem:[%s24493_s5 + $0x228] sm:$0xff]  }
 0x774   : > { %18745 = vmatprep.subr.bf16.mxu1 %v20293_v59 }
 0x776   : > { %18682 = vmatmul.mubr.bf16.gmra.mrb[140].mxu1 %v24129_v11  ;;  %v20292_v11 = vld [vmem:[#allocation3 + $0x30] sm:$0xff]  }
 0x777   : > { %18685 = vmatprep.mubr.bf16.mxu1 %v24169_v56  ;;  %v20294_v56 = vld [vmem:[#allocation3 + $0x38] sm:$0xff]  }
 0x77e   : > { %18686 = vmatmul.mubr.bf16.gmra.mrb[144].mxu1 %v24172_v57  ;;  %v20296_v57 = vld [vmem:[%s24493_s5 + $0x1c8] sm:$0xff]  }
 0x77f   : > { %18689 = vmatprep.mubr.bf16.mxu1 %v24175_v35  ;;  %v20297_v35 = vld [vmem:[#allocation3 + $0x48] sm:$0xff]  }
 0x786   : > { %18690 = vmatmul.mubr.bf16.gmra.mrb[148].mxu1 %v24161_v28  ;;  %v20302_v28 = vld [vmem:[%s24493_s5 + $0x1d8] sm:$0xff]  }
 0x787   : > { %18693 = vmatprep.mubr.bf16.mxu1 %v23727_v0  ;;  %v20299_v0 = vld [vmem:[%s24493_s5 + $0x1d0] sm:$0xff]  }
 0x78e   : > { %18694 = vmatmul.mubr.bf16.gmra.mrb[152].mxu1 %v13249_v7  ;;  %v14040_v7 = vsel %vm2678_vm5, %v14037_v45, %v14039_v41 }
 0x78f   : > { %18713 = vmatprep.mubr.bf16.mxu1 %v20291_v60  ;;  %v14042_v60 = vsel %vm2678_vm5, %v14039_v41, %v14041_v37 }
 0x796   : > { %18714 = vmatmul.mubr.bf16.vlgmr.msra.gmra.mrb[124].mxu1 %v20292_v11  ;;  %v14043_v11 = vrot.slane %v24146_v19, 1  ;;  %v20407_v19 = vld [vmem:[#allocation3 + $0x98] sm:$0xff]  }
 0x797   : > { %18717 = vmatprep.mubr.bf16.mxu1 %v20294_v56  ;;  %18746 = vmatpush3.bf16.msra.mxu1 %v20293_v59  ;;  %v14036_v59 = vsel %vm2678_vm5, %v14033_v32, %v14035_v9 }
 0x798   : > { %18747 = vmatprep.subr.bf16.mxu1 %v20296_v57  ;;  %v14044_v34 = vsel %vm2678_vm5, %v14041_v37, %v14043_v11 }
 0x79b   : > { %18748 = vmatpush3.bf16.msra.mxu1 %v20296_v57  ;;  %v14045_v57 = vrot.slane %v20404_v29, 1 }
 0x79c   : > { %18749 = vmatprep.subr.bf16.mxu1 %v20299_v0 }
 0x79d   : > { %v14046_v56 = vsel %vm2678_vm5, %v14043_v11, %v14045_v57 }
 0x79e   : > { %18718 = vmatmul.mubr.bf16.gmra.mrb[128].mxu1 %v20295_v5 }
 0x79f   : > { %18721 = vmatprep.mubr.bf16.mxu1 %v20297_v35  ;;  %18750 = vmatpush3.bf16.msra.mxu1 %v20299_v0  ;;  %v20405_v0 = vld [vmem:[#allocation3 + $0x88] sm:$0xff]  }
 0x7a0   : > { %18751 = vmatprep.subr.bf16.mxu1 %v20302_v28  ;;  %v14047_v5 = vrot.slane %v20405_v0, 1 }
 0x7a3   : > { %18752 = vmatpush3.bf16.msra.mxu1 %v20302_v28  ;;  %v20406_v28 = vld [vmem:[#allocation3 + $0x90] sm:$0xff]  }
 0x7a4   : > { %18753 = vmatprep.subr.bf16.mxu1 %v20305_v42  ;;  %v14049_v35 = vrot.slane %v20406_v28, 1 }
 0x7a6   : > { %18722 = vmatmul.mubr.bf16.gmra.mrb[132].mxu1 %v20298_v3  ;;  %v14050_v3 = vsel %vm2678_vm5, %v14047_v5, %v14049_v35 }
 0x7a7   : > { %18725 = vmatprep.mubr.bf16.mxu1 %v20300_v18  ;;  %18754 = vmatpush3.bf16.msra.mxu1 %v20305_v42  ;;  %v14048_v42 = vsel %vm2678_vm5, %v14045_v57, %v14047_v5  ;;  %v20408_v18 = vld [vmem:[#allocation3 + $0xa0] sm:$0xff]  }
 0x7a8   : > { %18755 = vmatprep.subr.bf16.mxu1 %v20308_v30 }
 0x7ab   : > { %18756 = vmatpush3.bf16.msra.mxu1 %v20308_v30  ;;  %v14051_v30 = vrot.slane %v20407_v19, 1 }
 0x7ac   : > { %18757 = vmatprep.subr.bf16.mxu1 %v20311_v27 }
 0x7ae   : > { %18726 = vmatmul.mubr.bf16.gmra.mrb[136].mxu1 %v20301_v51  ;;  %v14052_v51 = vsel %vm2678_vm5, %v14049_v35, %v14051_v30 }
 0x7af   : > { %18729 = vmatprep.mubr.bf16.mxu1 %v20303_v52  ;;  %18758 = vmatpush3.bf16.msra.mxu1 %v20311_v27  ;;  %v14053_v27 = vrot.slane %v20408_v18, 1  ;;  %v20338_v52 = vld [vmem:[#allocation3 + $0xa8] ss:$0 sps:$4 sm:$0x11]  }
 0x7b0   : > { %18759 = vmatprep.subr.bf16.mxu1 %v20314_v38 }
 0x7b3   : > { %18760 = vmatpush3.bf16.msra.mxu1 %v20314_v38  ;;  %v14054_v38 = vsel %vm2678_vm5, %v14051_v30, %v14053_v27 }
 0x7b4   : > { %18793 = vmatprep.subr.bf16.mxu1 %v20318_v63 }
 0x7b6   : > { %18730 = vmatmul.mubr.bf16.gmra.mrb[140].mxu1 %v20304_v23 }
 0x7b7   : > { %18733 = vmatprep.mubr.bf16.mxu1 %v20306_v31  ;;  %v25079_v31 = vld [vmem:[#allocation23_spill] sm:$0xff] }
 0x7be   : > { %18734 = vmatmul.mubr.bf16.gmra.mrb[144].mxu1 %v20307_v55  ;;  %v25084_v55 = vld [vmem:[#allocation21_spill] sm:$0xff] }
 0x7bf   : > { %18737 = vmatprep.mubr.bf16.mxu1 %v20309_v8 }
 0x7c6   : > { %18738 = vmatmul.mubr.bf16.gmra.mrb[148].mxu1 %v20310_v24 }
 0x7c7   : > { %18741 = vmatprep.mubr.bf16.mxu1 %v20312_v20 }
 0x7ce   : > { %18742 = vmatmul.mubr.bf16.gmra.mrb[152].mxu1 %v20313_v26 }
 0x7cf   : > { %18761 = vmatprep.mubr.bf16.mxu1 %v14026_v4 }
 0x7d6   : > { %18762 = vmatmul.mubr.bf16.vlgmr.msra.gmra.mrb[124].mxu1 %v14028_v10 }
 0x7d7   : > { %18765 = vmatprep.mubr.bf16.mxu1 %v14030_v2  ;;  %18794 = vmatpush3.bf16.msra.mxu1 %v20318_v63  ;;  %v14055_v63 = vrot.slane %v20338_v52, 1 }
 0x7d8   : > { %18795 = vmatprep.subr.bf16.mxu1 %v20321_v16 }
 0x7d9   : > { %v14056_v23 = vsel %vm2678_vm5, %v14053_v27, %v14055_v63 }
 0x7db   : > { %18796 = vmatpush3.bf16.msra.mxu1 %v20321_v16 }
 0x7dc   : > { %18797 = vmatprep.subr.bf16.mxu1 %v20324_v12 }
 0x7de   : > { %18766 = vmatmul.mubr.bf16.gmra.mrb[128].mxu1 %v14032_v44 }
 0x7df   : > { %18769 = vmatprep.mubr.bf16.mxu1 %v14034_v25  ;;  %18798 = vmatpush3.bf16.msra.mxu1 %v20324_v12 }
 0x7e0   : > { %18799 = vmatprep.subr.bf16.mxu1 %v20327_v61 }
 0x7e3   : > { %18800 = vmatpush3.bf16.msra.mxu1 %v20327_v61 }
 0x7e4   : > { %18801 = vmatprep.subr.bf16.mxu1 %v20330_v40 }
 0x7e6   : > { %18770 = vmatmul.mubr.bf16.gmra.mrb[132].mxu1 %v14036_v59 }
 0x7e7   : > { %18773 = vmatprep.mubr.bf16.mxu1 %v14038_v58  ;;  %18802 = vmatpush3.bf16.msra.mxu1 %v20330_v40 }
 0x7e8   : > { %18803 = vmatprep.subr.bf16.mxu1 %v20333_v6 }
 0x7eb   : > { %18804 = vmatpush3.bf16.msra.mxu1 %v20333_v6 }
 0x7ec   : > { %18805 = vmatprep.subr.bf16.mxu1 %v20336_v17 }
 0x7ee   : > { %18774 = vmatmul.mubr.bf16.gmra.mrb[136].mxu1 %v14040_v7 }
 0x7ef   : > { %18777 = vmatprep.mubr.bf16.mxu1 %v14042_v60  ;;  %18806 = vmatpush3.bf16.msra.mxu1 %v20336_v17 }
 0x7f0   : > { %18807 = vmatprep.subr.bf16.mxu1 %v20339_v62 }
 0x7f3   : > { %18808 = vmatpush3.bf16.msra.mxu1 %v20339_v62 }
 0x7f6   : > { %18778 = vmatmul.mubr.bf16.gmra.mrb[140].mxu1 %v14044_v34 }
 0x7f7   : > { %18781 = vmatprep.mubr.bf16.mxu1 %v14046_v56 }
 0x7fe   : > { %18782 = vmatmul.mubr.bf16.gmra.mrb[144].mxu1 %v14048_v42 }
 0x7ff   : > { %18785 = vmatprep.mubr.bf16.mxu1 %v14050_v3 }
 0x806   : > { %18786 = vmatmul.mubr.bf16.gmra.mrb[148].mxu1 %v14052_v51 }
 0x807   : > { %18789 = vmatprep.mubr.bf16.mxu1 %v14054_v38 }
 0x80e   : > { %18790 = vmatmul.mubr.bf16.gmra.mrb[152].mxu1 %v14056_v23 }
 0x80f   : > { %18809 = vmatprep.mubr.bf16.mxu1 %v24049_v1  ;;  %v25080_v1 = vld [vmem:[#allocation14_spill] sm:$0xff] }
 0x816   : > { %18810 = vmatmul.mubr.bf16.vlgmr.msra.gmra.mrb[124].mxu1 %v24052_v54  ;;  %v25081_v54 = vld [vmem:[#allocation19_spill] sm:$0xff] }
 0x817   : > { %18813 = vmatprep.mubr.bf16.mxu1 %v24074_v47  ;;  %v25082_v47 = vld [vmem:[#allocation20_spill] sm:$0xff] }
 0x81e   : > { %18814 = vmatmul.mubr.bf16.gmra.mrb[128].mxu1 %v24077_v14  ;;  %v25083_v14 = vld [vmem:[#allocation22_spill] sm:$0xff] }
 0x81f   : > { %18817 = vmatprep.mubr.bf16.mxu1 %v24101_v13  ;;  %v20341_v13 = vld [vmem:[#allocation3 + $0xa8] ss:$0 sps:$4 sm:$0x33]  }
 0x826   : > { %18818 = vmatmul.mubr.bf16.gmra.mrb[132].mxu1 %v24104_v36  ;;  %v14369_v36 = vrot.slane %v20341_v13, 2 }
 0x827   : > { %18821 = vmatprep.mubr.bf16.mxu1 %v24134_v53  ;;  %v25085_v53 = vrot.slane %v25084_v55, 2 }
 0x829   : > { %v14370_v8 = vsel %vm3456_vm6, %v25085_v53, %v14369_v36 }
 0x82e   : > { %18822 = vmatmul.mubr.bf16.gmra.mrb[136].mxu1 %v25079_v31 }
 0x82f   : > { %18825 = vmatprep.mubr.bf16.mxu1 %v24178_v22  ;;  %v24381_v22 = vld [vmem:[%s24494_s6] ss:$0 sm:$0xff] }
 0x836   : > { %18826 = vmatmul.mubr.bf16.gmra.mrb[140].mxu1 %v24181_v33 }
 0x837   : > { %18829 = vmatprep.mubr.bf16.mxu1 %v24166_v46 }
 0x83e   : > { %18830 = vmatmul.mubr.bf16.gmra.mrb[144].mxu1 %v25080_v1 }
 0x83f   : > { %18833 = vmatprep.mubr.bf16.mxu1 %v25081_v54 }
 0x846   : > { %18834 = vmatmul.mubr.bf16.gmra.mrb[148].mxu1 %v25082_v47 }
 0x847   : > { %18837 = vmatprep.mubr.bf16.mxu1 %v25083_v14 }
 0x84e   : > { %18838 = vmatmul.mubr.bf16.gmra.mrb[152].mxu1 %v14370_v8 }
 0x8e9   : > { %v18811_v46 = vpop.f32.mrb[124].mxu1 }
 0x8ea   : > { %v14636_v33 = vadd.f32 %v18811_v46, %v24381_v22  ;;  %v14469_v24 = vpop.f32.mrb[125].mxu1 }
 0x8eb   : > { %v14634_v20 = vadd.f32 %v24381_v22, %v14469_v24  ;;  %v18812_v43 = vpop.f32.mrb[126].mxu1 }
 0x8ec   : > { %v14668_v15 = vmax.f32 %v14636_v33, 0.0  ;;  %v14637_v39 = vadd.f32 %v18812_v43, %v24381_v22  ;;  %v14472_v26 = vpop.f32.mrb[127].mxu1 }
 0x8ed   : > { %v14666_v49 = vmax.f32 %v14634_v20, 0.0  ;;  %v14635_v4 = vadd.f32 %v24381_v22, %v14472_v26 }
 0x8ee   : > { %v15783_v21 = vpack.c.bf16 %v14668_v15, %v14668_v15  ;;  %v14669_v48 = vmax.f32 %v14637_v39, 0.0 }
 0x8ef   : > { %v15781_v16 = vpack.c.bf16 %v14666_v49, %v14666_v49  ;;  %v14667_v10 = vmax.f32 %v14635_v4, 0.0 }
 0x8f0   : > { %14829 = vst.msk [vmem:[%s24390_s9 + $0x8] sm:$0xf] %vm14826_vm8, %v15783_v21  ;;  %v15784_v2 = vpack.c.bf16 %v14669_v48, %v14669_v48 }
 0x8f1   : > { %14827 = vst.msk [vmem:[%s24390_s9] sm:$0xf] %vm14826_vm8, %v15781_v16  ;;  %v15782_v12 = vpack.c.bf16 %v14667_v10, %v14667_v10  ;;  %v18815_v50 = vpop.f32.mrb[128].mxu1 }
 0x8f2   : > { %14830 = vst.msk [vmem:[%s24390_s9 + $0xc] sm:$0xf] %vm14826_vm8, %v15784_v2  ;;  %v14640_v32 = vadd.f32 %v18815_v50, %v24381_v22  ;;  %v14485_v61 = vpop.f32.mrb[129].mxu1 }
 0x8f3   : > { %14828 = vst.msk [vmem:[%s24390_s9 + $0x4] sm:$0xf] %vm14826_vm8, %v15782_v12  ;;  %v14638_v44 = vadd.f32 %v24381_v22, %v14485_v61  ;;  %v18816_v25 = vpop.f32.mrb[130].mxu1 }
 0x8f4   : > { %v14672_v40 = vmax.f32 %v14640_v32, 0.0  ;;  %v14641_v9 = vadd.f32 %v18816_v25, %v24381_v22  ;;  %v14488_v45 = vpop.f32.mrb[131].mxu1 }
 0x8f5   : > { %v14670_v6 = vmax.f32 %v14638_v44, 0.0  ;;  %v14639_v59 = vadd.f32 %v24381_v22, %v14488_v45 }
 0x8f6   : > { %v15787_v58 = vpack.c.bf16 %v14672_v40, %v14672_v40  ;;  %v14673_v17 = vmax.f32 %v14641_v9, 0.0 }
 0x8f7   : > { %v15785_v41 = vpack.c.bf16 %v14670_v6, %v14670_v6  ;;  %v14671_v37 = vmax.f32 %v14639_v59, 0.0 }
 0x8f8   : > { %14833 = vst.msk [vmem:[%s24390_s9 + $0x18] sm:$0xf] %vm14826_vm8, %v15787_v58  ;;  %v15788_v62 = vpack.c.bf16 %v14673_v17, %v14673_v17 }
 0x8f9   : > { %14831 = vst.msk [vmem:[%s24390_s9 + $0x10] sm:$0xf] %vm14826_vm8, %v15785_v41  ;;  %v15786_v7 = vpack.c.bf16 %v14671_v37, %v14671_v37  ;;  %v18819_v60 = vpop.f32.mrb[132].mxu1 }
 0x8fa   : > { %14834 = vst.msk [vmem:[%s24390_s9 + $0x1c] sm:$0xf] %vm14826_vm8, %v15788_v62  ;;  %v14644_v11 = vadd.f32 %v18819_v60, %v24381_v22  ;;  %v14501_v29 = vpop.f32.mrb[133].mxu1 }
 0x8fb   : > { %14832 = vst.msk [vmem:[%s24390_s9 + $0x14] sm:$0xf] %vm14826_vm8, %v15786_v7  ;;  %v14642_v57 = vadd.f32 %v24381_v22, %v14501_v29  ;;  %v18820_v34 = vpop.f32.mrb[134].mxu1 }
 0x8fc   : > { %v14676_v56 = vmax.f32 %v14644_v11, 0.0  ;;  %v14645_v0 = vadd.f32 %v18820_v34, %v24381_v22  ;;  %v14504_v5 = vpop.f32.mrb[135].mxu1 }
 0x8fd   : > { %v14674_v28 = vmax.f32 %v14642_v57, 0.0  ;;  %v14643_v35 = vadd.f32 %v24381_v22, %v14504_v5 }
 0x8fe   : > { %v15791_v42 = vpack.c.bf16 %v14676_v56, %v14676_v56  ;;  %v14677_v3 = vmax.f32 %v14645_v0, 0.0 }
 0x8ff   : > { %v15789_v19 = vpack.c.bf16 %v14674_v28, %v14674_v28  ;;  %v14675_v30 = vmax.f32 %v14643_v35, 0.0 }
 0x900   : > { %14837 = vst.msk [vmem:[%s24390_s9 + $0x28] sm:$0xf] %vm14826_vm8, %v15791_v42  ;;  %v15792_v18 = vpack.c.bf16 %v14677_v3, %v14677_v3 }
 0x901   : > { %14835 = vst.msk [vmem:[%s24390_s9 + $0x20] sm:$0xf] %vm14826_vm8, %v15789_v19  ;;  %v15790_v27 = vpack.c.bf16 %v14675_v30, %v14675_v30  ;;  %v18823_v51 = vpop.f32.mrb[136].mxu1 }
 0x902   : > { %14838 = vst.msk [vmem:[%s24390_s9 + $0x2c] sm:$0xf] %vm14826_vm8, %v15792_v18  ;;  %v14648_v38 = vadd.f32 %v18823_v51, %v24381_v22  ;;  %v14517_v52 = vpop.f32.mrb[137].mxu1 }
 0x903   : > { %14836 = vst.msk [vmem:[%s24390_s9 + $0x24] sm:$0xf] %vm14826_vm8, %v15790_v27  ;;  %v14646_v63 = vadd.f32 %v24381_v22, %v14517_v52  ;;  %v18824_v23 = vpop.f32.mrb[138].mxu1 }
 0x904   : > { %v14680_v31 = vmax.f32 %v14648_v38, 0.0  ;;  %v14649_v1 = vadd.f32 %v18824_v23, %v24381_v22  ;;  %v14520_v54 = vpop.f32.mrb[139].mxu1 }
 0x905   : > { %v14678_v47 = vmax.f32 %v14646_v63, 0.0  ;;  %v14647_v14 = vadd.f32 %v24381_v22, %v14520_v54 }
 0x906   : > { %v15795_v13 = vpack.c.bf16 %v14680_v31, %v14680_v31  ;;  %v14681_v36 = vmax.f32 %v14649_v1, 0.0 }
 0x907   : > { %v15793_v55 = vpack.c.bf16 %v14678_v47, %v14678_v47  ;;  %v14679_v53 = vmax.f32 %v14647_v14, 0.0 }
 0x908   : > { %14841 = vst.msk [vmem:[%s24390_s9 + $0x38] sm:$0xf] %vm14826_vm8, %v15795_v13  ;;  %v15796_v8 = vpack.c.bf16 %v14681_v36, %v14681_v36 }
 0x909   : > { %14839 = vst.msk [vmem:[%s24390_s9 + $0x30] sm:$0xf] %vm14826_vm8, %v15793_v55  ;;  %v15794_v46 = vpack.c.bf16 %v14679_v53, %v14679_v53  ;;  %v18827_v33 = vpop.f32.mrb[140].mxu1 }
 0x90a   : > { %14842 = vst.msk [vmem:[%s24390_s9 + $0x3c] sm:$0xf] %vm14826_vm8, %v15796_v8  ;;  %v14652_v24 = vadd.f32 %v18827_v33, %v24381_v22  ;;  %v14533_v20 = vpop.f32.mrb[141].mxu1 }
 0x90b   : > { %14840 = vst.msk [vmem:[%s24390_s9 + $0x34] sm:$0xf] %vm14826_vm8, %v15794_v46  ;;  %v14650_v43 = vadd.f32 %v24381_v22, %v14533_v20  ;;  %v18828_v15 = vpop.f32.mrb[142].mxu1 }
 0x90c   : > { %v14684_v39 = vmax.f32 %v14652_v24, 0.0  ;;  %v14653_v26 = vadd.f32 %v18828_v15, %v24381_v22  ;;  %v14536_v49 = vpop.f32.mrb[143].mxu1 }
 0x90d   : > { %v14682_v4 = vmax.f32 %v14650_v43, 0.0  ;;  %v14651_v21 = vadd.f32 %v24381_v22, %v14536_v49 }
 0x90e   : > { %v15799_v48 = vpack.c.bf16 %v14684_v39, %v14684_v39  ;;  %v14685_v16 = vmax.f32 %v14653_v26, 0.0 }
 0x90f   : > { %v15797_v10 = vpack.c.bf16 %v14682_v4, %v14682_v4  ;;  %v14683_v2 = vmax.f32 %v14651_v21, 0.0 }
 0x910   : > { %14845 = vst.msk [vmem:[%s24390_s9 + $0x48] sm:$0xf] %vm14826_vm8, %v15799_v48  ;;  %v15800_v12 = vpack.c.bf16 %v14685_v16, %v14685_v16 }
 0x911   : > { %14843 = vst.msk [vmem:[%s24390_s9 + $0x40] sm:$0xf] %vm14826_vm8, %v15797_v10  ;;  %v15798_v50 = vpack.c.bf16 %v14683_v2, %v14683_v2  ;;  %v18831_v32 = vpop.f32.mrb[144].mxu1 }
 0x912   : > { %14846 = vst.msk [vmem:[%s24390_s9 + $0x4c] sm:$0xf] %vm14826_vm8, %v15800_v12  ;;  %v14656_v61 = vadd.f32 %v18831_v32, %v24381_v22  ;;  %v14549_v44 = vpop.f32.mrb[145].mxu1 }
 0x913   : > { %14844 = vst.msk [vmem:[%s24390_s9 + $0x44] sm:$0xf] %vm14826_vm8, %v15798_v50  ;;  %v14654_v25 = vadd.f32 %v24381_v22, %v14549_v44  ;;  %v18832_v40 = vpop.f32.mrb[146].mxu1 }
 0x914   : > { %v14688_v9 = vmax.f32 %v14656_v61, 0.0  ;;  %v14657_v45 = vadd.f32 %v18832_v40, %v24381_v22  ;;  %v14552_v6 = vpop.f32.mrb[147].mxu1 }
 0x915   : > { %v14686_v59 = vmax.f32 %v14654_v25, 0.0  ;;  %v14655_v58 = vadd.f32 %v24381_v22, %v14552_v6 }
 0x916   : > { %v15803_v17 = vpack.c.bf16 %v14688_v9, %v14688_v9  ;;  %v14689_v41 = vmax.f32 %v14657_v45, 0.0 }
 0x917   : > { %v15801_v37 = vpack.c.bf16 %v14686_v59, %v14686_v59  ;;  %v14687_v62 = vmax.f32 %v14655_v58, 0.0 }
 0x918   : > { %14849 = vst.msk [vmem:[%s24390_s9 + $0x58] sm:$0xf] %vm14826_vm8, %v15803_v17  ;;  %v15804_v7 = vpack.c.bf16 %v14689_v41, %v14689_v41 }
 0x919   : > { %14847 = vst.msk [vmem:[%s24390_s9 + $0x50] sm:$0xf] %vm14826_vm8, %v15801_v37  ;;  %v15802_v60 = vpack.c.bf16 %v14687_v62, %v14687_v62  ;;  %v18835_v11 = vpop.f32.mrb[148].mxu1 }
 0x91a   : > { %14850 = vst.msk [vmem:[%s24390_s9 + $0x5c] sm:$0xf] %vm14826_vm8, %v15804_v7  ;;  %v14660_v29 = vadd.f32 %v18835_v11, %v24381_v22  ;;  %v14565_v57 = vpop.f32.mrb[149].mxu1 }
 0x91b   : > { %14848 = vst.msk [vmem:[%s24390_s9 + $0x54] sm:$0xf] %vm14826_vm8, %v15802_v60  ;;  %v14658_v34 = vadd.f32 %v24381_v22, %v14565_v57  ;;  %v18836_v56 = vpop.f32.mrb[150].mxu1 }
 0x91c   : > { %v14692_v0 = vmax.f32 %v14660_v29, 0.0  ;;  %v14661_v5 = vadd.f32 %v18836_v56, %v24381_v22  ;;  %v14568_v28 = vpop.f32.mrb[151].mxu1 }
 0x91d   : > { %v14690_v35 = vmax.f32 %v14658_v34, 0.0  ;;  %v14659_v42 = vadd.f32 %v24381_v22, %v14568_v28 }
 0x91e   : > { %v15807_v3 = vpack.c.bf16 %v14692_v0, %v14692_v0  ;;  %v14693_v19 = vmax.f32 %v14661_v5, 0.0 }
 0x91f   : > { %v15805_v30 = vpack.c.bf16 %v14690_v35, %v14690_v35  ;;  %v14691_v18 = vmax.f32 %v14659_v42, 0.0 }
 0x920   : > { %14853 = vst.msk [vmem:[%s24390_s9 + $0x68] sm:$0xf] %vm14826_vm8, %v15807_v3  ;;  %v15808_v27 = vpack.c.bf16 %v14693_v19, %v14693_v19 }
 0x921   : > { %14851 = vst.msk [vmem:[%s24390_s9 + $0x60] sm:$0xf] %vm14826_vm8, %v15805_v30  ;;  %v15806_v51 = vpack.c.bf16 %v14691_v18, %v14691_v18  ;;  %v18839_v38 = vpop.f32.mrb[152].mxu1 }
 0x922   : > { %14854 = vst.msk [vmem:[%s24390_s9 + $0x6c] sm:$0xf] %vm14826_vm8, %v15808_v27  ;;  %v14664_v52 = vadd.f32 %v18839_v38, %v24381_v22  ;;  %v14581_v63 = vpop.f32.mrb[153].mxu1 }
 0x923   : > { %14852 = vst.msk [vmem:[%s24390_s9 + $0x64] sm:$0xf] %vm14826_vm8, %v15806_v51  ;;  %v14662_v23 = vadd.f32 %v24381_v22, %v14581_v63  ;;  %v18840_v31 = vpop.f32.mrb[154].mxu1 }
 0x924   : > { %v14696_v1 = vmax.f32 %v14664_v52, 0.0  ;;  %v14665_v54 = vadd.f32 %v18840_v31, %v24381_v22  ;;  %v14584_v47 = vpop.f32.mrb[155].mxu1 }
 0x925   : > { %v14694_v14 = vmax.f32 %v14662_v23, 0.0  ;;  %v14663_v13 = vadd.f32 %v24381_v22, %v14584_v47 }
 0x926   : > { %v15811_v36 = vpack.c.bf16 %v14696_v1, %v14696_v1  ;;  %v14697_v55 = vmax.f32 %v14665_v54, 0.0 }
 0x927   : > { %v15809_v53 = vpack.c.bf16 %v14694_v14, %v14694_v14  ;;  %v14695_v8 = vmax.f32 %v14663_v13, 0.0 }
 0x928   : > { %14857 = vst.msk [vmem:[%s24390_s9 + $0x78] sm:$0xf] %vm14826_vm8, %v15811_v36  ;;  %v15812_v46 = vpack.c.bf16 %v14697_v55, %v14697_v55 }
 0x929   : > { %14855 = vst.msk [vmem:[%s24390_s9 + $0x70] sm:$0xf] %vm14826_vm8, %v15809_v53  ;;  %v15810_v33 = vpack.c.bf16 %v14695_v8, %v14695_v8 }
 0x92a   : > { %14858 = vst.msk [vmem:[%s24390_s9 + $0x7c] sm:$0xf] %vm14826_vm8, %v15812_v46 }
 0x92b   : > { %14856 = vst.msk [vmem:[%s24390_s9 + $0x74] sm:$0xf] %vm14826_vm8, %v15810_v33 }
 0x92c PF: > { %s17_s24 = sadd.s32 1, %s20415_s24  }
 0x92d   : > { %p14_p4 = scmp.ge.s32.totalorder %s17_s24, 4  }
 0x92f   :  { %16 = sbr.rel (!%p14_p4) target bundleno = 1 (0x1), region = 78 }

</bundles_post_ra>
